<compile_context>
chip_gen: v5e
topology: v5e:2x2
jax: 0.10.0
libtpu: 0.0.40
codegen_flags: <defaults>
</compile_context>

<pallas_src>
import functools

import jax
import jax.numpy as jnp
from jax.experimental import pallas as pl
from jax.experimental.pallas import tpu as pltpu


def _round_up(v, m):
    return ((v + m - 1) // m) * m


def _oa_kernel(x_ref, w1_ref, b1_ref, w2_ref, b2_ref, w3_ref, b3_ref, idx_ref,
               *, topk):
    # x_ref: (TB, T, C) bf16; w*: bf16; b*: f32 (1, H)/(1, N); idx_ref: (TB, KP) i32.
    x = x_ref[...]                                   # whole block already in VMEM
    t = x.shape[1]

    # Mean pool over T: unrolled VPU adds with f32 accumulation (keeps the
    # 2 XLU units free for the top-k reductions below), constant multiply,
    # cast to bf16 for the MXU.
    acc = x[:, 0, :].astype(jnp.float32)
    for ti in range(1, t):
        acc = acc + x[:, ti, :].astype(jnp.float32)
    pooled = (acc * jnp.float32(1.0 / t)).astype(jnp.bfloat16)

    # 3-layer MLP on the MXU: bf16 operands, f32 accumulation.
    h1 = jnp.dot(pooled, w1_ref[...], preferred_element_type=jnp.float32)
    h1 = jnp.maximum(h1 + b1_ref[...], 0.0).astype(jnp.bfloat16)

    h2 = jnp.dot(h1, w2_ref[...], preferred_element_type=jnp.float32)
    h2 = jnp.maximum(h2 + b2_ref[...], 0.0).astype(jnp.bfloat16)

    logits = jnp.dot(h2, w3_ref[...], preferred_element_type=jnp.float32)
    logits = logits + b3_ref[...]                    # (TB, N) f32

    # sigmoid is monotonic -> top-k over logits == top-k over sigmoid(logits),
    # so the EUP transcendental is skipped entirely.

    # Fused top-k, ONE XLU reduction per selection:
    #   * map f32 bits to an order-preserving int32 key (VPU xor/select only),
    #   * clear the low idx_bits and OR in (mask - column_index),
    #   * a single max-reduce per iteration gives value AND index; the index is
    #     recovered arithmetically from the low bits (no second reduce).
    # Tie-break = lowest index; value comparison loses idx_bits low mantissa
    # bits (~2^-16 relative for N<=128), per the review's option (b).
    n = logits.shape[-1]
    idx_bits = max(1, (n - 1).bit_length())
    mask = (1 << idx_bits) - 1

    bits = pltpu.bitcast(logits, jnp.int32)
    okey = jnp.where(bits < 0, bits ^ jnp.int32(0x7FFFFFFF), bits)   # ordered key
    iota = jax.lax.broadcasted_iota(jnp.int32, logits.shape, 1)
    keys = (okey & jnp.int32(~mask)) | (jnp.int32(mask) - iota)      # (TB, N) i32

    neg_inf_key = jnp.int32(-(2 ** 31))              # below every valid packed key
    cols = []
    for _ in range(topk):                            # exactly topk selections
        best = jnp.max(keys, axis=-1, keepdims=True)                 # 1 XLU reduce
        cols.append(jnp.int32(mask) - (best & jnp.int32(mask)))      # (TB, 1) index
        keys = jnp.where(keys == best, neg_inf_key, keys)            # unique hit

    pad_cols = idx_ref.shape[1] - topk
    if pad_cols > 0:                                 # fill padded columns once
        cols.append(jnp.zeros((logits.shape[0], pad_cols), jnp.int32))

    # Single batched store of all index columns (1 store per block).
    idx_ref[...] = jnp.concatenate(cols, axis=-1)


def oa_candidate_sampler(x, params, topk=5):
    """x: (B, T, C) float32/bfloat16. Returns top-k OA indices per row, int32 (B, topk)."""
    B, T, C = x.shape
    w1, b1, w2, b2, w3, b3 = params
    H = w1.shape[1]
    N = w3.shape[1]

    # x is the only large per-block DMA: ship it as bf16 (halves HBM bytes);
    # the T-sum is accumulated in f32 inside the kernel.
    x = x.astype(jnp.bfloat16)

    # Batch tile: as large as possible (up to 512 rows) while keeping the grid
    # length >= 2 so dimension_semantics=("parallel",) can shard blocks across
    # both TensorCores on v7x. tb is not MXU-constrained (4x128^2 on v5e,
    # 2x256^2 on v6e/v7x); any multiple of 8 works.
    tb = max(8, min(512, _round_up(pl.cdiv(B, 2), 8)))
    b_pad = _round_up(B, tb)
    if b_pad != B:
        x = jnp.pad(x, ((0, b_pad - B), (0, 0), (0, 0)))
    n_blocks = b_pad // tb

    topk_pad = _round_up(max(topk, 1), 8)            # layout-friendly output width
    const2 = lambda i: (0, 0)                        # weights stay VMEM-resident

    idx = pl.pallas_call(
        functools.partial(_oa_kernel, topk=topk),
        out_shape=jax.ShapeDtypeStruct((b_pad, topk_pad), jnp.int32),
        grid=(n_blocks,),
        in_specs=[
            pl.BlockSpec((tb, T, C), lambda i: (i, 0, 0)),
            pl.BlockSpec((C, H), const2),
            pl.BlockSpec((1, H), const2),
            pl.BlockSpec((H, H), const2),
            pl.BlockSpec((1, H), const2),
            pl.BlockSpec((H, N), const2),
            pl.BlockSpec((1, N), const2),
        ],
        out_specs=pl.BlockSpec((tb, topk_pad), lambda i: (i, 0)),
        compiler_params=pltpu.CompilerParams(
            dimension_semantics=("parallel",)),
    )(x, w1, b1, w2, b2, w3, b3)

    return idx[:B, :topk]


def init_params(key, input_dim, hidden_dim, num_oas):
    """Deterministic synthetic parameters (torch-style uniform fan-in init).

    Weights are stored bf16 (MXU-native operands, halved DMA bytes); biases f32.
    """
    ks = jax.random.split(key, 6)

    def lin(kw, kb, fan_in, fan_out):
        bound = 1.0 / (fan_in ** 0.5)
        w = jax.random.uniform(kw, (fan_in, fan_out), jnp.float32, -bound, bound)
        b = jax.random.uniform(kb, (1, fan_out), jnp.float32, -bound, bound)
        return w.astype(jnp.bfloat16), b

    w1, b1 = lin(ks[0], ks[1], input_dim, hidden_dim)
    w2, b2 = lin(ks[2], ks[3], hidden_dim, hidden_dim)
    w3, b3 = lin(ks[4], ks[5], hidden_dim, num_oas)
    return (w1, b1, w2, b2, w3, b3)


if __name__ == "__main__":
    # Shapes consistent with the module's forward (B, T, C); B chosen so the
    # batch grid has 2 steps (exercises pipelining / both-TC sharding on v7x).
    B, T = 256, 8
    input_dim, hidden_dim, num_oas, topk = 128, 256, 128, 5

    key = jax.random.PRNGKey(0)
    kx, kp = jax.random.split(key)
    x = jax.random.normal(kx, (B, T, input_dim), jnp.float32)
    params = init_params(kp, input_dim, hidden_dim, num_oas)

    out = oa_candidate_sampler(x, params, topk=topk)
    out = jax.block_until_ready(out)

    # Pure-JAX reference (same bf16-input / bf16-operand / f32-accumulate numerics).
    w1, b1, w2, b2, w3, b3 = params
    xb = x.astype(jnp.bfloat16).astype(jnp.float32)
    pooled = jnp.mean(xb, axis=1).astype(jnp.bfloat16)
    h1 = jnp.maximum(jnp.dot(pooled, w1, preferred_element_type=jnp.float32) + b1, 0.0)
    h2 = jnp.maximum(jnp.dot(h1.astype(jnp.bfloat16), w2,
                             preferred_element_type=jnp.float32) + b2, 0.0)
    logits = jnp.dot(h2.astype(jnp.bfloat16), w3,
                     preferred_element_type=jnp.float32) + b3
    probs = jax.nn.sigmoid(logits)

    # Checks (set-style / tolerance-based: exact index parity is fragile under
    # near-ties + bf16 rounding + the packed-key low-mantissa truncation).
    assert out.shape == (B, topk) and out.dtype == jnp.int32
    assert bool(jnp.all((out >= 0) & (out < num_oas)))
    srt = jnp.sort(out, axis=-1)
    assert bool(jnp.all(srt[:, 1:] != srt[:, :-1]))           # distinct per row
    rows = jnp.arange(B)[:, None]
    kth = jnp.sort(probs, axis=-1)[:, -topk][:, None]         # k-th largest prob
    assert bool(jnp.all(probs[rows, out] >= kth - 1e-3))      # selections hit top-k

    print("KERNEL_OK")
</pallas_src>

<mosaic_0001>
module attributes {stable_mosaic.version = 11 : i64} {
  func.func @_oa_kernel(%arg0: i32, %arg1: memref<128x8x128xbf16, #tpu.memory_space<vmem>>, %arg2: memref<128x256xbf16, #tpu.memory_space<vmem>>, %arg3: memref<1x256xf32, #tpu.memory_space<vmem>>, %arg4: memref<256x256xbf16, #tpu.memory_space<vmem>>, %arg5: memref<1x256xf32, #tpu.memory_space<vmem>>, %arg6: memref<256x128xbf16, #tpu.memory_space<vmem>>, %arg7: memref<1x128xf32, #tpu.memory_space<vmem>>, %arg8: memref<128x8xi32, #tpu.memory_space<vmem>>) attributes {dimension_semantics = [#tpu.dimension_semantics<parallel>], iteration_bounds = array<i64: 2>, scalar_prefetch = 0 : i64, scratch_operands = 0 : i64, tpu.core_type = #tpu.core_type<tc>, window_params = [{transform_indices = @transform_0, window_bounds = array<i64: 128, 8, 128>}, {pipeline_mode = #tpu.pipeline_mode<synchronous>, transform_indices = @transform_1, window_bounds = array<i64: 128, 256>}, {pipeline_mode = #tpu.pipeline_mode<synchronous>, transform_indices = @transform_2, window_bounds = array<i64: 1, 256>}, {pipeline_mode = #tpu.pipeline_mode<synchronous>, transform_indices = @transform_3, window_bounds = array<i64: 256, 256>}, {pipeline_mode = #tpu.pipeline_mode<synchronous>, transform_indices = @transform_4, window_bounds = array<i64: 1, 256>}, {pipeline_mode = #tpu.pipeline_mode<synchronous>, transform_indices = @transform_5, window_bounds = array<i64: 256, 128>}, {pipeline_mode = #tpu.pipeline_mode<synchronous>, transform_indices = @transform_6, window_bounds = array<i64: 1, 128>}, {transform_indices = @transform_7, window_bounds = array<i64: 128, 8>}]} {
    %c0 = arith.constant 0 : index
    %c0_0 = arith.constant 0 : index
    %c0_1 = arith.constant 0 : index
    %0 = vector.load %arg1[%c0, %c0_0, %c0_1] : memref<128x8x128xbf16, #tpu.memory_space<vmem>>, vector<128x8x128xbf16>
    %1 = vector.extract_strided_slice %0 {offsets = [0, 0, 0], sizes = [128, 1, 128], strides = [1, 1, 1]} : vector<128x8x128xbf16> to vector<128x1x128xbf16>
    %2 = vector.shape_cast %1 : vector<128x1x128xbf16> to vector<128x128xbf16>
    %3 = arith.extf %2 : vector<128x128xbf16> to vector<128x128xf32>
    %4 = vector.extract_strided_slice %0 {offsets = [0, 1, 0], sizes = [128, 1, 128], strides = [1, 1, 1]} : vector<128x8x128xbf16> to vector<128x1x128xbf16>
    %5 = vector.shape_cast %4 : vector<128x1x128xbf16> to vector<128x128xbf16>
    %6 = arith.extf %5 : vector<128x128xbf16> to vector<128x128xf32>
    %7 = arith.addf %3, %6 : vector<128x128xf32>
    %8 = vector.extract_strided_slice %0 {offsets = [0, 2, 0], sizes = [128, 1, 128], strides = [1, 1, 1]} : vector<128x8x128xbf16> to vector<128x1x128xbf16>
    %9 = vector.shape_cast %8 : vector<128x1x128xbf16> to vector<128x128xbf16>
    %10 = arith.extf %9 : vector<128x128xbf16> to vector<128x128xf32>
    %11 = arith.addf %7, %10 : vector<128x128xf32>
    %12 = vector.extract_strided_slice %0 {offsets = [0, 3, 0], sizes = [128, 1, 128], strides = [1, 1, 1]} : vector<128x8x128xbf16> to vector<128x1x128xbf16>
    %13 = vector.shape_cast %12 : vector<128x1x128xbf16> to vector<128x128xbf16>
    %14 = arith.extf %13 : vector<128x128xbf16> to vector<128x128xf32>
    %15 = arith.addf %11, %14 : vector<128x128xf32>
    %16 = vector.extract_strided_slice %0 {offsets = [0, 4, 0], sizes = [128, 1, 128], strides = [1, 1, 1]} : vector<128x8x128xbf16> to vector<128x1x128xbf16>
    %17 = vector.shape_cast %16 : vector<128x1x128xbf16> to vector<128x128xbf16>
    %18 = arith.extf %17 : vector<128x128xbf16> to vector<128x128xf32>
    %19 = arith.addf %15, %18 : vector<128x128xf32>
    %20 = vector.extract_strided_slice %0 {offsets = [0, 5, 0], sizes = [128, 1, 128], strides = [1, 1, 1]} : vector<128x8x128xbf16> to vector<128x1x128xbf16>
    %21 = vector.shape_cast %20 : vector<128x1x128xbf16> to vector<128x128xbf16>
    %22 = arith.extf %21 : vector<128x128xbf16> to vector<128x128xf32>
    %23 = arith.addf %19, %22 : vector<128x128xf32>
    %24 = vector.extract_strided_slice %0 {offsets = [0, 6, 0], sizes = [128, 1, 128], strides = [1, 1, 1]} : vector<128x8x128xbf16> to vector<128x1x128xbf16>
    %25 = vector.shape_cast %24 : vector<128x1x128xbf16> to vector<128x128xbf16>
    %26 = arith.extf %25 : vector<128x128xbf16> to vector<128x128xf32>
    %27 = arith.addf %23, %26 : vector<128x128xf32>
    %28 = vector.extract_strided_slice %0 {offsets = [0, 7, 0], sizes = [128, 1, 128], strides = [1, 1, 1]} : vector<128x8x128xbf16> to vector<128x1x128xbf16>
    %29 = vector.shape_cast %28 : vector<128x1x128xbf16> to vector<128x128xbf16>
    %30 = arith.extf %29 : vector<128x128xbf16> to vector<128x128xf32>
    %31 = arith.addf %27, %30 : vector<128x128xf32>
    %cst = arith.constant 1.250000e-01 : f32
    %32 = vector.broadcast %cst : f32 to vector<128x128xf32>
    %33 = arith.mulf %31, %32 : vector<128x128xf32>
    %34 = arith.truncf %33 : vector<128x128xf32> to vector<128x128xbf16>
    %c0_2 = arith.constant 0 : index
    %c0_3 = arith.constant 0 : index
    %35 = vector.load %arg2[%c0_2, %c0_3] : memref<128x256xbf16, #tpu.memory_space<vmem>>, vector<128x256xbf16>
    %cst_4 = arith.constant dense<0.000000e+00> : vector<128x256xf32>
    %36 = tpu.matmul %34, %35, %cst_4 {dimension_numbers = #tpu.dot_dimension_numbers<[1], [0], [0], [1], [0, 0, 1, 1], [], []>} : vector<128x128xbf16>, vector<128x256xbf16>, vector<128x256xf32> -> vector<128x256xf32>
    %c0_5 = arith.constant 0 : index
    %c0_6 = arith.constant 0 : index
    %37 = vector.load %arg3[%c0_5, %c0_6] : memref<1x256xf32, #tpu.memory_space<vmem>>, vector<1x256xf32>
    %38 = vector.broadcast %37 : vector<1x256xf32> to vector<128x256xf32>
    %39 = arith.addf %36, %38 : vector<128x256xf32>
    %cst_7 = arith.constant 0.000000e+00 : f32
    %40 = vector.broadcast %cst_7 : f32 to vector<128x256xf32>
    %41 = arith.maximumf %39, %40 : vector<128x256xf32>
    %42 = arith.truncf %41 : vector<128x256xf32> to vector<128x256xbf16>
    %c0_8 = arith.constant 0 : index
    %c0_9 = arith.constant 0 : index
    %43 = vector.load %arg4[%c0_8, %c0_9] : memref<256x256xbf16, #tpu.memory_space<vmem>>, vector<256x256xbf16>
    %cst_10 = arith.constant dense<0.000000e+00> : vector<128x256xf32>
    %44 = tpu.matmul %42, %43, %cst_10 {dimension_numbers = #tpu.dot_dimension_numbers<[1], [0], [0], [1], [0, 0, 1, 1], [], []>} : vector<128x256xbf16>, vector<256x256xbf16>, vector<128x256xf32> -> vector<128x256xf32>
    %c0_11 = arith.constant 0 : index
    %c0_12 = arith.constant 0 : index
    %45 = vector.load %arg5[%c0_11, %c0_12] : memref<1x256xf32, #tpu.memory_space<vmem>>, vector<1x256xf32>
    %46 = vector.broadcast %45 : vector<1x256xf32> to vector<128x256xf32>
    %47 = arith.addf %44, %46 : vector<128x256xf32>
    %cst_13 = arith.constant 0.000000e+00 : f32
    %48 = vector.broadcast %cst_13 : f32 to vector<128x256xf32>
    %49 = arith.maximumf %47, %48 : vector<128x256xf32>
    %50 = arith.truncf %49 : vector<128x256xf32> to vector<128x256xbf16>
    %c0_14 = arith.constant 0 : index
    %c0_15 = arith.constant 0 : index
    %51 = vector.load %arg6[%c0_14, %c0_15] : memref<256x128xbf16, #tpu.memory_space<vmem>>, vector<256x128xbf16>
    %cst_16 = arith.constant dense<0.000000e+00> : vector<128x128xf32>
    %52 = tpu.matmul %50, %51, %cst_16 {dimension_numbers = #tpu.dot_dimension_numbers<[1], [0], [0], [1], [0, 0, 1, 1], [], []>} : vector<128x256xbf16>, vector<256x128xbf16>, vector<128x128xf32> -> vector<128x128xf32>
    %c0_17 = arith.constant 0 : index
    %c0_18 = arith.constant 0 : index
    %53 = vector.load %arg7[%c0_17, %c0_18] : memref<1x128xf32, #tpu.memory_space<vmem>>, vector<1x128xf32>
    %54 = vector.broadcast %53 : vector<1x128xf32> to vector<128x128xf32>
    %55 = arith.addf %52, %54 : vector<128x128xf32>
    %56 = tpu.bitcast %55 : vector<128x128xf32> -> vector<128x128xi32>
    %c0_i32 = arith.constant 0 : i32
    %57 = vector.broadcast %c0_i32 : i32 to vector<128x128xi32>
    %58 = arith.cmpi slt, %56, %57 : vector<128x128xi32>
    %c2147483647_i32 = arith.constant 2147483647 : i32
    %59 = vector.broadcast %c2147483647_i32 : i32 to vector<128x128xi32>
    %60 = arith.xori %56, %59 : vector<128x128xi32>
    %61 = arith.select %58, %60, %56 : vector<128x128xi1>, vector<128x128xi32>
    %62 = tpu.iota {dimensions = array<i32: 1>} : vector<128x128xi32>
    %c-128_i32 = arith.constant -128 : i32
    %63 = vector.broadcast %c-128_i32 : i32 to vector<128x128xi32>
    %64 = arith.andi %61, %63 : vector<128x128xi32>
    %c127_i32 = arith.constant 127 : i32
    %65 = vector.broadcast %c127_i32 : i32 to vector<128x128xi32>
    %66 = arith.subi %65, %62 : vector<128x128xi32>
    %67 = arith.ori %64, %66 : vector<128x128xi32>
    %cst_19 = arith.constant dense<-2147483648> : vector<128xi32>
    %68 = vector.multi_reduction <maxsi>, %67, %cst_19 [1] : vector<128x128xi32> to vector<128xi32>
    %69 = vector.shape_cast %68 : vector<128xi32> to vector<128x1xi32>
    %c127_i32_20 = arith.constant 127 : i32
    %70 = vector.broadcast %c127_i32_20 : i32 to vector<128x1xi32>
    %71 = arith.andi %69, %70 : vector<128x1xi32>
    %c127_i32_21 = arith.constant 127 : i32
    %72 = vector.broadcast %c127_i32_21 : i32 to vector<128x1xi32>
    %73 = arith.subi %72, %71 : vector<128x1xi32>
    %74 = vector.broadcast %69 : vector<128x1xi32> to vector<128x128xi32>
    %75 = arith.cmpi eq, %67, %74 : vector<128x128xi32>
    %c-2147483648_i32 = arith.constant -2147483648 : i32
    %76 = vector.broadcast %c-2147483648_i32 : i32 to vector<128x128xi32>
    %77 = arith.select %75, %76, %67 : vector<128x128xi1>, vector<128x128xi32>
    %cst_22 = arith.constant dense<-2147483648> : vector<128xi32>
    %78 = vector.multi_reduction <maxsi>, %77, %cst_22 [1] : vector<128x128xi32> to vector<128xi32>
    %79 = vector.shape_cast %78 : vector<128xi32> to vector<128x1xi32>
    %c127_i32_23 = arith.constant 127 : i32
    %80 = vector.broadcast %c127_i32_23 : i32 to vector<128x1xi32>
    %81 = arith.andi %79, %80 : vector<128x1xi32>
    %c127_i32_24 = arith.constant 127 : i32
    %82 = vector.broadcast %c127_i32_24 : i32 to vector<128x1xi32>
    %83 = arith.subi %82, %81 : vector<128x1xi32>
    %84 = vector.broadcast %79 : vector<128x1xi32> to vector<128x128xi32>
    %85 = arith.cmpi eq, %77, %84 : vector<128x128xi32>
    %c-2147483648_i32_25 = arith.constant -2147483648 : i32
    %86 = vector.broadcast %c-2147483648_i32_25 : i32 to vector<128x128xi32>
    %87 = arith.select %85, %86, %77 : vector<128x128xi1>, vector<128x128xi32>
    %cst_26 = arith.constant dense<-2147483648> : vector<128xi32>
    %88 = vector.multi_reduction <maxsi>, %87, %cst_26 [1] : vector<128x128xi32> to vector<128xi32>
    %89 = vector.shape_cast %88 : vector<128xi32> to vector<128x1xi32>
    %c127_i32_27 = arith.constant 127 : i32
    %90 = vector.broadcast %c127_i32_27 : i32 to vector<128x1xi32>
    %91 = arith.andi %89, %90 : vector<128x1xi32>
    %c127_i32_28 = arith.constant 127 : i32
    %92 = vector.broadcast %c127_i32_28 : i32 to vector<128x1xi32>
    %93 = arith.subi %92, %91 : vector<128x1xi32>
    %94 = vector.broadcast %89 : vector<128x1xi32> to vector<128x128xi32>
    %95 = arith.cmpi eq, %87, %94 : vector<128x128xi32>
    %c-2147483648_i32_29 = arith.constant -2147483648 : i32
    %96 = vector.broadcast %c-2147483648_i32_29 : i32 to vector<128x128xi32>
    %97 = arith.select %95, %96, %87 : vector<128x128xi1>, vector<128x128xi32>
    %cst_30 = arith.constant dense<-2147483648> : vector<128xi32>
    %98 = vector.multi_reduction <maxsi>, %97, %cst_30 [1] : vector<128x128xi32> to vector<128xi32>
    %99 = vector.shape_cast %98 : vector<128xi32> to vector<128x1xi32>
    %c127_i32_31 = arith.constant 127 : i32
    %100 = vector.broadcast %c127_i32_31 : i32 to vector<128x1xi32>
    %101 = arith.andi %99, %100 : vector<128x1xi32>
    %c127_i32_32 = arith.constant 127 : i32
    %102 = vector.broadcast %c127_i32_32 : i32 to vector<128x1xi32>
    %103 = arith.subi %102, %101 : vector<128x1xi32>
    %104 = vector.broadcast %99 : vector<128x1xi32> to vector<128x128xi32>
    %105 = arith.cmpi eq, %97, %104 : vector<128x128xi32>
    %c-2147483648_i32_33 = arith.constant -2147483648 : i32
    %106 = vector.broadcast %c-2147483648_i32_33 : i32 to vector<128x128xi32>
    %107 = arith.select %105, %106, %97 : vector<128x128xi1>, vector<128x128xi32>
    %cst_34 = arith.constant dense<-2147483648> : vector<128xi32>
    %108 = vector.multi_reduction <maxsi>, %107, %cst_34 [1] : vector<128x128xi32> to vector<128xi32>
    %109 = vector.shape_cast %108 : vector<128xi32> to vector<128x1xi32>
    %c127_i32_35 = arith.constant 127 : i32
    %110 = vector.broadcast %c127_i32_35 : i32 to vector<128x1xi32>
    %111 = arith.andi %109, %110 : vector<128x1xi32>
    %c127_i32_36 = arith.constant 127 : i32
    %112 = vector.broadcast %c127_i32_36 : i32 to vector<128x1xi32>
    %113 = arith.subi %112, %111 : vector<128x1xi32>
    %c0_i32_37 = arith.constant 0 : i32
    %114 = vector.broadcast %c0_i32_37 : i32 to vector<128x3xi32>
    %115 = tpu.concatenate %73, %83, %93, %103, %113, %114 in 1 : vector<128x1xi32>, vector<128x1xi32>, vector<128x1xi32>, vector<128x1xi32>, vector<128x1xi32>, vector<128x3xi32> -> vector<128x8xi32>
    %c0_38 = arith.constant 0 : index
    %c0_39 = arith.constant 0 : index
    %116 = vector.load %arg8[%c0_38, %c0_39] : memref<128x8xi32, #tpu.memory_space<vmem>>, vector<128x8xi32>
    tpu.vector_store %arg8[%c0_38, %c0_39], %115 {strides = array<i32>} : memref<128x8xi32, #tpu.memory_space<vmem>>, vector<128x8xi32>,
    return
  }
  func.func @transform_0(%arg0: i32) -> (i32, i32, i32) {
    %c0_i32 = arith.constant 0 : i32
    %c0_i32_0 = arith.constant 0 : i32
    %c0_i32_1 = arith.constant 0 : i32
    return %arg0, %c0_i32, %c0_i32_0 : i32, i32, i32
  }
  func.func @transform_1(%arg0: i32) -> (i32, i32) {
    %c0_i32 = arith.constant 0 : i32
    %c0_i32_0 = arith.constant 0 : i32
    %c0_i32_1 = arith.constant 0 : i32
    return %c0_i32, %c0_i32_0 : i32, i32
  }
  func.func @transform_2(%arg0: i32) -> (i32, i32) {
    %c0_i32 = arith.constant 0 : i32
    %c0_i32_0 = arith.constant 0 : i32
    %c0_i32_1 = arith.constant 0 : i32
    return %c0_i32, %c0_i32_0 : i32, i32
  }
  func.func @transform_3(%arg0: i32) -> (i32, i32) {
    %c0_i32 = arith.constant 0 : i32
    %c0_i32_0 = arith.constant 0 : i32
    %c0_i32_1 = arith.constant 0 : i32
    return %c0_i32, %c0_i32_0 : i32, i32
  }
  func.func @transform_4(%arg0: i32) -> (i32, i32) {
    %c0_i32 = arith.constant 0 : i32
    %c0_i32_0 = arith.constant 0 : i32
    %c0_i32_1 = arith.constant 0 : i32
    return %c0_i32, %c0_i32_0 : i32, i32
  }
  func.func @transform_5(%arg0: i32) -> (i32, i32) {
    %c0_i32 = arith.constant 0 : i32
    %c0_i32_0 = arith.constant 0 : i32
    %c0_i32_1 = arith.constant 0 : i32
    return %c0_i32, %c0_i32_0 : i32, i32
  }
  func.func @transform_6(%arg0: i32) -> (i32, i32) {
    %c0_i32 = arith.constant 0 : i32
    %c0_i32_0 = arith.constant 0 : i32
    %c0_i32_1 = arith.constant 0 : i32
    return %c0_i32, %c0_i32_0 : i32, i32
  }
  func.func @transform_7(%arg0: i32) -> (i32, i32) {
    %c0_i32 = arith.constant 0 : i32
    %c0_i32_0 = arith.constant 0 : i32
    return %arg0, %c0_i32 : i32, i32
  }
}

</mosaic_0001>

<bundles_post_ra>
// kernel: tpu_custom_call.1
= control target key start
LH: loop header
LB: loop body
LE: loop exit
PB: predicated region body
PF: predicated region fallthrough
CT: control target
= control target key end

     0   :  { %12 = vsyncpa [#allocation3], 0  ;;  %s11029_s0 = inlined_call_operand.hbm [shape: bf16[256,8,128], index: 0, kind: input, shape index: {}]   ;;  %s11030_s1 = inlined_call_operand.hbm [shape: bf16[128,256], index: 1, kind: input, shape index: {}]   ;;  %s11031_s2 = inlined_call_operand.hbm [shape: f32[1,256], index: 2, kind: input, shape index: {}]   ;;  %s11032_s3 = inlined_call_operand.hbm [shape: bf16[256,256], index: 3, kind: input, shape index: {}]   ;;  %s11033_s4 = inlined_call_operand.vmem [shape: f32[1,256], index: 4, kind: input, shape index: {}]   ;;  %s11034_s5 = inlined_call_operand.hbm [shape: bf16[256,128], index: 5, kind: input, shape index: {}]   ;;  %s11035_s6 = inlined_call_operand.vmem [shape: f32[1,128], index: 6, kind: input, shape index: {}]   ;;  %s11036_s7 = inlined_call_operand.vmem [shape: s32[256,8], index: 7, kind: output, shape index: {}]  }
   0x1   :  { %14 = vsyncpa [#allocation3 + $0x1], 0 }
   0x2   :  { %15 = vsyncpa [#allocation5], 0 }
   0x3   :  { %16 = vsyncpa [#allocation8], 0  ;;  %s7820_s24 = smov 0   ;;  %s7822_s25 = smov 0  }
   0x4   :  { %s7824_s26 = smov 0   ;;  %s7826_s27 = smov 0  }
   0x5 LB: > { %s11037_s28 = sadd.s32 4294967295, %s7770_s27   ;;  %p42_p0 = scmp.ne.s32.totalorder %s7762_s25, %s7758_s24  ;;  %s7770_s27 = sphi %s7826_s27, %s11192_s27   ;;  %s7766_s26 = sphi %s7824_s26, %s11191_s26   ;;  %s7762_s25 = sphi %s7822_s25, %s11190_s25   ;;  %s7758_s24 = sphi %s7820_s24, %s11189_s24  }
   0x6   : > { %p7842_p1 = scmp.eq.s32.totalorder %s11037_s28, 0  ;;  %p6834_p2 = scmp.ge.s32.totalorder %s7770_s27, 1 }
   0x7   : > { %p205_p3 = scmp.lt.s32.totalorder %s7770_s27, 3  ;;  %s216_s10 = sshll.u32 %s11030_s1, 4  ;;  %s217_s10 = int_to_ptr.hbm [resolvable:$true] %s216_s10 }
   0x8   : > { %p7850_p4 = por %p7842_p1, %p42_p0  ;;  %s7772_s12 = smov [#allocation4]  }
   0x9   : > { %p7857_p5 = pnand %p6834_p2, %p205_p3  ;;  %s218_s13 = sshll.u32 %s7772_s12, 4  ;;  %s219_s13 = int_to_ptr.vmem [resolvable:$true] %s218_s13 }
   0xa   : > { %s242_s17 = sshll.u32 %s11032_s3, 4  ;;  %s7773_s18 = smov 128   ;;  %s243_s17 = int_to_ptr.hbm [resolvable:$true] %s242_s17 }
   0xb   : > { %p7511_p6 = pneg %p7857_p5  ;;  %s7774_s19 = smov 8  }
   0xc   : > { %s7775_s20 = smov [#allocation7]   ;;  %s231_s24 = sshll.u32 %s11031_s2, 4  ;;  %s232_s24 = int_to_ptr.hbm [resolvable:$true] %s231_s24 }
   0xd   : > { %p7865_p7 = pnand %p7511_p6, %p7842_p1  ;;  %s244_s21 = sshll.u32 %s7775_s20, 4  ;;  %s245_s21 = int_to_ptr.vmem [resolvable:$true] %s244_s21 }
   0xe   : > { %s259_s12 = sshll.u32 %s11034_s5, 4  ;;  %s7777_s15 = smov [#allocation9]   ;;  %s260_s12 = int_to_ptr.hbm [resolvable:$true] %s259_s12 }
   0xf   : > { %7514 = dma.hbm_to_vmem [thread:$0]  (!%p7865_p7), %s217_s10, 2048, %s219_s13, [#allocation5], %s7773_s18, %s7773_s18, %s7774_s19  }
  0x10   : > { %7520 = dma.hbm_to_vmem [thread:$0]  (!%p7865_p7), %s243_s17, 4096, %s245_s21, [#allocation8], %s7773_s18, %s7773_s18, %s7774_s19  }
  0x11   : > { %s7776_s10 = smov [#allocation6]   ;;  %s261_s16 = sshll.u32 %s7777_s15, 4  ;;  %s262_s16 = int_to_ptr.vmem [resolvable:$true] %s261_s16 }
  0x12   : > { %s233_s13 = sshll.u32 %s7776_s10, 4  ;;  %s7778_s17 = smov 64   ;;  %s234_s13 = int_to_ptr.vmem [resolvable:$true] %s233_s13 }
  0x13   : > { %7517 = dma.hbm_to_vmem [thread:$0]  (!%p7865_p7), %s232_s24, 32, %s234_s13, [#allocation5]  }
  0x14   : > { %s7779_s18 = smov 4   ;;  %s7890_s19 = sadd.s32 1, %s7770_s27  }
  0x15   : > { %7523 = dma.hbm_to_vmem [thread:$0]  (!%p7865_p7), %s260_s12, 2048, %s262_s16, [#allocation8], %s7778_s17, %s7778_s17, %s7779_s18  }
  0x16   : > { %s26_s20 = ssub.s32 %s7770_s27, %s7890_s19  ;;  %s29_s21 = sadd.s32 1, %s7766_s26 }
  0x17   : > { %p27_p8 = scmp.eq.s32.totalorder %s26_s20, 0  ;;  %p36_p9 = scmp.ne.s32.totalorder %s7766_s26, %s7762_s25 }
  0x18   : > { %p37_p10 = scmp.eq.s32.totalorder %s7770_s27, 0  ;;  %s278_s23 = sand.u32 1, %s7766_s26  }
  0x19   : > { %s7899_s22 = scalar_select %p27_p8, %s7766_s26, %s29_s21  }
  0x1a   : > { %p38_p11 = por %p37_p10, %p36_p9  ;;  %s7109_s24 = sshll.u32 %s7770_s27, 9 }
  0x1b   : > { %p7532_p12 = scmp.lt.s32.totalorder %s7770_s27, 2  ;;  %s6840_s8 = sshll.u32 %s278_s23, 9 }
  0x1c   : > { %s287_s10 = scalar_lea.hbm %s11029_s0, %s7109_s24  ;;  %s282_s13 = scalar_lea.vmem [#allocation2], %s6840_s8 }
  0x1d   : > { %s288_s12 = sshll.u32 %s287_s10, 4  ;;  %s290_s15 = sshll.u32 %s282_s13, 4  ;;  %s289_s12 = int_to_ptr.hbm [resolvable:$true] %s288_s12  ;;  %s291_s15 = int_to_ptr.vmem [resolvable:$true] %s290_s15 }
  0x1e   : > { %p7907_p13 = pnand %p7532_p12, %p38_p11  ;;  %s279_s20 = scalar_lea.sflag [#allocation3], %s278_s23 }
  0x1f   : > { %s7698_s21 = sshra.s32 %s289_s12, 4  ;;  %s7705_s8 = scalar_lea.hbm %s11029_s0, 1024  ;;  %s7699_s21 = int_to_ptr.hbm [resolvable:$true] %s7698_s21 }
  0x20   : > { %s7700_s28 = scalar_lea.hbm %s7699_s21, 512  ;;  %p7702_p2 = pneg %p7907_p13 }
  0x21   : > { %p7701_p0 = scmp.ne.s32.totalorder %s7699_s21, %s7700_s28  ;;  %p7706_p7 = scmp.lt.s32.totalorder %s7699_s21, %s11029_s0 }
  0x22   : > { %p7707_p8 = scmp.lt.s32.totalorder %s7705_s8, %s7700_s28 }
  0x23   : > { %p7703_p3 = pnand %p7702_p2, %p7701_p0 }
  0x24   : > { %p7708_p9 = por %p7707_p8, %p7706_p7 }
  0x25   : > { %p7704_p6 = pneg %p7703_p3 }
  0x27   : > { %p7709_p10 = pnand %p7708_p9, %p7704_p6 }
  0x29   : > { %7712 = shalt.err (!%p7709_p10)
}
  0x2a   : > { %7527 = dma.hbm_to_vmem [thread:$0]  (!%p7907_p13), %s289_s12, 8192, %s291_s15, %s279_s20, %s7778_s17, %s7778_s17, %s7779_s18  }
  0x2b   : > { %302 = sbr.rel (%p7857_p5) target bundleno = 2384 (0x950), region = 48 }
  0x30   : > { %s304_s23 = sand.u32 1, %s7762_s25  }
  0x31   : > { %s6844_s13 = sshll.u32 %s304_s23, 9  ;;  %s305_s24 = scalar_lea.sflag [#allocation3], %s304_s23 }
  0x32   : > { %s7927_s14 = scalar_lea.vmem [#allocation2], %s6844_s13 }
  0x33   : > { %7745 = dma.done.wait (%p7850_p4), %s305_s24, 8192  }
  0x34   : > { %7747 = vsyncadd (%p7850_p4), %s305_s24, 4294959104 }
  0x35   : > { %7749 = dma.done.wait (%p7842_p1), [#allocation5], 2080  }
  0x36   : > { %7751 = vsyncadd (%p7842_p1), [#allocation5], 4294965216 }
  0x37   : > { %7753 = dma.done.wait (%p7842_p1), [#allocation8], 6144  }
  0x38   : > { %7755 = vsyncadd (%p7842_p1), [#allocation8], 4294961152  ;;  %v6909_v0 = vld [vmem:[#allocation4 + $0x70] sm:$0xf]  ;;  %v7125_v1 = vld [vmem:[#allocation4 + $0x74] sm:$0xf0] }
  0x39   : > { %v7124_v2 = vld [vmem:[#allocation4 + $0x74] sm:$0xf]  ;;  %v6910_v3 = vor.u32 %v7125_v1, %v6909_v0  ;;  %v6911_v4 = vld [vmem:[#allocation4 + $0x78] sm:$0xf0]  ;;  %v6901_v5 = vld [vmem:[#allocation4 + $0x60] sm:$0xf] }
  0x3a   : > { %v7123_v6 = vld [vmem:[#allocation4 + $0x64] sm:$0xf0]  ;;  %v6914_v7 = vor.u32 %v7124_v2, %v6911_v4  ;;  %v7122_v8 = vld [vmem:[#allocation4 + $0x64] sm:$0xf]  ;;  %v6903_v9 = vld [vmem:[#allocation4 + $0x68] sm:$0xf0] }
  0x3b   : > { %v6893_v10 = vld [vmem:[#allocation4 + $0x50] sm:$0xf]  ;;  %4300 = vmatpush.bf16.msra.mxu0 %v6910_v3  ;;  %v6902_v11 = vor.u32 %v7123_v6, %v6901_v5  ;;  %v7121_v12 = vld [vmem:[#allocation4 + $0x54] sm:$0xf0]  ;;  %v7120_v13 = vld [vmem:[#allocation4 + $0x54] sm:$0xf]  ;;  %v6906_v15 = vor.u32 %v7122_v8, %v6903_v9 }
  0x3c   : > { %v6895_v14 = vld [vmem:[#allocation4 + $0x58] sm:$0xf0]  ;;  %4349 = vmatpush.bf16.msra.mxu1 %v6914_v7  ;;  %v6885_v16 = vld [vmem:[#allocation4 + $0x40] sm:$0xf]  ;;  %v7119_v17 = vld [vmem:[#allocation4 + $0x44] sm:$0xf0]  ;;  %v6894_v25 = vor.u32 %v7121_v12, %v6893_v10 }
  0x3d   : > { %v7118_v18 = vld [vmem:[#allocation4 + $0x44] sm:$0xf]  ;;  %v6887_v19 = vld [vmem:[#allocation4 + $0x48] sm:$0xf0]  ;;  %v7941_v20 = vld [vmem:[#allocation4 + $0x30] sm:$0xf]  ;;  %v6898_v29 = vor.u32 %v7120_v13, %v6895_v14  ;;  %v6886_v33 = vor.u32 %v7119_v17, %v6885_v16 }
  0x3e   : > { %v7943_v21 = vld [vmem:[#allocation4 + $0x34] sm:$0xf0]  ;;  %v7945_v22 = vld [vmem:[#allocation4 + $0x34] sm:$0xf]  ;;  %v7947_v23 = vld [vmem:[#allocation4 + $0x38] sm:$0xf0]  ;;  %v6890_v34 = vor.u32 %v7118_v18, %v6887_v19 }
  0x3f   : > { %v7949_v24 = vld [vmem:[#allocation4 + $0x20] sm:$0xf]  ;;  %4301 = vmatpush.bf16.msra.mxu0 %v6902_v11  ;;  %v7951_v26 = vld [vmem:[#allocation4 + $0x24] sm:$0xf0]  ;;  %v7953_v27 = vld [vmem:[#allocation4 + $0x24] sm:$0xf]  ;;  %v6878_v35 = vor.u32 %v7943_v21, %v7941_v20  ;;  %v6882_v36 = vor.u32 %v7945_v22, %v7947_v23 }
  0x40   : > { %v7955_v28 = vld [vmem:[#allocation4 + $0x28] sm:$0xf0]  ;;  %4350 = vmatpush.bf16.msra.mxu1 %v6906_v15  ;;  %v7957_v30 = vld [vmem:[#allocation4 + $0x10] sm:$0xf]  ;;  %v7959_v31 = vld [vmem:[#allocation4 + $0x14] sm:$0xf0]  ;;  %v6870_v40 = vor.u32 %v7951_v26, %v7949_v24 }
  0x41   : > { %v7961_v32 = vld [vmem:[#allocation4 + $0x14] sm:$0xf]  ;;  %v7967_v37 = vld [vmem:[#allocation4 + $0x18] sm:$0xf0]  ;;  %v7969_v38 = vld [vmem:[#allocation4] sm:$0xf]  ;;  %v6874_v41 = vor.u32 %v7953_v27, %v7955_v28  ;;  %v6862_v42 = vor.u32 %v7959_v31, %v7957_v30 }
  0x42   : > { %v7971_v39 = vld [vmem:[#allocation4 + $0x4] sm:$0xf0]  ;;  %v6866_v43 = vor.u32 %v7961_v32, %v7967_v37  ;;  %v7981_v44 = vld [vmem:[#allocation4 + $0x4] sm:$0xf]  ;;  %v7983_v45 = vld [vmem:[#allocation4 + $0x8] sm:$0xf0] }
  0x43   : > { %v7175_v46 = vld [vmem:[%s7927_s14] sm:$0xff]   ;;  %4302 = vmatpush.bf16.msra.mxu0 %v6894_v25  ;;  %v7430_v51 = vld [vmem:[%s7927_s14 + $0x8] sm:$0xff]   ;;  %v7431_v52 = vld [vmem:[%s7927_s14 + $0x10] sm:$0xff]   ;;  %vm3974_vm0 = vcmask 1041409   ;;  %vm3977_vm1 = vcmask 1042434   ;;  %vm3980_vm2 = vcmask 1043459  }
  0x44   : > { %v7990_v49 = vunpack.c.l.bf16 %v7175_v46  ;;  %v7992_v50 = vunpack.c.h.bf16 %v7175_v46  ;;  %v7432_v53 = vld [vmem:[%s7927_s14 + $0x18] sm:$0xff]   ;;  %4351 = vmatpush.bf16.msra.mxu1 %v6898_v29  ;;  %v7997_v54 = vunpack.c.l.bf16 %v7430_v51  ;;  %v7999_v55 = vunpack.c.h.bf16 %v7430_v51  ;;  %v7433_v58 = vld [vmem:[%s7927_s14 + $0x20] sm:$0xff]   ;;  %v7434_v59 = vld [vmem:[%s7927_s14 + $0x28] sm:$0xff]   ;;  %s11188_s17 = sadd.s32 4294967295, %s7770_s27  }
  0x45   : > { %v8001_v56 = vunpack.c.l.bf16 %v7431_v52  ;;  %v8003_v57 = vunpack.c.h.bf16 %v7431_v52  ;;  %v7435_v60 = vld [vmem:[%s7927_s14 + $0x30] sm:$0xff]   ;;  %v8008_v61 = vunpack.c.l.bf16 %v7432_v53  ;;  %v8010_v62 = vunpack.c.h.bf16 %v7432_v53  ;;  %v7436_v1 = vld [vmem:[%s7927_s14 + $0x38] sm:$0xff]   ;;  %s6849_s18 = sshll.u32 %s11188_s17, 4 }
  0x46   : > { %v8012_v63 = vunpack.c.l.bf16 %v7433_v58  ;;  %v8014_v0 = vunpack.c.h.bf16 %v7433_v58  ;;  %v8017_v2 = vunpack.c.l.bf16 %v7434_v59  ;;  %v8019_v3 = vunpack.c.h.bf16 %v7434_v59  ;;  %p362_p1 = scmp.lt.s32.totalorder %s6849_s18, 31 }
  0x47   : > { %v8021_v4 = vunpack.c.l.bf16 %v7435_v60  ;;  %v8023_v5 = vunpack.c.h.bf16 %v7435_v60  ;;  %4303 = vmatpush.bf16.msra.mxu0 %v6886_v33  ;;  %v8025_v6 = vunpack.c.l.bf16 %v7436_v1  ;;  %v8027_v7 = vunpack.c.h.bf16 %v7436_v1 }
  0x48   : > { %11083 = vst [vmem:[#allocation13_spill] sm:$0xff] %v8017_v2  ;;  %v751_v8 = vrot.slane %v7990_v49, 1  ;;  %v752_v9 = vrot.slane %v7992_v50, 1  ;;  %4352 = vmatpush.bf16.msra.mxu1 %v6890_v34  ;;  %v753_v10 = vrot.slane %v7997_v54, 1  ;;  %v754_v11 = vrot.slane %v7999_v55, 1  ;;  %s11194_s18 = smov (!%p362_p1, %s6849_s18), 31 }
  0x49   : > { %11084 = vst [vmem:[#allocation14_spill] sm:$0xff] %v8019_v3  ;;  %v755_v12 = vrot.slane %v8001_v56, 1  ;;  %v756_v13 = vrot.slane %v8003_v57, 1  ;;  %v757_v14 = vrot.slane %v8008_v61, 1  ;;  %v758_v15 = vrot.slane %v8010_v62, 1  ;;  %s6850_s12 = sshll.u32 %s11194_s18, 3 }
  0x4a   : > { %11085 = vst [vmem:[#allocation15_spill] sm:$0xff] %v8021_v4  ;;  %v759_v16 = vrot.slane %v8012_v63, 1  ;;  %v760_v17 = vrot.slane %v8014_v0, 1  ;;  %v761_v18 = vrot.slane %v8017_v2, 1  ;;  %v762_v19 = vrot.slane %v8019_v3, 1  ;;  %s10916_s16 = scalar_lea.vmem %s11036_s7, %s6850_s12 }
  0x4b   : > { %11086 = vst [vmem:[#allocation16_spill] sm:$0xff] %v8023_v5  ;;  %v763_v20 = vrot.slane %v8021_v4, 1  ;;  %v764_v21 = vrot.slane %v8023_v5, 1  ;;  %4304 = vmatpush.bf16.msra.mxu0 %v6878_v35  ;;  %v765_v22 = vrot.slane %v8025_v6, 1  ;;  %v766_v23 = vrot.slane %v8027_v7, 1 }
  0x4c   : > { %11087 = vst [vmem:[#allocation17_spill] sm:$0xff] %v8025_v6  ;;  %v1007_v25 = vadd.f32 %v7990_v49, %v751_v8  ;;  %v1008_v29 = vadd.f32 %v7992_v50, %v752_v9  ;;  %4353 = vmatpush.bf16.msra.mxu1 %v6882_v36  ;;  %v1009_v33 = vadd.f32 %v7997_v54, %v753_v10  ;;  %v1135_v10 = vrot.slane %v7990_v49, 2 }
  0x4d   : > { %11088 = vst [vmem:[#allocation18_spill] sm:$0xff] %v8027_v7  ;;  %v1010_v34 = vadd.f32 %v7999_v55, %v754_v11  ;;  %v1011_v46 = vadd.f32 %v8001_v56, %v755_v12  ;;  %v1012_v51 = vadd.f32 %v8003_v57, %v756_v13  ;;  %v1013_v52 = vadd.f32 %v8008_v61, %v757_v14 }
  0x4e   : > { %v1014_v35 = vadd.f32 %v8010_v62, %v758_v15  ;;  %v1015_v53 = vadd.f32 %v8012_v63, %v759_v16  ;;  %v1016_v58 = vadd.f32 %v8014_v0, %v760_v17  ;;  %v1017_v59 = vadd.f32 %v8017_v2, %v761_v18 }
  0x4f   : > { %v1018_v36 = vadd.f32 %v8019_v3, %v762_v19  ;;  %v1019_v60 = vadd.f32 %v8021_v4, %v763_v20  ;;  %v1020_v1 = vadd.f32 %v8023_v5, %v764_v21  ;;  %4305 = vmatpush.bf16.msra.mxu0 %v6870_v40  ;;  %v1021_v8 = vadd.f32 %v8025_v6, %v765_v22 }
  0x50   : > { %v1022_v9 = vadd.f32 %v8027_v7, %v766_v23  ;;  %v1136_v11 = vrot.slane %v7992_v50, 2  ;;  %4354 = vmatpush.bf16.msra.mxu1 %v6874_v41  ;;  %v1137_v12 = vrot.slane %v7997_v54, 2  ;;  %v1138_v13 = vrot.slane %v7999_v55, 2 }
  0x51   : > { %v1139_v14 = vrot.slane %v8001_v56, 2  ;;  %v1140_v24 = vrot.slane %v8003_v57, 2  ;;  %v1141_v26 = vrot.slane %v8008_v61, 2  ;;  %v1142_v40 = vrot.slane %v8010_v62, 2 }
  0x52   : > { %v1143_v15 = vrot.slane %v8012_v63, 2  ;;  %v1144_v16 = vrot.slane %v8014_v0, 2  ;;  %v1145_v17 = vrot.slane %v8017_v2, 2  ;;  %v1146_v27 = vrot.slane %v8019_v3, 2 }
  0x53   : > { %v1147_v28 = vrot.slane %v8021_v4, 2  ;;  %v1148_v41 = vrot.slane %v8023_v5, 2  ;;  %4306 = vmatpush.bf16.msra.mxu0 %v6862_v42  ;;  %v1149_v18 = vrot.slane %v8025_v6, 2  ;;  %v1150_v19 = vrot.slane %v8027_v7, 2 }
  0x54   : > { %v1391_v20 = vadd.f32 %v1135_v10, %v1007_v25  ;;  %v1392_v21 = vadd.f32 %v1136_v11, %v1008_v29  ;;  %4355 = vmatpush.bf16.msra.mxu1 %v6866_v43  ;;  %v1393_v22 = vadd.f32 %v1137_v12, %v1009_v33  ;;  %v1394_v23 = vadd.f32 %v1138_v13, %v1010_v34 }
  0x55   : > { %v1395_v48 = vadd.f32 %v1139_v14, %v1011_v46  ;;  %v1396_v47 = vadd.f32 %v1140_v24, %v1012_v51  ;;  %v1397_v4 = vadd.f32 %v1141_v26, %v1013_v52  ;;  %v1398_v5 = vadd.f32 %v1142_v40, %v1014_v35 }
  0x56   : > { %v1399_v3 = vadd.f32 %v1143_v15, %v1015_v53  ;;  %v1400_v2 = vadd.f32 %v1144_v16, %v1016_v58  ;;  %v1401_v30 = vadd.f32 %v1145_v17, %v1017_v59  ;;  %v1402_v31 = vadd.f32 %v1146_v27, %v1018_v36  ;;  %v11091_v53 = vld [vmem:[#allocation13_spill] sm:$0xff]  ;;  %v11093_v59 = vld [vmem:[#allocation15_spill] sm:$0xff] }
  0x57   : > { %v1403_v42 = vadd.f32 %v1147_v28, %v1019_v60  ;;  %v1404_v6 = vadd.f32 %v1148_v41, %v1020_v1  ;;  %v11089_v25 = vor.u32 %v7971_v39, %v7969_v38  ;;  %v1405_v29 = vadd.f32 %v1149_v18, %v1021_v8  ;;  %v11094_v60 = vld [vmem:[#allocation16_spill] sm:$0xff]  ;;  %v11095_v8 = vld [vmem:[#allocation17_spill] sm:$0xff] }
  0x58   : > { %v1406_v10 = vadd.f32 %v1150_v19, %v1022_v9  ;;  %v1519_v32 = vrot.slane %v7990_v49, 3  ;;  %v1520_v37 = vrot.slane %v7992_v50, 3  ;;  %v11090_v43 = vor.u32 %v7981_v44, %v7983_v45  ;;  %v11092_v44 = vld [vmem:[#allocation14_spill] sm:$0xff] }
  0x59   : > { %4307 = vmatpush.bf16.msra.mxu0 %v11089_v25  ;;  %v1521_v33 = vrot.slane %v7997_v54, 3  ;;  %v1522_v34 = vrot.slane %v7999_v55, 3  ;;  %v1523_v46 = vrot.slane %v8001_v56, 3  ;;  %v1524_v51 = vrot.slane %v8003_v57, 3 }
  0x5a   : > { %4356 = vmatpush.bf16.msra.mxu1 %v11090_v43  ;;  %v1525_v38 = vrot.slane %v8008_v61, 3  ;;  %v1526_v39 = vrot.slane %v8010_v62, 3  ;;  %v1527_v52 = vrot.slane %v8012_v63, 3  ;;  %v1528_v35 = vrot.slane %v8014_v0, 3 }
  0x5b   : > { %v1529_v58 = vrot.slane %v11091_v53, 3  ;;  %v1530_v45 = vrot.slane %v11092_v44, 3  ;;  %v1531_v36 = vrot.slane %v11093_v59, 3  ;;  %v1532_v1 = vrot.slane %v11094_v60, 3 }
  0x5c   : > { %v1533_v9 = vrot.slane %v11095_v8, 3  ;;  %v1534_v11 = vrot.slane %v8027_v7, 3  ;;  %v1775_v12 = vadd.f32 %v1519_v32, %v1391_v20  ;;  %v1776_v13 = vadd.f32 %v1520_v37, %v1392_v21 }
  0x5d   : > { %v1777_v14 = vadd.f32 %v1521_v33, %v1393_v22  ;;  %v1778_v24 = vadd.f32 %v1522_v34, %v1394_v23  ;;  %v1779_v26 = vadd.f32 %v1523_v46, %v1395_v48  ;;  %v1780_v40 = vadd.f32 %v1524_v51, %v1396_v47 }
  0x5e   : > { %v1781_v15 = vadd.f32 %v1525_v38, %v1397_v4  ;;  %v1782_v16 = vadd.f32 %v1526_v39, %v1398_v5  ;;  %v1783_v17 = vadd.f32 %v1527_v52, %v1399_v3  ;;  %v1784_v27 = vadd.f32 %v1528_v35, %v1400_v2 }
  0x5f   : > { %v1785_v28 = vadd.f32 %v1529_v58, %v1401_v30  ;;  %v1786_v41 = vadd.f32 %v1530_v45, %v1402_v31  ;;  %v1787_v18 = vadd.f32 %v1531_v36, %v1403_v42  ;;  %v1788_v19 = vadd.f32 %v1532_v1, %v1404_v6  ;;  %v11096_v31 = vld [vmem:[#allocation17_spill] sm:$0xff] }
  0x60   : > { %v1789_v25 = vadd.f32 %v1533_v9, %v1405_v29  ;;  %v1790_v43 = vadd.f32 %v1534_v11, %v1406_v10  ;;  %v1903_v8 = vrot.slane %v7990_v49, 4  ;;  %v1904_v7 = vrot.slane %v7992_v50, 4  ;;  %v11097_v29 = vld [vmem:[#allocation18_spill] sm:$0xff] }
  0x61   : > { %v1905_v20 = vrot.slane %v7997_v54, 4  ;;  %v1906_v21 = vrot.slane %v7999_v55, 4  ;;  %v1907_v47 = vrot.slane %v8001_v56, 4  ;;  %v1908_v48 = vrot.slane %v8003_v57, 4 }
  0x62   : > { %v1909_v2 = vrot.slane %v8008_v61, 4  ;;  %v1910_v3 = vrot.slane %v8010_v62, 4  ;;  %v1911_v4 = vrot.slane %v8012_v63, 4  ;;  %v1912_v5 = vrot.slane %v8014_v0, 4 }
  0x63   : > { %v1913_v6 = vrot.slane %v11091_v53, 4  ;;  %v1914_v22 = vrot.slane %v11092_v44, 4  ;;  %v1915_v23 = vrot.slane %v11093_v59, 4  ;;  %v1916_v30 = vrot.slane %v11094_v60, 4 }
  0x64   : > { %v1917_v42 = vrot.slane %v11096_v31, 4  ;;  %v1918_v10 = vrot.slane %v11097_v29, 4  ;;  %v2159_v32 = vadd.f32 %v1903_v8, %v1775_v12  ;;  %v2160_v37 = vadd.f32 %v1904_v7, %v1776_v13 }
  0x65   : > { %v2161_v33 = vadd.f32 %v1905_v20, %v1777_v14  ;;  %v2162_v34 = vadd.f32 %v1906_v21, %v1778_v24  ;;  %v2163_v46 = vadd.f32 %v1907_v47, %v1779_v26  ;;  %v2164_v51 = vadd.f32 %v1908_v48, %v1780_v40 }
  0x66   : > { %v2165_v38 = vadd.f32 %v1909_v2, %v1781_v15  ;;  %v2166_v39 = vadd.f32 %v1910_v3, %v1782_v16  ;;  %v2167_v52 = vadd.f32 %v1911_v4, %v1783_v17  ;;  %v2168_v35 = vadd.f32 %v1912_v5, %v1784_v27 }
  0x67   : > { %v2169_v58 = vadd.f32 %v1913_v6, %v1785_v28  ;;  %v2170_v45 = vadd.f32 %v1914_v22, %v1786_v41  ;;  %v2171_v36 = vadd.f32 %v1915_v23, %v1787_v18  ;;  %v2172_v1 = vadd.f32 %v1916_v30, %v1788_v19  ;;  %v11098_v28 = vld [vmem:[#allocation17_spill] sm:$0xff]  ;;  %v11099_v18 = vld [vmem:[#allocation18_spill] sm:$0xff] }
  0x68   : > { %v2173_v9 = vadd.f32 %v1917_v42, %v1789_v25  ;;  %v2174_v11 = vadd.f32 %v1918_v10, %v1790_v43  ;;  %v2287_v31 = vrot.slane %v7990_v49, 5  ;;  %v2288_v29 = vrot.slane %v7992_v50, 5 }
  0x69   : > { %v2289_v7 = vrot.slane %v7997_v54, 5  ;;  %v2290_v8 = vrot.slane %v7999_v55, 5  ;;  %v2291_v12 = vrot.slane %v8001_v56, 5  ;;  %v2292_v13 = vrot.slane %v8003_v57, 5 }
  0x6a   : > { %v2293_v14 = vrot.slane %v8008_v61, 5  ;;  %v2294_v24 = vrot.slane %v8010_v62, 5  ;;  %v2295_v26 = vrot.slane %v8012_v63, 5  ;;  %v2296_v40 = vrot.slane %v8014_v0, 5 }
  0x6b   : > { %v2297_v15 = vrot.slane %v11091_v53, 5  ;;  %v2298_v16 = vrot.slane %v11092_v44, 5  ;;  %v2299_v17 = vrot.slane %v11093_v59, 5  ;;  %v2300_v27 = vrot.slane %v11094_v60, 5 }
  0x6c   : > { %v2301_v41 = vrot.slane %v11098_v28, 5  ;;  %v2302_v19 = vrot.slane %v11099_v18, 5  ;;  %v2543_v25 = vadd.f32 %v2287_v31, %v2159_v32  ;;  %v2544_v43 = vadd.f32 %v2288_v29, %v2160_v37 }
  0x6d   : > { %v2545_v20 = vadd.f32 %v2289_v7, %v2161_v33  ;;  %v2546_v21 = vadd.f32 %v2290_v8, %v2162_v34  ;;  %v2547_v47 = vadd.f32 %v2291_v12, %v2163_v46  ;;  %v2548_v48 = vadd.f32 %v2292_v13, %v2164_v51 }
  0x6e   : > { %v2549_v2 = vadd.f32 %v2293_v14, %v2165_v38  ;;  %v2550_v3 = vadd.f32 %v2294_v24, %v2166_v39  ;;  %v2551_v4 = vadd.f32 %v2295_v26, %v2167_v52  ;;  %v2552_v5 = vadd.f32 %v2296_v40, %v2168_v35 }
  0x6f   : > { %v2553_v6 = vadd.f32 %v2297_v15, %v2169_v58  ;;  %v2554_v22 = vadd.f32 %v2298_v16, %v2170_v45  ;;  %v2555_v23 = vadd.f32 %v2299_v17, %v2171_v36  ;;  %v2556_v30 = vadd.f32 %v2300_v27, %v2172_v1  ;;  %v11100_v58 = vld [vmem:[#allocation17_spill] sm:$0xff]  ;;  %v11101_v36 = vld [vmem:[#allocation18_spill] sm:$0xff] }
  0x70   : > { %v2557_v42 = vadd.f32 %v2301_v41, %v2173_v9  ;;  %v2558_v10 = vadd.f32 %v2302_v19, %v2174_v11  ;;  %v2671_v28 = vrot.slane %v7990_v49, 6  ;;  %v2672_v18 = vrot.slane %v7992_v50, 6 }
  0x71   : > { %v2673_v31 = vrot.slane %v7997_v54, 6  ;;  %v2674_v29 = vrot.slane %v7999_v55, 6  ;;  %v2675_v32 = vrot.slane %v8001_v56, 6  ;;  %v2676_v37 = vrot.slane %v8003_v57, 6 }
  0x72   : > { %v2677_v33 = vrot.slane %v8008_v61, 6  ;;  %v2678_v34 = vrot.slane %v8010_v62, 6  ;;  %v2679_v46 = vrot.slane %v8012_v63, 6  ;;  %v2680_v51 = vrot.slane %v8014_v0, 6 }
  0x73   : > { %v2681_v38 = vrot.slane %v11091_v53, 6  ;;  %v2682_v39 = vrot.slane %v11092_v44, 6  ;;  %v2683_v52 = vrot.slane %v11093_v59, 6  ;;  %v2684_v35 = vrot.slane %v11094_v60, 6 }
  0x74   : > { %v2685_v45 = vrot.slane %v11100_v58, 6  ;;  %v2686_v1 = vrot.slane %v11101_v36, 6  ;;  %v2927_v9 = vadd.f32 %v2671_v28, %v2543_v25  ;;  %v2928_v11 = vadd.f32 %v2672_v18, %v2544_v43 }
  0x75   : > { %v2929_v7 = vadd.f32 %v2673_v31, %v2545_v20  ;;  %v2930_v8 = vadd.f32 %v2674_v29, %v2546_v21  ;;  %v2931_v12 = vadd.f32 %v2675_v32, %v2547_v47  ;;  %v2932_v13 = vadd.f32 %v2676_v37, %v2548_v48 }
  0x76   : > { %v2933_v14 = vadd.f32 %v2677_v33, %v2549_v2  ;;  %v2934_v24 = vadd.f32 %v2678_v34, %v2550_v3  ;;  %v2935_v26 = vadd.f32 %v2679_v46, %v2551_v4  ;;  %v2936_v40 = vadd.f32 %v2680_v51, %v2552_v5  ;;  %v11102_v2 = vld [vmem:[#allocation17_spill] sm:$0xff]  ;;  %v11103_v3 = vld [vmem:[#allocation18_spill] sm:$0xff] }
  0x77   : > { %v2937_v15 = vadd.f32 %v2681_v38, %v2553_v6  ;;  %v2938_v16 = vadd.f32 %v2682_v39, %v2554_v22  ;;  %v2939_v17 = vadd.f32 %v2683_v52, %v2555_v23  ;;  %v2940_v27 = vadd.f32 %v2684_v35, %v2556_v30 }
  0x78   : > { %v2941_v41 = vadd.f32 %v2685_v45, %v2557_v42  ;;  %v2942_v19 = vadd.f32 %v2686_v1, %v2558_v10  ;;  %v3055_v58 = vrot.slane %v7990_v49, 7  ;;  %v3056_v36 = vrot.slane %v7992_v50, 7 }
  0x79   : > { %v3057_v28 = vrot.slane %v7997_v54, 7  ;;  %v3058_v18 = vrot.slane %v7999_v55, 7  ;;  %v3059_v25 = vrot.slane %v8001_v56, 7  ;;  %v3060_v43 = vrot.slane %v8003_v57, 7 }
  0x7a   : > { %v3061_v20 = vrot.slane %v8008_v61, 7  ;;  %v3062_v21 = vrot.slane %v8010_v62, 7  ;;  %v3063_v47 = vrot.slane %v8012_v63, 7  ;;  %v3064_v48 = vrot.slane %v8014_v0, 7 }
  0x7b   : > { %v3065_v49 = vrot.slane %v11091_v53, 7  ;;  %v3066_v50 = vrot.slane %v11092_v44, 7  ;;  %v3067_v54 = vrot.slane %v11093_v59, 7  ;;  %v3068_v55 = vrot.slane %v11094_v60, 7 }
  0x7c   : > { %v3069_v56 = vrot.slane %v11102_v2, 7  ;;  %v3070_v57 = vrot.slane %v11103_v3, 7  ;;  %v3311_v4 = vadd.f32 %v3055_v58, %v2927_v9  ;;  %v3312_v61 = vadd.f32 %v3056_v36, %v2928_v11 }
  0x7d   : > { %v3313_v5 = vadd.f32 %v3057_v28, %v2929_v7  ;;  %v3314_v62 = vadd.f32 %v3058_v18, %v2930_v8  ;;  %v3315_v6 = vadd.f32 %v3059_v25, %v2931_v12  ;;  %v3316_v63 = vadd.f32 %v3060_v43, %v2932_v13 }
  0x7e   : > { %v3317_v22 = vadd.f32 %v3061_v20, %v2933_v14  ;;  %v3318_v0 = vadd.f32 %v3062_v21, %v2934_v24  ;;  %v3319_v23 = vadd.f32 %v3063_v47, %v2935_v26  ;;  %v3320_v53 = vadd.f32 %v3064_v48, %v2936_v40 }
  0x7f   : > { %v3321_v30 = vadd.f32 %v3065_v49, %v2937_v15  ;;  %v3322_v44 = vadd.f32 %v3066_v50, %v2938_v16  ;;  %v3323_v42 = vadd.f32 %v3067_v54, %v2939_v17  ;;  %v3324_v59 = vadd.f32 %v3068_v55, %v2940_v27 }
  0x80   : > { %v3325_v10 = vadd.f32 %v3069_v56, %v2941_v41  ;;  %v3326_v60 = vadd.f32 %v3070_v57, %v2942_v19  ;;  %v3439_v31 = vmul.f32 0.125, %v3311_v4  ;;  %v3440_v29 = vmul.f32 0.125, %v3312_v61 }
  0x81   : > { %v3441_v32 = vmul.f32 0.125, %v3313_v5  ;;  %v3442_v37 = vmul.f32 0.125, %v3314_v62  ;;  %v3443_v33 = vmul.f32 0.125, %v3315_v6  ;;  %v3444_v34 = vmul.f32 0.125, %v3316_v63 }
  0x82   : > { %v3445_v46 = vmul.f32 0.125, %v3317_v22  ;;  %v3446_v51 = vmul.f32 0.125, %v3318_v0  ;;  %v3447_v38 = vmul.f32 0.125, %v3319_v23  ;;  %v3448_v39 = vmul.f32 0.125, %v3320_v53 }
  0x83   : > { %v3449_v52 = vmul.f32 0.125, %v3321_v30  ;;  %v3450_v35 = vmul.f32 0.125, %v3322_v44  ;;  %v3451_v58 = vmul.f32 0.125, %v3323_v42  ;;  %v3452_v45 = vmul.f32 0.125, %v3324_v59 }
  0x84   : > { %v3453_v36 = vmul.f32 0.125, %v3325_v10  ;;  %v3454_v1 = vmul.f32 0.125, %v3326_v60  ;;  %v3567_v9 = vpack.c.bf16 %v3439_v31, %v3439_v31  ;;  %v3568_v11 = vpack.c.bf16 %v3440_v29, %v3440_v29  ;;  %v7437_v60 = vld [vmem:[%s7927_s14 + $0x40] sm:$0xff]   ;;  %v7438_v31 = vld [vmem:[%s7927_s14 + $0x48] sm:$0xff]  }
  0x85   : > { %v3569_v7 = vpack.c.bf16 %v3441_v32, %v3441_v32  ;;  %v3570_v8 = vpack.c.bf16 %v3442_v37, %v3442_v37  ;;  %v3571_v12 = vpack.c.bf16 %v3443_v33, %v3443_v33  ;;  %v3572_v13 = vpack.c.bf16 %v3444_v34, %v3444_v34  ;;  %v7439_v34 = vld [vmem:[%s7927_s14 + $0x50] sm:$0xff]  }
  0x86   : > { %v3573_v14 = vpack.c.bf16 %v3445_v46, %v3445_v46  ;;  %v3574_v24 = vpack.c.bf16 %v3446_v51, %v3446_v51  ;;  %v3575_v26 = vpack.c.bf16 %v3447_v38, %v3447_v38  ;;  %v3576_v40 = vpack.c.bf16 %v3448_v39, %v3448_v39 }
  0x87   : > { %v3577_v15 = vpack.c.bf16 %v3449_v52, %v3449_v52  ;;  %v3578_v16 = vpack.c.bf16 %v3450_v35, %v3450_v35  ;;  %v3579_v17 = vpack.c.bf16 %v3451_v58, %v3451_v58  ;;  %v3580_v27 = vpack.c.bf16 %v3452_v45, %v3452_v45  ;;  %v7440_v52 = vld [vmem:[%s7927_s14 + $0x58] sm:$0xff]  }
  0x88   : > { %v3581_v41 = vpack.c.bf16 %v3453_v36, %v3453_v36  ;;  %v3582_v19 = vpack.c.bf16 %v3454_v1, %v3454_v1  ;;  %v3845_v28 = vunpack.c.l.b16 %v3567_v9  ;;  %v3846_v18 = vunpack.c.l.b16 %v3568_v11  ;;  %v7441_v1 = vld [vmem:[%s7927_s14 + $0x60] sm:$0xff]   ;;  %v7442_v9 = vld [vmem:[%s7927_s14 + $0x68] sm:$0xff]  }
  0x89   : > { %v3847_v25 = vunpack.c.l.b16 %v3569_v7  ;;  %v3848_v43 = vunpack.c.l.b16 %v3570_v8  ;;  %v3849_v20 = vunpack.c.l.b16 %v3571_v12  ;;  %v3850_v21 = vunpack.c.l.b16 %v3572_v13  ;;  %v7443_v13 = vld [vmem:[%s7927_s14 + $0x70] sm:$0xff]  }
  0x8a   : > { %v3851_v47 = vunpack.c.l.b16 %v3573_v14  ;;  %v3852_v48 = vunpack.c.l.b16 %v3574_v24  ;;  %v3853_v49 = vunpack.c.l.b16 %v3575_v26  ;;  %v3854_v50 = vunpack.c.l.b16 %v3576_v40  ;;  %v7444_v14 = vld [vmem:[%s7927_s14 + $0x78] sm:$0xff]  }
  0x8b   : > { %v3855_v54 = vunpack.c.l.b16 %v3577_v15  ;;  %v3856_v55 = vunpack.c.l.b16 %v3578_v16  ;;  %v3857_v2 = vunpack.c.l.b16 %v3579_v17  ;;  %v3858_v56 = vunpack.c.l.b16 %v3580_v27 }
  0x8c   : > { %v3859_v3 = vunpack.c.l.b16 %v3581_v41  ;;  %v3860_v57 = vunpack.c.l.b16 %v3582_v19  ;;  %v3973_v4 = vrot.slane %v3846_v18, 7  ;;  %v3976_v61 = vrot.slane %v3847_v25, 6 }
  0x8d   : > { %v3979_v5 = vrot.slane %v3848_v43, 5  ;;  %v3982_v6 = vrot.slane %v3849_v20, 4  ;;  %vm3983_vm3 = vcmask 1044484   ;;  %v3985_v63 = vrot.slane %v3850_v21, 3 }
  0x8e   : > { %v3975_v62 = vsel %vm3974_vm0, %v3973_v4, %v3845_v28  ;;  %vm3986_vm4 = vcmask 1045509   ;;  %v3988_v0 = vrot.slane %v3851_v47, 2  ;;  %vm3989_vm5 = vcmask 1046534  }
  0x8f   : > { %v3978_v22 = vsel %vm3977_vm1, %v3976_v61, %v3975_v62  ;;  %v3991_v53 = vrot.slane %v3852_v48, 1  ;;  %vm3992_vm6 = vcmask 1047559   ;;  %v3994_v30 = vrot.slane %v3854_v50, 7 }
  0x90   : > { %v3981_v23 = vsel %vm3980_vm2, %v3979_v5, %v3978_v22  ;;  %v3996_v42 = vrot.slane %v3855_v54, 6  ;;  %v3998_v59 = vrot.slane %v3856_v55, 5  ;;  %v4000_v10 = vrot.slane %v3857_v2, 4 }
  0x91   : > { %v3984_v44 = vsel %vm3983_vm3, %v3982_v6, %v3981_v23  ;;  %v3995_v32 = vsel %vm3974_vm0, %v3994_v30, %v3853_v49  ;;  %v4002_v37 = vrot.slane %v3858_v56, 3  ;;  %v4004_v33 = vrot.slane %v3859_v3, 2 }
  0x92   : > { %v3987_v29 = vsel %vm3986_vm4, %v3985_v63, %v3984_v44  ;;  %v3997_v51 = vsel %vm3977_vm1, %v3996_v42, %v3995_v32  ;;  %v4006_v38 = vrot.slane %v3860_v57, 1  ;;  %v8186_v39 = vunpack.c.l.bf16 %v7437_v60 }
  0x93   : > { %v3990_v46 = vsel %vm3989_vm5, %v3988_v0, %v3987_v29  ;;  %v3999_v58 = vsel %vm3980_vm2, %v3998_v59, %v3997_v51  ;;  %v8191_v45 = vunpack.c.h.bf16 %v7437_v60  ;;  %v8193_v36 = vunpack.c.l.bf16 %v7438_v31 }
  0x94   : > { %v3993_v35 = vsel %vm3992_vm6, %v3991_v53, %v3990_v46  ;;  %v4001_v11 = vsel %vm3983_vm3, %v4000_v10, %v3999_v58  ;;  %v8198_v7 = vunpack.c.h.bf16 %v7438_v31  ;;  %v8200_v8 = vunpack.c.l.bf16 %v7439_v34 }
  0x95   : > { %v8202_v12 = vunpack.c.h.bf16 %v7439_v34  ;;  %v4003_v24 = vsel %vm3986_vm4, %v4002_v37, %v4001_v11  ;;  %v8207_v26 = vunpack.c.l.bf16 %v7440_v52  ;;  %v8209_v40 = vunpack.c.h.bf16 %v7440_v52 }
  0x96   : > { %v8211_v15 = vunpack.c.l.bf16 %v7441_v1  ;;  %v4005_v16 = vsel %vm3989_vm5, %v4004_v33, %v4003_v24  ;;  %v8214_v17 = vunpack.c.h.bf16 %v7441_v1  ;;  %v8216_v27 = vunpack.c.l.bf16 %v7442_v9 }
  0x97   : > { %v8218_v41 = vunpack.c.h.bf16 %v7442_v9  ;;  %v4007_v19 = vsel %vm3992_vm6, %v4006_v38, %v4005_v16  ;;  %v8221_v28 = vunpack.c.l.bf16 %v7443_v13  ;;  %v8223_v18 = vunpack.c.h.bf16 %v7443_v13 }
  0x98   : > { %v8225_v25 = vunpack.c.l.bf16 %v7444_v14  ;;  %v4204_v43 = vpack.c.b16 %v4007_v19, %v3993_v35  ;;  %v8227_v20 = vunpack.c.h.bf16 %v7444_v14  ;;  %v767_v21 = vrot.slane %v8186_v39, 1 }
  0x99   : > { %v768_v47 = vrot.slane %v8191_v45, 1  ;;  %v769_v48 = vrot.slane %v8193_v36, 1  ;;  %v770_v49 = vrot.slane %v8198_v7, 1  ;;  %v771_v50 = vrot.slane %v8200_v8, 1 }
  0x9a   : > { %11104 = vst [vmem:[#allocation13_spill] sm:$0xff] %v8225_v25  ;;  %v772_v54 = vrot.slane %v8202_v12, 1  ;;  %4308 = vmatmul.bf16.vlgmr.msra.gmra.mxu0 %v4204_v43  ;;  %4357 = vmatmul.bf16.vlgmr.msra.gmra.mxu1 %v4204_v43  ;;  %v773_v55 = vrot.slane %v8207_v26, 1  ;;  %v774_v2 = vrot.slane %v8209_v40, 1  ;;  %v775_v56 = vrot.slane %v8211_v15, 1 }
  0x9b   : > { %11105 = vst [vmem:[#allocation14_spill] sm:$0xff] %v8227_v20  ;;  %v776_v3 = vrot.slane %v8214_v17, 1  ;;  %v777_v57 = vrot.slane %v8216_v27, 1  ;;  %v778_v4 = vrot.slane %v8218_v41, 1  ;;  %v779_v61 = vrot.slane %v8221_v28, 1 }
  0x9c   : > { %v780_v5 = vrot.slane %v8223_v18, 1  ;;  %v781_v62 = vrot.slane %v8225_v25, 1  ;;  %v782_v6 = vrot.slane %v8227_v20, 1  ;;  %v1023_v63 = vadd.f32 %v8186_v39, %v767_v21 }
  0x9d   : > { %v1024_v22 = vadd.f32 %v8191_v45, %v768_v47  ;;  %v1025_v0 = vadd.f32 %v8193_v36, %v769_v48  ;;  %v1026_v23 = vadd.f32 %v8198_v7, %v770_v49  ;;  %v1027_v53 = vadd.f32 %v8200_v8, %v771_v50 }
  0x9e   : > { %v1028_v30 = vadd.f32 %v8202_v12, %v772_v54  ;;  %v1029_v44 = vadd.f32 %v8207_v26, %v773_v55  ;;  %v1030_v42 = vadd.f32 %v8209_v40, %v774_v2  ;;  %v1031_v59 = vadd.f32 %v8211_v15, %v775_v56 }
  0x9f   : > { %v1032_v10 = vadd.f32 %v8214_v17, %v776_v3  ;;  %v1033_v60 = vadd.f32 %v8216_v27, %v777_v57  ;;  %v1034_v31 = vadd.f32 %v8218_v41, %v778_v4  ;;  %v1035_v29 = vadd.f32 %v8221_v28, %v779_v61 }
  0xa0   : > { %v1036_v32 = vadd.f32 %v8223_v18, %v780_v5  ;;  %v1037_v37 = vadd.f32 %v8225_v25, %v781_v62  ;;  %v1038_v33 = vadd.f32 %v8227_v20, %v782_v6  ;;  %v1151_v34 = vrot.slane %v8186_v39, 2 }
  0xa1   : > { %v1152_v46 = vrot.slane %v8191_v45, 2  ;;  %v1153_v51 = vrot.slane %v8193_v36, 2  ;;  %v1154_v38 = vrot.slane %v8198_v7, 2  ;;  %v1155_v52 = vrot.slane %v8200_v8, 2 }
  0xa2   : > { %v1156_v35 = vrot.slane %v8202_v12, 2  ;;  %v1157_v58 = vrot.slane %v8207_v26, 2  ;;  %v1158_v1 = vrot.slane %v8209_v40, 2  ;;  %v1159_v9 = vrot.slane %v8211_v15, 2 }
  0xa3   : > { %v1160_v11 = vrot.slane %v8214_v17, 2  ;;  %v1161_v13 = vrot.slane %v8216_v27, 2  ;;  %v1162_v14 = vrot.slane %v8218_v41, 2  ;;  %v1163_v24 = vrot.slane %v8221_v28, 2 }
  0xa4   : > { %v1164_v16 = vrot.slane %v8223_v18, 2  ;;  %v1165_v19 = vrot.slane %v8225_v25, 2  ;;  %v1166_v43 = vrot.slane %v8227_v20, 2  ;;  %v1407_v21 = vadd.f32 %v1151_v34, %v1023_v63 }
  0xa5   : > { %v1408_v47 = vadd.f32 %v1152_v46, %v1024_v22  ;;  %v1409_v48 = vadd.f32 %v1153_v51, %v1025_v0  ;;  %v1410_v49 = vadd.f32 %v1154_v38, %v1026_v23  ;;  %v1411_v50 = vadd.f32 %v1155_v52, %v1027_v53 }
  0xa6   : > { %v1412_v54 = vadd.f32 %v1156_v35, %v1028_v30  ;;  %v1413_v55 = vadd.f32 %v1157_v58, %v1029_v44  ;;  %v1414_v2 = vadd.f32 %v1158_v1, %v1030_v42  ;;  %v1415_v56 = vadd.f32 %v1159_v9, %v1031_v59 }
  0xa7   : > { %v1416_v3 = vadd.f32 %v1160_v11, %v1032_v10  ;;  %v1417_v57 = vadd.f32 %v1161_v13, %v1033_v60  ;;  %v1418_v4 = vadd.f32 %v1162_v14, %v1034_v31  ;;  %v1419_v61 = vadd.f32 %v1163_v24, %v1035_v29  ;;  %v11106_v29 = vld [vmem:[#allocation13_spill] sm:$0xff] }
  0xa8   : > { %v1420_v5 = vadd.f32 %v1164_v16, %v1036_v32  ;;  %v1421_v62 = vadd.f32 %v1165_v19, %v1037_v37  ;;  %v1422_v6 = vadd.f32 %v1166_v43, %v1038_v33  ;;  %v1535_v25 = vrot.slane %v8186_v39, 3  ;;  %v11107_v37 = vld [vmem:[#allocation14_spill] sm:$0xff] }
  0xa9   : > { %v1536_v20 = vrot.slane %v8191_v45, 3  ;;  %v1537_v63 = vrot.slane %v8193_v36, 3  ;;  %v1538_v22 = vrot.slane %v8198_v7, 3  ;;  %v1539_v0 = vrot.slane %v8200_v8, 3 }
  0xaa   : > { %v1540_v23 = vrot.slane %v8202_v12, 3  ;;  %v1541_v53 = vrot.slane %v8207_v26, 3  ;;  %v1542_v30 = vrot.slane %v8209_v40, 3  ;;  %v1543_v44 = vrot.slane %v8211_v15, 3 }
  0xab   : > { %v1544_v42 = vrot.slane %v8214_v17, 3  ;;  %v1545_v59 = vrot.slane %v8216_v27, 3  ;;  %v1546_v10 = vrot.slane %v8218_v41, 3  ;;  %v1547_v60 = vrot.slane %v8221_v28, 3 }
  0xac   : > { %v1548_v31 = vrot.slane %v8223_v18, 3  ;;  %v1549_v32 = vrot.slane %v11106_v29, 3  ;;  %v1550_v33 = vrot.slane %v11107_v37, 3  ;;  %v1791_v34 = vadd.f32 %v1535_v25, %v1407_v21 }
  0xad   : > { %v1792_v46 = vadd.f32 %v1536_v20, %v1408_v47  ;;  %v1793_v51 = vadd.f32 %v1537_v63, %v1409_v48  ;;  %v1794_v38 = vadd.f32 %v1538_v22, %v1410_v49  ;;  %v1795_v52 = vadd.f32 %v1539_v0, %v1411_v50 }
  0xae   : > { %v1796_v35 = vadd.f32 %v1540_v23, %v1412_v54  ;;  %v1797_v58 = vadd.f32 %v1541_v53, %v1413_v55  ;;  %v1798_v1 = vadd.f32 %v1542_v30, %v1414_v2  ;;  %v1799_v9 = vadd.f32 %v1543_v44, %v1415_v56 }
  0xaf   : > { %v1800_v11 = vadd.f32 %v1544_v42, %v1416_v3  ;;  %v1801_v13 = vadd.f32 %v1545_v59, %v1417_v57  ;;  %v1802_v14 = vadd.f32 %v1546_v10, %v1418_v4  ;;  %v1803_v24 = vadd.f32 %v1547_v60, %v1419_v61  ;;  %v11108_v57 = vld [vmem:[#allocation13_spill] sm:$0xff]  ;;  %v11109_v61 = vld [vmem:[#allocation14_spill] sm:$0xff] }
  0xb0   : > { %v1804_v16 = vadd.f32 %v1548_v31, %v1420_v5  ;;  %v1805_v19 = vadd.f32 %v1549_v32, %v1421_v62  ;;  %v1806_v43 = vadd.f32 %v1550_v33, %v1422_v6  ;;  %v1919_v29 = vrot.slane %v8186_v39, 4 }
  0xb1   : > { %v1920_v37 = vrot.slane %v8191_v45, 4  ;;  %v1921_v25 = vrot.slane %v8193_v36, 4  ;;  %v1922_v20 = vrot.slane %v8198_v7, 4  ;;  %v1923_v21 = vrot.slane %v8200_v8, 4 }
  0xb2   : > { %v1924_v47 = vrot.slane %v8202_v12, 4  ;;  %v1925_v48 = vrot.slane %v8207_v26, 4  ;;  %v1926_v49 = vrot.slane %v8209_v40, 4  ;;  %v1927_v50 = vrot.slane %v8211_v15, 4 }
  0xb3   : > { %v1928_v54 = vrot.slane %v8214_v17, 4  ;;  %v1929_v55 = vrot.slane %v8216_v27, 4  ;;  %v1930_v2 = vrot.slane %v8218_v41, 4  ;;  %v1931_v56 = vrot.slane %v8221_v28, 4 }
  0xb4   : > { %v1932_v3 = vrot.slane %v8223_v18, 4  ;;  %v1933_v4 = vrot.slane %v11108_v57, 4  ;;  %v1934_v5 = vrot.slane %v11109_v61, 4  ;;  %v2175_v62 = vadd.f32 %v1919_v29, %v1791_v34 }
  0xb5   : > { %v2176_v6 = vadd.f32 %v1920_v37, %v1792_v46  ;;  %v2177_v63 = vadd.f32 %v1921_v25, %v1793_v51  ;;  %v2178_v22 = vadd.f32 %v1922_v20, %v1794_v38  ;;  %v2179_v0 = vadd.f32 %v1923_v21, %v1795_v52 }
  0xb6   : > { %v2180_v23 = vadd.f32 %v1924_v47, %v1796_v35  ;;  %v2181_v53 = vadd.f32 %v1925_v48, %v1797_v58  ;;  %v2182_v30 = vadd.f32 %v1926_v49, %v1798_v1  ;;  %v2183_v44 = vadd.f32 %v1927_v50, %v1799_v9 }
  0xb7   : > { %v2184_v42 = vadd.f32 %v1928_v54, %v1800_v11  ;;  %v2185_v59 = vadd.f32 %v1929_v55, %v1801_v13  ;;  %v2186_v10 = vadd.f32 %v1930_v2, %v1802_v14  ;;  %v2187_v60 = vadd.f32 %v1931_v56, %v1803_v24  ;;  %v11110_v13 = vld [vmem:[#allocation13_spill] sm:$0xff]  ;;  %v11111_v24 = vld [vmem:[#allocation14_spill] sm:$0xff] }
  0xb8   : > { %v2188_v31 = vadd.f32 %v1932_v3, %v1804_v16  ;;  %v2189_v32 = vadd.f32 %v1933_v4, %v1805_v19  ;;  %v2190_v33 = vadd.f32 %v1934_v5, %v1806_v43  ;;  %v2303_v57 = vrot.slane %v8186_v39, 5 }
  0xb9   : > { %v2304_v61 = vrot.slane %v8191_v45, 5  ;;  %v2305_v29 = vrot.slane %v8193_v36, 5  ;;  %v2306_v37 = vrot.slane %v8198_v7, 5  ;;  %v2307_v34 = vrot.slane %v8200_v8, 5 }
  0xba   : > { %v2308_v46 = vrot.slane %v8202_v12, 5  ;;  %v2309_v51 = vrot.slane %v8207_v26, 5  ;;  %v2310_v38 = vrot.slane %v8209_v40, 5  ;;  %v2311_v52 = vrot.slane %v8211_v15, 5 }
  0xbb   : > { %v2312_v35 = vrot.slane %v8214_v17, 5  ;;  %v2313_v58 = vrot.slane %v8216_v27, 5  ;;  %v2314_v1 = vrot.slane %v8218_v41, 5  ;;  %v2315_v9 = vrot.slane %v8221_v28, 5 }
  0xbc   : > { %v2316_v11 = vrot.slane %v8223_v18, 5  ;;  %v2317_v14 = vrot.slane %v11110_v13, 5  ;;  %v2318_v16 = vrot.slane %v11111_v24, 5  ;;  %v2559_v19 = vadd.f32 %v2303_v57, %v2175_v62 }
  0xbd   : > { %v2560_v43 = vadd.f32 %v2304_v61, %v2176_v6  ;;  %v2561_v25 = vadd.f32 %v2305_v29, %v2177_v63  ;;  %v2562_v20 = vadd.f32 %v2306_v37, %v2178_v22  ;;  %v2563_v21 = vadd.f32 %v2307_v34, %v2179_v0 }
  0xbe   : > { %v2564_v47 = vadd.f32 %v2308_v46, %v2180_v23  ;;  %v2565_v48 = vadd.f32 %v2309_v51, %v2181_v53  ;;  %v2566_v49 = vadd.f32 %v2310_v38, %v2182_v30  ;;  %v2567_v50 = vadd.f32 %v2311_v52, %v2183_v44 }
  0xbf   : > { %v2568_v54 = vadd.f32 %v2312_v35, %v2184_v42  ;;  %v2569_v55 = vadd.f32 %v2313_v58, %v2185_v59  ;;  %v2570_v2 = vadd.f32 %v2314_v1, %v2186_v10  ;;  %v2571_v56 = vadd.f32 %v2315_v9, %v2187_v60  ;;  %v11112_v59 = vld [vmem:[#allocation13_spill] sm:$0xff]  ;;  %v11113_v60 = vld [vmem:[#allocation14_spill] sm:$0xff] }
  0xc0   : > { %v2572_v3 = vadd.f32 %v2316_v11, %v2188_v31  ;;  %v2573_v4 = vadd.f32 %v2317_v14, %v2189_v32  ;;  %v2574_v5 = vadd.f32 %v2318_v16, %v2190_v33  ;;  %v2687_v13 = vrot.slane %v8186_v39, 6 }
  0xc1   : > { %v2688_v24 = vrot.slane %v8191_v45, 6  ;;  %v2689_v57 = vrot.slane %v8193_v36, 6  ;;  %v2690_v61 = vrot.slane %v8198_v7, 6  ;;  %v2691_v62 = vrot.slane %v8200_v8, 6 }
  0xc2   : > { %v2692_v6 = vrot.slane %v8202_v12, 6  ;;  %v2693_v63 = vrot.slane %v8207_v26, 6  ;;  %v2694_v22 = vrot.slane %v8209_v40, 6  ;;  %v2695_v0 = vrot.slane %v8211_v15, 6 }
  0xc3   : > { %v2696_v23 = vrot.slane %v8214_v17, 6  ;;  %v2697_v53 = vrot.slane %v8216_v27, 6  ;;  %v2698_v30 = vrot.slane %v8218_v41, 6  ;;  %v2699_v44 = vrot.slane %v8221_v28, 6 }
  0xc4   : > { %v2700_v42 = vrot.slane %v8223_v18, 6  ;;  %v2701_v10 = vrot.slane %v11112_v59, 6  ;;  %v2702_v31 = vrot.slane %v11113_v60, 6  ;;  %v2943_v32 = vadd.f32 %v2687_v13, %v2559_v19 }
  0xc5   : > { %v2944_v33 = vadd.f32 %v2688_v24, %v2560_v43  ;;  %v2945_v29 = vadd.f32 %v2689_v57, %v2561_v25  ;;  %v2946_v37 = vadd.f32 %v2690_v61, %v2562_v20  ;;  %v2947_v34 = vadd.f32 %v2691_v62, %v2563_v21 }
  0xc6   : > { %v2948_v46 = vadd.f32 %v2692_v6, %v2564_v47  ;;  %v2949_v51 = vadd.f32 %v2693_v63, %v2565_v48  ;;  %v2950_v38 = vadd.f32 %v2694_v22, %v2566_v49  ;;  %v2951_v52 = vadd.f32 %v2695_v0, %v2567_v50  ;;  %v11114_v48 = vld [vmem:[#allocation13_spill] sm:$0xff]  ;;  %v11115_v49 = vld [vmem:[#allocation14_spill] sm:$0xff] }
  0xc7   : > { %v2952_v35 = vadd.f32 %v2696_v23, %v2568_v54  ;;  %v2953_v58 = vadd.f32 %v2697_v53, %v2569_v55  ;;  %v2954_v1 = vadd.f32 %v2698_v30, %v2570_v2  ;;  %v2955_v9 = vadd.f32 %v2699_v44, %v2571_v56 }
  0xc8   : > { %v2956_v11 = vadd.f32 %v2700_v42, %v2572_v3  ;;  %v2957_v14 = vadd.f32 %v2701_v10, %v2573_v4  ;;  %v2958_v16 = vadd.f32 %v2702_v31, %v2574_v5  ;;  %v3071_v59 = vrot.slane %v8186_v39, 7 }
  0xc9   : > { %v3072_v60 = vrot.slane %v8191_v45, 7  ;;  %v3073_v13 = vrot.slane %v8193_v36, 7  ;;  %v3074_v24 = vrot.slane %v8198_v7, 7  ;;  %v3075_v19 = vrot.slane %v8200_v8, 7 }
  0xca   : > { %v3076_v43 = vrot.slane %v8202_v12, 7  ;;  %v3077_v25 = vrot.slane %v8207_v26, 7  ;;  %v3078_v20 = vrot.slane %v8209_v40, 7  ;;  %v3079_v21 = vrot.slane %v8211_v15, 7 }
  0xcb   : > { %v3080_v47 = vrot.slane %v8214_v17, 7  ;;  %v3081_v39 = vrot.slane %v8216_v27, 7  ;;  %v3082_v45 = vrot.slane %v8218_v41, 7  ;;  %v3083_v36 = vrot.slane %v8221_v28, 7 }
  0xcc   : > { %v3084_v7 = vrot.slane %v8223_v18, 7  ;;  %v3085_v8 = vrot.slane %v11114_v48, 7  ;;  %v3086_v12 = vrot.slane %v11115_v49, 7  ;;  %v3327_v50 = vadd.f32 %v3071_v59, %v2943_v32 }
  0xcd   : > { %v3328_v26 = vadd.f32 %v3072_v60, %v2944_v33  ;;  %v3329_v54 = vadd.f32 %v3073_v13, %v2945_v29  ;;  %v3330_v40 = vadd.f32 %v3074_v24, %v2946_v37  ;;  %v3331_v55 = vadd.f32 %v3075_v19, %v2947_v34 }
  0xce   : > { %v3332_v15 = vadd.f32 %v3076_v43, %v2948_v46  ;;  %v3333_v2 = vadd.f32 %v3077_v25, %v2949_v51  ;;  %v3334_v17 = vadd.f32 %v3078_v20, %v2950_v38  ;;  %v3335_v56 = vadd.f32 %v3079_v21, %v2951_v52 }
  0xcf   : > { %v3336_v27 = vadd.f32 %v3080_v47, %v2952_v35  ;;  %v3337_v3 = vadd.f32 %v3081_v39, %v2953_v58  ;;  %v3338_v41 = vadd.f32 %v3082_v45, %v2954_v1  ;;  %v3339_v4 = vadd.f32 %v3083_v36, %v2955_v9 }
  0xd0   : > { %v3340_v28 = vadd.f32 %v3084_v7, %v2956_v11  ;;  %v3341_v5 = vadd.f32 %v3085_v8, %v2957_v14  ;;  %v3342_v18 = vadd.f32 %v3086_v12, %v2958_v16  ;;  %v3455_v57 = vmul.f32 0.125, %v3327_v50 }
  0xd1   : > { %v3456_v61 = vmul.f32 0.125, %v3328_v26  ;;  %v3457_v62 = vmul.f32 0.125, %v3329_v54  ;;  %v3458_v6 = vmul.f32 0.125, %v3330_v40  ;;  %v3459_v63 = vmul.f32 0.125, %v3331_v55  ;;  %v7140_v54 = vld [vmem:[#allocation7 + $0x74] sm:$0xf] }
  0xd2   : > { %v3460_v22 = vmul.f32 0.125, %v3332_v15  ;;  %v3461_v0 = vmul.f32 0.125, %v3333_v2  ;;  %v3462_v23 = vmul.f32 0.125, %v3334_v17  ;;  %v3463_v53 = vmul.f32 0.125, %v3335_v56  ;;  %v6975_v40 = vld [vmem:[#allocation7 + $0x78] sm:$0xf0] }
  0xd3   : > { %v3464_v30 = vmul.f32 0.125, %v3336_v27  ;;  %v3465_v44 = vmul.f32 0.125, %v3337_v3  ;;  %v3466_v42 = vmul.f32 0.125, %v3338_v41  ;;  %v3467_v59 = vmul.f32 0.125, %v3339_v4  ;;  %v7156_v56 = vld [vmem:[#allocation7 + $0xf4] sm:$0xf] }
  0xd4   : > { %v3468_v10 = vmul.f32 0.125, %v3340_v28  ;;  %v3469_v60 = vmul.f32 0.125, %v3341_v5  ;;  %v3470_v31 = vmul.f32 0.125, %v3342_v18  ;;  %v3583_v32 = vpack.c.bf16 %v3455_v57, %v3455_v57  ;;  %v7039_v28 = vld [vmem:[#allocation7 + $0xf8] sm:$0xf0] }
  0xd5   : > { %v3584_v33 = vpack.c.bf16 %v3456_v61, %v3456_v61  ;;  %v3585_v29 = vpack.c.bf16 %v3457_v62, %v3457_v62  ;;  %v3586_v37 = vpack.c.bf16 %v3458_v6, %v3458_v6  ;;  %v3587_v34 = vpack.c.bf16 %v3459_v63, %v3459_v63  ;;  %v7445_v62 = vld [vmem:[%s7927_s14 + $0x80] sm:$0xff]  }
  0xd6   : > { %v3588_v46 = vpack.c.bf16 %v3460_v22, %v3460_v22  ;;  %v3589_v51 = vpack.c.bf16 %v3461_v0, %v3461_v0  ;;  %v3590_v38 = vpack.c.bf16 %v3462_v23, %v3462_v23  ;;  %v3591_v52 = vpack.c.bf16 %v3463_v53, %v3463_v53  ;;  %v7446_v23 = vld [vmem:[%s7927_s14 + $0x88] sm:$0xff]  }
  0xd7   : > { %v3592_v35 = vpack.c.bf16 %v3464_v30, %v3464_v30  ;;  %v3593_v58 = vpack.c.bf16 %v3465_v44, %v3465_v44  ;;  %v3594_v1 = vpack.c.bf16 %v3466_v42, %v3466_v42  ;;  %v3595_v9 = vpack.c.bf16 %v3467_v59, %v3467_v59  ;;  %v7447_v59 = vld [vmem:[%s7927_s14 + $0x90] sm:$0xff]  }
  0xd8   : > { %v3596_v11 = vpack.c.bf16 %v3468_v10, %v3468_v10  ;;  %v3597_v14 = vpack.c.bf16 %v3469_v60, %v3469_v60  ;;  %v3598_v16 = vpack.c.bf16 %v3470_v31, %v3470_v31  ;;  %v3861_v13 = vunpack.c.l.b16 %v3583_v32 }
  0xd9   : > { %v3862_v24 = vunpack.c.l.b16 %v3584_v33  ;;  %v3863_v19 = vunpack.c.l.b16 %v3585_v29  ;;  %v3864_v43 = vunpack.c.l.b16 %v3586_v37  ;;  %v3865_v25 = vunpack.c.l.b16 %v3587_v34  ;;  %v7448_v33 = vld [vmem:[%s7927_s14 + $0x98] sm:$0xff]  }
  0xda   : > { %v3866_v20 = vunpack.c.l.b16 %v3588_v46  ;;  %v3867_v21 = vunpack.c.l.b16 %v3589_v51  ;;  %v3868_v47 = vunpack.c.l.b16 %v3590_v38  ;;  %v3869_v39 = vunpack.c.l.b16 %v3591_v52  ;;  %v7449_v51 = vld [vmem:[%s7927_s14 + $0xa0] sm:$0xff]   ;;  %v7450_v38 = vld [vmem:[%s7927_s14 + $0xa8] sm:$0xff]  }
  0xdb   : > { %v3870_v45 = vunpack.c.l.b16 %v3592_v35  ;;  %v3871_v36 = vunpack.c.l.b16 %v3593_v58  ;;  %v3872_v7 = vunpack.c.l.b16 %v3594_v1  ;;  %v3873_v48 = vunpack.c.l.b16 %v3595_v9  ;;  %v7451_v9 = vld [vmem:[%s7927_s14 + $0xb0] sm:$0xff]  }
  0xdc   : > { %v3874_v8 = vunpack.c.l.b16 %v3596_v11  ;;  %v3875_v49 = vunpack.c.l.b16 %v3597_v14  ;;  %v3876_v12 = vunpack.c.l.b16 %v3598_v16  ;;  %v4008_v50 = vrot.slane %v3862_v24, 7  ;;  %v7452_v11 = vld [vmem:[%s7927_s14 + $0xb8] sm:$0xff]  }
  0xdd   : > { %v4010_v26 = vrot.slane %v3863_v19, 6  ;;  %v4012_v55 = vrot.slane %v3864_v43, 5  ;;  %v4014_v15 = vrot.slane %v3865_v25, 4  ;;  %v4016_v2 = vrot.slane %v3866_v20, 3 }
  0xde   : > { %v4018_v17 = vrot.slane %v3867_v21, 2  ;;  %v4009_v27 = vsel %vm3974_vm0, %v4008_v50, %v3861_v13  ;;  %v4020_v3 = vrot.slane %v3868_v47, 1  ;;  %v4022_v41 = vrot.slane %v3870_v45, 7 }
  0xdf   : > { %v4024_v4 = vrot.slane %v3871_v36, 6  ;;  %v4011_v5 = vsel %vm3977_vm1, %v4010_v26, %v4009_v27  ;;  %v4026_v18 = vrot.slane %v3872_v7, 5  ;;  %v4028_v57 = vrot.slane %v3873_v48, 4 }
  0xe0   : > { %v4030_v61 = vrot.slane %v3874_v8, 3  ;;  %v4013_v6 = vsel %vm3980_vm2, %v4012_v55, %v4011_v5  ;;  %v4023_v63 = vsel %vm3974_vm0, %v4022_v41, %v3869_v39  ;;  %v4032_v22 = vrot.slane %v3875_v49, 2 }
  0xe1   : > { %v4034_v0 = vrot.slane %v3876_v12, 1  ;;  %v4015_v53 = vsel %vm3983_vm3, %v4014_v15, %v4013_v6  ;;  %v4025_v30 = vsel %vm3977_vm1, %v4024_v4, %v4023_v63  ;;  %v6978_v44 = vor.u32 %v7140_v54, %v6975_v40 }
  0xe2   : > { %v7042_v42 = vor.u32 %v7156_v56, %v7039_v28  ;;  %v4017_v10 = vsel %vm3986_vm4, %v4016_v2, %v4015_v53  ;;  %v4027_v60 = vsel %vm3980_vm2, %v4026_v18, %v4025_v30  ;;  %v8368_v31 = vunpack.c.l.bf16 %v7445_v62 }
  0xe3   : > { %v8370_v32 = vunpack.c.h.bf16 %v7445_v62  ;;  %v4019_v29 = vsel %vm3989_vm5, %v4018_v17, %v4017_v10  ;;  %v4029_v37 = vsel %vm3983_vm3, %v4028_v57, %v4027_v60  ;;  %4742 = vmatpush.bf16.msrb.mxu0 %v6978_v44  ;;  %v8375_v34 = vunpack.c.l.bf16 %v7446_v23 }
  0xe4   : > { %4791 = vmatpush.bf16.msrb.mxu1 %v7042_v42  ;;  %v8377_v46 = vunpack.c.h.bf16 %v7446_v23  ;;  %v4021_v52 = vsel %vm3992_vm6, %v4020_v3, %v4019_v29  ;;  %v4031_v35 = vsel %vm3986_vm4, %v4030_v61, %v4029_v37  ;;  %v8383_v58 = vunpack.c.l.bf16 %v7447_v59 }
  0xe5   : > { %v8385_v1 = vunpack.c.h.bf16 %v7447_v59  ;;  %v4033_v14 = vsel %vm3989_vm5, %v4032_v22, %v4031_v35  ;;  %v8390_v16 = vunpack.c.l.bf16 %v7448_v33  ;;  %v8392_v13 = vunpack.c.h.bf16 %v7448_v33 }
  0xe6   : > { %v8394_v24 = vunpack.c.l.bf16 %v7449_v51  ;;  %v4035_v19 = vsel %vm3992_vm6, %v4034_v0, %v4033_v14  ;;  %v8397_v43 = vunpack.c.h.bf16 %v7449_v51  ;;  %v8399_v25 = vunpack.c.l.bf16 %v7450_v38 }
  0xe7   : > { %v8401_v20 = vunpack.c.h.bf16 %v7450_v38  ;;  %v4205_v21 = vpack.c.b16 %v4035_v19, %v4021_v52  ;;  %v8403_v47 = vunpack.c.l.bf16 %v7451_v9  ;;  %v8405_v39 = vunpack.c.h.bf16 %v7451_v9 }
  0xe8   : > { %v8407_v45 = vunpack.c.l.bf16 %v7452_v11  ;;  %v8409_v36 = vunpack.c.h.bf16 %v7452_v11  ;;  %v783_v7 = vrot.slane %v8368_v31, 1  ;;  %v784_v48 = vrot.slane %v8370_v32, 1 }
  0xe9   : > { %v785_v8 = vrot.slane %v8375_v34, 1  ;;  %4313 = vmatmul.bf16.gmra.mxu0 %v4205_v21  ;;  %4362 = vmatmul.bf16.gmra.mxu1 %v4205_v21  ;;  %v786_v49 = vrot.slane %v8377_v46, 1  ;;  %v787_v12 = vrot.slane %v8383_v58, 1  ;;  %v788_v50 = vrot.slane %v8385_v1, 1 }
  0xea   : > { %11116 = vst [vmem:[#allocation15_spill] sm:$0xff] %v8407_v45  ;;  %v789_v26 = vrot.slane %v8390_v16, 1  ;;  %v790_v54 = vrot.slane %v8392_v13, 1  ;;  %v791_v40 = vrot.slane %v8394_v24, 1  ;;  %v792_v55 = vrot.slane %v8397_v43, 1 }
  0xeb   : > { %11117 = vst [vmem:[#allocation16_spill] sm:$0xff] %v8409_v36  ;;  %v793_v15 = vrot.slane %v8399_v25, 1  ;;  %v794_v2 = vrot.slane %v8401_v20, 1  ;;  %v795_v17 = vrot.slane %v8403_v47, 1  ;;  %v796_v56 = vrot.slane %v8405_v39, 1 }
  0xec   : > { %v797_v27 = vrot.slane %v8407_v45, 1  ;;  %v798_v3 = vrot.slane %v8409_v36, 1  ;;  %v1039_v41 = vadd.f32 %v8368_v31, %v783_v7  ;;  %v1040_v4 = vadd.f32 %v8370_v32, %v784_v48 }
  0xed   : > { %v1041_v28 = vadd.f32 %v8375_v34, %v785_v8  ;;  %v1042_v5 = vadd.f32 %v8377_v46, %v786_v49  ;;  %v1043_v18 = vadd.f32 %v8383_v58, %v787_v12  ;;  %v1044_v57 = vadd.f32 %v8385_v1, %v788_v50 }
  0xee   : > { %v1045_v61 = vadd.f32 %v8390_v16, %v789_v26  ;;  %v1046_v62 = vadd.f32 %v8392_v13, %v790_v54  ;;  %v1047_v6 = vadd.f32 %v8394_v24, %v791_v40  ;;  %v1048_v63 = vadd.f32 %v8397_v43, %v792_v55 }
  0xef   : > { %v1049_v22 = vadd.f32 %v8399_v25, %v793_v15  ;;  %v1050_v0 = vadd.f32 %v8401_v20, %v794_v2  ;;  %v1051_v23 = vadd.f32 %v8403_v47, %v795_v17  ;;  %v1052_v53 = vadd.f32 %v8405_v39, %v796_v56 }
  0xf0   : > { %v1053_v30 = vadd.f32 %v8407_v45, %v797_v27  ;;  %v1054_v44 = vadd.f32 %v8409_v36, %v798_v3  ;;  %v1167_v42 = vrot.slane %v8368_v31, 2  ;;  %v1168_v59 = vrot.slane %v8370_v32, 2 }
  0xf1   : > { %v1169_v10 = vrot.slane %v8375_v34, 2  ;;  %v1170_v60 = vrot.slane %v8377_v46, 2  ;;  %v1171_v33 = vrot.slane %v8383_v58, 2  ;;  %v1172_v29 = vrot.slane %v8385_v1, 2 }
  0xf2   : > { %v1173_v37 = vrot.slane %v8390_v16, 2  ;;  %v1174_v51 = vrot.slane %v8392_v13, 2  ;;  %v1175_v38 = vrot.slane %v8394_v24, 2  ;;  %v1176_v52 = vrot.slane %v8397_v43, 2 }
  0xf3   : > { %v1177_v35 = vrot.slane %v8399_v25, 2  ;;  %v1178_v9 = vrot.slane %v8401_v20, 2  ;;  %v1179_v11 = vrot.slane %v8403_v47, 2  ;;  %v1180_v14 = vrot.slane %v8405_v39, 2 }
  0xf4   : > { %v1181_v19 = vrot.slane %v8407_v45, 2  ;;  %v1182_v21 = vrot.slane %v8409_v36, 2  ;;  %v1423_v7 = vadd.f32 %v1167_v42, %v1039_v41  ;;  %v1424_v48 = vadd.f32 %v1168_v59, %v1040_v4 }
  0xf5   : > { %v1425_v8 = vadd.f32 %v1169_v10, %v1041_v28  ;;  %v1426_v49 = vadd.f32 %v1170_v60, %v1042_v5  ;;  %v1427_v12 = vadd.f32 %v1171_v33, %v1043_v18  ;;  %v1428_v50 = vadd.f32 %v1172_v29, %v1044_v57 }
  0xf6   : > { %v1429_v26 = vadd.f32 %v1173_v37, %v1045_v61  ;;  %v1430_v54 = vadd.f32 %v1174_v51, %v1046_v62  ;;  %v1431_v40 = vadd.f32 %v1175_v38, %v1047_v6  ;;  %v1432_v55 = vadd.f32 %v1176_v52, %v1048_v63 }
  0xf7   : > { %v1433_v15 = vadd.f32 %v1177_v35, %v1049_v22  ;;  %v1434_v2 = vadd.f32 %v1178_v9, %v1050_v0  ;;  %v1435_v17 = vadd.f32 %v1179_v11, %v1051_v23  ;;  %v1436_v56 = vadd.f32 %v1180_v14, %v1052_v53  ;;  %v11118_v23 = vld [vmem:[#allocation15_spill] sm:$0xff] }
  0xf8   : > { %v1437_v27 = vadd.f32 %v1181_v19, %v1053_v30  ;;  %v1438_v3 = vadd.f32 %v1182_v21, %v1054_v44  ;;  %v1551_v45 = vrot.slane %v8368_v31, 3  ;;  %v1552_v36 = vrot.slane %v8370_v32, 3  ;;  %v11119_v30 = vld [vmem:[#allocation16_spill] sm:$0xff] }
  0xf9   : > { %v1553_v41 = vrot.slane %v8375_v34, 3  ;;  %v1554_v4 = vrot.slane %v8377_v46, 3  ;;  %v1555_v28 = vrot.slane %v8383_v58, 3  ;;  %v1556_v5 = vrot.slane %v8385_v1, 3 }
  0xfa   : > { %v1557_v18 = vrot.slane %v8390_v16, 3  ;;  %v1558_v57 = vrot.slane %v8392_v13, 3  ;;  %v1559_v61 = vrot.slane %v8394_v24, 3  ;;  %v1560_v62 = vrot.slane %v8397_v43, 3 }
  0xfb   : > { %v1561_v6 = vrot.slane %v8399_v25, 3  ;;  %v1562_v63 = vrot.slane %v8401_v20, 3  ;;  %v1563_v22 = vrot.slane %v8403_v47, 3  ;;  %v1564_v0 = vrot.slane %v8405_v39, 3 }
  0xfc   : > { %v1565_v53 = vrot.slane %v11118_v23, 3  ;;  %v1566_v44 = vrot.slane %v11119_v30, 3  ;;  %v1807_v42 = vadd.f32 %v1551_v45, %v1423_v7  ;;  %v1808_v59 = vadd.f32 %v1552_v36, %v1424_v48 }
  0xfd   : > { %v1809_v10 = vadd.f32 %v1553_v41, %v1425_v8  ;;  %v1810_v60 = vadd.f32 %v1554_v4, %v1426_v49  ;;  %v1811_v33 = vadd.f32 %v1555_v28, %v1427_v12  ;;  %v1812_v29 = vadd.f32 %v1556_v5, %v1428_v50 }
  0xfe   : > { %v1813_v37 = vadd.f32 %v1557_v18, %v1429_v26  ;;  %v1814_v51 = vadd.f32 %v1558_v57, %v1430_v54  ;;  %v1815_v38 = vadd.f32 %v1559_v61, %v1431_v40  ;;  %v1816_v52 = vadd.f32 %v1560_v62, %v1432_v55 }
  0xff   : > { %v1817_v35 = vadd.f32 %v1561_v6, %v1433_v15  ;;  %v1818_v9 = vadd.f32 %v1562_v63, %v1434_v2  ;;  %v1819_v11 = vadd.f32 %v1563_v22, %v1435_v17  ;;  %v1820_v14 = vadd.f32 %v1564_v0, %v1436_v56  ;;  %v11120_v15 = vld [vmem:[#allocation15_spill] sm:$0xff]  ;;  %v11121_v17 = vld [vmem:[#allocation16_spill] sm:$0xff] }
 0x100   : > { %v1821_v19 = vadd.f32 %v1565_v53, %v1437_v27  ;;  %v1822_v21 = vadd.f32 %v1566_v44, %v1438_v3  ;;  %v1935_v23 = vrot.slane %v8368_v31, 4  ;;  %v1936_v30 = vrot.slane %v8370_v32, 4 }
 0x101   : > { %v1937_v45 = vrot.slane %v8375_v34, 4  ;;  %v1938_v36 = vrot.slane %v8377_v46, 4  ;;  %v1939_v7 = vrot.slane %v8383_v58, 4  ;;  %v1940_v48 = vrot.slane %v8385_v1, 4 }
 0x102   : > { %v1941_v8 = vrot.slane %v8390_v16, 4  ;;  %v1942_v49 = vrot.slane %v8392_v13, 4  ;;  %v1943_v12 = vrot.slane %v8394_v24, 4  ;;  %v1944_v50 = vrot.slane %v8397_v43, 4 }
 0x103   : > { %v1945_v26 = vrot.slane %v8399_v25, 4  ;;  %v1946_v54 = vrot.slane %v8401_v20, 4  ;;  %v1947_v40 = vrot.slane %v8403_v47, 4  ;;  %v1948_v55 = vrot.slane %v8405_v39, 4 }
 0x104   : > { %v1949_v2 = vrot.slane %v11120_v15, 4  ;;  %v1950_v56 = vrot.slane %v11121_v17, 4  ;;  %v2191_v27 = vadd.f32 %v1935_v23, %v1807_v42  ;;  %v2192_v3 = vadd.f32 %v1936_v30, %v1808_v59 }
 0x105   : > { %v2193_v41 = vadd.f32 %v1937_v45, %v1809_v10  ;;  %v2194_v4 = vadd.f32 %v1938_v36, %v1810_v60  ;;  %v2195_v28 = vadd.f32 %v1939_v7, %v1811_v33  ;;  %v2196_v5 = vadd.f32 %v1940_v48, %v1812_v29 }
 0x106   : > { %v2197_v18 = vadd.f32 %v1941_v8, %v1813_v37  ;;  %v2198_v57 = vadd.f32 %v1942_v49, %v1814_v51  ;;  %v2199_v61 = vadd.f32 %v1943_v12, %v1815_v38  ;;  %v2200_v62 = vadd.f32 %v1944_v50, %v1816_v52 }
 0x107   : > { %v2201_v6 = vadd.f32 %v1945_v26, %v1817_v35  ;;  %v2202_v63 = vadd.f32 %v1946_v54, %v1818_v9  ;;  %v2203_v22 = vadd.f32 %v1947_v40, %v1819_v11  ;;  %v2204_v0 = vadd.f32 %v1948_v55, %v1820_v14  ;;  %v11122_v35 = vld [vmem:[#allocation15_spill] sm:$0xff]  ;;  %v11123_v11 = vld [vmem:[#allocation16_spill] sm:$0xff] }
 0x108   : > { %v2205_v53 = vadd.f32 %v1949_v2, %v1821_v19  ;;  %v2206_v44 = vadd.f32 %v1950_v56, %v1822_v21  ;;  %v2319_v15 = vrot.slane %v8368_v31, 5  ;;  %v2320_v17 = vrot.slane %v8370_v32, 5 }
 0x109   : > { %v2321_v23 = vrot.slane %v8375_v34, 5  ;;  %v2322_v30 = vrot.slane %v8377_v46, 5  ;;  %v2323_v42 = vrot.slane %v8383_v58, 5  ;;  %v2324_v59 = vrot.slane %v8385_v1, 5 }
 0x10a   : > { %v2325_v10 = vrot.slane %v8390_v16, 5  ;;  %v2326_v60 = vrot.slane %v8392_v13, 5  ;;  %v2327_v33 = vrot.slane %v8394_v24, 5  ;;  %v2328_v29 = vrot.slane %v8397_v43, 5 }
 0x10b   : > { %v2329_v37 = vrot.slane %v8399_v25, 5  ;;  %v2330_v51 = vrot.slane %v8401_v20, 5  ;;  %v2331_v38 = vrot.slane %v8403_v47, 5  ;;  %v2332_v52 = vrot.slane %v8405_v39, 5 }
 0x10c   : > { %v2333_v9 = vrot.slane %v11122_v35, 5  ;;  %v2334_v14 = vrot.slane %v11123_v11, 5  ;;  %v2575_v19 = vadd.f32 %v2319_v15, %v2191_v27  ;;  %v2576_v21 = vadd.f32 %v2320_v17, %v2192_v3 }
 0x10d   : > { %v2577_v45 = vadd.f32 %v2321_v23, %v2193_v41  ;;  %v2578_v36 = vadd.f32 %v2322_v30, %v2194_v4  ;;  %v2579_v7 = vadd.f32 %v2323_v42, %v2195_v28  ;;  %v2580_v48 = vadd.f32 %v2324_v59, %v2196_v5 }
 0x10e   : > { %v2581_v8 = vadd.f32 %v2325_v10, %v2197_v18  ;;  %v2582_v49 = vadd.f32 %v2326_v60, %v2198_v57  ;;  %v2583_v12 = vadd.f32 %v2327_v33, %v2199_v61  ;;  %v2584_v50 = vadd.f32 %v2328_v29, %v2200_v62 }
 0x10f   : > { %v2585_v26 = vadd.f32 %v2329_v37, %v2201_v6  ;;  %v2586_v54 = vadd.f32 %v2330_v51, %v2202_v63  ;;  %v2587_v40 = vadd.f32 %v2331_v38, %v2203_v22  ;;  %v2588_v55 = vadd.f32 %v2332_v52, %v2204_v0  ;;  %v11124_v6 = vld [vmem:[#allocation15_spill] sm:$0xff]  ;;  %v11125_v22 = vld [vmem:[#allocation16_spill] sm:$0xff] }
 0x110   : > { %v2589_v2 = vadd.f32 %v2333_v9, %v2205_v53  ;;  %v2590_v56 = vadd.f32 %v2334_v14, %v2206_v44  ;;  %v2703_v35 = vrot.slane %v8368_v31, 6  ;;  %v2704_v11 = vrot.slane %v8370_v32, 6 }
 0x111   : > { %v2705_v15 = vrot.slane %v8375_v34, 6  ;;  %v2706_v17 = vrot.slane %v8377_v46, 6  ;;  %v2707_v27 = vrot.slane %v8383_v58, 6  ;;  %v2708_v3 = vrot.slane %v8385_v1, 6 }
 0x112   : > { %v2709_v41 = vrot.slane %v8390_v16, 6  ;;  %v2710_v4 = vrot.slane %v8392_v13, 6  ;;  %v2711_v28 = vrot.slane %v8394_v24, 6  ;;  %v2712_v5 = vrot.slane %v8397_v43, 6 }
 0x113   : > { %v2713_v18 = vrot.slane %v8399_v25, 6  ;;  %v2714_v57 = vrot.slane %v8401_v20, 6  ;;  %v2715_v61 = vrot.slane %v8403_v47, 6  ;;  %v2716_v62 = vrot.slane %v8405_v39, 6 }
 0x114   : > { %v2717_v63 = vrot.slane %v11124_v6, 6  ;;  %v2718_v0 = vrot.slane %v11125_v22, 6  ;;  %v2959_v53 = vadd.f32 %v2703_v35, %v2575_v19  ;;  %v2960_v44 = vadd.f32 %v2704_v11, %v2576_v21 }
 0x115   : > { %v2961_v23 = vadd.f32 %v2705_v15, %v2577_v45  ;;  %v2962_v30 = vadd.f32 %v2706_v17, %v2578_v36  ;;  %v2963_v42 = vadd.f32 %v2707_v27, %v2579_v7  ;;  %v2964_v59 = vadd.f32 %v2708_v3, %v2580_v48 }
 0x116   : > { %v2965_v10 = vadd.f32 %v2709_v41, %v2581_v8  ;;  %v2966_v60 = vadd.f32 %v2710_v4, %v2582_v49  ;;  %v2967_v33 = vadd.f32 %v2711_v28, %v2583_v12  ;;  %v2968_v29 = vadd.f32 %v2712_v5, %v2584_v50  ;;  %v11126_v8 = vld [vmem:[#allocation15_spill] sm:$0xff]  ;;  %v11127_v49 = vld [vmem:[#allocation16_spill] sm:$0xff] }
 0x117   : > { %v2969_v37 = vadd.f32 %v2713_v18, %v2585_v26  ;;  %v2970_v51 = vadd.f32 %v2714_v57, %v2586_v54  ;;  %v2971_v38 = vadd.f32 %v2715_v61, %v2587_v40  ;;  %v2972_v52 = vadd.f32 %v2716_v62, %v2588_v55 }
 0x118   : > { %v2973_v9 = vadd.f32 %v2717_v63, %v2589_v2  ;;  %v2974_v14 = vadd.f32 %v2718_v0, %v2590_v56  ;;  %v3087_v6 = vrot.slane %v8368_v31, 7  ;;  %v3088_v22 = vrot.slane %v8370_v32, 7 }
 0x119   : > { %v3089_v35 = vrot.slane %v8375_v34, 7  ;;  %v3090_v11 = vrot.slane %v8377_v46, 7  ;;  %v3091_v19 = vrot.slane %v8383_v58, 7  ;;  %v3092_v21 = vrot.slane %v8385_v1, 7 }
 0x11a   : > { %v3093_v45 = vrot.slane %v8390_v16, 7  ;;  %v3094_v36 = vrot.slane %v8392_v13, 7  ;;  %v3095_v7 = vrot.slane %v8394_v24, 7  ;;  %v3096_v48 = vrot.slane %v8397_v43, 7 }
 0x11b   : > { %v3097_v31 = vrot.slane %v8399_v25, 7  ;;  %v3098_v32 = vrot.slane %v8401_v20, 7  ;;  %v3099_v34 = vrot.slane %v8403_v47, 7  ;;  %v3100_v46 = vrot.slane %v8405_v39, 7 }
 0x11c   : > { %v3101_v58 = vrot.slane %v11126_v8, 7  ;;  %v3102_v1 = vrot.slane %v11127_v49, 7  ;;  %v3343_v12 = vadd.f32 %v3087_v6, %v2959_v53  ;;  %v3344_v16 = vadd.f32 %v3088_v22, %v2960_v44 }
 0x11d   : > { %v3345_v50 = vadd.f32 %v3089_v35, %v2961_v23  ;;  %v3346_v13 = vadd.f32 %v3090_v11, %v2962_v30  ;;  %v3347_v26 = vadd.f32 %v3091_v19, %v2963_v42  ;;  %v3348_v24 = vadd.f32 %v3092_v21, %v2964_v59 }
 0x11e   : > { %v3349_v54 = vadd.f32 %v3093_v45, %v2965_v10  ;;  %v3350_v43 = vadd.f32 %v3094_v36, %v2966_v60  ;;  %v3351_v40 = vadd.f32 %v3095_v7, %v2967_v33  ;;  %v3352_v25 = vadd.f32 %v3096_v48, %v2968_v29 }
 0x11f   : > { %v3353_v55 = vadd.f32 %v3097_v31, %v2969_v37  ;;  %v3354_v20 = vadd.f32 %v3098_v32, %v2970_v51  ;;  %v3355_v2 = vadd.f32 %v3099_v34, %v2971_v38  ;;  %v3356_v47 = vadd.f32 %v3100_v46, %v2972_v52 }
 0x120   : > { %v3357_v56 = vadd.f32 %v3101_v58, %v2973_v9  ;;  %v3358_v39 = vadd.f32 %v3102_v1, %v2974_v14  ;;  %v3471_v15 = vmul.f32 0.125, %v3343_v12  ;;  %v3472_v17 = vmul.f32 0.125, %v3344_v16  ;;  %v7138_v1 = vld [vmem:[#allocation7 + $0x64] sm:$0xf] }
 0x121   : > { %v3473_v27 = vmul.f32 0.125, %v3345_v50  ;;  %v3474_v3 = vmul.f32 0.125, %v3346_v13  ;;  %v3475_v41 = vmul.f32 0.125, %v3347_v26  ;;  %v3476_v4 = vmul.f32 0.125, %v3348_v24  ;;  %v6967_v26 = vld [vmem:[#allocation7 + $0x68] sm:$0xf0] }
 0x122   : > { %v3477_v28 = vmul.f32 0.125, %v3349_v54  ;;  %v3478_v5 = vmul.f32 0.125, %v3350_v43  ;;  %v3479_v18 = vmul.f32 0.125, %v3351_v40  ;;  %v3480_v57 = vmul.f32 0.125, %v3352_v25  ;;  %v7154_v25 = vld [vmem:[#allocation7 + $0xe4] sm:$0xf] }
 0x123   : > { %v3481_v61 = vmul.f32 0.125, %v3353_v55  ;;  %v3482_v62 = vmul.f32 0.125, %v3354_v20  ;;  %v3483_v6 = vmul.f32 0.125, %v3355_v2  ;;  %v3484_v63 = vmul.f32 0.125, %v3356_v47 }
 0x124   : > { %v3485_v22 = vmul.f32 0.125, %v3357_v56  ;;  %v3486_v0 = vmul.f32 0.125, %v3358_v39  ;;  %v3599_v53 = vpack.c.bf16 %v3471_v15, %v3471_v15  ;;  %v3600_v44 = vpack.c.bf16 %v3472_v17, %v3472_v17  ;;  %v7031_v56 = vld [vmem:[#allocation7 + $0xe8] sm:$0xf0] }
 0x125   : > { %v3601_v23 = vpack.c.bf16 %v3473_v27, %v3473_v27  ;;  %v3602_v30 = vpack.c.bf16 %v3474_v3, %v3474_v3  ;;  %v3603_v42 = vpack.c.bf16 %v3475_v41, %v3475_v41  ;;  %v3604_v59 = vpack.c.bf16 %v3476_v4, %v3476_v4  ;;  %v7453_v3 = vld [vmem:[%s7927_s14 + $0xc0] sm:$0xff]   ;;  %v7454_v41 = vld [vmem:[%s7927_s14 + $0xc8] sm:$0xff]  }
 0x126   : > { %v3605_v10 = vpack.c.bf16 %v3477_v28, %v3477_v28  ;;  %v3606_v60 = vpack.c.bf16 %v3478_v5, %v3478_v5  ;;  %v3607_v33 = vpack.c.bf16 %v3479_v18, %v3479_v18  ;;  %v3608_v29 = vpack.c.bf16 %v3480_v57, %v3480_v57  ;;  %v7455_v57 = vld [vmem:[%s7927_s14 + $0xd0] sm:$0xff]  }
 0x127   : > { %v3609_v37 = vpack.c.bf16 %v3481_v61, %v3481_v61  ;;  %v3610_v51 = vpack.c.bf16 %v3482_v62, %v3482_v62  ;;  %v3611_v38 = vpack.c.bf16 %v3483_v6, %v3483_v6  ;;  %v3612_v52 = vpack.c.bf16 %v3484_v63, %v3484_v63 }
 0x128   : > { %v3613_v9 = vpack.c.bf16 %v3485_v22, %v3485_v22  ;;  %v3614_v14 = vpack.c.bf16 %v3486_v0, %v3486_v0  ;;  %v3877_v35 = vunpack.c.l.b16 %v3599_v53  ;;  %v3878_v11 = vunpack.c.l.b16 %v3600_v44  ;;  %v7456_v22 = vld [vmem:[%s7927_s14 + $0xd8] sm:$0xff]  }
 0x129   : > { %v3879_v19 = vunpack.c.l.b16 %v3601_v23  ;;  %v3880_v21 = vunpack.c.l.b16 %v3602_v30  ;;  %v3881_v45 = vunpack.c.l.b16 %v3603_v42  ;;  %v3882_v36 = vunpack.c.l.b16 %v3604_v59  ;;  %v7457_v30 = vld [vmem:[%s7927_s14 + $0xe0] sm:$0xff]  }
 0x12a   : > { %v3883_v7 = vunpack.c.l.b16 %v3605_v10  ;;  %v3884_v48 = vunpack.c.l.b16 %v3606_v60  ;;  %v3885_v31 = vunpack.c.l.b16 %v3607_v33  ;;  %v3886_v32 = vunpack.c.l.b16 %v3608_v29  ;;  %v7458_v33 = vld [vmem:[%s7927_s14 + $0xe8] sm:$0xff]   ;;  %v7459_v29 = vld [vmem:[%s7927_s14 + $0xf0] sm:$0xff]  }
 0x12b   : > { %v3887_v34 = vunpack.c.l.b16 %v3609_v37  ;;  %v3888_v46 = vunpack.c.l.b16 %v3610_v51  ;;  %v3889_v8 = vunpack.c.l.b16 %v3611_v38  ;;  %v3890_v58 = vunpack.c.l.b16 %v3612_v52 }
 0x12c   : > { %v3891_v49 = vunpack.c.l.b16 %v3613_v9  ;;  %v3892_v12 = vunpack.c.l.b16 %v3614_v14  ;;  %v4036_v16 = vrot.slane %v3878_v11, 7  ;;  %v4038_v50 = vrot.slane %v3879_v19, 6  ;;  %v7460_v9 = vld [vmem:[%s7927_s14 + $0xf8] sm:$0xff]  }
 0x12d   : > { %v4040_v13 = vrot.slane %v3880_v21, 5  ;;  %v4042_v24 = vrot.slane %v3881_v45, 4  ;;  %v4044_v54 = vrot.slane %v3882_v36, 3  ;;  %v4046_v43 = vrot.slane %v3883_v7, 2 }
 0x12e   : > { %v4048_v40 = vrot.slane %v3884_v48, 1  ;;  %v4037_v55 = vsel %vm3974_vm0, %v4036_v16, %v3877_v35  ;;  %v4050_v20 = vrot.slane %v3886_v32, 7  ;;  %v4052_v2 = vrot.slane %v3887_v34, 6 }
 0x12f   : > { %v4054_v47 = vrot.slane %v3888_v46, 5  ;;  %v4039_v39 = vsel %vm3977_vm1, %v4038_v50, %v4037_v55  ;;  %v4056_v15 = vrot.slane %v3889_v8, 4  ;;  %v4058_v17 = vrot.slane %v3890_v58, 3 }
 0x130   : > { %v4060_v27 = vrot.slane %v3891_v49, 2  ;;  %v4041_v4 = vsel %vm3980_vm2, %v4040_v13, %v4039_v39  ;;  %v4051_v28 = vsel %vm3974_vm0, %v4050_v20, %v3885_v31  ;;  %v4062_v5 = vrot.slane %v3892_v12, 1 }
 0x131   : > { %v6970_v18 = vor.u32 %v7138_v1, %v6967_v26  ;;  %v4043_v61 = vsel %vm3983_vm3, %v4042_v24, %v4041_v4  ;;  %v4053_v62 = vsel %vm3977_vm1, %v4052_v2, %v4051_v28  ;;  %v7034_v6 = vor.u32 %v7154_v25, %v7031_v56 }
 0x132   : > { %v8548_v63 = vunpack.c.l.bf16 %v7453_v3  ;;  %v4045_v0 = vsel %vm3986_vm4, %v4044_v54, %v4043_v61  ;;  %v4055_v53 = vsel %vm3980_vm2, %v4054_v47, %v4053_v62  ;;  %v8553_v44 = vunpack.c.h.bf16 %v7453_v3 }
 0x133   : > { %4743 = vmatpush.bf16.msrb.mxu0 %v6970_v18  ;;  %v8555_v23 = vunpack.c.l.bf16 %v7454_v41  ;;  %v4047_v42 = vsel %vm3989_vm5, %v4046_v43, %v4045_v0  ;;  %v4057_v59 = vsel %vm3983_vm3, %v4056_v15, %v4055_v53  ;;  %4792 = vmatpush.bf16.msrb.mxu1 %v7034_v6  ;;  %v8560_v10 = vunpack.c.h.bf16 %v7454_v41 }
 0x134   : > { %v8562_v60 = vunpack.c.l.bf16 %v7455_v57  ;;  %v4049_v37 = vsel %vm3992_vm6, %v4048_v40, %v4047_v42  ;;  %v4059_v51 = vsel %vm3986_vm4, %v4058_v17, %v4057_v59  ;;  %v8568_v38 = vunpack.c.h.bf16 %v7455_v57 }
 0x135   : > { %v8570_v52 = vunpack.c.l.bf16 %v7456_v22  ;;  %v4061_v14 = vsel %vm3989_vm5, %v4060_v27, %v4059_v51  ;;  %v8574_v35 = vunpack.c.h.bf16 %v7456_v22  ;;  %v8576_v11 = vunpack.c.l.bf16 %v7457_v30 }
 0x136   : > { %v8578_v19 = vunpack.c.h.bf16 %v7457_v30  ;;  %v4063_v21 = vsel %vm3992_vm6, %v4062_v5, %v4061_v14  ;;  %v8581_v45 = vunpack.c.l.bf16 %v7458_v33  ;;  %v8583_v36 = vunpack.c.h.bf16 %v7458_v33 }
 0x137   : > { %v8585_v7 = vunpack.c.l.bf16 %v7459_v29  ;;  %v4206_v48 = vpack.c.b16 %v4063_v21, %v4049_v37  ;;  %v8587_v31 = vunpack.c.h.bf16 %v7459_v29  ;;  %v8589_v32 = vunpack.c.l.bf16 %v7460_v9 }
 0x138   : > { %v8591_v34 = vunpack.c.h.bf16 %v7460_v9  ;;  %v799_v46 = vrot.slane %v8548_v63, 1  ;;  %v800_v8 = vrot.slane %v8553_v44, 1  ;;  %v801_v58 = vrot.slane %v8555_v23, 1 }
 0x139   : > { %11128 = vst [vmem:[#allocation17_spill] sm:$0xff] %v8589_v32  ;;  %v802_v49 = vrot.slane %v8560_v10, 1  ;;  %4318 = vmatmul.bf16.gmra.mxu0 %v4206_v48  ;;  %4367 = vmatmul.bf16.gmra.mxu1 %v4206_v48  ;;  %v803_v1 = vrot.slane %v8562_v60, 1  ;;  %v804_v12 = vrot.slane %v8568_v38, 1  ;;  %v805_v16 = vrot.slane %v8570_v52, 1 }
 0x13a   : > { %11129 = vst [vmem:[#allocation18_spill] sm:$0xff] %v8591_v34  ;;  %v806_v50 = vrot.slane %v8574_v35, 1  ;;  %v807_v13 = vrot.slane %v8576_v11, 1  ;;  %v808_v26 = vrot.slane %v8578_v19, 1  ;;  %v809_v24 = vrot.slane %v8581_v45, 1 }
 0x13b   : > { %v810_v54 = vrot.slane %v8583_v36, 1  ;;  %v811_v43 = vrot.slane %v8585_v7, 1  ;;  %v812_v40 = vrot.slane %v8587_v31, 1  ;;  %v813_v25 = vrot.slane %v8589_v32, 1 }
 0x13c   : > { %v814_v55 = vrot.slane %v8591_v34, 1  ;;  %v1055_v20 = vadd.f32 %v8548_v63, %v799_v46  ;;  %v1056_v2 = vadd.f32 %v8553_v44, %v800_v8  ;;  %v1057_v47 = vadd.f32 %v8555_v23, %v801_v58 }
 0x13d   : > { %v1058_v56 = vadd.f32 %v8560_v10, %v802_v49  ;;  %v1059_v39 = vadd.f32 %v8562_v60, %v803_v1  ;;  %v1060_v15 = vadd.f32 %v8568_v38, %v804_v12  ;;  %v1061_v17 = vadd.f32 %v8570_v52, %v805_v16 }
 0x13e   : > { %v1062_v27 = vadd.f32 %v8574_v35, %v806_v50  ;;  %v1063_v3 = vadd.f32 %v8576_v11, %v807_v13  ;;  %v1064_v41 = vadd.f32 %v8578_v19, %v808_v26  ;;  %v1065_v4 = vadd.f32 %v8581_v45, %v809_v24 }
 0x13f   : > { %v1066_v28 = vadd.f32 %v8583_v36, %v810_v54  ;;  %v1067_v5 = vadd.f32 %v8585_v7, %v811_v43  ;;  %v1068_v18 = vadd.f32 %v8587_v31, %v812_v40  ;;  %v1069_v57 = vadd.f32 %v8589_v32, %v813_v25 }
 0x140   : > { %v1070_v61 = vadd.f32 %v8591_v34, %v814_v55  ;;  %v1183_v62 = vrot.slane %v8548_v63, 2  ;;  %v1184_v6 = vrot.slane %v8553_v44, 2  ;;  %v1185_v22 = vrot.slane %v8555_v23, 2 }
 0x141   : > { %v1186_v0 = vrot.slane %v8560_v10, 2  ;;  %v1187_v53 = vrot.slane %v8562_v60, 2  ;;  %v1188_v30 = vrot.slane %v8568_v38, 2  ;;  %v1189_v42 = vrot.slane %v8570_v52, 2 }
 0x142   : > { %v1190_v59 = vrot.slane %v8574_v35, 2  ;;  %v1191_v33 = vrot.slane %v8576_v11, 2  ;;  %v1192_v29 = vrot.slane %v8578_v19, 2  ;;  %v1193_v37 = vrot.slane %v8581_v45, 2 }
 0x143   : > { %v1194_v51 = vrot.slane %v8583_v36, 2  ;;  %v1195_v9 = vrot.slane %v8585_v7, 2  ;;  %v1196_v14 = vrot.slane %v8587_v31, 2  ;;  %v1197_v21 = vrot.slane %v8589_v32, 2 }
 0x144   : > { %v1198_v48 = vrot.slane %v8591_v34, 2  ;;  %v1439_v46 = vadd.f32 %v1183_v62, %v1055_v20  ;;  %v1440_v8 = vadd.f32 %v1184_v6, %v1056_v2  ;;  %v1441_v58 = vadd.f32 %v1185_v22, %v1057_v47 }
 0x145   : > { %v1442_v49 = vadd.f32 %v1186_v0, %v1058_v56  ;;  %v1443_v1 = vadd.f32 %v1187_v53, %v1059_v39  ;;  %v1444_v12 = vadd.f32 %v1188_v30, %v1060_v15  ;;  %v1445_v16 = vadd.f32 %v1189_v42, %v1061_v17 }
 0x146   : > { %v1446_v50 = vadd.f32 %v1190_v59, %v1062_v27  ;;  %v1447_v13 = vadd.f32 %v1191_v33, %v1063_v3  ;;  %v1448_v26 = vadd.f32 %v1192_v29, %v1064_v41  ;;  %v1449_v24 = vadd.f32 %v1193_v37, %v1065_v4 }
 0x147   : > { %v1450_v54 = vadd.f32 %v1194_v51, %v1066_v28  ;;  %v1451_v43 = vadd.f32 %v1195_v9, %v1067_v5  ;;  %v1452_v40 = vadd.f32 %v1196_v14, %v1068_v18  ;;  %v1453_v25 = vadd.f32 %v1197_v21, %v1069_v57  ;;  %v11130_v5 = vld [vmem:[#allocation17_spill] sm:$0xff]  ;;  %v11131_v57 = vld [vmem:[#allocation18_spill] sm:$0xff] }
 0x148   : > { %v1454_v55 = vadd.f32 %v1198_v48, %v1070_v61  ;;  %v1567_v32 = vrot.slane %v8548_v63, 3  ;;  %v1568_v34 = vrot.slane %v8553_v44, 3  ;;  %v1569_v20 = vrot.slane %v8555_v23, 3 }
 0x149   : > { %v1570_v2 = vrot.slane %v8560_v10, 3  ;;  %v1571_v47 = vrot.slane %v8562_v60, 3  ;;  %v1572_v56 = vrot.slane %v8568_v38, 3  ;;  %v1573_v39 = vrot.slane %v8570_v52, 3 }
 0x14a   : > { %v1574_v15 = vrot.slane %v8574_v35, 3  ;;  %v1575_v17 = vrot.slane %v8576_v11, 3  ;;  %v1576_v27 = vrot.slane %v8578_v19, 3  ;;  %v1577_v3 = vrot.slane %v8581_v45, 3 }
 0x14b   : > { %v1578_v41 = vrot.slane %v8583_v36, 3  ;;  %v1579_v4 = vrot.slane %v8585_v7, 3  ;;  %v1580_v28 = vrot.slane %v8587_v31, 3  ;;  %v1581_v18 = vrot.slane %v11130_v5, 3 }
 0x14c   : > { %v1582_v61 = vrot.slane %v11131_v57, 3  ;;  %v1823_v62 = vadd.f32 %v1567_v32, %v1439_v46  ;;  %v1824_v6 = vadd.f32 %v1568_v34, %v1440_v8  ;;  %v1825_v22 = vadd.f32 %v1569_v20, %v1441_v58 }
 0x14d   : > { %v1826_v0 = vadd.f32 %v1570_v2, %v1442_v49  ;;  %v1827_v53 = vadd.f32 %v1571_v47, %v1443_v1  ;;  %v1828_v30 = vadd.f32 %v1572_v56, %v1444_v12  ;;  %v1829_v42 = vadd.f32 %v1573_v39, %v1445_v16 }
 0x14e   : > { %v1830_v59 = vadd.f32 %v1574_v15, %v1446_v50  ;;  %v1831_v33 = vadd.f32 %v1575_v17, %v1447_v13  ;;  %v1832_v29 = vadd.f32 %v1576_v27, %v1448_v26  ;;  %v1833_v37 = vadd.f32 %v1577_v3, %v1449_v24  ;;  %v11132_v24 = vld [vmem:[#allocation17_spill] sm:$0xff] }
 0x14f   : > { %v1834_v51 = vadd.f32 %v1578_v41, %v1450_v54  ;;  %v1835_v9 = vadd.f32 %v1579_v4, %v1451_v43  ;;  %v1836_v14 = vadd.f32 %v1580_v28, %v1452_v40  ;;  %v1837_v21 = vadd.f32 %v1581_v18, %v1453_v25  ;;  %v11133_v43 = vld [vmem:[#allocation18_spill] sm:$0xff] }
 0x150   : > { %v1838_v48 = vadd.f32 %v1582_v61, %v1454_v55  ;;  %v1951_v5 = vrot.slane %v8548_v63, 4  ;;  %v1952_v57 = vrot.slane %v8553_v44, 4  ;;  %v1953_v32 = vrot.slane %v8555_v23, 4 }
 0x151   : > { %v1954_v34 = vrot.slane %v8560_v10, 4  ;;  %v1955_v46 = vrot.slane %v8562_v60, 4  ;;  %v1956_v8 = vrot.slane %v8568_v38, 4  ;;  %v1957_v58 = vrot.slane %v8570_v52, 4 }
 0x152   : > { %v1958_v49 = vrot.slane %v8574_v35, 4  ;;  %v1959_v1 = vrot.slane %v8576_v11, 4  ;;  %v1960_v12 = vrot.slane %v8578_v19, 4  ;;  %v1961_v16 = vrot.slane %v8581_v45, 4 }
 0x153   : > { %v1962_v50 = vrot.slane %v8583_v36, 4  ;;  %v1963_v13 = vrot.slane %v8585_v7, 4  ;;  %v1964_v26 = vrot.slane %v8587_v31, 4  ;;  %v1965_v54 = vrot.slane %v11132_v24, 4 }
 0x154   : > { %v1966_v40 = vrot.slane %v11133_v43, 4  ;;  %v2207_v25 = vadd.f32 %v1951_v5, %v1823_v62  ;;  %v2208_v55 = vadd.f32 %v1952_v57, %v1824_v6  ;;  %v2209_v20 = vadd.f32 %v1953_v32, %v1825_v22 }
 0x155   : > { %v2210_v2 = vadd.f32 %v1954_v34, %v1826_v0  ;;  %v2211_v47 = vadd.f32 %v1955_v46, %v1827_v53  ;;  %v2212_v56 = vadd.f32 %v1956_v8, %v1828_v30  ;;  %v2213_v39 = vadd.f32 %v1957_v58, %v1829_v42 }
 0x156   : > { %v2214_v15 = vadd.f32 %v1958_v49, %v1830_v59  ;;  %v2215_v17 = vadd.f32 %v1959_v1, %v1831_v33  ;;  %v2216_v27 = vadd.f32 %v1960_v12, %v1832_v29  ;;  %v2217_v3 = vadd.f32 %v1961_v16, %v1833_v37  ;;  %v11134_v37 = vld [vmem:[#allocation17_spill] sm:$0xff] }
 0x157   : > { %v2218_v41 = vadd.f32 %v1962_v50, %v1834_v51  ;;  %v2219_v4 = vadd.f32 %v1963_v13, %v1835_v9  ;;  %v2220_v28 = vadd.f32 %v1964_v26, %v1836_v14  ;;  %v2221_v18 = vadd.f32 %v1965_v54, %v1837_v21  ;;  %v11135_v9 = vld [vmem:[#allocation18_spill] sm:$0xff] }
 0x158   : > { %v2222_v61 = vadd.f32 %v1966_v40, %v1838_v48  ;;  %v2335_v24 = vrot.slane %v8548_v63, 5  ;;  %v2336_v43 = vrot.slane %v8553_v44, 5  ;;  %v2337_v5 = vrot.slane %v8555_v23, 5 }
 0x159   : > { %v2338_v57 = vrot.slane %v8560_v10, 5  ;;  %v2339_v62 = vrot.slane %v8562_v60, 5  ;;  %v2340_v6 = vrot.slane %v8568_v38, 5  ;;  %v2341_v22 = vrot.slane %v8570_v52, 5 }
 0x15a   : > { %v2342_v0 = vrot.slane %v8574_v35, 5  ;;  %v2343_v53 = vrot.slane %v8576_v11, 5  ;;  %v2344_v30 = vrot.slane %v8578_v19, 5  ;;  %v2345_v42 = vrot.slane %v8581_v45, 5 }
 0x15b   : > { %v2346_v59 = vrot.slane %v8583_v36, 5  ;;  %v2347_v33 = vrot.slane %v8585_v7, 5  ;;  %v2348_v29 = vrot.slane %v8587_v31, 5  ;;  %v2349_v51 = vrot.slane %v11134_v37, 5 }
 0x15c   : > { %v2350_v14 = vrot.slane %v11135_v9, 5  ;;  %v2591_v21 = vadd.f32 %v2335_v24, %v2207_v25  ;;  %v2592_v48 = vadd.f32 %v2336_v43, %v2208_v55  ;;  %v2593_v32 = vadd.f32 %v2337_v5, %v2209_v20 }
 0x15d   : > { %v2594_v34 = vadd.f32 %v2338_v57, %v2210_v2  ;;  %v2595_v46 = vadd.f32 %v2339_v62, %v2211_v47  ;;  %v2596_v8 = vadd.f32 %v2340_v6, %v2212_v56  ;;  %v2597_v58 = vadd.f32 %v2341_v22, %v2213_v39 }
 0x15e   : > { %v2598_v49 = vadd.f32 %v2342_v0, %v2214_v15  ;;  %v2599_v1 = vadd.f32 %v2343_v53, %v2215_v17  ;;  %v2600_v12 = vadd.f32 %v2344_v30, %v2216_v27  ;;  %v2601_v16 = vadd.f32 %v2345_v42, %v2217_v3  ;;  %v11136_v3 = vld [vmem:[#allocation17_spill] sm:$0xff] }
 0x15f   : > { %v2602_v50 = vadd.f32 %v2346_v59, %v2218_v41  ;;  %v2603_v13 = vadd.f32 %v2347_v33, %v2219_v4  ;;  %v2604_v26 = vadd.f32 %v2348_v29, %v2220_v28  ;;  %v2605_v54 = vadd.f32 %v2349_v51, %v2221_v18  ;;  %v11137_v4 = vld [vmem:[#allocation18_spill] sm:$0xff] }
 0x160   : > { %v2606_v40 = vadd.f32 %v2350_v14, %v2222_v61  ;;  %v2719_v37 = vrot.slane %v8548_v63, 6  ;;  %v2720_v9 = vrot.slane %v8553_v44, 6  ;;  %v2721_v24 = vrot.slane %v8555_v23, 6 }
 0x161   : > { %v2722_v43 = vrot.slane %v8560_v10, 6  ;;  %v2723_v25 = vrot.slane %v8562_v60, 6  ;;  %v2724_v55 = vrot.slane %v8568_v38, 6  ;;  %v2725_v20 = vrot.slane %v8570_v52, 6 }
 0x162   : > { %v2726_v2 = vrot.slane %v8574_v35, 6  ;;  %v2727_v47 = vrot.slane %v8576_v11, 6  ;;  %v2728_v56 = vrot.slane %v8578_v19, 6  ;;  %v2729_v39 = vrot.slane %v8581_v45, 6 }
 0x163   : > { %v2730_v15 = vrot.slane %v8583_v36, 6  ;;  %v2731_v17 = vrot.slane %v8585_v7, 6  ;;  %v2732_v27 = vrot.slane %v8587_v31, 6  ;;  %v2733_v41 = vrot.slane %v11136_v3, 6 }
 0x164   : > { %v2734_v28 = vrot.slane %v11137_v4, 6  ;;  %v2975_v18 = vadd.f32 %v2719_v37, %v2591_v21  ;;  %v2976_v61 = vadd.f32 %v2720_v9, %v2592_v48  ;;  %v2977_v5 = vadd.f32 %v2721_v24, %v2593_v32 }
 0x165   : > { %v2978_v57 = vadd.f32 %v2722_v43, %v2594_v34  ;;  %v2979_v62 = vadd.f32 %v2723_v25, %v2595_v46  ;;  %v2980_v6 = vadd.f32 %v2724_v55, %v2596_v8  ;;  %v2981_v22 = vadd.f32 %v2725_v20, %v2597_v58  ;;  %v11138_v58 = vld [vmem:[#allocation17_spill] sm:$0xff] }
 0x166   : > { %v2982_v0 = vadd.f32 %v2726_v2, %v2598_v49  ;;  %v2983_v53 = vadd.f32 %v2727_v47, %v2599_v1  ;;  %v2984_v30 = vadd.f32 %v2728_v56, %v2600_v12  ;;  %v2985_v42 = vadd.f32 %v2729_v39, %v2601_v16  ;;  %v11139_v49 = vld [vmem:[#allocation18_spill] sm:$0xff] }
 0x167   : > { %v2986_v59 = vadd.f32 %v2730_v15, %v2602_v50  ;;  %v2987_v33 = vadd.f32 %v2731_v17, %v2603_v13  ;;  %v2988_v29 = vadd.f32 %v2732_v27, %v2604_v26  ;;  %v2989_v51 = vadd.f32 %v2733_v41, %v2605_v54 }
 0x168   : > { %v2990_v14 = vadd.f32 %v2734_v28, %v2606_v40  ;;  %v3103_v3 = vrot.slane %v8548_v63, 7  ;;  %v3104_v4 = vrot.slane %v8553_v44, 7  ;;  %v3105_v37 = vrot.slane %v8555_v23, 7 }
 0x169   : > { %v3106_v9 = vrot.slane %v8560_v10, 7  ;;  %v3107_v21 = vrot.slane %v8562_v60, 7  ;;  %v3108_v48 = vrot.slane %v8568_v38, 7  ;;  %v3109_v32 = vrot.slane %v8570_v52, 7 }
 0x16a   : > { %v3110_v34 = vrot.slane %v8574_v35, 7  ;;  %v3111_v46 = vrot.slane %v8576_v11, 7  ;;  %v3112_v8 = vrot.slane %v8578_v19, 7  ;;  %v3113_v63 = vrot.slane %v8581_v45, 7 }
 0x16b   : > { %v3114_v44 = vrot.slane %v8583_v36, 7  ;;  %v3115_v23 = vrot.slane %v8585_v7, 7  ;;  %v3116_v10 = vrot.slane %v8587_v31, 7  ;;  %v3117_v60 = vrot.slane %v11138_v58, 7 }
 0x16c   : > { %v3118_v38 = vrot.slane %v11139_v49, 7  ;;  %v3359_v1 = vadd.f32 %v3103_v3, %v2975_v18  ;;  %v3360_v52 = vadd.f32 %v3104_v4, %v2976_v61  ;;  %v3361_v12 = vadd.f32 %v3105_v37, %v2977_v5 }
 0x16d   : > { %v3362_v35 = vadd.f32 %v3106_v9, %v2978_v57  ;;  %v3363_v16 = vadd.f32 %v3107_v21, %v2979_v62  ;;  %v3364_v11 = vadd.f32 %v3108_v48, %v2980_v6  ;;  %v3365_v50 = vadd.f32 %v3109_v32, %v2981_v22 }
 0x16e   : > { %v3366_v19 = vadd.f32 %v3110_v34, %v2982_v0  ;;  %v3367_v13 = vadd.f32 %v3111_v46, %v2983_v53  ;;  %v3368_v45 = vadd.f32 %v3112_v8, %v2984_v30  ;;  %v3369_v26 = vadd.f32 %v3113_v63, %v2985_v42 }
 0x16f   : > { %v3370_v36 = vadd.f32 %v3114_v44, %v2986_v59  ;;  %v3371_v54 = vadd.f32 %v3115_v23, %v2987_v33  ;;  %v3372_v7 = vadd.f32 %v3116_v10, %v2988_v29  ;;  %v3373_v40 = vadd.f32 %v3117_v60, %v2989_v51 }
 0x170   : > { %v3374_v31 = vadd.f32 %v3118_v38, %v2990_v14  ;;  %v3487_v24 = vmul.f32 0.125, %v3359_v1  ;;  %v3488_v43 = vmul.f32 0.125, %v3360_v52  ;;  %v3489_v25 = vmul.f32 0.125, %v3361_v12  ;;  %v7136_v1 = vld [vmem:[#allocation7 + $0x54] sm:$0xf] }
 0x171   : > { %v3490_v55 = vmul.f32 0.125, %v3362_v35  ;;  %v3491_v20 = vmul.f32 0.125, %v3363_v16  ;;  %v3492_v2 = vmul.f32 0.125, %v3364_v11  ;;  %v3493_v47 = vmul.f32 0.125, %v3365_v50  ;;  %v6959_v11 = vld [vmem:[#allocation7 + $0x58] sm:$0xf0] }
 0x172   : > { %v3494_v56 = vmul.f32 0.125, %v3366_v19  ;;  %v3495_v39 = vmul.f32 0.125, %v3367_v13  ;;  %v3496_v15 = vmul.f32 0.125, %v3368_v45  ;;  %v3497_v17 = vmul.f32 0.125, %v3369_v26  ;;  %v7152_v26 = vld [vmem:[#allocation7 + $0xd4] sm:$0xf] }
 0x173   : > { %v3498_v27 = vmul.f32 0.125, %v3370_v36  ;;  %v3499_v3 = vmul.f32 0.125, %v3371_v54  ;;  %v3500_v41 = vmul.f32 0.125, %v3372_v7  ;;  %v3501_v4 = vmul.f32 0.125, %v3373_v40 }
 0x174   : > { %v3502_v28 = vmul.f32 0.125, %v3374_v31  ;;  %v3615_v18 = vpack.c.bf16 %v3487_v24, %v3487_v24  ;;  %v3616_v61 = vpack.c.bf16 %v3488_v43, %v3488_v43  ;;  %v3617_v5 = vpack.c.bf16 %v3489_v25, %v3489_v25  ;;  %v7023_v31 = vld [vmem:[#allocation7 + $0xd8] sm:$0xf0] }
 0x175   : > { %v3618_v57 = vpack.c.bf16 %v3490_v55, %v3490_v55  ;;  %v3619_v62 = vpack.c.bf16 %v3491_v20, %v3491_v20  ;;  %v3620_v6 = vpack.c.bf16 %v3492_v2, %v3492_v2  ;;  %v3621_v22 = vpack.c.bf16 %v3493_v47, %v3493_v47  ;;  %v7461_v20 = vld [vmem:[%s7927_s14 + $0x100] sm:$0xff]   ;;  %v7462_v2 = vld [vmem:[%s7927_s14 + $0x108] sm:$0xff]  }
 0x176   : > { %v3622_v0 = vpack.c.bf16 %v3494_v56, %v3494_v56  ;;  %v3623_v53 = vpack.c.bf16 %v3495_v39, %v3495_v39  ;;  %v3624_v30 = vpack.c.bf16 %v3496_v15, %v3496_v15  ;;  %v3625_v42 = vpack.c.bf16 %v3497_v17, %v3497_v17  ;;  %v7463_v17 = vld [vmem:[%s7927_s14 + $0x110] sm:$0xff]  }
 0x177   : > { %v3626_v59 = vpack.c.bf16 %v3498_v27, %v3498_v27  ;;  %v3627_v33 = vpack.c.bf16 %v3499_v3, %v3499_v3  ;;  %v3628_v29 = vpack.c.bf16 %v3500_v41, %v3500_v41  ;;  %v3629_v51 = vpack.c.bf16 %v3501_v4, %v3501_v4 }
 0x178   : > { %v3630_v14 = vpack.c.bf16 %v3502_v28, %v3502_v28  ;;  %v3893_v37 = vunpack.c.l.b16 %v3615_v18  ;;  %v3894_v9 = vunpack.c.l.b16 %v3616_v61  ;;  %v3895_v21 = vunpack.c.l.b16 %v3617_v5  ;;  %v7464_v28 = vld [vmem:[%s7927_s14 + $0x118] sm:$0xff]  }
 0x179   : > { %v3896_v48 = vunpack.c.l.b16 %v3618_v57  ;;  %v3897_v32 = vunpack.c.l.b16 %v3619_v62  ;;  %v3898_v34 = vunpack.c.l.b16 %v3620_v6  ;;  %v3899_v46 = vunpack.c.l.b16 %v3621_v22  ;;  %v7465_v62 = vld [vmem:[%s7927_s14 + $0x120] sm:$0xff]  }
 0x17a   : > { %v3900_v8 = vunpack.c.l.b16 %v3622_v0  ;;  %v3901_v63 = vunpack.c.l.b16 %v3623_v53  ;;  %v3902_v44 = vunpack.c.l.b16 %v3624_v30  ;;  %v3903_v23 = vunpack.c.l.b16 %v3625_v42  ;;  %v7466_v30 = vld [vmem:[%s7927_s14 + $0x128] sm:$0xff]   ;;  %v7467_v42 = vld [vmem:[%s7927_s14 + $0x130] sm:$0xff]  }
 0x17b   : > { %v3904_v10 = vunpack.c.l.b16 %v3626_v59  ;;  %v3905_v58 = vunpack.c.l.b16 %v3627_v33  ;;  %v3906_v60 = vunpack.c.l.b16 %v3628_v29  ;;  %v3907_v49 = vunpack.c.l.b16 %v3629_v51 }
 0x17c   : > { %v3908_v38 = vunpack.c.l.b16 %v3630_v14  ;;  %v4064_v52 = vrot.slane %v3894_v9, 7  ;;  %v4066_v12 = vrot.slane %v3895_v21, 6  ;;  %v4068_v35 = vrot.slane %v3896_v48, 5  ;;  %v7468_v14 = vld [vmem:[%s7927_s14 + $0x138] sm:$0xff]  }
 0x17d   : > { %v4070_v16 = vrot.slane %v3897_v32, 4  ;;  %v4072_v50 = vrot.slane %v3898_v34, 3  ;;  %v4074_v19 = vrot.slane %v3899_v46, 2  ;;  %v4076_v13 = vrot.slane %v3900_v8, 1 }
 0x17e   : > { %v4078_v45 = vrot.slane %v3902_v44, 7  ;;  %v4065_v36 = vsel %vm3974_vm0, %v4064_v52, %v3893_v37  ;;  %v4080_v54 = vrot.slane %v3903_v23, 6  ;;  %v4082_v7 = vrot.slane %v3904_v10, 5 }
 0x17f   : > { %v4084_v40 = vrot.slane %v3905_v58, 4  ;;  %v4067_v24 = vsel %vm3977_vm1, %v4066_v12, %v4065_v36  ;;  %v4086_v25 = vrot.slane %v3906_v60, 3  ;;  %v4088_v55 = vrot.slane %v3907_v49, 2 }
 0x180   : > { %v4079_v43 = vsel %vm3974_vm0, %v4078_v45, %v3901_v63  ;;  %v4069_v47 = vsel %vm3980_vm2, %v4068_v35, %v4067_v24  ;;  %v4090_v39 = vrot.slane %v3908_v38, 1  ;;  %v6962_v15 = vor.u32 %v7136_v1, %v6959_v11 }
 0x181   : > { %v4081_v56 = vsel %vm3977_vm1, %v4080_v54, %v4079_v43  ;;  %v4071_v27 = vsel %vm3983_vm3, %v4070_v16, %v4069_v47  ;;  %v7026_v41 = vor.u32 %v7152_v26, %v7023_v31  ;;  %v8731_v4 = vunpack.c.l.bf16 %v7461_v20 }
 0x182   : > { %v4083_v3 = vsel %vm3980_vm2, %v4082_v7, %v4081_v56  ;;  %v4073_v18 = vsel %vm3986_vm4, %v4072_v50, %v4071_v27  ;;  %4744 = vmatpush.bf16.msrb.mxu0 %v6962_v15  ;;  %v8736_v5 = vunpack.c.h.bf16 %v7461_v20  ;;  %v8738_v57 = vunpack.c.l.bf16 %v7462_v2 }
 0x183   : > { %v4085_v61 = vsel %vm3983_vm3, %v4084_v40, %v4083_v3  ;;  %v4075_v6 = vsel %vm3989_vm5, %v4074_v19, %v4073_v18  ;;  %4793 = vmatpush.bf16.msrb.mxu1 %v7026_v41  ;;  %v8743_v0 = vunpack.c.h.bf16 %v7462_v2  ;;  %v8745_v53 = vunpack.c.l.bf16 %v7463_v17 }
 0x184   : > { %v4087_v22 = vsel %vm3986_vm4, %v4086_v25, %v4085_v61  ;;  %v4077_v59 = vsel %vm3992_vm6, %v4076_v13, %v4075_v6  ;;  %v8751_v29 = vunpack.c.h.bf16 %v7463_v17  ;;  %v8753_v51 = vunpack.c.l.bf16 %v7464_v28 }
 0x185   : > { %v4089_v33 = vsel %vm3989_vm5, %v4088_v55, %v4087_v22  ;;  %v8757_v9 = vunpack.c.h.bf16 %v7464_v28  ;;  %v8759_v21 = vunpack.c.l.bf16 %v7465_v62  ;;  %v8761_v48 = vunpack.c.h.bf16 %v7465_v62 }
 0x186   : > { %v4091_v37 = vsel %vm3992_vm6, %v4090_v39, %v4089_v33  ;;  %v8763_v34 = vunpack.c.l.bf16 %v7466_v30  ;;  %v8765_v46 = vunpack.c.h.bf16 %v7466_v30  ;;  %v8767_v8 = vunpack.c.l.bf16 %v7467_v42 }
 0x187   : > { %v4207_v32 = vpack.c.b16 %v4091_v37, %v4077_v59  ;;  %v8769_v63 = vunpack.c.h.bf16 %v7467_v42  ;;  %v8771_v44 = vunpack.c.l.bf16 %v7468_v14  ;;  %v8773_v23 = vunpack.c.h.bf16 %v7468_v14 }
 0x188   : > { %v815_v10 = vrot.slane %v8731_v4, 1  ;;  %v816_v58 = vrot.slane %v8736_v5, 1  ;;  %v817_v60 = vrot.slane %v8738_v57, 1  ;;  %v818_v49 = vrot.slane %v8743_v0, 1 }
 0x189   : > { %11140 = vst [vmem:[#allocation13_spill] sm:$0xff] %v8771_v44  ;;  %4323 = vmatmul.bf16.gmra.mxu0 %v4207_v32  ;;  %4372 = vmatmul.bf16.gmra.mxu1 %v4207_v32  ;;  %v819_v38 = vrot.slane %v8745_v53, 1  ;;  %v820_v1 = vrot.slane %v8751_v29, 1  ;;  %v821_v52 = vrot.slane %v8753_v51, 1  ;;  %v822_v12 = vrot.slane %v8757_v9, 1 }
 0x18a   : > { %11141 = vst [vmem:[#allocation14_spill] sm:$0xff] %v8773_v23  ;;  %v823_v35 = vrot.slane %v8759_v21, 1  ;;  %v824_v16 = vrot.slane %v8761_v48, 1  ;;  %v825_v11 = vrot.slane %v8763_v34, 1  ;;  %v826_v50 = vrot.slane %v8765_v46, 1 }
 0x18b   : > { %v827_v19 = vrot.slane %v8767_v8, 1  ;;  %v828_v13 = vrot.slane %v8769_v63, 1  ;;  %v829_v45 = vrot.slane %v8771_v44, 1  ;;  %v830_v26 = vrot.slane %v8773_v23, 1 }
 0x18c   : > { %v1071_v36 = vadd.f32 %v8731_v4, %v815_v10  ;;  %v1072_v54 = vadd.f32 %v8736_v5, %v816_v58  ;;  %v1073_v7 = vadd.f32 %v8738_v57, %v817_v60  ;;  %v1074_v40 = vadd.f32 %v8743_v0, %v818_v49 }
 0x18d   : > { %v1075_v31 = vadd.f32 %v8745_v53, %v819_v38  ;;  %v1076_v24 = vadd.f32 %v8751_v29, %v820_v1  ;;  %v1077_v43 = vadd.f32 %v8753_v51, %v821_v52  ;;  %v1078_v25 = vadd.f32 %v8757_v9, %v822_v12 }
 0x18e   : > { %v1079_v55 = vadd.f32 %v8759_v21, %v823_v35  ;;  %v1080_v20 = vadd.f32 %v8761_v48, %v824_v16  ;;  %v1081_v2 = vadd.f32 %v8763_v34, %v825_v11  ;;  %v1082_v47 = vadd.f32 %v8765_v46, %v826_v50 }
 0x18f   : > { %v1083_v56 = vadd.f32 %v8767_v8, %v827_v19  ;;  %v1084_v39 = vadd.f32 %v8769_v63, %v828_v13  ;;  %v1085_v15 = vadd.f32 %v8771_v44, %v829_v45  ;;  %v1086_v17 = vadd.f32 %v8773_v23, %v830_v26 }
 0x190   : > { %v1199_v27 = vrot.slane %v8731_v4, 2  ;;  %v1200_v3 = vrot.slane %v8736_v5, 2  ;;  %v1201_v41 = vrot.slane %v8738_v57, 2  ;;  %v1202_v28 = vrot.slane %v8743_v0, 2 }
 0x191   : > { %v1203_v18 = vrot.slane %v8745_v53, 2  ;;  %v1204_v61 = vrot.slane %v8751_v29, 2  ;;  %v1205_v62 = vrot.slane %v8753_v51, 2  ;;  %v1206_v6 = vrot.slane %v8757_v9, 2 }
 0x192   : > { %v1207_v22 = vrot.slane %v8759_v21, 2  ;;  %v1208_v30 = vrot.slane %v8761_v48, 2  ;;  %v1209_v42 = vrot.slane %v8763_v34, 2  ;;  %v1210_v59 = vrot.slane %v8765_v46, 2 }
 0x193   : > { %v1211_v33 = vrot.slane %v8767_v8, 2  ;;  %v1212_v14 = vrot.slane %v8769_v63, 2  ;;  %v1213_v37 = vrot.slane %v8771_v44, 2  ;;  %v1214_v32 = vrot.slane %v8773_v23, 2 }
 0x194   : > { %v1455_v10 = vadd.f32 %v1199_v27, %v1071_v36  ;;  %v1456_v58 = vadd.f32 %v1200_v3, %v1072_v54  ;;  %v1457_v60 = vadd.f32 %v1201_v41, %v1073_v7  ;;  %v1458_v49 = vadd.f32 %v1202_v28, %v1074_v40 }
 0x195   : > { %v1459_v38 = vadd.f32 %v1203_v18, %v1075_v31  ;;  %v1460_v1 = vadd.f32 %v1204_v61, %v1076_v24  ;;  %v1461_v52 = vadd.f32 %v1205_v62, %v1077_v43  ;;  %v1462_v12 = vadd.f32 %v1206_v6, %v1078_v25 }
 0x196   : > { %v1463_v35 = vadd.f32 %v1207_v22, %v1079_v55  ;;  %v1464_v16 = vadd.f32 %v1208_v30, %v1080_v20  ;;  %v1465_v11 = vadd.f32 %v1209_v42, %v1081_v2  ;;  %v1466_v50 = vadd.f32 %v1210_v59, %v1082_v47 }
 0x197   : > { %v1467_v19 = vadd.f32 %v1211_v33, %v1083_v56  ;;  %v1468_v13 = vadd.f32 %v1212_v14, %v1084_v39  ;;  %v1469_v45 = vadd.f32 %v1213_v37, %v1085_v15  ;;  %v1470_v26 = vadd.f32 %v1214_v32, %v1086_v17  ;;  %v11142_v56 = vld [vmem:[#allocation13_spill] sm:$0xff]  ;;  %v11143_v15 = vld [vmem:[#allocation14_spill] sm:$0xff] }
 0x198   : > { %v1583_v44 = vrot.slane %v8731_v4, 3  ;;  %v1584_v23 = vrot.slane %v8736_v5, 3  ;;  %v1585_v36 = vrot.slane %v8738_v57, 3  ;;  %v1586_v54 = vrot.slane %v8743_v0, 3 }
 0x199   : > { %v1587_v7 = vrot.slane %v8745_v53, 3  ;;  %v1588_v40 = vrot.slane %v8751_v29, 3  ;;  %v1589_v31 = vrot.slane %v8753_v51, 3  ;;  %v1590_v24 = vrot.slane %v8757_v9, 3 }
 0x19a   : > { %v1591_v43 = vrot.slane %v8759_v21, 3  ;;  %v1592_v25 = vrot.slane %v8761_v48, 3  ;;  %v1593_v55 = vrot.slane %v8763_v34, 3  ;;  %v1594_v20 = vrot.slane %v8765_v46, 3 }
 0x19b   : > { %v1595_v2 = vrot.slane %v8767_v8, 3  ;;  %v1596_v47 = vrot.slane %v8769_v63, 3  ;;  %v1597_v39 = vrot.slane %v11142_v56, 3  ;;  %v1598_v17 = vrot.slane %v11143_v15, 3 }
 0x19c   : > { %v1839_v27 = vadd.f32 %v1583_v44, %v1455_v10  ;;  %v1840_v3 = vadd.f32 %v1584_v23, %v1456_v58  ;;  %v1841_v41 = vadd.f32 %v1585_v36, %v1457_v60  ;;  %v1842_v28 = vadd.f32 %v1586_v54, %v1458_v49 }
 0x19d   : > { %v1843_v18 = vadd.f32 %v1587_v7, %v1459_v38  ;;  %v1844_v61 = vadd.f32 %v1588_v40, %v1460_v1  ;;  %v1845_v62 = vadd.f32 %v1589_v31, %v1461_v52  ;;  %v1846_v6 = vadd.f32 %v1590_v24, %v1462_v12 }
 0x19e   : > { %v1847_v22 = vadd.f32 %v1591_v43, %v1463_v35  ;;  %v1848_v30 = vadd.f32 %v1592_v25, %v1464_v16  ;;  %v1849_v42 = vadd.f32 %v1593_v55, %v1465_v11  ;;  %v1850_v59 = vadd.f32 %v1594_v20, %v1466_v50  ;;  %v11144_v11 = vld [vmem:[#allocation13_spill] sm:$0xff] }
 0x19f   : > { %v1851_v33 = vadd.f32 %v1595_v2, %v1467_v19  ;;  %v1852_v14 = vadd.f32 %v1596_v47, %v1468_v13  ;;  %v1853_v37 = vadd.f32 %v1597_v39, %v1469_v45  ;;  %v1854_v32 = vadd.f32 %v1598_v17, %v1470_v26  ;;  %v11145_v19 = vld [vmem:[#allocation14_spill] sm:$0xff] }
 0x1a0   : > { %v1967_v56 = vrot.slane %v8731_v4, 4  ;;  %v1968_v15 = vrot.slane %v8736_v5, 4  ;;  %v1969_v44 = vrot.slane %v8738_v57, 4  ;;  %v1970_v23 = vrot.slane %v8743_v0, 4 }
 0x1a1   : > { %v1971_v10 = vrot.slane %v8745_v53, 4  ;;  %v1972_v58 = vrot.slane %v8751_v29, 4  ;;  %v1973_v60 = vrot.slane %v8753_v51, 4  ;;  %v1974_v49 = vrot.slane %v8757_v9, 4 }
 0x1a2   : > { %v1975_v38 = vrot.slane %v8759_v21, 4  ;;  %v1976_v1 = vrot.slane %v8761_v48, 4  ;;  %v1977_v52 = vrot.slane %v8763_v34, 4  ;;  %v1978_v12 = vrot.slane %v8765_v46, 4 }
 0x1a3   : > { %v1979_v35 = vrot.slane %v8767_v8, 4  ;;  %v1980_v16 = vrot.slane %v8769_v63, 4  ;;  %v1981_v50 = vrot.slane %v11144_v11, 4  ;;  %v1982_v13 = vrot.slane %v11145_v19, 4 }
 0x1a4   : > { %v2223_v45 = vadd.f32 %v1967_v56, %v1839_v27  ;;  %v2224_v26 = vadd.f32 %v1968_v15, %v1840_v3  ;;  %v2225_v36 = vadd.f32 %v1969_v44, %v1841_v41  ;;  %v2226_v54 = vadd.f32 %v1970_v23, %v1842_v28 }
 0x1a5   : > { %v2227_v7 = vadd.f32 %v1971_v10, %v1843_v18  ;;  %v2228_v40 = vadd.f32 %v1972_v58, %v1844_v61  ;;  %v2229_v31 = vadd.f32 %v1973_v60, %v1845_v62  ;;  %v2230_v24 = vadd.f32 %v1974_v49, %v1846_v6 }
 0x1a6   : > { %v2231_v43 = vadd.f32 %v1975_v38, %v1847_v22  ;;  %v2232_v25 = vadd.f32 %v1976_v1, %v1848_v30  ;;  %v2233_v55 = vadd.f32 %v1977_v52, %v1849_v42  ;;  %v2234_v20 = vadd.f32 %v1978_v12, %v1850_v59  ;;  %v11146_v42 = vld [vmem:[#allocation13_spill] sm:$0xff] }
 0x1a7   : > { %v2235_v2 = vadd.f32 %v1979_v35, %v1851_v33  ;;  %v2236_v47 = vadd.f32 %v1980_v16, %v1852_v14  ;;  %v2237_v39 = vadd.f32 %v1981_v50, %v1853_v37  ;;  %v2238_v17 = vadd.f32 %v1982_v13, %v1854_v32  ;;  %v11147_v33 = vld [vmem:[#allocation14_spill] sm:$0xff] }
 0x1a8   : > { %v2351_v11 = vrot.slane %v8731_v4, 5  ;;  %v2352_v19 = vrot.slane %v8736_v5, 5  ;;  %v2353_v56 = vrot.slane %v8738_v57, 5  ;;  %v2354_v15 = vrot.slane %v8743_v0, 5 }
 0x1a9   : > { %v2355_v27 = vrot.slane %v8745_v53, 5  ;;  %v2356_v3 = vrot.slane %v8751_v29, 5  ;;  %v2357_v41 = vrot.slane %v8753_v51, 5  ;;  %v2358_v28 = vrot.slane %v8757_v9, 5 }
 0x1aa   : > { %v2359_v18 = vrot.slane %v8759_v21, 5  ;;  %v2360_v61 = vrot.slane %v8761_v48, 5  ;;  %v2361_v62 = vrot.slane %v8763_v34, 5  ;;  %v2362_v6 = vrot.slane %v8765_v46, 5 }
 0x1ab   : > { %v2363_v22 = vrot.slane %v8767_v8, 5  ;;  %v2364_v30 = vrot.slane %v8769_v63, 5  ;;  %v2365_v59 = vrot.slane %v11146_v42, 5  ;;  %v2366_v14 = vrot.slane %v11147_v33, 5 }
 0x1ac   : > { %v2607_v37 = vadd.f32 %v2351_v11, %v2223_v45  ;;  %v2608_v32 = vadd.f32 %v2352_v19, %v2224_v26  ;;  %v2609_v44 = vadd.f32 %v2353_v56, %v2225_v36  ;;  %v2610_v23 = vadd.f32 %v2354_v15, %v2226_v54 }
 0x1ad   : > { %v2611_v10 = vadd.f32 %v2355_v27, %v2227_v7  ;;  %v2612_v58 = vadd.f32 %v2356_v3, %v2228_v40  ;;  %v2613_v60 = vadd.f32 %v2357_v41, %v2229_v31  ;;  %v2614_v49 = vadd.f32 %v2358_v28, %v2230_v24 }
 0x1ae   : > { %v2615_v38 = vadd.f32 %v2359_v18, %v2231_v43  ;;  %v2616_v1 = vadd.f32 %v2360_v61, %v2232_v25  ;;  %v2617_v52 = vadd.f32 %v2361_v62, %v2233_v55  ;;  %v2618_v12 = vadd.f32 %v2362_v6, %v2234_v20  ;;  %v11148_v55 = vld [vmem:[#allocation13_spill] sm:$0xff] }
 0x1af   : > { %v2619_v35 = vadd.f32 %v2363_v22, %v2235_v2  ;;  %v2620_v16 = vadd.f32 %v2364_v30, %v2236_v47  ;;  %v2621_v50 = vadd.f32 %v2365_v59, %v2237_v39  ;;  %v2622_v13 = vadd.f32 %v2366_v14, %v2238_v17  ;;  %v11149_v2 = vld [vmem:[#allocation14_spill] sm:$0xff] }
 0x1b0   : > { %v2735_v42 = vrot.slane %v8731_v4, 6  ;;  %v2736_v33 = vrot.slane %v8736_v5, 6  ;;  %v2737_v11 = vrot.slane %v8738_v57, 6  ;;  %v2738_v19 = vrot.slane %v8743_v0, 6 }
 0x1b1   : > { %v2739_v45 = vrot.slane %v8745_v53, 6  ;;  %v2740_v26 = vrot.slane %v8751_v29, 6  ;;  %v2741_v36 = vrot.slane %v8753_v51, 6  ;;  %v2742_v54 = vrot.slane %v8757_v9, 6 }
 0x1b2   : > { %v2743_v7 = vrot.slane %v8759_v21, 6  ;;  %v2744_v40 = vrot.slane %v8761_v48, 6  ;;  %v2745_v31 = vrot.slane %v8763_v34, 6  ;;  %v2746_v24 = vrot.slane %v8765_v46, 6 }
 0x1b3   : > { %v2747_v43 = vrot.slane %v8767_v8, 6  ;;  %v2748_v25 = vrot.slane %v8769_v63, 6  ;;  %v2749_v20 = vrot.slane %v11148_v55, 6  ;;  %v2750_v47 = vrot.slane %v11149_v2, 6 }
 0x1b4   : > { %v2991_v39 = vadd.f32 %v2735_v42, %v2607_v37  ;;  %v2992_v17 = vadd.f32 %v2736_v33, %v2608_v32  ;;  %v2993_v56 = vadd.f32 %v2737_v11, %v2609_v44  ;;  %v2994_v15 = vadd.f32 %v2738_v19, %v2610_v23 }
 0x1b5   : > { %v2995_v27 = vadd.f32 %v2739_v45, %v2611_v10  ;;  %v2996_v3 = vadd.f32 %v2740_v26, %v2612_v58  ;;  %v2997_v41 = vadd.f32 %v2741_v36, %v2613_v60  ;;  %v2998_v28 = vadd.f32 %v2742_v54, %v2614_v49  ;;  %v11150_v60 = vld [vmem:[#allocation13_spill] sm:$0xff]  ;;  %v11151_v49 = vld [vmem:[#allocation14_spill] sm:$0xff] }
 0x1b6   : > { %v2999_v18 = vadd.f32 %v2743_v7, %v2615_v38  ;;  %v3000_v61 = vadd.f32 %v2744_v40, %v2616_v1  ;;  %v3001_v62 = vadd.f32 %v2745_v31, %v2617_v52  ;;  %v3002_v6 = vadd.f32 %v2746_v24, %v2618_v12 }
 0x1b7   : > { %v3003_v22 = vadd.f32 %v2747_v43, %v2619_v35  ;;  %v3004_v30 = vadd.f32 %v2748_v25, %v2620_v16  ;;  %v3005_v59 = vadd.f32 %v2749_v20, %v2621_v50  ;;  %v3006_v14 = vadd.f32 %v2750_v47, %v2622_v13 }
 0x1b8   : > { %v3119_v55 = vrot.slane %v8731_v4, 7  ;;  %v3120_v2 = vrot.slane %v8736_v5, 7  ;;  %v3121_v42 = vrot.slane %v8738_v57, 7  ;;  %v3122_v33 = vrot.slane %v8743_v0, 7 }
 0x1b9   : > { %v3123_v37 = vrot.slane %v8745_v53, 7  ;;  %v3124_v32 = vrot.slane %v8751_v29, 7  ;;  %v3125_v44 = vrot.slane %v8753_v51, 7  ;;  %v3126_v23 = vrot.slane %v8757_v9, 7 }
 0x1ba   : > { %v3127_v10 = vrot.slane %v8759_v21, 7  ;;  %v3128_v58 = vrot.slane %v8761_v48, 7  ;;  %v3129_v4 = vrot.slane %v8763_v34, 7  ;;  %v3130_v5 = vrot.slane %v8765_v46, 7 }
 0x1bb   : > { %v3131_v57 = vrot.slane %v8767_v8, 7  ;;  %v3132_v0 = vrot.slane %v8769_v63, 7  ;;  %v3133_v53 = vrot.slane %v11150_v60, 7  ;;  %v3134_v29 = vrot.slane %v11151_v49, 7 }
 0x1bc   : > { %v3375_v38 = vadd.f32 %v3119_v55, %v2991_v39  ;;  %v3376_v51 = vadd.f32 %v3120_v2, %v2992_v17  ;;  %v3377_v1 = vadd.f32 %v3121_v42, %v2993_v56  ;;  %v3378_v9 = vadd.f32 %v3122_v33, %v2994_v15 }
 0x1bd   : > { %v3379_v52 = vadd.f32 %v3123_v37, %v2995_v27  ;;  %v3380_v21 = vadd.f32 %v3124_v32, %v2996_v3  ;;  %v3381_v12 = vadd.f32 %v3125_v44, %v2997_v41  ;;  %v3382_v48 = vadd.f32 %v3126_v23, %v2998_v28 }
 0x1be   : > { %v3383_v35 = vadd.f32 %v3127_v10, %v2999_v18  ;;  %v3384_v34 = vadd.f32 %v3128_v58, %v3000_v61  ;;  %v3385_v16 = vadd.f32 %v3129_v4, %v3001_v62  ;;  %v3386_v46 = vadd.f32 %v3130_v5, %v3002_v6 }
 0x1bf   : > { %v3387_v50 = vadd.f32 %v3131_v57, %v3003_v22  ;;  %v3388_v8 = vadd.f32 %v3132_v0, %v3004_v30  ;;  %v3389_v13 = vadd.f32 %v3133_v53, %v3005_v59  ;;  %v3390_v63 = vadd.f32 %v3134_v29, %v3006_v14 }
 0x1c0   : > { %v3503_v11 = vmul.f32 0.125, %v3375_v38  ;;  %v3504_v19 = vmul.f32 0.125, %v3376_v51  ;;  %v3505_v45 = vmul.f32 0.125, %v3377_v1  ;;  %v3506_v26 = vmul.f32 0.125, %v3378_v9  ;;  %v7134_v51 = vld [vmem:[#allocation7 + $0x44] sm:$0xf] }
 0x1c1   : > { %v3507_v36 = vmul.f32 0.125, %v3379_v52  ;;  %v3508_v54 = vmul.f32 0.125, %v3380_v21  ;;  %v3509_v7 = vmul.f32 0.125, %v3381_v12  ;;  %v3510_v40 = vmul.f32 0.125, %v3382_v48  ;;  %v6951_v12 = vld [vmem:[#allocation7 + $0x48] sm:$0xf0] }
 0x1c2   : > { %v3511_v31 = vmul.f32 0.125, %v3383_v35  ;;  %v3512_v24 = vmul.f32 0.125, %v3384_v34  ;;  %v3513_v43 = vmul.f32 0.125, %v3385_v16  ;;  %v3514_v25 = vmul.f32 0.125, %v3386_v46  ;;  %v7150_v46 = vld [vmem:[#allocation7 + $0xc4] sm:$0xf] }
 0x1c3   : > { %v3515_v55 = vmul.f32 0.125, %v3387_v50  ;;  %v3516_v20 = vmul.f32 0.125, %v3388_v8  ;;  %v3517_v2 = vmul.f32 0.125, %v3389_v13  ;;  %v3518_v47 = vmul.f32 0.125, %v3390_v63 }
 0x1c4   : > { %v3631_v39 = vpack.c.bf16 %v3503_v11, %v3503_v11  ;;  %v3632_v17 = vpack.c.bf16 %v3504_v19, %v3504_v19  ;;  %v3633_v56 = vpack.c.bf16 %v3505_v45, %v3505_v45  ;;  %v3634_v15 = vpack.c.bf16 %v3506_v26, %v3506_v26  ;;  %v7015_v11 = vld [vmem:[#allocation7 + $0xc8] sm:$0xf0] }
 0x1c5   : > { %v3635_v27 = vpack.c.bf16 %v3507_v36, %v3507_v36  ;;  %v3636_v3 = vpack.c.bf16 %v3508_v54, %v3508_v54  ;;  %v3637_v41 = vpack.c.bf16 %v3509_v7, %v3509_v7  ;;  %v3638_v28 = vpack.c.bf16 %v3510_v40, %v3510_v40  ;;  %v7469_v54 = vld [vmem:[%s7927_s14 + $0x140] sm:$0xff]   ;;  %v7470_v7 = vld [vmem:[%s7927_s14 + $0x148] sm:$0xff]  }
 0x1c6   : > { %v3639_v18 = vpack.c.bf16 %v3511_v31, %v3511_v31  ;;  %v3640_v61 = vpack.c.bf16 %v3512_v24, %v3512_v24  ;;  %v3641_v62 = vpack.c.bf16 %v3513_v43, %v3513_v43  ;;  %v3642_v6 = vpack.c.bf16 %v3514_v25, %v3514_v25  ;;  %v7471_v25 = vld [vmem:[%s7927_s14 + $0x150] sm:$0xff]  }
 0x1c7   : > { %v3643_v22 = vpack.c.bf16 %v3515_v55, %v3515_v55  ;;  %v3644_v30 = vpack.c.bf16 %v3516_v20, %v3516_v20  ;;  %v3645_v59 = vpack.c.bf16 %v3517_v2, %v3517_v2  ;;  %v3646_v14 = vpack.c.bf16 %v3518_v47, %v3518_v47 }
 0x1c8   : > { %v3909_v42 = vunpack.c.l.b16 %v3631_v39  ;;  %v3910_v33 = vunpack.c.l.b16 %v3632_v17  ;;  %v3911_v37 = vunpack.c.l.b16 %v3633_v56  ;;  %v3912_v32 = vunpack.c.l.b16 %v3634_v15  ;;  %v7472_v39 = vld [vmem:[%s7927_s14 + $0x158] sm:$0xff]  }
 0x1c9   : > { %v3913_v44 = vunpack.c.l.b16 %v3635_v27  ;;  %v3914_v23 = vunpack.c.l.b16 %v3636_v3  ;;  %v3915_v10 = vunpack.c.l.b16 %v3637_v41  ;;  %v3916_v58 = vunpack.c.l.b16 %v3638_v28  ;;  %v7473_v3 = vld [vmem:[%s7927_s14 + $0x160] sm:$0xff]   ;;  %v7474_v41 = vld [vmem:[%s7927_s14 + $0x168] sm:$0xff]  }
 0x1ca   : > { %v3917_v4 = vunpack.c.l.b16 %v3639_v18  ;;  %v3918_v5 = vunpack.c.l.b16 %v3640_v61  ;;  %v3919_v57 = vunpack.c.l.b16 %v3641_v62  ;;  %v3920_v0 = vunpack.c.l.b16 %v3642_v6  ;;  %v7475_v6 = vld [vmem:[%s7927_s14 + $0x170] sm:$0xff]  }
 0x1cb   : > { %v3921_v60 = vunpack.c.l.b16 %v3643_v22  ;;  %v3922_v53 = vunpack.c.l.b16 %v3644_v30  ;;  %v3923_v49 = vunpack.c.l.b16 %v3645_v59  ;;  %v3924_v29 = vunpack.c.l.b16 %v3646_v14 }
 0x1cc   : > { %v4092_v38 = vrot.slane %v3910_v33, 7  ;;  %v4094_v1 = vrot.slane %v3911_v37, 6  ;;  %v4096_v9 = vrot.slane %v3912_v32, 5  ;;  %v4098_v52 = vrot.slane %v3913_v44, 4 }
 0x1cd   : > { %v4100_v21 = vrot.slane %v3914_v23, 3  ;;  %v4102_v35 = vrot.slane %v3915_v10, 2  ;;  %v4104_v34 = vrot.slane %v3916_v58, 1  ;;  %v4106_v16 = vrot.slane %v3918_v5, 7 }
 0x1ce   : > { %v4093_v48 = vsel %vm3974_vm0, %v4092_v38, %v3909_v42  ;;  %v4108_v8 = vrot.slane %v3919_v57, 6  ;;  %v4110_v13 = vrot.slane %v3920_v0, 5  ;;  %v4112_v63 = vrot.slane %v3921_v60, 4  ;;  %v7476_v42 = vld [vmem:[%s7927_s14 + $0x178] sm:$0xff]  }
 0x1cf   : > { %v4095_v50 = vsel %vm3977_vm1, %v4094_v1, %v4093_v48  ;;  %v4107_v45 = vsel %vm3974_vm0, %v4106_v16, %v3917_v4  ;;  %v4114_v26 = vrot.slane %v3922_v53, 3  ;;  %v4116_v36 = vrot.slane %v3923_v49, 2 }
 0x1d0   : > { %v4097_v19 = vsel %vm3980_vm2, %v4096_v9, %v4095_v50  ;;  %v4109_v31 = vsel %vm3977_vm1, %v4108_v8, %v4107_v45  ;;  %v4118_v24 = vrot.slane %v3924_v29, 1  ;;  %v6954_v43 = vor.u32 %v7134_v51, %v6951_v12 }
 0x1d1   : > { %v4099_v40 = vsel %vm3983_vm3, %v4098_v52, %v4097_v19  ;;  %v4111_v20 = vsel %vm3980_vm2, %v4110_v13, %v4109_v31  ;;  %v7018_v2 = vor.u32 %v7150_v46, %v7015_v11  ;;  %v8914_v47 = vunpack.c.l.bf16 %v7469_v54 }
 0x1d2   : > { %v4101_v55 = vsel %vm3986_vm4, %v4100_v21, %v4099_v40  ;;  %v4113_v56 = vsel %vm3983_vm3, %v4112_v63, %v4111_v20  ;;  %4745 = vmatpush.bf16.msrb.mxu0 %v6954_v43  ;;  %v8919_v15 = vunpack.c.h.bf16 %v7469_v54  ;;  %v8921_v27 = vunpack.c.l.bf16 %v7470_v7 }
 0x1d3   : > { %v4103_v17 = vsel %vm3989_vm5, %v4102_v35, %v4101_v55  ;;  %v4115_v18 = vsel %vm3986_vm4, %v4114_v26, %v4113_v56  ;;  %4794 = vmatpush.bf16.msrb.mxu1 %v7018_v2  ;;  %v8927_v61 = vunpack.c.h.bf16 %v7470_v7  ;;  %v8929_v62 = vunpack.c.l.bf16 %v7471_v25 }
 0x1d4   : > { %v4105_v28 = vsel %vm3992_vm6, %v4104_v34, %v4103_v17  ;;  %v4117_v22 = vsel %vm3989_vm5, %v4116_v36, %v4115_v18  ;;  %v8933_v30 = vunpack.c.h.bf16 %v7471_v25  ;;  %v8935_v59 = vunpack.c.l.bf16 %v7472_v39 }
 0x1d5   : > { %v8937_v14 = vunpack.c.h.bf16 %v7472_v39  ;;  %v4119_v33 = vsel %vm3992_vm6, %v4118_v24, %v4117_v22  ;;  %v8941_v37 = vunpack.c.l.bf16 %v7473_v3  ;;  %v8943_v32 = vunpack.c.h.bf16 %v7473_v3 }
 0x1d6   : > { %v8945_v44 = vunpack.c.l.bf16 %v7474_v41  ;;  %v4208_v23 = vpack.c.b16 %v4119_v33, %v4105_v28  ;;  %v8947_v10 = vunpack.c.h.bf16 %v7474_v41  ;;  %v8949_v58 = vunpack.c.l.bf16 %v7475_v6 }
 0x1d7   : > { %v8951_v4 = vunpack.c.h.bf16 %v7475_v6  ;;  %v8953_v5 = vunpack.c.l.bf16 %v7476_v42  ;;  %v8955_v57 = vunpack.c.h.bf16 %v7476_v42  ;;  %v831_v0 = vrot.slane %v8914_v47, 1 }
 0x1d8   : > { %v832_v60 = vrot.slane %v8919_v15, 1  ;;  %4328 = vmatmul.bf16.gmra.mxu0 %v4208_v23  ;;  %4377 = vmatmul.bf16.gmra.mxu1 %v4208_v23  ;;  %v833_v53 = vrot.slane %v8921_v27, 1  ;;  %v834_v49 = vrot.slane %v8927_v61, 1  ;;  %v835_v29 = vrot.slane %v8929_v62, 1 }
 0x1d9   : > { %11152 = vst [vmem:[#allocation15_spill] sm:$0xff] %v8953_v5  ;;  %v836_v38 = vrot.slane %v8933_v30, 1  ;;  %v837_v51 = vrot.slane %v8935_v59, 1  ;;  %v838_v1 = vrot.slane %v8937_v14, 1  ;;  %v839_v9 = vrot.slane %v8941_v37, 1 }
 0x1da   : > { %11153 = vst [vmem:[#allocation16_spill] sm:$0xff] %v8955_v57  ;;  %v840_v52 = vrot.slane %v8943_v32, 1  ;;  %v841_v21 = vrot.slane %v8945_v44, 1  ;;  %v842_v12 = vrot.slane %v8947_v10, 1  ;;  %v843_v48 = vrot.slane %v8949_v58, 1 }
 0x1db   : > { %v844_v35 = vrot.slane %v8951_v4, 1  ;;  %v845_v34 = vrot.slane %v8953_v5, 1  ;;  %v846_v16 = vrot.slane %v8955_v57, 1  ;;  %v1087_v46 = vadd.f32 %v8914_v47, %v831_v0 }
 0x1dc   : > { %v1088_v50 = vadd.f32 %v8919_v15, %v832_v60  ;;  %v1089_v8 = vadd.f32 %v8921_v27, %v833_v53  ;;  %v1090_v13 = vadd.f32 %v8927_v61, %v834_v49  ;;  %v1091_v63 = vadd.f32 %v8929_v62, %v835_v29 }
 0x1dd   : > { %v1092_v11 = vadd.f32 %v8933_v30, %v836_v38  ;;  %v1093_v19 = vadd.f32 %v8935_v59, %v837_v51  ;;  %v1094_v45 = vadd.f32 %v8937_v14, %v838_v1  ;;  %v1095_v26 = vadd.f32 %v8941_v37, %v839_v9 }
 0x1de   : > { %v1096_v36 = vadd.f32 %v8943_v32, %v840_v52  ;;  %v1097_v54 = vadd.f32 %v8945_v44, %v841_v21  ;;  %v1098_v7 = vadd.f32 %v8947_v10, %v842_v12  ;;  %v1099_v40 = vadd.f32 %v8949_v58, %v843_v48 }
 0x1df   : > { %v1100_v31 = vadd.f32 %v8951_v4, %v844_v35  ;;  %v1101_v24 = vadd.f32 %v8953_v5, %v845_v34  ;;  %v1102_v43 = vadd.f32 %v8955_v57, %v846_v16  ;;  %v1215_v25 = vrot.slane %v8914_v47, 2 }
 0x1e0   : > { %v1216_v55 = vrot.slane %v8919_v15, 2  ;;  %v1217_v20 = vrot.slane %v8921_v27, 2  ;;  %v1218_v2 = vrot.slane %v8927_v61, 2  ;;  %v1219_v39 = vrot.slane %v8929_v62, 2 }
 0x1e1   : > { %v1220_v17 = vrot.slane %v8933_v30, 2  ;;  %v1221_v56 = vrot.slane %v8935_v59, 2  ;;  %v1222_v3 = vrot.slane %v8937_v14, 2  ;;  %v1223_v41 = vrot.slane %v8941_v37, 2 }
 0x1e2   : > { %v1224_v28 = vrot.slane %v8943_v32, 2  ;;  %v1225_v18 = vrot.slane %v8945_v44, 2  ;;  %v1226_v6 = vrot.slane %v8947_v10, 2  ;;  %v1227_v22 = vrot.slane %v8949_v58, 2 }
 0x1e3   : > { %v1228_v42 = vrot.slane %v8951_v4, 2  ;;  %v1229_v33 = vrot.slane %v8953_v5, 2  ;;  %v1230_v23 = vrot.slane %v8955_v57, 2  ;;  %v1471_v0 = vadd.f32 %v1215_v25, %v1087_v46 }
 0x1e4   : > { %v1472_v60 = vadd.f32 %v1216_v55, %v1088_v50  ;;  %v1473_v53 = vadd.f32 %v1217_v20, %v1089_v8  ;;  %v1474_v49 = vadd.f32 %v1218_v2, %v1090_v13  ;;  %v1475_v29 = vadd.f32 %v1219_v39, %v1091_v63 }
 0x1e5   : > { %v1476_v38 = vadd.f32 %v1220_v17, %v1092_v11  ;;  %v1477_v51 = vadd.f32 %v1221_v56, %v1093_v19  ;;  %v1478_v1 = vadd.f32 %v1222_v3, %v1094_v45  ;;  %v1479_v9 = vadd.f32 %v1223_v41, %v1095_v26 }
 0x1e6   : > { %v1480_v52 = vadd.f32 %v1224_v28, %v1096_v36  ;;  %v1481_v21 = vadd.f32 %v1225_v18, %v1097_v54  ;;  %v1482_v12 = vadd.f32 %v1226_v6, %v1098_v7  ;;  %v1483_v48 = vadd.f32 %v1227_v22, %v1099_v40  ;;  %v11154_v40 = vld [vmem:[#allocation15_spill] sm:$0xff] }
 0x1e7   : > { %v1484_v35 = vadd.f32 %v1228_v42, %v1100_v31  ;;  %v1485_v34 = vadd.f32 %v1229_v33, %v1101_v24  ;;  %v1486_v16 = vadd.f32 %v1230_v23, %v1102_v43  ;;  %v1599_v5 = vrot.slane %v8914_v47, 3  ;;  %v11155_v24 = vld [vmem:[#allocation16_spill] sm:$0xff] }
 0x1e8   : > { %v1600_v57 = vrot.slane %v8919_v15, 3  ;;  %v1601_v46 = vrot.slane %v8921_v27, 3  ;;  %v1602_v50 = vrot.slane %v8927_v61, 3  ;;  %v1603_v8 = vrot.slane %v8929_v62, 3 }
 0x1e9   : > { %v1604_v13 = vrot.slane %v8933_v30, 3  ;;  %v1605_v63 = vrot.slane %v8935_v59, 3  ;;  %v1606_v11 = vrot.slane %v8937_v14, 3  ;;  %v1607_v19 = vrot.slane %v8941_v37, 3 }
 0x1ea   : > { %v1608_v45 = vrot.slane %v8943_v32, 3  ;;  %v1609_v26 = vrot.slane %v8945_v44, 3  ;;  %v1610_v36 = vrot.slane %v8947_v10, 3  ;;  %v1611_v54 = vrot.slane %v8949_v58, 3 }
 0x1eb   : > { %v1612_v7 = vrot.slane %v8951_v4, 3  ;;  %v1613_v31 = vrot.slane %v11154_v40, 3  ;;  %v1614_v43 = vrot.slane %v11155_v24, 3  ;;  %v1855_v25 = vadd.f32 %v1599_v5, %v1471_v0 }
 0x1ec   : > { %v1856_v55 = vadd.f32 %v1600_v57, %v1472_v60  ;;  %v1857_v20 = vadd.f32 %v1601_v46, %v1473_v53  ;;  %v1858_v2 = vadd.f32 %v1602_v50, %v1474_v49  ;;  %v1859_v39 = vadd.f32 %v1603_v8, %v1475_v29 }
 0x1ed   : > { %v1860_v17 = vadd.f32 %v1604_v13, %v1476_v38  ;;  %v1861_v56 = vadd.f32 %v1605_v63, %v1477_v51  ;;  %v1862_v3 = vadd.f32 %v1606_v11, %v1478_v1  ;;  %v1863_v41 = vadd.f32 %v1607_v19, %v1479_v9 }
 0x1ee   : > { %v1864_v28 = vadd.f32 %v1608_v45, %v1480_v52  ;;  %v1865_v18 = vadd.f32 %v1609_v26, %v1481_v21  ;;  %v1866_v6 = vadd.f32 %v1610_v36, %v1482_v12  ;;  %v1867_v22 = vadd.f32 %v1611_v54, %v1483_v48  ;;  %v11156_v21 = vld [vmem:[#allocation15_spill] sm:$0xff]  ;;  %v11157_v48 = vld [vmem:[#allocation16_spill] sm:$0xff] }
 0x1ef   : > { %v1868_v42 = vadd.f32 %v1612_v7, %v1484_v35  ;;  %v1869_v33 = vadd.f32 %v1613_v31, %v1485_v34  ;;  %v1870_v23 = vadd.f32 %v1614_v43, %v1486_v16  ;;  %v1983_v40 = vrot.slane %v8914_v47, 4 }
 0x1f0   : > { %v1984_v24 = vrot.slane %v8919_v15, 4  ;;  %v1985_v5 = vrot.slane %v8921_v27, 4  ;;  %v1986_v57 = vrot.slane %v8927_v61, 4  ;;  %v1987_v0 = vrot.slane %v8929_v62, 4 }
 0x1f1   : > { %v1988_v60 = vrot.slane %v8933_v30, 4  ;;  %v1989_v53 = vrot.slane %v8935_v59, 4  ;;  %v1990_v49 = vrot.slane %v8937_v14, 4  ;;  %v1991_v29 = vrot.slane %v8941_v37, 4 }
 0x1f2   : > { %v1992_v38 = vrot.slane %v8943_v32, 4  ;;  %v1993_v51 = vrot.slane %v8945_v44, 4  ;;  %v1994_v1 = vrot.slane %v8947_v10, 4  ;;  %v1995_v9 = vrot.slane %v8949_v58, 4 }
 0x1f3   : > { %v1996_v52 = vrot.slane %v8951_v4, 4  ;;  %v1997_v12 = vrot.slane %v11156_v21, 4  ;;  %v1998_v35 = vrot.slane %v11157_v48, 4  ;;  %v2239_v34 = vadd.f32 %v1983_v40, %v1855_v25 }
 0x1f4   : > { %v2240_v16 = vadd.f32 %v1984_v24, %v1856_v55  ;;  %v2241_v46 = vadd.f32 %v1985_v5, %v1857_v20  ;;  %v2242_v50 = vadd.f32 %v1986_v57, %v1858_v2  ;;  %v2243_v8 = vadd.f32 %v1987_v0, %v1859_v39 }
 0x1f5   : > { %v2244_v13 = vadd.f32 %v1988_v60, %v1860_v17  ;;  %v2245_v63 = vadd.f32 %v1989_v53, %v1861_v56  ;;  %v2246_v11 = vadd.f32 %v1990_v49, %v1862_v3  ;;  %v2247_v19 = vadd.f32 %v1991_v29, %v1863_v41 }
 0x1f6   : > { %v2248_v45 = vadd.f32 %v1992_v38, %v1864_v28  ;;  %v2249_v26 = vadd.f32 %v1993_v51, %v1865_v18  ;;  %v2250_v36 = vadd.f32 %v1994_v1, %v1866_v6  ;;  %v2251_v54 = vadd.f32 %v1995_v9, %v1867_v22  ;;  %v11158_v18 = vld [vmem:[#allocation15_spill] sm:$0xff]  ;;  %v11159_v22 = vld [vmem:[#allocation16_spill] sm:$0xff] }
 0x1f7   : > { %v2252_v7 = vadd.f32 %v1996_v52, %v1868_v42  ;;  %v2253_v31 = vadd.f32 %v1997_v12, %v1869_v33  ;;  %v2254_v43 = vadd.f32 %v1998_v35, %v1870_v23  ;;  %v2367_v21 = vrot.slane %v8914_v47, 5 }
 0x1f8   : > { %v2368_v48 = vrot.slane %v8919_v15, 5  ;;  %v2369_v40 = vrot.slane %v8921_v27, 5  ;;  %v2370_v24 = vrot.slane %v8927_v61, 5  ;;  %v2371_v25 = vrot.slane %v8929_v62, 5 }
 0x1f9   : > { %v2372_v55 = vrot.slane %v8933_v30, 5  ;;  %v2373_v20 = vrot.slane %v8935_v59, 5  ;;  %v2374_v2 = vrot.slane %v8937_v14, 5  ;;  %v2375_v39 = vrot.slane %v8941_v37, 5 }
 0x1fa   : > { %v2376_v17 = vrot.slane %v8943_v32, 5  ;;  %v2377_v56 = vrot.slane %v8945_v44, 5  ;;  %v2378_v3 = vrot.slane %v8947_v10, 5  ;;  %v2379_v41 = vrot.slane %v8949_v58, 5 }
 0x1fb   : > { %v2380_v28 = vrot.slane %v8951_v4, 5  ;;  %v2381_v6 = vrot.slane %v11158_v18, 5  ;;  %v2382_v42 = vrot.slane %v11159_v22, 5  ;;  %v2623_v33 = vadd.f32 %v2367_v21, %v2239_v34 }
 0x1fc   : > { %v2624_v23 = vadd.f32 %v2368_v48, %v2240_v16  ;;  %v2625_v5 = vadd.f32 %v2369_v40, %v2241_v46  ;;  %v2626_v57 = vadd.f32 %v2370_v24, %v2242_v50  ;;  %v2627_v0 = vadd.f32 %v2371_v25, %v2243_v8 }
 0x1fd   : > { %v2628_v60 = vadd.f32 %v2372_v55, %v2244_v13  ;;  %v2629_v53 = vadd.f32 %v2373_v20, %v2245_v63  ;;  %v2630_v49 = vadd.f32 %v2374_v2, %v2246_v11  ;;  %v2631_v29 = vadd.f32 %v2375_v39, %v2247_v19 }
 0x1fe   : > { %v2632_v38 = vadd.f32 %v2376_v17, %v2248_v45  ;;  %v2633_v51 = vadd.f32 %v2377_v56, %v2249_v26  ;;  %v2634_v1 = vadd.f32 %v2378_v3, %v2250_v36  ;;  %v2635_v9 = vadd.f32 %v2379_v41, %v2251_v54  ;;  %v11160_v26 = vld [vmem:[#allocation15_spill] sm:$0xff]  ;;  %v11161_v54 = vld [vmem:[#allocation16_spill] sm:$0xff] }
 0x1ff   : > { %v2636_v52 = vadd.f32 %v2380_v28, %v2252_v7  ;;  %v2637_v12 = vadd.f32 %v2381_v6, %v2253_v31  ;;  %v2638_v35 = vadd.f32 %v2382_v42, %v2254_v43  ;;  %v2751_v18 = vrot.slane %v8914_v47, 6 }
 0x200   : > { %v2752_v22 = vrot.slane %v8919_v15, 6  ;;  %v2753_v21 = vrot.slane %v8921_v27, 6  ;;  %v2754_v48 = vrot.slane %v8927_v61, 6  ;;  %v2755_v34 = vrot.slane %v8929_v62, 6 }
 0x201   : > { %v2756_v16 = vrot.slane %v8933_v30, 6  ;;  %v2757_v46 = vrot.slane %v8935_v59, 6  ;;  %v2758_v50 = vrot.slane %v8937_v14, 6  ;;  %v2759_v8 = vrot.slane %v8941_v37, 6 }
 0x202   : > { %v2760_v13 = vrot.slane %v8943_v32, 6  ;;  %v2761_v63 = vrot.slane %v8945_v44, 6  ;;  %v2762_v11 = vrot.slane %v8947_v10, 6  ;;  %v2763_v19 = vrot.slane %v8949_v58, 6 }
 0x203   : > { %v2764_v45 = vrot.slane %v8951_v4, 6  ;;  %v2765_v36 = vrot.slane %v11160_v26, 6  ;;  %v2766_v7 = vrot.slane %v11161_v54, 6  ;;  %v3007_v31 = vadd.f32 %v2751_v18, %v2623_v33 }
 0x204   : > { %v3008_v43 = vadd.f32 %v2752_v22, %v2624_v23  ;;  %v3009_v40 = vadd.f32 %v2753_v21, %v2625_v5  ;;  %v3010_v24 = vadd.f32 %v2754_v48, %v2626_v57  ;;  %v3011_v25 = vadd.f32 %v2755_v34, %v2627_v0 }
 0x205   : > { %v3012_v55 = vadd.f32 %v2756_v16, %v2628_v60  ;;  %v3013_v20 = vadd.f32 %v2757_v46, %v2629_v53  ;;  %v3014_v2 = vadd.f32 %v2758_v50, %v2630_v49  ;;  %v3015_v39 = vadd.f32 %v2759_v8, %v2631_v29  ;;  %v11162_v53 = vld [vmem:[#allocation15_spill] sm:$0xff]  ;;  %v11163_v49 = vld [vmem:[#allocation16_spill] sm:$0xff] }
 0x206   : > { %v3016_v17 = vadd.f32 %v2760_v13, %v2632_v38  ;;  %v3017_v56 = vadd.f32 %v2761_v63, %v2633_v51  ;;  %v3018_v3 = vadd.f32 %v2762_v11, %v2634_v1  ;;  %v3019_v41 = vadd.f32 %v2763_v19, %v2635_v9 }
 0x207   : > { %v3020_v28 = vadd.f32 %v2764_v45, %v2636_v52  ;;  %v3021_v6 = vadd.f32 %v2765_v36, %v2637_v12  ;;  %v3022_v42 = vadd.f32 %v2766_v7, %v2638_v35  ;;  %v3135_v26 = vrot.slane %v8914_v47, 7 }
 0x208   : > { %v3136_v54 = vrot.slane %v8919_v15, 7  ;;  %v3137_v18 = vrot.slane %v8921_v27, 7  ;;  %v3138_v22 = vrot.slane %v8927_v61, 7  ;;  %v3139_v33 = vrot.slane %v8929_v62, 7 }
 0x209   : > { %v3140_v23 = vrot.slane %v8933_v30, 7  ;;  %v3141_v5 = vrot.slane %v8935_v59, 7  ;;  %v3142_v57 = vrot.slane %v8937_v14, 7  ;;  %v3143_v0 = vrot.slane %v8941_v37, 7 }
 0x20a   : > { %v3144_v60 = vrot.slane %v8943_v32, 7  ;;  %v3145_v47 = vrot.slane %v8945_v44, 7  ;;  %v3146_v15 = vrot.slane %v8947_v10, 7  ;;  %v3147_v27 = vrot.slane %v8949_v58, 7 }
 0x20b   : > { %v3148_v61 = vrot.slane %v8951_v4, 7  ;;  %v3149_v62 = vrot.slane %v11162_v53, 7  ;;  %v3150_v30 = vrot.slane %v11163_v49, 7  ;;  %v3391_v29 = vadd.f32 %v3135_v26, %v3007_v31 }
 0x20c   : > { %v3392_v59 = vadd.f32 %v3136_v54, %v3008_v43  ;;  %v3393_v38 = vadd.f32 %v3137_v18, %v3009_v40  ;;  %v3394_v14 = vadd.f32 %v3138_v22, %v3010_v24  ;;  %v3395_v51 = vadd.f32 %v3139_v33, %v3011_v25 }
 0x20d   : > { %v3396_v37 = vadd.f32 %v3140_v23, %v3012_v55  ;;  %v3397_v1 = vadd.f32 %v3141_v5, %v3013_v20  ;;  %v3398_v32 = vadd.f32 %v3142_v57, %v3014_v2  ;;  %v3399_v9 = vadd.f32 %v3143_v0, %v3015_v39 }
 0x20e   : > { %v3400_v44 = vadd.f32 %v3144_v60, %v3016_v17  ;;  %v3401_v52 = vadd.f32 %v3145_v47, %v3017_v56  ;;  %v3402_v10 = vadd.f32 %v3146_v15, %v3018_v3  ;;  %v3403_v12 = vadd.f32 %v3147_v27, %v3019_v41 }
 0x20f   : > { %v3404_v58 = vadd.f32 %v3148_v61, %v3020_v28  ;;  %v3405_v35 = vadd.f32 %v3149_v62, %v3021_v6  ;;  %v3406_v4 = vadd.f32 %v3150_v30, %v3022_v42  ;;  %v3519_v21 = vmul.f32 0.125, %v3391_v29 }
 0x210   : > { %v3520_v48 = vmul.f32 0.125, %v3392_v59  ;;  %v3521_v34 = vmul.f32 0.125, %v3393_v38  ;;  %v3522_v16 = vmul.f32 0.125, %v3394_v14  ;;  %v3523_v46 = vmul.f32 0.125, %v3395_v51  ;;  %v7132_v38 = vld [vmem:[#allocation7 + $0x34] sm:$0xf] }
 0x211   : > { %v3524_v50 = vmul.f32 0.125, %v3396_v37  ;;  %v3525_v8 = vmul.f32 0.125, %v3397_v1  ;;  %v3526_v13 = vmul.f32 0.125, %v3398_v32  ;;  %v3527_v63 = vmul.f32 0.125, %v3399_v9  ;;  %v6943_v14 = vld [vmem:[#allocation7 + $0x38] sm:$0xf0] }
 0x212   : > { %v3528_v11 = vmul.f32 0.125, %v3400_v44  ;;  %v3529_v19 = vmul.f32 0.125, %v3401_v52  ;;  %v3530_v45 = vmul.f32 0.125, %v3402_v10  ;;  %v3531_v26 = vmul.f32 0.125, %v3403_v12  ;;  %v7148_v9 = vld [vmem:[#allocation7 + $0xb4] sm:$0xf] }
 0x213   : > { %v3532_v36 = vmul.f32 0.125, %v3404_v58  ;;  %v3533_v54 = vmul.f32 0.125, %v3405_v35  ;;  %v3534_v7 = vmul.f32 0.125, %v3406_v4  ;;  %v3647_v31 = vpack.c.bf16 %v3519_v21, %v3519_v21  ;;  %v7007_v58 = vld [vmem:[#allocation7 + $0xb8] sm:$0xf0] }
 0x214   : > { %v3648_v43 = vpack.c.bf16 %v3520_v48, %v3520_v48  ;;  %v3649_v40 = vpack.c.bf16 %v3521_v34, %v3521_v34  ;;  %v3650_v24 = vpack.c.bf16 %v3522_v16, %v3522_v16  ;;  %v3651_v25 = vpack.c.bf16 %v3523_v46, %v3523_v46  ;;  %v7477_v34 = vld [vmem:[%s7927_s14 + $0x180] sm:$0xff]  }
 0x215   : > { %v3652_v55 = vpack.c.bf16 %v3524_v50, %v3524_v50  ;;  %v3653_v20 = vpack.c.bf16 %v3525_v8, %v3525_v8  ;;  %v3654_v2 = vpack.c.bf16 %v3526_v13, %v3526_v13  ;;  %v3655_v39 = vpack.c.bf16 %v3527_v63, %v3527_v63  ;;  %v7478_v13 = vld [vmem:[%s7927_s14 + $0x188] sm:$0xff]  }
 0x216   : > { %v3656_v17 = vpack.c.bf16 %v3528_v11, %v3528_v11  ;;  %v3657_v56 = vpack.c.bf16 %v3529_v19, %v3529_v19  ;;  %v3658_v3 = vpack.c.bf16 %v3530_v45, %v3530_v45  ;;  %v3659_v41 = vpack.c.bf16 %v3531_v26, %v3531_v26  ;;  %v7479_v26 = vld [vmem:[%s7927_s14 + $0x190] sm:$0xff]  }
 0x217   : > { %v3660_v28 = vpack.c.bf16 %v3532_v36, %v3532_v36  ;;  %v3661_v6 = vpack.c.bf16 %v3533_v54, %v3533_v54  ;;  %v3662_v42 = vpack.c.bf16 %v3534_v7, %v3534_v7  ;;  %v3925_v18 = vunpack.c.l.b16 %v3647_v31 }
 0x218   : > { %v3926_v22 = vunpack.c.l.b16 %v3648_v43  ;;  %v3927_v33 = vunpack.c.l.b16 %v3649_v40  ;;  %v3928_v23 = vunpack.c.l.b16 %v3650_v24  ;;  %v3929_v5 = vunpack.c.l.b16 %v3651_v25  ;;  %v7480_v43 = vld [vmem:[%s7927_s14 + $0x198] sm:$0xff]  }
 0x219   : > { %v3930_v57 = vunpack.c.l.b16 %v3652_v55  ;;  %v3931_v0 = vunpack.c.l.b16 %v3653_v20  ;;  %v3932_v60 = vunpack.c.l.b16 %v3654_v2  ;;  %v3933_v47 = vunpack.c.l.b16 %v3655_v39  ;;  %v7481_v20 = vld [vmem:[%s7927_s14 + $0x1a0] sm:$0xff]   ;;  %v7482_v2 = vld [vmem:[%s7927_s14 + $0x1a8] sm:$0xff]  }
 0x21a   : > { %v3934_v15 = vunpack.c.l.b16 %v3656_v17  ;;  %v3935_v27 = vunpack.c.l.b16 %v3657_v56  ;;  %v3936_v61 = vunpack.c.l.b16 %v3658_v3  ;;  %v3937_v53 = vunpack.c.l.b16 %v3659_v41  ;;  %v7483_v41 = vld [vmem:[%s7927_s14 + $0x1b0] sm:$0xff]  }
 0x21b   : > { %v3938_v62 = vunpack.c.l.b16 %v3660_v28  ;;  %v3939_v49 = vunpack.c.l.b16 %v3661_v6  ;;  %v3940_v30 = vunpack.c.l.b16 %v3662_v42  ;;  %v4120_v29 = vrot.slane %v3926_v22, 7  ;;  %v7484_v28 = vld [vmem:[%s7927_s14 + $0x1b8] sm:$0xff]  }
 0x21c   : > { %v4122_v59 = vrot.slane %v3927_v33, 6  ;;  %v4124_v51 = vrot.slane %v3928_v23, 5  ;;  %v4126_v37 = vrot.slane %v3929_v5, 4  ;;  %v4128_v1 = vrot.slane %v3930_v57, 3 }
 0x21d   : > { %v4130_v32 = vrot.slane %v3931_v0, 2  ;;  %v4121_v44 = vsel %vm3974_vm0, %v4120_v29, %v3925_v18  ;;  %v4132_v52 = vrot.slane %v3932_v60, 1  ;;  %v4134_v10 = vrot.slane %v3934_v15, 7 }
 0x21e   : > { %v4136_v12 = vrot.slane %v3935_v27, 6  ;;  %v4123_v35 = vsel %vm3977_vm1, %v4122_v59, %v4121_v44  ;;  %v4138_v4 = vrot.slane %v3936_v61, 5  ;;  %v4140_v21 = vrot.slane %v3937_v53, 4 }
 0x21f   : > { %v4142_v48 = vrot.slane %v3938_v62, 3  ;;  %v4125_v16 = vsel %vm3980_vm2, %v4124_v51, %v4123_v35  ;;  %v4135_v46 = vsel %vm3974_vm0, %v4134_v10, %v3933_v47  ;;  %v4144_v50 = vrot.slane %v3939_v49, 2 }
 0x220   : > { %v4146_v8 = vrot.slane %v3940_v30, 1  ;;  %v4127_v63 = vsel %vm3983_vm3, %v4126_v37, %v4125_v16  ;;  %v4137_v11 = vsel %vm3977_vm1, %v4136_v12, %v4135_v46  ;;  %v6946_v19 = vor.u32 %v7132_v38, %v6943_v14 }
 0x221   : > { %v7010_v45 = vor.u32 %v7148_v9, %v7007_v58  ;;  %v4129_v36 = vsel %vm3986_vm4, %v4128_v1, %v4127_v63  ;;  %v4139_v54 = vsel %vm3980_vm2, %v4138_v4, %v4137_v11  ;;  %v9096_v7 = vunpack.c.l.bf16 %v7477_v34 }
 0x222   : > { %v9098_v31 = vunpack.c.h.bf16 %v7477_v34  ;;  %v4131_v40 = vsel %vm3989_vm5, %v4130_v32, %v4129_v36  ;;  %v4141_v24 = vsel %vm3983_vm3, %v4140_v21, %v4139_v54  ;;  %4746 = vmatpush.bf16.msrb.mxu0 %v6946_v19  ;;  %v9103_v25 = vunpack.c.l.bf16 %v7478_v13 }
 0x223   : > { %4795 = vmatpush.bf16.msrb.mxu1 %v7010_v45  ;;  %v9105_v55 = vunpack.c.h.bf16 %v7478_v13  ;;  %v4133_v39 = vsel %vm3992_vm6, %v4132_v52, %v4131_v40  ;;  %v4143_v17 = vsel %vm3986_vm4, %v4142_v48, %v4141_v24  ;;  %v9111_v56 = vunpack.c.l.bf16 %v7479_v26 }
 0x224   : > { %v9113_v3 = vunpack.c.h.bf16 %v7479_v26  ;;  %v4145_v6 = vsel %vm3989_vm5, %v4144_v50, %v4143_v17  ;;  %v9118_v42 = vunpack.c.l.bf16 %v7480_v43  ;;  %v9120_v18 = vunpack.c.h.bf16 %v7480_v43 }
 0x225   : > { %v9122_v22 = vunpack.c.l.bf16 %v7481_v20  ;;  %v4147_v33 = vsel %vm3992_vm6, %v4146_v8, %v4145_v6  ;;  %v9125_v23 = vunpack.c.h.bf16 %v7481_v20  ;;  %v9127_v5 = vunpack.c.l.bf16 %v7482_v2 }
 0x226   : > { %v9129_v57 = vunpack.c.h.bf16 %v7482_v2  ;;  %v4209_v0 = vpack.c.b16 %v4147_v33, %v4133_v39  ;;  %v9131_v60 = vunpack.c.l.bf16 %v7483_v41  ;;  %v9133_v47 = vunpack.c.h.bf16 %v7483_v41 }
 0x227   : > { %v9135_v15 = vunpack.c.l.bf16 %v7484_v28  ;;  %v9137_v27 = vunpack.c.h.bf16 %v7484_v28  ;;  %v847_v61 = vrot.slane %v9096_v7, 1  ;;  %v848_v53 = vrot.slane %v9098_v31, 1 }
 0x228   : > { %v849_v62 = vrot.slane %v9103_v25, 1  ;;  %4333 = vmatmul.bf16.gmra.mxu0 %v4209_v0  ;;  %4382 = vmatmul.bf16.gmra.mxu1 %v4209_v0  ;;  %v850_v49 = vrot.slane %v9105_v55, 1  ;;  %v851_v30 = vrot.slane %v9111_v56, 1  ;;  %v852_v29 = vrot.slane %v9113_v3, 1 }
 0x229   : > { %11164 = vst [vmem:[#allocation17_spill] sm:$0xff] %v9135_v15  ;;  %v853_v59 = vrot.slane %v9118_v42, 1  ;;  %v854_v38 = vrot.slane %v9120_v18, 1  ;;  %v855_v14 = vrot.slane %v9122_v22, 1  ;;  %v856_v51 = vrot.slane %v9125_v23, 1 }
 0x22a   : > { %11165 = vst [vmem:[#allocation18_spill] sm:$0xff] %v9137_v27  ;;  %v857_v37 = vrot.slane %v9127_v5, 1  ;;  %v858_v1 = vrot.slane %v9129_v57, 1  ;;  %v859_v32 = vrot.slane %v9131_v60, 1  ;;  %v860_v9 = vrot.slane %v9133_v47, 1 }
 0x22b   : > { %v861_v44 = vrot.slane %v9135_v15, 1  ;;  %v862_v52 = vrot.slane %v9137_v27, 1  ;;  %v1103_v10 = vadd.f32 %v9096_v7, %v847_v61  ;;  %v1104_v12 = vadd.f32 %v9098_v31, %v848_v53 }
 0x22c   : > { %v1105_v58 = vadd.f32 %v9103_v25, %v849_v62  ;;  %v1106_v35 = vadd.f32 %v9105_v55, %v850_v49  ;;  %v1107_v4 = vadd.f32 %v9111_v56, %v851_v30  ;;  %v1108_v21 = vadd.f32 %v9113_v3, %v852_v29 }
 0x22d   : > { %v1109_v48 = vadd.f32 %v9118_v42, %v853_v59  ;;  %v1110_v34 = vadd.f32 %v9120_v18, %v854_v38  ;;  %v1111_v16 = vadd.f32 %v9122_v22, %v855_v14  ;;  %v1112_v46 = vadd.f32 %v9125_v23, %v856_v51 }
 0x22e   : > { %v1113_v50 = vadd.f32 %v9127_v5, %v857_v37  ;;  %v1114_v8 = vadd.f32 %v9129_v57, %v858_v1  ;;  %v1115_v13 = vadd.f32 %v9131_v60, %v859_v32  ;;  %v1116_v63 = vadd.f32 %v9133_v47, %v860_v9 }
 0x22f   : > { %v1117_v11 = vadd.f32 %v9135_v15, %v861_v44  ;;  %v1118_v19 = vadd.f32 %v9137_v27, %v862_v52  ;;  %v1231_v45 = vrot.slane %v9096_v7, 2  ;;  %v1232_v26 = vrot.slane %v9098_v31, 2 }
 0x230   : > { %v1233_v36 = vrot.slane %v9103_v25, 2  ;;  %v1234_v54 = vrot.slane %v9105_v55, 2  ;;  %v1235_v43 = vrot.slane %v9111_v56, 2  ;;  %v1236_v40 = vrot.slane %v9113_v3, 2 }
 0x231   : > { %v1237_v24 = vrot.slane %v9118_v42, 2  ;;  %v1238_v20 = vrot.slane %v9120_v18, 2  ;;  %v1239_v2 = vrot.slane %v9122_v22, 2  ;;  %v1240_v39 = vrot.slane %v9125_v23, 2 }
 0x232   : > { %v1241_v17 = vrot.slane %v9127_v5, 2  ;;  %v1242_v41 = vrot.slane %v9129_v57, 2  ;;  %v1243_v28 = vrot.slane %v9131_v60, 2  ;;  %v1244_v6 = vrot.slane %v9133_v47, 2 }
 0x233   : > { %v1245_v33 = vrot.slane %v9135_v15, 2  ;;  %v1246_v0 = vrot.slane %v9137_v27, 2  ;;  %v1487_v61 = vadd.f32 %v1231_v45, %v1103_v10  ;;  %v1488_v53 = vadd.f32 %v1232_v26, %v1104_v12 }
 0x234   : > { %v1489_v62 = vadd.f32 %v1233_v36, %v1105_v58  ;;  %v1490_v49 = vadd.f32 %v1234_v54, %v1106_v35  ;;  %v1491_v30 = vadd.f32 %v1235_v43, %v1107_v4  ;;  %v1492_v29 = vadd.f32 %v1236_v40, %v1108_v21 }
 0x235   : > { %v1493_v59 = vadd.f32 %v1237_v24, %v1109_v48  ;;  %v1494_v38 = vadd.f32 %v1238_v20, %v1110_v34  ;;  %v1495_v14 = vadd.f32 %v1239_v2, %v1111_v16  ;;  %v1496_v51 = vadd.f32 %v1240_v39, %v1112_v46 }
 0x236   : > { %v1497_v37 = vadd.f32 %v1241_v17, %v1113_v50  ;;  %v1498_v1 = vadd.f32 %v1242_v41, %v1114_v8  ;;  %v1499_v32 = vadd.f32 %v1243_v28, %v1115_v13  ;;  %v1500_v9 = vadd.f32 %v1244_v6, %v1116_v63  ;;  %v11166_v13 = vld [vmem:[#allocation17_spill] sm:$0xff] }
 0x237   : > { %v1501_v44 = vadd.f32 %v1245_v33, %v1117_v11  ;;  %v1502_v52 = vadd.f32 %v1246_v0, %v1118_v19  ;;  %v1615_v15 = vrot.slane %v9096_v7, 3  ;;  %v1616_v27 = vrot.slane %v9098_v31, 3  ;;  %v11167_v11 = vld [vmem:[#allocation18_spill] sm:$0xff] }
 0x238   : > { %v1617_v10 = vrot.slane %v9103_v25, 3  ;;  %v1618_v12 = vrot.slane %v9105_v55, 3  ;;  %v1619_v58 = vrot.slane %v9111_v56, 3  ;;  %v1620_v35 = vrot.slane %v9113_v3, 3 }
 0x239   : > { %v1621_v4 = vrot.slane %v9118_v42, 3  ;;  %v1622_v21 = vrot.slane %v9120_v18, 3  ;;  %v1623_v48 = vrot.slane %v9122_v22, 3  ;;  %v1624_v34 = vrot.slane %v9125_v23, 3 }
 0x23a   : > { %v1625_v16 = vrot.slane %v9127_v5, 3  ;;  %v1626_v46 = vrot.slane %v9129_v57, 3  ;;  %v1627_v50 = vrot.slane %v9131_v60, 3  ;;  %v1628_v8 = vrot.slane %v9133_v47, 3 }
 0x23b   : > { %v1629_v63 = vrot.slane %v11166_v13, 3  ;;  %v1630_v19 = vrot.slane %v11167_v11, 3  ;;  %v1871_v45 = vadd.f32 %v1615_v15, %v1487_v61  ;;  %v1872_v26 = vadd.f32 %v1616_v27, %v1488_v53 }
 0x23c   : > { %v1873_v36 = vadd.f32 %v1617_v10, %v1489_v62  ;;  %v1874_v54 = vadd.f32 %v1618_v12, %v1490_v49  ;;  %v1875_v43 = vadd.f32 %v1619_v58, %v1491_v30  ;;  %v1876_v40 = vadd.f32 %v1620_v35, %v1492_v29 }
 0x23d   : > { %v1877_v24 = vadd.f32 %v1621_v4, %v1493_v59  ;;  %v1878_v20 = vadd.f32 %v1622_v21, %v1494_v38  ;;  %v1879_v2 = vadd.f32 %v1623_v48, %v1495_v14  ;;  %v1880_v39 = vadd.f32 %v1624_v34, %v1496_v51 }
 0x23e   : > { %v1881_v17 = vadd.f32 %v1625_v16, %v1497_v37  ;;  %v1882_v41 = vadd.f32 %v1626_v46, %v1498_v1  ;;  %v1883_v28 = vadd.f32 %v1627_v50, %v1499_v32  ;;  %v1884_v6 = vadd.f32 %v1628_v8, %v1500_v9  ;;  %v11168_v37 = vld [vmem:[#allocation17_spill] sm:$0xff]  ;;  %v11169_v32 = vld [vmem:[#allocation18_spill] sm:$0xff] }
 0x23f   : > { %v1885_v33 = vadd.f32 %v1629_v63, %v1501_v44  ;;  %v1886_v0 = vadd.f32 %v1630_v19, %v1502_v52  ;;  %v1999_v13 = vrot.slane %v9096_v7, 4  ;;  %v2000_v11 = vrot.slane %v9098_v31, 4 }
 0x240   : > { %v2001_v15 = vrot.slane %v9103_v25, 4  ;;  %v2002_v27 = vrot.slane %v9105_v55, 4  ;;  %v2003_v61 = vrot.slane %v9111_v56, 4  ;;  %v2004_v53 = vrot.slane %v9113_v3, 4 }
 0x241   : > { %v2005_v62 = vrot.slane %v9118_v42, 4  ;;  %v2006_v49 = vrot.slane %v9120_v18, 4  ;;  %v2007_v30 = vrot.slane %v9122_v22, 4  ;;  %v2008_v29 = vrot.slane %v9125_v23, 4 }
 0x242   : > { %v2009_v59 = vrot.slane %v9127_v5, 4  ;;  %v2010_v38 = vrot.slane %v9129_v57, 4  ;;  %v2011_v14 = vrot.slane %v9131_v60, 4  ;;  %v2012_v51 = vrot.slane %v9133_v47, 4 }
 0x243   : > { %v2013_v1 = vrot.slane %v11168_v37, 4  ;;  %v2014_v9 = vrot.slane %v11169_v32, 4  ;;  %v2255_v44 = vadd.f32 %v1999_v13, %v1871_v45  ;;  %v2256_v52 = vadd.f32 %v2000_v11, %v1872_v26 }
 0x244   : > { %v2257_v10 = vadd.f32 %v2001_v15, %v1873_v36  ;;  %v2258_v12 = vadd.f32 %v2002_v27, %v1874_v54  ;;  %v2259_v58 = vadd.f32 %v2003_v61, %v1875_v43  ;;  %v2260_v35 = vadd.f32 %v2004_v53, %v1876_v40 }
 0x245   : > { %v2261_v4 = vadd.f32 %v2005_v62, %v1877_v24  ;;  %v2262_v21 = vadd.f32 %v2006_v49, %v1878_v20  ;;  %v2263_v48 = vadd.f32 %v2007_v30, %v1879_v2  ;;  %v2264_v34 = vadd.f32 %v2008_v29, %v1880_v39 }
 0x246   : > { %v2265_v16 = vadd.f32 %v2009_v59, %v1881_v17  ;;  %v2266_v46 = vadd.f32 %v2010_v38, %v1882_v41  ;;  %v2267_v50 = vadd.f32 %v2011_v14, %v1883_v28  ;;  %v2268_v8 = vadd.f32 %v2012_v51, %v1884_v6  ;;  %v11170_v17 = vld [vmem:[#allocation17_spill] sm:$0xff]  ;;  %v11171_v28 = vld [vmem:[#allocation18_spill] sm:$0xff] }
 0x247   : > { %v2269_v63 = vadd.f32 %v2013_v1, %v1885_v33  ;;  %v2270_v19 = vadd.f32 %v2014_v9, %v1886_v0  ;;  %v2383_v37 = vrot.slane %v9096_v7, 5  ;;  %v2384_v32 = vrot.slane %v9098_v31, 5 }
 0x248   : > { %v2385_v13 = vrot.slane %v9103_v25, 5  ;;  %v2386_v11 = vrot.slane %v9105_v55, 5  ;;  %v2387_v45 = vrot.slane %v9111_v56, 5  ;;  %v2388_v26 = vrot.slane %v9113_v3, 5 }
 0x249   : > { %v2389_v36 = vrot.slane %v9118_v42, 5  ;;  %v2390_v54 = vrot.slane %v9120_v18, 5  ;;  %v2391_v43 = vrot.slane %v9122_v22, 5  ;;  %v2392_v40 = vrot.slane %v9125_v23, 5 }
 0x24a   : > { %v2393_v24 = vrot.slane %v9127_v5, 5  ;;  %v2394_v20 = vrot.slane %v9129_v57, 5  ;;  %v2395_v2 = vrot.slane %v9131_v60, 5  ;;  %v2396_v39 = vrot.slane %v9133_v47, 5 }
 0x24b   : > { %v2397_v41 = vrot.slane %v11170_v17, 5  ;;  %v2398_v6 = vrot.slane %v11171_v28, 5  ;;  %v2639_v33 = vadd.f32 %v2383_v37, %v2255_v44  ;;  %v2640_v0 = vadd.f32 %v2384_v32, %v2256_v52 }
 0x24c   : > { %v2641_v15 = vadd.f32 %v2385_v13, %v2257_v10  ;;  %v2642_v27 = vadd.f32 %v2386_v11, %v2258_v12  ;;  %v2643_v61 = vadd.f32 %v2387_v45, %v2259_v58  ;;  %v2644_v53 = vadd.f32 %v2388_v26, %v2260_v35 }
 0x24d   : > { %v2645_v62 = vadd.f32 %v2389_v36, %v2261_v4  ;;  %v2646_v49 = vadd.f32 %v2390_v54, %v2262_v21  ;;  %v2647_v30 = vadd.f32 %v2391_v43, %v2263_v48  ;;  %v2648_v29 = vadd.f32 %v2392_v40, %v2264_v34 }
 0x24e   : > { %v2649_v59 = vadd.f32 %v2393_v24, %v2265_v16  ;;  %v2650_v38 = vadd.f32 %v2394_v20, %v2266_v46  ;;  %v2651_v14 = vadd.f32 %v2395_v2, %v2267_v50  ;;  %v2652_v51 = vadd.f32 %v2396_v39, %v2268_v8  ;;  %v11172_v16 = vld [vmem:[#allocation17_spill] sm:$0xff]  ;;  %v11173_v50 = vld [vmem:[#allocation18_spill] sm:$0xff] }
 0x24f   : > { %v2653_v1 = vadd.f32 %v2397_v41, %v2269_v63  ;;  %v2654_v9 = vadd.f32 %v2398_v6, %v2270_v19  ;;  %v2767_v17 = vrot.slane %v9096_v7, 6  ;;  %v2768_v28 = vrot.slane %v9098_v31, 6 }
 0x250   : > { %v2769_v37 = vrot.slane %v9103_v25, 6  ;;  %v2770_v32 = vrot.slane %v9105_v55, 6  ;;  %v2771_v44 = vrot.slane %v9111_v56, 6  ;;  %v2772_v52 = vrot.slane %v9113_v3, 6 }
 0x251   : > { %v2773_v10 = vrot.slane %v9118_v42, 6  ;;  %v2774_v12 = vrot.slane %v9120_v18, 6  ;;  %v2775_v58 = vrot.slane %v9122_v22, 6  ;;  %v2776_v35 = vrot.slane %v9125_v23, 6 }
 0x252   : > { %v2777_v4 = vrot.slane %v9127_v5, 6  ;;  %v2778_v21 = vrot.slane %v9129_v57, 6  ;;  %v2779_v48 = vrot.slane %v9131_v60, 6  ;;  %v2780_v34 = vrot.slane %v9133_v47, 6 }
 0x253   : > { %v2781_v46 = vrot.slane %v11172_v16, 6  ;;  %v2782_v8 = vrot.slane %v11173_v50, 6  ;;  %v3023_v63 = vadd.f32 %v2767_v17, %v2639_v33  ;;  %v3024_v19 = vadd.f32 %v2768_v28, %v2640_v0 }
 0x254   : > { %v3025_v13 = vadd.f32 %v2769_v37, %v2641_v15  ;;  %v3026_v11 = vadd.f32 %v2770_v32, %v2642_v27  ;;  %v3027_v45 = vadd.f32 %v2771_v44, %v2643_v61  ;;  %v3028_v26 = vadd.f32 %v2772_v52, %v2644_v53 }
 0x255   : > { %v3029_v36 = vadd.f32 %v2773_v10, %v2645_v62  ;;  %v3030_v54 = vadd.f32 %v2774_v12, %v2646_v49  ;;  %v3031_v43 = vadd.f32 %v2775_v58, %v2647_v30  ;;  %v3032_v40 = vadd.f32 %v2776_v35, %v2648_v29  ;;  %v11174_v62 = vld [vmem:[#allocation17_spill] sm:$0xff]  ;;  %v11175_v49 = vld [vmem:[#allocation18_spill] sm:$0xff] }
 0x256   : > { %v3033_v24 = vadd.f32 %v2777_v4, %v2649_v59  ;;  %v3034_v20 = vadd.f32 %v2778_v21, %v2650_v38  ;;  %v3035_v2 = vadd.f32 %v2779_v48, %v2651_v14  ;;  %v3036_v39 = vadd.f32 %v2780_v34, %v2652_v51 }
 0x257   : > { %v3037_v41 = vadd.f32 %v2781_v46, %v2653_v1  ;;  %v3038_v6 = vadd.f32 %v2782_v8, %v2654_v9  ;;  %v3151_v16 = vrot.slane %v9096_v7, 7  ;;  %v3152_v50 = vrot.slane %v9098_v31, 7 }
 0x258   : > { %v3153_v17 = vrot.slane %v9103_v25, 7  ;;  %v3154_v28 = vrot.slane %v9105_v55, 7  ;;  %v3155_v33 = vrot.slane %v9111_v56, 7  ;;  %v3156_v0 = vrot.slane %v9113_v3, 7 }
 0x259   : > { %v3157_v15 = vrot.slane %v9118_v42, 7  ;;  %v3158_v27 = vrot.slane %v9120_v18, 7  ;;  %v3159_v61 = vrot.slane %v9122_v22, 7  ;;  %v3160_v53 = vrot.slane %v9125_v23, 7 }
 0x25a   : > { %v3161_v7 = vrot.slane %v9127_v5, 7  ;;  %v3162_v31 = vrot.slane %v9129_v57, 7  ;;  %v3163_v25 = vrot.slane %v9131_v60, 7  ;;  %v3164_v55 = vrot.slane %v9133_v47, 7 }
 0x25b   : > { %v3165_v56 = vrot.slane %v11174_v62, 7  ;;  %v3166_v3 = vrot.slane %v11175_v49, 7  ;;  %v3407_v30 = vadd.f32 %v3151_v16, %v3023_v63  ;;  %v3408_v42 = vadd.f32 %v3152_v50, %v3024_v19 }
 0x25c   : > { %v3409_v29 = vadd.f32 %v3153_v17, %v3025_v13  ;;  %v3410_v18 = vadd.f32 %v3154_v28, %v3026_v11  ;;  %v3411_v59 = vadd.f32 %v3155_v33, %v3027_v45  ;;  %v3412_v22 = vadd.f32 %v3156_v0, %v3028_v26 }
 0x25d   : > { %v3413_v38 = vadd.f32 %v3157_v15, %v3029_v36  ;;  %v3414_v23 = vadd.f32 %v3158_v27, %v3030_v54  ;;  %v3415_v14 = vadd.f32 %v3159_v61, %v3031_v43  ;;  %v3416_v5 = vadd.f32 %v3160_v53, %v3032_v40 }
 0x25e   : > { %v3417_v51 = vadd.f32 %v3161_v7, %v3033_v24  ;;  %v3418_v57 = vadd.f32 %v3162_v31, %v3034_v20  ;;  %v3419_v1 = vadd.f32 %v3163_v25, %v3035_v2  ;;  %v3420_v60 = vadd.f32 %v3164_v55, %v3036_v39 }
 0x25f   : > { %v3421_v9 = vadd.f32 %v3165_v56, %v3037_v41  ;;  %v3422_v47 = vadd.f32 %v3166_v3, %v3038_v6  ;;  %v3535_v37 = vmul.f32 0.125, %v3407_v30  ;;  %v3536_v32 = vmul.f32 0.125, %v3408_v42  ;;  %v7130_v3 = vld [vmem:[#allocation7 + $0x24] sm:$0xf]  ;;  %v6935_v30 = vld [vmem:[#allocation7 + $0x28] sm:$0xf0] }
 0x260   : > { %v3537_v44 = vmul.f32 0.125, %v3409_v29  ;;  %v3538_v52 = vmul.f32 0.125, %v3410_v18  ;;  %v3539_v10 = vmul.f32 0.125, %v3411_v59  ;;  %v3540_v12 = vmul.f32 0.125, %v3412_v22  ;;  %v7146_v22 = vld [vmem:[#allocation7 + $0xa4] sm:$0xf] }
 0x261   : > { %v3541_v58 = vmul.f32 0.125, %v3413_v38  ;;  %v3542_v35 = vmul.f32 0.125, %v3414_v23  ;;  %v3543_v4 = vmul.f32 0.125, %v3415_v14  ;;  %v3544_v21 = vmul.f32 0.125, %v3416_v5  ;;  %v6999_v38 = vld [vmem:[#allocation7 + $0xa8] sm:$0xf0] }
 0x262   : > { %v3545_v48 = vmul.f32 0.125, %v3417_v51  ;;  %v3546_v34 = vmul.f32 0.125, %v3418_v57  ;;  %v3547_v16 = vmul.f32 0.125, %v3419_v1  ;;  %v3548_v46 = vmul.f32 0.125, %v3420_v60  ;;  %v6973_v23 = vld [vmem:[#allocation7 + $0x70] sm:$0xf] }
 0x263   : > { %v3549_v50 = vmul.f32 0.125, %v3421_v9  ;;  %v3550_v8 = vmul.f32 0.125, %v3422_v47  ;;  %v3663_v63 = vpack.c.bf16 %v3535_v37, %v3535_v37  ;;  %v3664_v19 = vpack.c.bf16 %v3536_v32, %v3536_v32  ;;  %v7141_v1 = vld [vmem:[#allocation7 + $0x74] sm:$0xf0]  ;;  %v7037_v32 = vld [vmem:[#allocation7 + $0xf0] sm:$0xf] }
 0x264   : > { %v3665_v13 = vpack.c.bf16 %v3537_v44, %v3537_v44  ;;  %v3666_v11 = vpack.c.bf16 %v3538_v52, %v3538_v52  ;;  %v3667_v45 = vpack.c.bf16 %v3539_v10, %v3539_v10  ;;  %v3668_v26 = vpack.c.bf16 %v3540_v12, %v3540_v12 }
 0x265   : > { %v3669_v36 = vpack.c.bf16 %v3541_v58, %v3541_v58  ;;  %v3670_v54 = vpack.c.bf16 %v3542_v35, %v3542_v35  ;;  %v3671_v43 = vpack.c.bf16 %v3543_v4, %v3543_v4  ;;  %v3672_v40 = vpack.c.bf16 %v3544_v21, %v3544_v21  ;;  %v7157_v58 = vld [vmem:[#allocation7 + $0xf4] sm:$0xf0] }
 0x266   : > { %v3673_v24 = vpack.c.bf16 %v3545_v48, %v3545_v48  ;;  %v3674_v20 = vpack.c.bf16 %v3546_v34, %v3546_v34  ;;  %v3675_v2 = vpack.c.bf16 %v3547_v16, %v3547_v16  ;;  %v3676_v39 = vpack.c.bf16 %v3548_v46, %v3548_v46  ;;  %v7485_v34 = vld [vmem:[%s7927_s14 + $0x1c0] sm:$0xff]   ;;  %v7486_v16 = vld [vmem:[%s7927_s14 + $0x1c8] sm:$0xff]  }
 0x267   : > { %v3677_v41 = vpack.c.bf16 %v3549_v50, %v3549_v50  ;;  %v3678_v6 = vpack.c.bf16 %v3550_v8, %v3550_v8  ;;  %v3941_v17 = vunpack.c.l.b16 %v3663_v63  ;;  %v3942_v28 = vunpack.c.l.b16 %v3664_v19  ;;  %v7487_v19 = vld [vmem:[%s7927_s14 + $0x1d0] sm:$0xff]  }
 0x268   : > { %v3943_v33 = vunpack.c.l.b16 %v3665_v13  ;;  %v3944_v0 = vunpack.c.l.b16 %v3666_v11  ;;  %v3945_v15 = vunpack.c.l.b16 %v3667_v45  ;;  %v3946_v27 = vunpack.c.l.b16 %v3668_v26 }
 0x269   : > { %v3947_v61 = vunpack.c.l.b16 %v3669_v36  ;;  %v3948_v53 = vunpack.c.l.b16 %v3670_v54  ;;  %v3949_v7 = vunpack.c.l.b16 %v3671_v43  ;;  %v3950_v31 = vunpack.c.l.b16 %v3672_v40  ;;  %v7488_v36 = vld [vmem:[%s7927_s14 + $0x1d8] sm:$0xff]  }
 0x26a   : > { %v3951_v25 = vunpack.c.l.b16 %v3673_v24  ;;  %v3952_v55 = vunpack.c.l.b16 %v3674_v20  ;;  %v3953_v62 = vunpack.c.l.b16 %v3675_v2  ;;  %v3954_v56 = vunpack.c.l.b16 %v3676_v39  ;;  %v7489_v20 = vld [vmem:[%s7927_s14 + $0x1e0] sm:$0xff]   ;;  %v7490_v2 = vld [vmem:[%s7927_s14 + $0x1e8] sm:$0xff]  }
 0x26b   : > { %v3955_v49 = vunpack.c.l.b16 %v3677_v41  ;;  %v3956_v42 = vunpack.c.l.b16 %v3678_v6  ;;  %v4148_v29 = vrot.slane %v3942_v28, 7  ;;  %v4150_v18 = vrot.slane %v3943_v33, 6  ;;  %v7491_v28 = vld [vmem:[%s7927_s14 + $0x1f0] sm:$0xff]  }
 0x26c   : > { %v4152_v59 = vrot.slane %v3944_v0, 5  ;;  %v4154_v14 = vrot.slane %v3945_v15, 4  ;;  %v4156_v5 = vrot.slane %v3946_v27, 3  ;;  %v4158_v51 = vrot.slane %v3947_v61, 2  ;;  %v7492_v61 = vld [vmem:[%s7927_s14 + $0x1f8] sm:$0xff]  }
 0x26d   : > { %v4160_v57 = vrot.slane %v3948_v53, 1  ;;  %v4149_v60 = vsel %vm3974_vm0, %v4148_v29, %v3941_v17  ;;  %v4162_v9 = vrot.slane %v3950_v31, 7  ;;  %v4164_v47 = vrot.slane %v3951_v25, 6 }
 0x26e   : > { %v4166_v37 = vrot.slane %v3952_v55, 5  ;;  %v4151_v44 = vsel %vm3977_vm1, %v4150_v18, %v4149_v60  ;;  %v4168_v52 = vrot.slane %v3953_v62, 4  ;;  %v4170_v10 = vrot.slane %v3954_v56, 3 }
 0x26f   : > { %v4172_v12 = vrot.slane %v3955_v49, 2  ;;  %v4153_v35 = vsel %vm3980_vm2, %v4152_v59, %v4151_v44  ;;  %v4163_v4 = vsel %vm3974_vm0, %v4162_v9, %v3949_v7  ;;  %v4174_v21 = vrot.slane %v3956_v42, 1 }
 0x270   : > { %v6938_v48 = vor.u32 %v7130_v3, %v6935_v30  ;;  %v4155_v46 = vsel %vm3983_vm3, %v4154_v14, %v4153_v35  ;;  %v4165_v50 = vsel %vm3977_vm1, %v4164_v47, %v4163_v4  ;;  %v7002_v8 = vor.u32 %v7146_v22, %v6999_v38 }
 0x271   : > { %v6974_v63 = vor.u32 %v7141_v1, %v6973_v23  ;;  %v4157_v13 = vsel %vm3986_vm4, %v4156_v5, %v4155_v46  ;;  %v4167_v11 = vsel %vm3980_vm2, %v4166_v37, %v4165_v50  ;;  %v7038_v45 = vor.u32 %v7157_v58, %v7037_v32 }
 0x272   : > { %4747 = vmatpush.bf16.msrb.mxu0 %v6938_v48  ;;  %v9278_v26 = vunpack.c.l.bf16 %v7485_v34  ;;  %v4159_v54 = vsel %vm3989_vm5, %v4158_v51, %v4157_v13  ;;  %v4169_v43 = vsel %vm3983_vm3, %v4168_v52, %v4167_v11  ;;  %4796 = vmatpush.bf16.msrb.mxu1 %v7002_v8  ;;  %v9283_v40 = vunpack.c.h.bf16 %v7485_v34 }
 0x273   : > { %4644 = vmatpush.bf16.msra.mxu2 %v6974_v63  ;;  %v9285_v24 = vunpack.c.l.bf16 %v7486_v16  ;;  %v4161_v39 = vsel %vm3992_vm6, %v4160_v57, %v4159_v54  ;;  %v4171_v41 = vsel %vm3986_vm4, %v4170_v10, %v4169_v43  ;;  %4693 = vmatpush.bf16.msra.mxu3 %v7038_v45  ;;  %v9291_v6 = vunpack.c.h.bf16 %v7486_v16 }
 0x274   : > { %v9293_v17 = vunpack.c.l.bf16 %v7487_v19  ;;  %v4173_v33 = vsel %vm3989_vm5, %v4172_v12, %v4171_v41  ;;  %v9297_v0 = vunpack.c.h.bf16 %v7487_v19  ;;  %v9299_v15 = vunpack.c.l.bf16 %v7488_v36 }
 0x275   : > { %v9301_v27 = vunpack.c.h.bf16 %v7488_v36  ;;  %v4175_v53 = vsel %vm3992_vm6, %v4174_v21, %v4173_v33  ;;  %v9305_v7 = vunpack.c.l.bf16 %v7489_v20  ;;  %v9307_v31 = vunpack.c.h.bf16 %v7489_v20 }
 0x276   : > { %v9309_v25 = vunpack.c.l.bf16 %v7490_v2  ;;  %v4210_v55 = vpack.c.b16 %v4175_v53, %v4161_v39  ;;  %v9311_v62 = vunpack.c.h.bf16 %v7490_v2  ;;  %v9313_v56 = vunpack.c.l.bf16 %v7491_v28 }
 0x277   : > { %v9315_v49 = vunpack.c.h.bf16 %v7491_v28  ;;  %v9317_v3 = vunpack.c.l.bf16 %v7492_v61  ;;  %v9319_v30 = vunpack.c.h.bf16 %v7492_v61  ;;  %v863_v42 = vrot.slane %v9278_v26, 1 }
 0x278   : > { %v864_v29 = vrot.slane %v9283_v40, 1  ;;  %4338 = vmatmul.bf16.gmra.mxu0 %v4210_v55  ;;  %4387 = vmatmul.bf16.gmra.mxu1 %v4210_v55  ;;  %v865_v18 = vrot.slane %v9285_v24, 1  ;;  %v866_v59 = vrot.slane %v9291_v6, 1  ;;  %v867_v22 = vrot.slane %v9293_v17, 1 }
 0x279   : > { %11176 = vst [vmem:[#allocation13_spill] sm:$0xff] %v9317_v3  ;;  %v868_v38 = vrot.slane %v9297_v0, 1  ;;  %v869_v23 = vrot.slane %v9299_v15, 1  ;;  %v870_v14 = vrot.slane %v9301_v27, 1  ;;  %v871_v5 = vrot.slane %v9305_v7, 1 }
 0x27a   : > { %11177 = vst [vmem:[#allocation14_spill] sm:$0xff] %v9319_v30  ;;  %v872_v51 = vrot.slane %v9307_v31, 1  ;;  %v873_v57 = vrot.slane %v9309_v25, 1  ;;  %v874_v1 = vrot.slane %v9311_v62, 1  ;;  %v875_v60 = vrot.slane %v9313_v56, 1 }
 0x27b   : > { %v876_v9 = vrot.slane %v9315_v49, 1  ;;  %v877_v47 = vrot.slane %v9317_v3, 1  ;;  %v878_v37 = vrot.slane %v9319_v30, 1  ;;  %v1119_v32 = vadd.f32 %v9278_v26, %v863_v42 }
 0x27c   : > { %v1120_v44 = vadd.f32 %v9283_v40, %v864_v29  ;;  %v1121_v52 = vadd.f32 %v9285_v24, %v865_v18  ;;  %v1122_v10 = vadd.f32 %v9291_v6, %v866_v59  ;;  %v1123_v12 = vadd.f32 %v9293_v17, %v867_v22 }
 0x27d   : > { %v1124_v58 = vadd.f32 %v9297_v0, %v868_v38  ;;  %v1125_v35 = vadd.f32 %v9299_v15, %v869_v23  ;;  %v1126_v4 = vadd.f32 %v9301_v27, %v870_v14  ;;  %v1127_v21 = vadd.f32 %v9305_v7, %v871_v5 }
 0x27e   : > { %v1128_v48 = vadd.f32 %v9307_v31, %v872_v51  ;;  %v1129_v34 = vadd.f32 %v9309_v25, %v873_v57  ;;  %v1130_v16 = vadd.f32 %v9311_v62, %v874_v1  ;;  %v1131_v46 = vadd.f32 %v9313_v56, %v875_v60 }
 0x27f   : > { %v1132_v50 = vadd.f32 %v9315_v49, %v876_v9  ;;  %v1133_v8 = vadd.f32 %v9317_v3, %v877_v47  ;;  %v1134_v63 = vadd.f32 %v9319_v30, %v878_v37  ;;  %v1247_v19 = vrot.slane %v9278_v26, 2 }
 0x280   : > { %v1248_v13 = vrot.slane %v9283_v40, 2  ;;  %v1249_v11 = vrot.slane %v9285_v24, 2  ;;  %v1250_v45 = vrot.slane %v9291_v6, 2  ;;  %v1251_v36 = vrot.slane %v9293_v17, 2 }
 0x281   : > { %v1252_v54 = vrot.slane %v9297_v0, 2  ;;  %v1253_v43 = vrot.slane %v9299_v15, 2  ;;  %v1254_v20 = vrot.slane %v9301_v27, 2  ;;  %v1255_v2 = vrot.slane %v9305_v7, 2 }
 0x282   : > { %v1256_v39 = vrot.slane %v9307_v31, 2  ;;  %v1257_v41 = vrot.slane %v9309_v25, 2  ;;  %v1258_v28 = vrot.slane %v9311_v62, 2  ;;  %v1259_v33 = vrot.slane %v9313_v56, 2 }
 0x283   : > { %v1260_v61 = vrot.slane %v9315_v49, 2  ;;  %v1261_v53 = vrot.slane %v9317_v3, 2  ;;  %v1262_v55 = vrot.slane %v9319_v30, 2  ;;  %v1503_v42 = vadd.f32 %v1247_v19, %v1119_v32 }
 0x284   : > { %v1504_v29 = vadd.f32 %v1248_v13, %v1120_v44  ;;  %v1505_v18 = vadd.f32 %v1249_v11, %v1121_v52  ;;  %v1506_v59 = vadd.f32 %v1250_v45, %v1122_v10  ;;  %v1507_v22 = vadd.f32 %v1251_v36, %v1123_v12 }
 0x285   : > { %v1508_v38 = vadd.f32 %v1252_v54, %v1124_v58  ;;  %v1509_v23 = vadd.f32 %v1253_v43, %v1125_v35  ;;  %v1510_v14 = vadd.f32 %v1254_v20, %v1126_v4  ;;  %v1511_v5 = vadd.f32 %v1255_v2, %v1127_v21 }
 0x286   : > { %v1512_v51 = vadd.f32 %v1256_v39, %v1128_v48  ;;  %v1513_v57 = vadd.f32 %v1257_v41, %v1129_v34  ;;  %v1514_v1 = vadd.f32 %v1258_v28, %v1130_v16  ;;  %v1515_v60 = vadd.f32 %v1259_v33, %v1131_v46  ;;  %v11178_v46 = vld [vmem:[#allocation13_spill] sm:$0xff] }
 0x287   : > { %v1516_v9 = vadd.f32 %v1260_v61, %v1132_v50  ;;  %v1517_v47 = vadd.f32 %v1261_v53, %v1133_v8  ;;  %v1518_v37 = vadd.f32 %v1262_v55, %v1134_v63  ;;  %v1631_v3 = vrot.slane %v9278_v26, 3  ;;  %v11179_v8 = vld [vmem:[#allocation14_spill] sm:$0xff] }
 0x288   : > { %v1632_v30 = vrot.slane %v9283_v40, 3  ;;  %v1633_v32 = vrot.slane %v9285_v24, 3  ;;  %v1634_v44 = vrot.slane %v9291_v6, 3  ;;  %v1635_v52 = vrot.slane %v9293_v17, 3 }
 0x289   : > { %v1636_v10 = vrot.slane %v9297_v0, 3  ;;  %v1637_v12 = vrot.slane %v9299_v15, 3  ;;  %v1638_v58 = vrot.slane %v9301_v27, 3  ;;  %v1639_v35 = vrot.slane %v9305_v7, 3 }
 0x28a   : > { %v1640_v4 = vrot.slane %v9307_v31, 3  ;;  %v1641_v21 = vrot.slane %v9309_v25, 3  ;;  %v1642_v48 = vrot.slane %v9311_v62, 3  ;;  %v1643_v34 = vrot.slane %v9313_v56, 3 }
 0x28b   : > { %v1644_v16 = vrot.slane %v9315_v49, 3  ;;  %v1645_v50 = vrot.slane %v11178_v46, 3  ;;  %v1646_v63 = vrot.slane %v11179_v8, 3  ;;  %v1887_v19 = vadd.f32 %v1631_v3, %v1503_v42 }
 0x28c   : > { %v1888_v13 = vadd.f32 %v1632_v30, %v1504_v29  ;;  %v1889_v11 = vadd.f32 %v1633_v32, %v1505_v18  ;;  %v1890_v45 = vadd.f32 %v1634_v44, %v1506_v59  ;;  %v1891_v36 = vadd.f32 %v1635_v52, %v1507_v22 }
 0x28d   : > { %v1892_v54 = vadd.f32 %v1636_v10, %v1508_v38  ;;  %v1893_v43 = vadd.f32 %v1637_v12, %v1509_v23  ;;  %v1894_v20 = vadd.f32 %v1638_v58, %v1510_v14  ;;  %v1895_v2 = vadd.f32 %v1639_v35, %v1511_v5 }
 0x28e   : > { %v1896_v39 = vadd.f32 %v1640_v4, %v1512_v51  ;;  %v1897_v41 = vadd.f32 %v1641_v21, %v1513_v57  ;;  %v1898_v28 = vadd.f32 %v1642_v48, %v1514_v1  ;;  %v1899_v33 = vadd.f32 %v1643_v34, %v1515_v60  ;;  %v11180_v57 = vld [vmem:[#allocation13_spill] sm:$0xff]  ;;  %v11181_v60 = vld [vmem:[#allocation14_spill] sm:$0xff] }
 0x28f   : > { %v1900_v61 = vadd.f32 %v1644_v16, %v1516_v9  ;;  %v1901_v53 = vadd.f32 %v1645_v50, %v1517_v47  ;;  %v1902_v55 = vadd.f32 %v1646_v63, %v1518_v37  ;;  %v2015_v46 = vrot.slane %v9278_v26, 4 }
 0x290   : > { %v2016_v8 = vrot.slane %v9283_v40, 4  ;;  %v2017_v3 = vrot.slane %v9285_v24, 4  ;;  %v2018_v30 = vrot.slane %v9291_v6, 4  ;;  %v2019_v42 = vrot.slane %v9293_v17, 4 }
 0x291   : > { %v2020_v29 = vrot.slane %v9297_v0, 4  ;;  %v2021_v18 = vrot.slane %v9299_v15, 4  ;;  %v2022_v59 = vrot.slane %v9301_v27, 4  ;;  %v2023_v22 = vrot.slane %v9305_v7, 4 }
 0x292   : > { %v2024_v38 = vrot.slane %v9307_v31, 4  ;;  %v2025_v23 = vrot.slane %v9309_v25, 4  ;;  %v2026_v14 = vrot.slane %v9311_v62, 4  ;;  %v2027_v5 = vrot.slane %v9313_v56, 4 }
 0x293   : > { %v2028_v51 = vrot.slane %v9315_v49, 4  ;;  %v2029_v1 = vrot.slane %v11180_v57, 4  ;;  %v2030_v9 = vrot.slane %v11181_v60, 4  ;;  %v2271_v47 = vadd.f32 %v2015_v46, %v1887_v19 }
 0x294   : > { %v2272_v37 = vadd.f32 %v2016_v8, %v1888_v13  ;;  %v2273_v32 = vadd.f32 %v2017_v3, %v1889_v11  ;;  %v2274_v44 = vadd.f32 %v2018_v30, %v1890_v45  ;;  %v2275_v52 = vadd.f32 %v2019_v42, %v1891_v36 }
 0x295   : > { %v2276_v10 = vadd.f32 %v2020_v29, %v1892_v54  ;;  %v2277_v12 = vadd.f32 %v2021_v18, %v1893_v43  ;;  %v2278_v58 = vadd.f32 %v2022_v59, %v1894_v20  ;;  %v2279_v35 = vadd.f32 %v2023_v22, %v1895_v2 }
 0x296   : > { %v2280_v4 = vadd.f32 %v2024_v38, %v1896_v39  ;;  %v2281_v21 = vadd.f32 %v2025_v23, %v1897_v41  ;;  %v2282_v48 = vadd.f32 %v2026_v14, %v1898_v28  ;;  %v2283_v34 = vadd.f32 %v2027_v5, %v1899_v33  ;;  %v11182_v41 = vld [vmem:[#allocation13_spill] sm:$0xff]  ;;  %v11183_v33 = vld [vmem:[#allocation14_spill] sm:$0xff] }
 0x297   : > { %v2284_v16 = vadd.f32 %v2028_v51, %v1900_v61  ;;  %v2285_v50 = vadd.f32 %v2029_v1, %v1901_v53  ;;  %v2286_v63 = vadd.f32 %v2030_v9, %v1902_v55  ;;  %v2399_v57 = vrot.slane %v9278_v26, 5 }
 0x298   : > { %v2400_v60 = vrot.slane %v9283_v40, 5  ;;  %v2401_v46 = vrot.slane %v9285_v24, 5  ;;  %v2402_v8 = vrot.slane %v9291_v6, 5  ;;  %v2403_v19 = vrot.slane %v9293_v17, 5 }
 0x299   : > { %v2404_v13 = vrot.slane %v9297_v0, 5  ;;  %v2405_v11 = vrot.slane %v9299_v15, 5  ;;  %v2406_v45 = vrot.slane %v9301_v27, 5  ;;  %v2407_v36 = vrot.slane %v9305_v7, 5 }
 0x29a   : > { %v2408_v54 = vrot.slane %v9307_v31, 5  ;;  %v2409_v43 = vrot.slane %v9309_v25, 5  ;;  %v2410_v20 = vrot.slane %v9311_v62, 5  ;;  %v2411_v2 = vrot.slane %v9313_v56, 5 }
 0x29b   : > { %v2412_v39 = vrot.slane %v9315_v49, 5  ;;  %v2413_v28 = vrot.slane %v11182_v41, 5  ;;  %v2414_v61 = vrot.slane %v11183_v33, 5  ;;  %v2655_v53 = vadd.f32 %v2399_v57, %v2271_v47 }
 0x29c   : > { %v2656_v55 = vadd.f32 %v2400_v60, %v2272_v37  ;;  %v2657_v3 = vadd.f32 %v2401_v46, %v2273_v32  ;;  %v2658_v30 = vadd.f32 %v2402_v8, %v2274_v44  ;;  %v2659_v42 = vadd.f32 %v2403_v19, %v2275_v52 }
 0x29d   : > { %v2660_v29 = vadd.f32 %v2404_v13, %v2276_v10  ;;  %v2661_v18 = vadd.f32 %v2405_v11, %v2277_v12  ;;  %v2662_v59 = vadd.f32 %v2406_v45, %v2278_v58  ;;  %v2663_v22 = vadd.f32 %v2407_v36, %v2279_v35 }
 0x29e   : > { %v2664_v38 = vadd.f32 %v2408_v54, %v2280_v4  ;;  %v2665_v23 = vadd.f32 %v2409_v43, %v2281_v21  ;;  %v2666_v14 = vadd.f32 %v2410_v20, %v2282_v48  ;;  %v2667_v5 = vadd.f32 %v2411_v2, %v2283_v34  ;;  %v11184_v21 = vld [vmem:[#allocation13_spill] sm:$0xff]  ;;  %v11185_v34 = vld [vmem:[#allocation14_spill] sm:$0xff] }
 0x29f   : > { %v2668_v51 = vadd.f32 %v2412_v39, %v2284_v16  ;;  %v2669_v1 = vadd.f32 %v2413_v28, %v2285_v50  ;;  %v2670_v9 = vadd.f32 %v2414_v61, %v2286_v63  ;;  %v2783_v41 = vrot.slane %v9278_v26, 6 }
 0x2a0   : > { %v2784_v33 = vrot.slane %v9283_v40, 6  ;;  %v2785_v57 = vrot.slane %v9285_v24, 6  ;;  %v2786_v60 = vrot.slane %v9291_v6, 6  ;;  %v2787_v47 = vrot.slane %v9293_v17, 6 }
 0x2a1   : > { %v2788_v37 = vrot.slane %v9297_v0, 6  ;;  %v2789_v32 = vrot.slane %v9299_v15, 6  ;;  %v2790_v44 = vrot.slane %v9301_v27, 6  ;;  %v2791_v52 = vrot.slane %v9305_v7, 6 }
 0x2a2   : > { %v2792_v10 = vrot.slane %v9307_v31, 6  ;;  %v2793_v12 = vrot.slane %v9309_v25, 6  ;;  %v2794_v58 = vrot.slane %v9311_v62, 6  ;;  %v2795_v35 = vrot.slane %v9313_v56, 6 }
 0x2a3   : > { %v2796_v4 = vrot.slane %v9315_v49, 6  ;;  %v2797_v48 = vrot.slane %v11184_v21, 6  ;;  %v2798_v16 = vrot.slane %v11185_v34, 6  ;;  %v3039_v50 = vadd.f32 %v2783_v41, %v2655_v53 }
 0x2a4   : > { %v3040_v63 = vadd.f32 %v2784_v33, %v2656_v55  ;;  %v3041_v46 = vadd.f32 %v2785_v57, %v2657_v3  ;;  %v3042_v8 = vadd.f32 %v2786_v60, %v2658_v30  ;;  %v3043_v19 = vadd.f32 %v2787_v47, %v2659_v42 }
 0x2a5   : > { %v3044_v13 = vadd.f32 %v2788_v37, %v2660_v29  ;;  %v3045_v11 = vadd.f32 %v2789_v32, %v2661_v18  ;;  %v3046_v45 = vadd.f32 %v2790_v44, %v2662_v59  ;;  %v3047_v36 = vadd.f32 %v2791_v52, %v2663_v22  ;;  %v9447_v18 = vpop.f32.mrf.mxu0  ;;  %v11187_v59 = vld [vmem:[#allocation14_spill] sm:$0xff] }
 0x2a6   : > { %v3048_v54 = vadd.f32 %v2792_v10, %v2664_v38  ;;  %v3049_v43 = vadd.f32 %v2793_v12, %v2665_v23  ;;  %v3050_v20 = vadd.f32 %v2794_v58, %v2666_v14  ;;  %v3051_v2 = vadd.f32 %v2795_v35, %v2667_v5 }
 0x2a7   : > { %v3052_v39 = vadd.f32 %v2796_v4, %v2668_v51  ;;  %v3053_v28 = vadd.f32 %v2797_v48, %v2669_v1  ;;  %v3054_v61 = vadd.f32 %v2798_v16, %v2670_v9  ;;  %v3167_v21 = vrot.slane %v9278_v26, 7 }
 0x2a8   : > { %v3168_v34 = vrot.slane %v9283_v40, 7  ;;  %v3169_v41 = vrot.slane %v9285_v24, 7  ;;  %v3170_v33 = vrot.slane %v9291_v6, 7  ;;  %v3171_v53 = vrot.slane %v9293_v17, 7  ;;  %v9449_v17 = vpop.f32.mrf.mxu1 }
 0x2a9   : > { %v3172_v55 = vrot.slane %v9297_v0, 7  ;;  %v3173_v3 = vrot.slane %v9299_v15, 7  ;;  %v3174_v30 = vrot.slane %v9301_v27, 7  ;;  %v3175_v42 = vrot.slane %v9305_v7, 7  ;;  %v11186_v0 = vld [vmem:[#allocation13_spill] sm:$0xff] }
 0x2aa   : > { %v3176_v29 = vrot.slane %v9307_v31, 7  ;;  %v3177_v26 = vrot.slane %v9309_v25, 7  ;;  %v3178_v40 = vrot.slane %v9311_v62, 7  ;;  %v3179_v24 = vrot.slane %v9313_v56, 7 }
 0x2ab   : > { %v3180_v6 = vrot.slane %v9315_v49, 7  ;;  %v3181_v15 = vrot.slane %v11186_v0, 7  ;;  %v3182_v27 = vrot.slane %v11187_v59, 7  ;;  %v3423_v22 = vadd.f32 %v3167_v21, %v3039_v50 }
 0x2ac   : > { %v3424_v7 = vadd.f32 %v3168_v34, %v3040_v63  ;;  %v3425_v38 = vadd.f32 %v3169_v41, %v3041_v46  ;;  %v3426_v31 = vadd.f32 %v3170_v33, %v3042_v8  ;;  %v3427_v23 = vadd.f32 %v3171_v53, %v3043_v19 }
 0x2ad   : > { %v3428_v25 = vadd.f32 %v3172_v55, %v3044_v13  ;;  %v3429_v14 = vadd.f32 %v3173_v3, %v3045_v11  ;;  %v3430_v62 = vadd.f32 %v3174_v30, %v3046_v45  ;;  %v3431_v5 = vadd.f32 %v3175_v42, %v3047_v36  ;;  %v9453_v19 = vpop.f32.mrf.mxu0 }
 0x2ae   : > { %v3432_v56 = vadd.f32 %v3176_v29, %v3048_v54  ;;  %v3433_v51 = vadd.f32 %v3177_v26, %v3049_v43  ;;  %v3434_v49 = vadd.f32 %v3178_v40, %v3050_v20  ;;  %v3435_v1 = vadd.f32 %v3179_v24, %v3051_v2 }
 0x2af   : > { %v3436_v9 = vadd.f32 %v3180_v6, %v3052_v39  ;;  %v3437_v57 = vadd.f32 %v3181_v15, %v3053_v28  ;;  %v3438_v60 = vadd.f32 %v3182_v27, %v3054_v61  ;;  %v3551_v47 = vmul.f32 0.125, %v3423_v22 }
 0x2b0   : > { %v3552_v37 = vmul.f32 0.125, %v3424_v7  ;;  %v3553_v32 = vmul.f32 0.125, %v3425_v38  ;;  %v3554_v44 = vmul.f32 0.125, %v3426_v31  ;;  %v3555_v52 = vmul.f32 0.125, %v3427_v23  ;;  %v9455_v13 = vpop.f32.mrf.mxu1 }
 0x2b1   : > { %v3556_v10 = vmul.f32 0.125, %v3428_v25  ;;  %v3557_v12 = vmul.f32 0.125, %v3429_v14  ;;  %v3558_v58 = vmul.f32 0.125, %v3430_v62  ;;  %v3559_v35 = vmul.f32 0.125, %v3431_v5  ;;  %v6965_v14 = vld [vmem:[#allocation7 + $0x60] sm:$0xf] }
 0x2b2   : > { %v3560_v4 = vmul.f32 0.125, %v3432_v56  ;;  %v3561_v21 = vmul.f32 0.125, %v3433_v51  ;;  %v3562_v48 = vmul.f32 0.125, %v3434_v49  ;;  %v3563_v34 = vmul.f32 0.125, %v3435_v1  ;;  %v7139_v62 = vld [vmem:[#allocation7 + $0x64] sm:$0xf0] }
 0x2b3   : > { %v3564_v16 = vmul.f32 0.125, %v3436_v9  ;;  %v3565_v50 = vmul.f32 0.125, %v3437_v57  ;;  %v3566_v63 = vmul.f32 0.125, %v3438_v60  ;;  %v3679_v46 = vpack.c.bf16 %v3551_v47, %v3551_v47  ;;  %v7029_v5 = vld [vmem:[#allocation7 + $0xe0] sm:$0xf] }
 0x2b4   : > { %v3680_v8 = vpack.c.bf16 %v3552_v37, %v3552_v37  ;;  %v3681_v11 = vpack.c.bf16 %v3553_v32, %v3553_v32  ;;  %v3682_v45 = vpack.c.bf16 %v3554_v44, %v3554_v44  ;;  %v3683_v36 = vpack.c.bf16 %v3555_v52, %v3555_v52  ;;  %v7155_v56 = vld [vmem:[#allocation7 + $0xe4] sm:$0xf0]  ;;  %v7128_v57 = vld [vmem:[#allocation7 + $0x14] sm:$0xf]  ;;  %v6927_v60 = vld [vmem:[#allocation7 + $0x18] sm:$0xf0] }
 0x2b5   : > { %v3684_v54 = vpack.c.bf16 %v3556_v10, %v3556_v10  ;;  %v3685_v43 = vpack.c.bf16 %v3557_v12, %v3557_v12  ;;  %v3686_v20 = vpack.c.bf16 %v3558_v58, %v3558_v58  ;;  %v3687_v2 = vpack.c.bf16 %v3559_v35, %v3559_v35  ;;  %v6957_v52 = vld [vmem:[#allocation7 + $0x50] sm:$0xf]  ;;  %v9458_v10 = vpop.f32.mrf.mxu0 }
 0x2b6   : > { %v3688_v39 = vpack.c.bf16 %v3560_v4, %v3560_v4  ;;  %v3689_v28 = vpack.c.bf16 %v3561_v21, %v3561_v21  ;;  %v3690_v61 = vpack.c.bf16 %v3562_v48, %v3562_v48  ;;  %v3691_v41 = vpack.c.bf16 %v3563_v34, %v3563_v34  ;;  %v7137_v48 = vld [vmem:[#allocation7 + $0x54] sm:$0xf0] }
 0x2b7   : > { %v3692_v33 = vpack.c.bf16 %v3564_v16, %v3564_v16  ;;  %v3693_v53 = vpack.c.bf16 %v3565_v50, %v3565_v50  ;;  %v3694_v55 = vpack.c.bf16 %v3566_v63, %v3566_v63  ;;  %v3957_v3 = vunpack.c.l.b16 %v3679_v46  ;;  %v7021_v46 = vld [vmem:[#allocation7 + $0xd0] sm:$0xf] }
 0x2b8   : > { %v3958_v30 = vunpack.c.l.b16 %v3680_v8  ;;  %v3959_v42 = vunpack.c.l.b16 %v3681_v11  ;;  %v3960_v29 = vunpack.c.l.b16 %v3682_v45  ;;  %v3961_v26 = vunpack.c.l.b16 %v3683_v36  ;;  %v9460_v12 = vpop.f32.mrf.mxu1  ;;  %v7153_v8 = vld [vmem:[#allocation7 + $0xd4] sm:$0xf0] }
 0x2b9   : > { %v3962_v40 = vunpack.c.l.b16 %v3684_v54  ;;  %v3963_v24 = vunpack.c.l.b16 %v3685_v43  ;;  %v3964_v6 = vunpack.c.l.b16 %v3686_v20  ;;  %v3965_v0 = vunpack.c.l.b16 %v3687_v2  ;;  %v7144_v43 = vld [vmem:[#allocation7 + $0x94] sm:$0xf]  ;;  %v6991_v20 = vld [vmem:[#allocation7 + $0x98] sm:$0xf0] }
 0x2ba   : > { %v3966_v15 = vunpack.c.l.b16 %v3688_v39  ;;  %v3967_v59 = vunpack.c.l.b16 %v3689_v28  ;;  %v3968_v27 = vunpack.c.l.b16 %v3690_v61  ;;  %v3969_v22 = vunpack.c.l.b16 %v3691_v41 }
 0x2bb   : > { %v3970_v7 = vunpack.c.l.b16 %v3692_v33  ;;  %v3971_v38 = vunpack.c.l.b16 %v3693_v53  ;;  %v3972_v31 = vunpack.c.l.b16 %v3694_v55  ;;  %v4176_v23 = vrot.slane %v3958_v30, 7  ;;  %v6949_v55 = vld [vmem:[#allocation7 + $0x40] sm:$0xf] }
 0x2bc   : > { %v4178_v25 = vrot.slane %v3959_v42, 6  ;;  %v4180_v51 = vrot.slane %v3960_v29, 5  ;;  %v4182_v49 = vrot.slane %v3961_v26, 4  ;;  %v4184_v1 = vrot.slane %v3962_v40, 3  ;;  %v7135_v29 = vld [vmem:[#allocation7 + $0x44] sm:$0xf0] }
 0x2bd   : > { %v4186_v9 = vrot.slane %v3963_v24, 2  ;;  %v4177_v47 = vsel %vm3974_vm0, %v4176_v23, %v3957_v3  ;;  %v4188_v37 = vrot.slane %v3964_v6, 1  ;;  %v4190_v32 = vrot.slane %v3966_v15, 7  ;;  %v7013_v26 = vld [vmem:[#allocation7 + $0xc0] sm:$0xf] }
 0x2be   : > { %v4192_v44 = vrot.slane %v3967_v59, 6  ;;  %v4179_v58 = vsel %vm3977_vm1, %v4178_v25, %v4177_v47  ;;  %v4194_v35 = vrot.slane %v3968_v27, 5  ;;  %v4196_v4 = vrot.slane %v3969_v22, 4  ;;  %v7151_v40 = vld [vmem:[#allocation7 + $0xc4] sm:$0xf0]  ;;  %v9475_v22 = vpop.f32.mrf.mxu0 }
 0x2bf   : > { %v4198_v21 = vrot.slane %v3970_v7, 3  ;;  %v4181_v34 = vsel %vm3980_vm2, %v4180_v51, %v4179_v58  ;;  %v4191_v16 = vsel %vm3974_vm0, %v4190_v32, %v3965_v0  ;;  %v4200_v50 = vrot.slane %v3971_v38, 2  ;;  %v7126_v6 = vld [vmem:[#allocation7 + $0x4] sm:$0xf]  ;;  %v6919_v0 = vld [vmem:[#allocation7 + $0x8] sm:$0xf0] }
 0x2c0   : > { %v4202_v63 = vrot.slane %v3972_v31, 1  ;;  %v4183_v11 = vsel %vm3983_vm3, %v4182_v49, %v4181_v34  ;;  %v4193_v45 = vsel %vm3977_vm1, %v4192_v44, %v4191_v16  ;;  %v6966_v36 = vor.u32 %v7139_v62, %v6965_v14  ;;  %v7142_v59 = vld [vmem:[#allocation7 + $0x84] sm:$0xf]  ;;  %v6983_v27 = vld [vmem:[#allocation7 + $0x88] sm:$0xf0]  ;;  %v9477_v7 = vpop.f32.mrf.mxu1 }
 0x2c1   : > { %v7030_v54 = vor.u32 %v7155_v56, %v7029_v5  ;;  %v4185_v2 = vsel %vm3986_vm4, %v4184_v1, %v4183_v11  ;;  %v4195_v39 = vsel %vm3980_vm2, %v4194_v35, %v4193_v45  ;;  %v6930_v28 = vor.u32 %v7128_v57, %v6927_v60  ;;  %v3711_v25 = vld [vmem:[#allocation6] sm:$0x3]  ;;  %v6941_v14 = vld [vmem:[#allocation7 + $0x30] sm:$0xf]  ;;  %v7133_v62 = vld [vmem:[#allocation7 + $0x34] sm:$0xf0] }
 0x2c2   : > { %v6958_v61 = vor.u32 %v7137_v48, %v6957_v52  ;;  %v4187_v41 = vsel %vm3989_vm5, %v4186_v9, %v4185_v2  ;;  %v4197_v33 = vsel %vm3983_vm3, %v4196_v4, %v4195_v39  ;;  %4645 = vmatpush.bf16.msra.mxu2 %v6966_v36  ;;  %v7022_v53 = vor.u32 %v7153_v8, %v7021_v46  ;;  %v7005_v5 = vld [vmem:[#allocation7 + $0xb0] sm:$0xf]  ;;  %v7149_v56 = vld [vmem:[#allocation7 + $0xb4] sm:$0xf0]  ;;  %v6933_v47 = vld [vmem:[#allocation7 + $0x20] sm:$0xf] }
 0x2c3   : > { %4694 = vmatpush.bf16.msra.mxu3 %v7030_v54  ;;  %v4189_v3 = vsel %vm3992_vm6, %v4188_v37, %v4187_v41  ;;  %v4199_v30 = vsel %vm3986_vm4, %v4198_v21, %v4197_v33  ;;  %4748 = vmatpush.bf16.msrb.mxu0 %v6930_v28  ;;  %v6994_v42 = vor.u32 %v7144_v43, %v6991_v20  ;;  %v9479_v1 = vperm.slane %v3711_v25, 0  ;;  %v7131_v37 = vld [vmem:[#allocation7 + $0x24] sm:$0xf0]  ;;  %v6997_v32 = vld [vmem:[#allocation7 + $0xa0] sm:$0xf]  ;;  %v7165_v41 = vld [vmem:[#allocation9 + $0x38] sm:$0xff] }
 0x2c4   : > { %v4201_v24 = vsel %vm3989_vm5, %v4200_v50, %v4199_v30  ;;  %v6950_v31 = vor.u32 %v7135_v29, %v6949_v55  ;;  %v7014_v23 = vor.u32 %v7151_v40, %v7013_v26  ;;  %v6922_v51 = vor.u32 %v7126_v6, %v6919_v0  ;;  %v7147_v44 = vld [vmem:[#allocation7 + $0xa4] sm:$0xf0]  ;;  %v6925_v34 = vld [vmem:[#allocation7 + $0x10] sm:$0xf]  ;;  %v7129_v16 = vld [vmem:[#allocation7 + $0x14] sm:$0xf0] }
 0x2c5   : > { %v4203_v15 = vsel %vm3992_vm6, %v4202_v63, %v4201_v24  ;;  %4797 = vmatpush.bf16.msrb.mxu1 %v6994_v42  ;;  %v6986_v49 = vor.u32 %v7142_v59, %v6983_v27  ;;  %v9481_v9 = vperm.slane %v3711_v25, 1  ;;  %v6942_v57 = vor.u32 %v7133_v62, %v6941_v14  ;;  %v6989_v50 = vld [vmem:[#allocation7 + $0x90] sm:$0xf]  ;;  %v7145_v63 = vld [vmem:[#allocation7 + $0x94] sm:$0xf0]  ;;  %v7171_v25 = vld [vmem:[#allocation9 + $0x68] sm:$0xff] }
 0x2c6   : > { %v4211_v38 = vpack.c.b16 %v4203_v15, %v4189_v3  ;;  %4646 = vmatpush.bf16.msra.mxu2 %v6958_v61  ;;  %v7006_v60 = vor.u32 %v7149_v56, %v7005_v5  ;;  %v4312_v52 = vadd.f32 %v9453_v19, %v9479_v1  ;;  %v4310_v35 = vadd.f32 %v9447_v18, %v9479_v1  ;;  %v4319_v46 = vpop.f32.mrf.mxu0  ;;  %v6917_v54 = vld [vmem:[#allocation7] sm:$0xf]  ;;  %v7143_v20 = vld [vmem:[#allocation7 + $0x84] sm:$0xf0]  ;;  %v7173_v33 = vld [vmem:[#allocation9 + $0x78] sm:$0xff] }
 0x2c7   : > { %4695 = vmatpush.bf16.msra.mxu3 %v7022_v53  ;;  %4749 = vmatpush.bf16.msrb.mxu0 %v6922_v51  ;;  %v4361_v58 = vadd.f32 %v9455_v13, %v9481_v9  ;;  %v4359_v4 = vadd.f32 %v9449_v17, %v9481_v9  ;;  %v6934_v21 = vor.u32 %v7131_v37, %v6933_v47  ;;  %v7127_v17 = vld [vmem:[#allocation7 + $0x4] sm:$0xf0]  ;;  %v6981_v43 = vld [vmem:[#allocation7 + $0x80] sm:$0xf]  ;;  %v7164_v42 = vld [vmem:[#allocation9 + $0x30] sm:$0xff] }
 0x2c8   : > { %4343 = vmatmul.bf16.gmra.mxu0 %v4211_v38  ;;  %4392 = vmatmul.bf16.gmra.mxu1 %v4211_v38  ;;  %v6998_v48 = vor.u32 %v7147_v44, %v6997_v32  ;;  %v4368_v8 = vpop.f32.mrf.mxu1  ;;  %v4400_v19 = vmax.f32 %v4312_v52, 0.0  ;;  %v4398_v45 = vmax.f32 %v4310_v35, 0.0  ;;  %v6926_v18 = vor.u32 %v7129_v16, %v6925_v34  ;;  %v7172_v29 = vld [vmem:[#allocation9 + $0x70] sm:$0xff]  ;;  %v7162_v52 = vld [vmem:[#allocation9 + $0x20] sm:$0xff] }
 0x2c9   : > { %4798 = vmatpush.bf16.msrb.mxu1 %v6986_v49  ;;  %v4401_v11 = vmax.f32 %v4361_v58, 0.0  ;;  %v4399_v13 = vmax.f32 %v4359_v4, 0.0  ;;  %v6990_v36 = vor.u32 %v7145_v63, %v6989_v50  ;;  %v6918_v28 = vor.u32 %v7127_v17, %v6917_v54  ;;  %v7170_v58 = vld [vmem:[#allocation9 + $0x60] sm:$0xff] }
 0x2ca   : > { %4647 = vmatpush.bf16.msra.mxu2 %v6950_v31  ;;  %v4430_v2 = vpack.c.bf16 %v4400_v19, %v4398_v45  ;;  %v6982_v61 = vor.u32 %v7143_v20, %v6981_v43  ;;  %v4317_v3 = vadd.f32 %v9475_v22, %v9479_v1  ;;  %v4366_v30 = vadd.f32 %v9477_v7, %v9481_v9 }
 0x2cb   : > { %4696 = vmatpush.bf16.msra.mxu3 %v7014_v23  ;;  %v4431_v39 = vpack.c.bf16 %v4401_v11, %v4399_v13  ;;  %v4315_v26 = vadd.f32 %v9458_v10, %v9479_v1  ;;  %v4364_v40 = vadd.f32 %v9460_v12, %v9481_v9  ;;  %v7163_v23 = vld [vmem:[#allocation9 + $0x28] sm:$0xff]  ;;  %v4320_v14 = vadd.f32 %v4319_v46, %v9479_v1 }
 0x2cc   : > { %v4404_v24 = vmax.f32 %v4317_v3, 0.0  ;;  %v4405_v6 = vmax.f32 %v4366_v30, 0.0  ;;  %v4369_v62 = vadd.f32 %v4368_v8, %v9481_v9 }
 0x2cd   : > { %v4402_v0 = vmax.f32 %v4315_v26, 0.0  ;;  %v4403_v15 = vmax.f32 %v4364_v40, 0.0  ;;  %v4406_v51 = vmax.f32 %v4320_v14, 0.0 }
 0x2ce   : > { %4648 = vmatpush.bf16.msra.mxu2 %v6942_v57  ;;  %v4321_v53 = vpop.f32.mrf.mxu0  ;;  %v4407_v49 = vmax.f32 %v4369_v62, 0.0 }
 0x2cf   : > { %4697 = vmatpush.bf16.msra.mxu3 %v7006_v60  ;;  %v4432_v22 = vpack.c.bf16 %v4404_v24, %v4402_v0  ;;  %v4433_v7 = vpack.c.bf16 %v4405_v6, %v4403_v15  ;;  %v4322_v38 = vadd.f32 %v4321_v53, %v9479_v1 }
 0x2d0   : > { %v4370_v55 = vpop.f32.mrf.mxu1 }
 0x2d1   : > { %v4371_v31 = vadd.f32 %v4370_v55, %v9481_v9  ;;  %v4408_v5 = vmax.f32 %v4322_v38, 0.0 }
 0x2d2   : > { %4649 = vmatpush.bf16.msra.mxu2 %v6934_v21 }
 0x2d3   : > { %4698 = vmatpush.bf16.msra.mxu3 %v6998_v48  ;;  %v4409_v56 = vmax.f32 %v4371_v31, 0.0  ;;  %v4434_v57 = vpack.c.bf16 %v4408_v5, %v4406_v51  ;;  %v7159_v51 = vld [vmem:[#allocation9 + $0x8] sm:$0xff] }
 0x2d5   : > { %v4435_v60 = vpack.c.bf16 %v4409_v56, %v4407_v49  ;;  %v7167_v49 = vld [vmem:[#allocation9 + $0x48] sm:$0xff] }
 0x2d6   : > { %4650 = vmatpush.bf16.msra.mxu2 %v6926_v18  ;;  %v4324_v59 = vpop.f32.mrf.mxu0  ;;  %v7161_v18 = vld [vmem:[#allocation9 + $0x18] sm:$0xff] }
 0x2d7   : > { %4699 = vmatpush.bf16.msra.mxu3 %v6990_v36  ;;  %v4325_v35 = vadd.f32 %v4324_v59, %v9479_v1  ;;  %v7169_v36 = vld [vmem:[#allocation9 + $0x58] sm:$0xff]  ;;  %v7160_v59 = vld [vmem:[#allocation9 + $0x10] sm:$0xff] }
 0x2d8   : > { %4750 = vmatmul.bf16.vlgmr.msrb.gmra.mxu0 %v4430_v2  ;;  %4799 = vmatmul.bf16.vlgmr.msrb.gmra.mxu1 %v4431_v39  ;;  %v4373_v27 = vpop.f32.mrf.mxu1 }
 0x2d9   : > { %v4374_v4 = vadd.f32 %v4373_v27, %v9481_v9  ;;  %v4410_v50 = vmax.f32 %v4325_v35, 0.0  ;;  %v7168_v27 = vld [vmem:[#allocation9 + $0x50] sm:$0xff] }
 0x2da   : > { %4651 = vmatpush.bf16.msra.mxu2 %v6918_v28 }
 0x2db   : > { %4700 = vmatpush.bf16.msra.mxu3 %v6982_v61  ;;  %v4411_v63 = vmax.f32 %v4374_v4, 0.0 }
 0x2dd   : > { %4652 = vmatmul.bf16.vlgmr.msra.gmra.mxu2 %v4430_v2 }
 0x2de   : > { %5020 = vmatpush.bf16.msrb.mxu2 %v7165_v41  ;;  %4701 = vmatmul.bf16.vlgmr.msra.gmra.mxu3 %v4431_v39  ;;  %v4326_v10 = vpop.f32.mrf.mxu0 }
 0x2df   : > { %5069 = vmatpush.bf16.msrb.mxu3 %v7173_v33  ;;  %v4327_v32 = vadd.f32 %v4326_v10, %v9479_v1 }
 0x2e0   : > { %v4375_v12 = vpop.f32.mrf.mxu1 }
 0x2e1   : > { %v4376_v44 = vadd.f32 %v4375_v12, %v9481_v9  ;;  %v4412_v21 = vmax.f32 %v4327_v32, 0.0 }
 0x2e2   : > { %5021 = vmatpush.bf16.msrb.mxu2 %v7164_v42 }
 0x2e3   : > { %5070 = vmatpush.bf16.msrb.mxu3 %v7172_v29  ;;  %v4413_v48 = vmax.f32 %v4376_v44, 0.0  ;;  %v4436_v46 = vpack.c.bf16 %v4412_v21, %v4410_v50 }
 0x2e5   : > { %v4437_v8 = vpack.c.bf16 %v4413_v48, %v4411_v63 }
 0x2e6   : > { %5022 = vmatpush.bf16.msrb.mxu2 %v7163_v23  ;;  %v4329_v47 = vpop.f32.mrf.mxu0 }
 0x2e7   : > { %5071 = vmatpush.bf16.msrb.mxu3 %v7171_v25  ;;  %v4330_v54 = vadd.f32 %v4329_v47, %v9479_v1  ;;  %v7158_v47 = vld [vmem:[#allocation9] sm:$0xff] }
 0x2e8   : > { %4755 = vmatmul.bf16.gmra.mxu0 %v4432_v22  ;;  %4804 = vmatmul.bf16.gmra.mxu1 %v4433_v7  ;;  %v4378_v37 = vpop.f32.mrf.mxu1 }
 0x2e9   : > { %v4379_v17 = vadd.f32 %v4378_v37, %v9481_v9  ;;  %v4414_v2 = vmax.f32 %v4330_v54, 0.0  ;;  %v7166_v37 = vld [vmem:[#allocation9 + $0x40] sm:$0xff] }
 0x2ea   : > { %5023 = vmatpush.bf16.msrb.mxu2 %v7162_v52 }
 0x2eb   : > { %5072 = vmatpush.bf16.msrb.mxu3 %v7170_v58  ;;  %v4415_v39 = vmax.f32 %v4379_v17, 0.0 }
 0x2ed   : > { %4657 = vmatmul.bf16.gmra.mxu2 %v4432_v22 }
 0x2ee   : > { %4706 = vmatmul.bf16.gmra.mxu3 %v4433_v7  ;;  %v4331_v34 = vpop.f32.mrf.mxu0  ;;  %5024 = vmatpush.bf16.msrb.mxu2 %v7161_v18 }
 0x2ef   : > { %v4332_v45 = vadd.f32 %v4331_v34, %v9479_v1  ;;  %5073 = vmatpush.bf16.msrb.mxu3 %v7169_v36 }
 0x2f0   : > { %v4380_v16 = vpop.f32.mrf.mxu1 }
 0x2f1   : > { %v4381_v13 = vadd.f32 %v4380_v16, %v9481_v9  ;;  %v4416_v43 = vmax.f32 %v4332_v45, 0.0 }
 0x2f2   : > { %5025 = vmatpush.bf16.msrb.mxu2 %v7160_v59 }
 0x2f3   : > { %v4417_v20 = vmax.f32 %v4381_v13, 0.0  ;;  %v4438_v28 = vpack.c.bf16 %v4416_v43, %v4414_v2  ;;  %5074 = vmatpush.bf16.msrb.mxu3 %v7168_v27 }
 0x2f5   : > { %v4439_v61 = vpack.c.bf16 %v4417_v20, %v4415_v39 }
 0x2f6   : > { %v4334_v19 = vpop.f32.mrf.mxu0  ;;  %5026 = vmatpush.bf16.msrb.mxu2 %v7159_v51 }
 0x2f7   : > { %v4335_v3 = vadd.f32 %v4334_v19, %v9479_v1  ;;  %5075 = vmatpush.bf16.msrb.mxu3 %v7167_v49 }
 0x2f8   : > { %4760 = vmatmul.bf16.gmra.mxu0 %v4434_v57  ;;  %4809 = vmatmul.bf16.gmra.mxu1 %v4435_v60  ;;  %v4383_v11 = vpop.f32.mrf.mxu1 }
 0x2f9   : > { %v4384_v30 = vadd.f32 %v4383_v11, %v9481_v9  ;;  %v4418_v24 = vmax.f32 %v4335_v3, 0.0 }
 0x2fa   : > { %5027 = vmatpush.bf16.msrb.mxu2 %v7158_v47 }
 0x2fb   : > { %v4419_v6 = vmax.f32 %v4384_v30, 0.0  ;;  %5076 = vmatpush.bf16.msrb.mxu3 %v7166_v37 }
 0x2fd   : > { %4662 = vmatmul.bf16.gmra.mxu2 %v4434_v57 }
 0x2fe   : > { %4711 = vmatmul.bf16.gmra.mxu3 %v4435_v60  ;;  %v4336_v41 = vpop.f32.mrf.mxu0 }
 0x2ff   : > { %v4337_v53 = vadd.f32 %v4336_v41, %v9479_v1 }
 0x300   : > { %v4385_v33 = vpop.f32.mrf.mxu1 }
 0x301   : > { %v4386_v55 = vadd.f32 %v4385_v33, %v9481_v9  ;;  %v4420_v26 = vmax.f32 %v4337_v53, 0.0 }
 0x303   : > { %v4421_v40 = vmax.f32 %v4386_v55, 0.0  ;;  %v4440_v0 = vpack.c.bf16 %v4420_v26, %v4418_v24 }
 0x305   : > { %v4441_v15 = vpack.c.bf16 %v4421_v40, %v4419_v6 }
 0x306   : > { %v4339_v42 = vpop.f32.mrf.mxu0 }
 0x307   : > { %v4340_v10 = vadd.f32 %v4339_v42, %v9479_v1 }
 0x308   : > { %4765 = vmatmul.bf16.gmra.mxu0 %v4436_v46  ;;  %4814 = vmatmul.bf16.gmra.mxu1 %v4437_v8  ;;  %v4388_v29 = vpop.f32.mrf.mxu1 }
 0x309   : > { %v4389_v12 = vadd.f32 %v4388_v29, %v9481_v9  ;;  %v4422_v14 = vmax.f32 %v4340_v10, 0.0 }
 0x30b   : > { %v4423_v62 = vmax.f32 %v4389_v12, 0.0 }
 0x30d   : > { %4667 = vmatmul.bf16.gmra.mxu2 %v4436_v46  ;;  %v4478_v46 = vld [vmem:[%s11033_s4] sm:$0x3] }
 0x30e   : > { %4716 = vmatmul.bf16.gmra.mxu3 %v4437_v8  ;;  %v4341_v22 = vpop.f32.mrf.mxu0  ;;  %v9526_v11 = vperm.slane %v4478_v46, 1  ;;  %v9530_v43 = vperm.slane %v4478_v46, 0 }
 0x30f   : > { %v4342_v38 = vadd.f32 %v4341_v22, %v9479_v1 }
 0x310   : > { %v4390_v7 = vpop.f32.mrf.mxu1 }
 0x311   : > { %v4391_v31 = vadd.f32 %v4390_v7, %v9481_v9  ;;  %v4424_v23 = vmax.f32 %v4342_v38, 0.0 }
 0x313   : > { %v4425_v25 = vmax.f32 %v4391_v31, 0.0  ;;  %v4442_v5 = vpack.c.bf16 %v4424_v23, %v4422_v14 }
 0x315   : > { %v4443_v56 = vpack.c.bf16 %v4425_v25, %v4423_v62 }
 0x318   : > { %4770 = vmatmul.bf16.gmra.mxu0 %v4438_v28  ;;  %4819 = vmatmul.bf16.gmra.mxu1 %v4439_v61 }
 0x31d   : > { %4672 = vmatmul.bf16.gmra.mxu2 %v4438_v28 }
 0x31e   : > { %4721 = vmatmul.bf16.gmra.mxu3 %v4439_v61 }
 0x328   : > { %4775 = vmatmul.bf16.gmra.mxu0 %v4440_v0  ;;  %4824 = vmatmul.bf16.gmra.mxu1 %v4441_v15 }
 0x32d   : > { %4677 = vmatmul.bf16.gmra.mxu2 %v4440_v0 }
 0x32e   : > { %4726 = vmatmul.bf16.gmra.mxu3 %v4441_v15 }
 0x338   : > { %4780 = vmatmul.bf16.gmra.mxu0 %v4442_v5  ;;  %4829 = vmatmul.bf16.gmra.mxu1 %v4443_v56 }
 0x33d   : > { %4682 = vmatmul.bf16.gmra.mxu2 %v4442_v5 }
 0x33e   : > { %4731 = vmatmul.bf16.gmra.mxu3 %v4443_v56 }
 0x345   : > { %v4344_v57 = vpop.f32.mrf.mxu0  ;;  %v4393_v60 = vpop.f32.mrf.mxu1 }
 0x346   : > { %v4345_v32 = vadd.f32 %v4344_v57, %v9479_v1  ;;  %v4394_v44 = vadd.f32 %v4393_v60, %v9481_v9 }
 0x348   : > { %v4426_v21 = vmax.f32 %v4345_v32, 0.0  ;;  %v4427_v48 = vmax.f32 %v4394_v44, 0.0 }
 0x34d   : > { %v4346_v52 = vpop.f32.mrf.mxu0  ;;  %v4395_v58 = vpop.f32.mrf.mxu1 }
 0x34e   : > { %v4347_v35 = vadd.f32 %v4346_v52, %v9479_v1  ;;  %v4396_v4 = vadd.f32 %v4395_v58, %v9481_v9 }
 0x350   : > { %v4428_v34 = vmax.f32 %v4347_v35, 0.0  ;;  %v4429_v16 = vmax.f32 %v4396_v4, 0.0 }
 0x352   : > { %v4444_v50 = vpack.c.bf16 %v4428_v34, %v4426_v21  ;;  %v4445_v63 = vpack.c.bf16 %v4429_v16, %v4427_v48 }
 0x354   : > { %4687 = vmatmul.bf16.gmra.mxu2 %v4444_v50  ;;  %4736 = vmatmul.bf16.gmra.mxu3 %v4445_v63 }
 0x355   : > { %4785 = vmatmul.bf16.gmra.mxu0 %v4444_v50  ;;  %4834 = vmatmul.bf16.gmra.mxu1 %v4445_v63  ;;  %v4751_v8 = vpop.f32.mrf.mxu0  ;;  %v4800_v19 = vpop.f32.mrf.mxu1 }
 0x356   : > { %v4752_v1 = vadd.f32 %v4751_v8, %v9526_v11 }
 0x358   : > { %v4801_v13 = vadd.f32 %v4800_v19, %v4752_v1 }
 0x35a   : > { %v4841_v20 = vmax.f32 %v4801_v13, 0.0 }
 0x35d   : > { %v4753_v9 = vpop.f32.mrf.mxu0  ;;  %v4802_v45 = vpop.f32.mrf.mxu1 }
 0x35e   : > { %v4754_v18 = vadd.f32 %v4753_v9, %v9526_v11 }
 0x360   : > { %v4653_v36 = vpop.f32.mrf.mxu2  ;;  %v4803_v17 = vadd.f32 %v4802_v45, %v4754_v18 }
 0x361   : > { %v4702_v54 = vpop.f32.mrf.mxu3  ;;  %v4654_v28 = vadd.f32 %v4653_v36, %v9530_v43 }
 0x362   : > { %v4843_v2 = vmax.f32 %v4803_v17, 0.0 }
 0x363   : > { %v4703_v55 = vadd.f32 %v4702_v54, %v4654_v28 }
 0x364   : > { %v4873_v39 = vpack.c.bf16 %v4843_v2, %v4841_v20 }
 0x365   : > { %v4756_v61 = vpop.f32.mrf.mxu0  ;;  %v4805_v41 = vpop.f32.mrf.mxu1  ;;  %v4840_v29 = vmax.f32 %v4703_v55, 0.0 }
 0x366   : > { %5077 = vmatmul.bf16.vlgmr.msrb.gmra.mxu3 %v4873_v39  ;;  %v4757_v30 = vadd.f32 %v4756_v61, %v9526_v11 }
 0x368   : > { %v4655_v33 = vpop.f32.mrf.mxu2  ;;  %v4806_v6 = vadd.f32 %v4805_v41, %v4757_v30 }
 0x369   : > { %v4704_v53 = vpop.f32.mrf.mxu3  ;;  %v4656_v3 = vadd.f32 %v4655_v33, %v9530_v43 }
 0x36a   : > { %v4845_v7 = vmax.f32 %v4806_v6, 0.0 }
 0x36b   : > { %v4705_v42 = vadd.f32 %v4704_v53, %v4656_v3 }
 0x36d   : > { %v4842_v26 = vmax.f32 %v4705_v42, 0.0  ;;  %v4758_v40 = vpop.f32.mrf.mxu0  ;;  %v4807_v24 = vpop.f32.mrf.mxu1 }
 0x36e   : > { %v4759_v0 = vadd.f32 %v4758_v40, %v9526_v11 }
 0x36f   : > { %v4872_v15 = vpack.c.bf16 %v4842_v26, %v4840_v29 }
 0x370   : > { %v4658_v59 = vpop.f32.mrf.mxu2  ;;  %v4808_v22 = vadd.f32 %v4807_v24, %v4759_v0 }
 0x371   : > { %v4707_v27 = vpop.f32.mrf.mxu3  ;;  %5028 = vmatmul.bf16.vlgmr.msrb.gmra.mxu2 %v4872_v15  ;;  %v4659_v10 = vadd.f32 %v4658_v59, %v9530_v43 }
 0x372   : > { %v4847_v38 = vmax.f32 %v4808_v22, 0.0 }
 0x373   : > { %v4708_v62 = vadd.f32 %v4707_v27, %v4659_v10 }
 0x374   : > { %v4875_v31 = vpack.c.bf16 %v4847_v38, %v4845_v7 }
 0x375   : > { %v4761_v12 = vpop.f32.mrf.mxu0  ;;  %v4810_v23 = vpop.f32.mrf.mxu1  ;;  %v4844_v49 = vmax.f32 %v4708_v62, 0.0 }
 0x376   : > { %5082 = vmatmul.bf16.gmra.mxu3 %v4875_v31  ;;  %v4762_v56 = vadd.f32 %v4761_v12, %v9526_v11 }
 0x378   : > { %v4660_v25 = vpop.f32.mrf.mxu2  ;;  %v4811_v37 = vadd.f32 %v4810_v23, %v4762_v56 }
 0x379   : > { %v4709_v14 = vpop.f32.mrf.mxu3  ;;  %v4661_v5 = vadd.f32 %v4660_v25, %v9530_v43 }
 0x37a   : > { %v4849_v4 = vmax.f32 %v4811_v37, 0.0 }
 0x37b   : > { %v4710_v51 = vadd.f32 %v4709_v14, %v4661_v5 }
 0x37d   : > { %v4846_v57 = vmax.f32 %v4710_v51, 0.0  ;;  %v4763_v60 = vpop.f32.mrf.mxu0  ;;  %v4812_v47 = vpop.f32.mrf.mxu1 }
 0x37e   : > { %v4764_v32 = vadd.f32 %v4763_v60, %v9526_v11 }
 0x37f   : > { %v4874_v44 = vpack.c.bf16 %v4846_v57, %v4844_v49 }
 0x380   : > { %v4663_v52 = vpop.f32.mrf.mxu2  ;;  %v4813_v35 = vadd.f32 %v4812_v47, %v4764_v32 }
 0x381   : > { %v4712_v58 = vpop.f32.mrf.mxu3  ;;  %5033 = vmatmul.bf16.gmra.mxu2 %v4874_v44  ;;  %v4664_v34 = vadd.f32 %v4663_v52, %v9530_v43 }
 0x382   : > { %v4851_v21 = vmax.f32 %v4813_v35, 0.0 }
 0x383   : > { %v4713_v8 = vadd.f32 %v4712_v58, %v4664_v34 }
 0x384   : > { %v4877_v48 = vpack.c.bf16 %v4851_v21, %v4849_v4 }
 0x385   : > { %v4766_v16 = vpop.f32.mrf.mxu0  ;;  %v4815_v50 = vpop.f32.mrf.mxu1  ;;  %v4848_v45 = vmax.f32 %v4713_v8, 0.0 }
 0x386   : > { %5087 = vmatmul.bf16.gmra.mxu3 %v4877_v48  ;;  %v4767_v1 = vadd.f32 %v4766_v16, %v9526_v11 }
 0x388   : > { %v4665_v63 = vpop.f32.mrf.mxu2  ;;  %v4816_v54 = vadd.f32 %v4815_v50, %v4767_v1 }
 0x389   : > { %v4714_v46 = vpop.f32.mrf.mxu3  ;;  %v4666_v19 = vadd.f32 %v4665_v63, %v9530_v43 }
 0x38a   : > { %v4853_v61 = vmax.f32 %v4816_v54, 0.0 }
 0x38b   : > { %v4715_v9 = vadd.f32 %v4714_v46, %v4666_v19 }
 0x38d   : > { %v4850_v13 = vmax.f32 %v4715_v9, 0.0  ;;  %v4768_v18 = vpop.f32.mrf.mxu0  ;;  %v4817_v36 = vpop.f32.mrf.mxu1 }
 0x38e   : > { %v4769_v17 = vadd.f32 %v4768_v18, %v9526_v11 }
 0x38f   : > { %v4876_v20 = vpack.c.bf16 %v4850_v13, %v4848_v45 }
 0x390   : > { %v4668_v2 = vpop.f32.mrf.mxu2  ;;  %v4818_v28 = vadd.f32 %v4817_v36, %v4769_v17 }
 0x391   : > { %v4717_v39 = vpop.f32.mrf.mxu3  ;;  %5038 = vmatmul.bf16.gmra.mxu2 %v4876_v20  ;;  %v4669_v53 = vadd.f32 %v4668_v2, %v9530_v43 }
 0x392   : > { %v4855_v41 = vmax.f32 %v4818_v28, 0.0 }
 0x393   : > { %v4718_v29 = vadd.f32 %v4717_v39, %v4669_v53 }
 0x394   : > { %v4879_v33 = vpack.c.bf16 %v4855_v41, %v4853_v61 }
 0x395   : > { %v4771_v55 = vpop.f32.mrf.mxu0  ;;  %v4820_v3 = vpop.f32.mrf.mxu1  ;;  %v4852_v6 = vmax.f32 %v4718_v29, 0.0 }
 0x396   : > { %5092 = vmatmul.bf16.gmra.mxu3 %v4879_v33  ;;  %v4772_v40 = vadd.f32 %v4771_v55, %v9526_v11 }
 0x398   : > { %v4670_v30 = vpop.f32.mrf.mxu2  ;;  %v4821_v27 = vadd.f32 %v4820_v3, %v4772_v40 }
 0x399   : > { %v4719_v42 = vpop.f32.mrf.mxu3  ;;  %v4671_v26 = vadd.f32 %v4670_v30, %v9530_v43 }
 0x39a   : > { %v4857_v12 = vmax.f32 %v4821_v27, 0.0 }
 0x39b   : > { %v4720_v24 = vadd.f32 %v4719_v42, %v4671_v26 }
 0x39d   : > { %v4854_v0 = vmax.f32 %v4720_v24, 0.0  ;;  %v4773_v15 = vpop.f32.mrf.mxu0  ;;  %v4822_v59 = vpop.f32.mrf.mxu1 }
 0x39e   : > { %v4774_v22 = vadd.f32 %v4773_v15, %v9526_v11 }
 0x39f   : > { %v4878_v7 = vpack.c.bf16 %v4854_v0, %v4852_v6 }
 0x3a0   : > { %v4673_v38 = vpop.f32.mrf.mxu2  ;;  %v4823_v10 = vadd.f32 %v4822_v59, %v4774_v22 }
 0x3a1   : > { %v4722_v31 = vpop.f32.mrf.mxu3  ;;  %5043 = vmatmul.bf16.gmra.mxu2 %v4878_v7  ;;  %v4674_v14 = vadd.f32 %v4673_v38, %v9530_v43 }
 0x3a2   : > { %v4859_v23 = vmax.f32 %v4823_v10, 0.0 }
 0x3a3   : > { %v4723_v49 = vadd.f32 %v4722_v31, %v4674_v14 }
 0x3a4   : > { %v4881_v25 = vpack.c.bf16 %v4859_v23, %v4857_v12 }
 0x3a5   : > { %v4776_v62 = vpop.f32.mrf.mxu0  ;;  %v4825_v5 = vpop.f32.mrf.mxu1  ;;  %v4856_v37 = vmax.f32 %v4723_v49, 0.0 }
 0x3a6   : > { %5097 = vmatmul.bf16.gmra.mxu3 %v4881_v25  ;;  %v4777_v60 = vadd.f32 %v4776_v62, %v9526_v11 }
 0x3a8   : > { %v4675_v56 = vpop.f32.mrf.mxu2  ;;  %v4826_v58 = vadd.f32 %v4825_v5, %v4777_v60 }
 0x3a9   : > { %v4724_v51 = vpop.f32.mrf.mxu3  ;;  %v4676_v57 = vadd.f32 %v4675_v56, %v9530_v43 }
 0x3aa   : > { %v4861_v16 = vmax.f32 %v4826_v58, 0.0 }
 0x3ab   : > { %v4725_v47 = vadd.f32 %v4724_v51, %v4676_v57 }
 0x3ad   : > { %v4858_v32 = vmax.f32 %v4725_v47, 0.0  ;;  %v4778_v44 = vpop.f32.mrf.mxu0  ;;  %v4827_v52 = vpop.f32.mrf.mxu1 }
 0x3ae   : > { %v4779_v35 = vadd.f32 %v4778_v44, %v9526_v11 }
 0x3af   : > { %v4880_v4 = vpack.c.bf16 %v4858_v32, %v4856_v37 }
 0x3b0   : > { %v4678_v21 = vpop.f32.mrf.mxu2  ;;  %v4828_v34 = vadd.f32 %v4827_v52, %v4779_v35 }
 0x3b1   : > { %v4727_v48 = vpop.f32.mrf.mxu3  ;;  %5048 = vmatmul.bf16.gmra.mxu2 %v4880_v4  ;;  %v4679_v46 = vadd.f32 %v4678_v21, %v9530_v43  ;;  %v5182_v4 = vlaneseq }
 0x3b2   : > { %v4863_v50 = vmax.f32 %v4828_v34, 0.0 }
 0x3b3   : > { %v4728_v45 = vadd.f32 %v4727_v48, %v4679_v46 }
 0x3b4   : > { %v4883_v63 = vpack.c.bf16 %v4863_v50, %v4861_v16 }
 0x3b5   : > { %v4781_v8 = vpop.f32.mrf.mxu0  ;;  %v4830_v19 = vpop.f32.mrf.mxu1  ;;  %v4860_v54 = vmax.f32 %v4728_v45, 0.0 }
 0x3b6   : > { %5102 = vmatmul.bf16.gmra.mxu3 %v4883_v63  ;;  %v4782_v18 = vadd.f32 %v4781_v8, %v9526_v11 }
 0x3b8   : > { %v4680_v1 = vpop.f32.mrf.mxu2  ;;  %v4831_v2 = vadd.f32 %v4830_v19, %v4782_v18 }
 0x3b9   : > { %v4729_v9 = vpop.f32.mrf.mxu3  ;;  %v4681_v13 = vadd.f32 %v4680_v1, %v9530_v43 }
 0x3ba   : > { %v4865_v55 = vmax.f32 %v4831_v2, 0.0 }
 0x3bb   : > { %v4730_v36 = vadd.f32 %v4729_v9, %v4681_v13 }
 0x3bd   : > { %v4862_v17 = vmax.f32 %v4730_v36, 0.0  ;;  %v4783_v20 = vpop.f32.mrf.mxu0  ;;  %v4832_v61 = vpop.f32.mrf.mxu1 }
 0x3be   : > { %v4784_v39 = vadd.f32 %v4783_v20, %v9526_v11 }
 0x3bf   : > { %v4882_v28 = vpack.c.bf16 %v4862_v17, %v4860_v54 }
 0x3c0   : > { %v4683_v41 = vpop.f32.mrf.mxu2  ;;  %v4833_v53 = vadd.f32 %v4832_v61, %v4784_v39 }
 0x3c1   : > { %v4732_v33 = vpop.f32.mrf.mxu3  ;;  %5053 = vmatmul.bf16.gmra.mxu2 %v4882_v28  ;;  %v4684_v42 = vadd.f32 %v4683_v41, %v9530_v43 }
 0x3c2   : > { %v4867_v3 = vmax.f32 %v4833_v53, 0.0 }
 0x3c3   : > { %v4733_v26 = vadd.f32 %v4732_v33, %v4684_v42 }
 0x3c4   : > { %v4885_v30 = vpack.c.bf16 %v4867_v3, %v4865_v55 }
 0x3c5   : > { %v4864_v0 = vmax.f32 %v4733_v26, 0.0 }
 0x3c6   : > { %5107 = vmatmul.bf16.gmra.mxu3 %v4885_v30 }
 0x3c8   : > { %v4685_v29 = vpop.f32.mrf.mxu2 }
 0x3c9   : > { %v4686_v40 = vadd.f32 %v4685_v29, %v9530_v43  ;;  %v4734_v24 = vpop.f32.mrf.mxu3 }
 0x3cb   : > { %v4735_v6 = vadd.f32 %v4734_v24, %v4686_v40 }
 0x3cd   : > { %v4866_v15 = vmax.f32 %v4735_v6, 0.0 }
 0x3cf   : > { %v4884_v59 = vpack.c.bf16 %v4866_v15, %v4864_v0 }
 0x3d1   : > { %5058 = vmatmul.bf16.gmra.mxu2 %v4884_v59 }
 0x3d2   : > { %v4786_v27 = vpop.f32.mrf.mxu0  ;;  %v4835_v22 = vpop.f32.mrf.mxu1 }
 0x3d3   : > { %v4787_v7 = vadd.f32 %v4786_v27, %v9526_v11 }
 0x3d5   : > { %v4836_v12 = vadd.f32 %v4835_v22, %v4787_v7 }
 0x3d7   : > { %v4688_v38 = vpop.f32.mrf.mxu2  ;;  %v4737_v31 = vpop.f32.mrf.mxu3  ;;  %v4869_v5 = vmax.f32 %v4836_v12, 0.0 }
 0x3d8   : > { %v4689_v25 = vadd.f32 %v4688_v38, %v9530_v43 }
 0x3da   : > { %v4788_v10 = vpop.f32.mrf.mxu0  ;;  %v4837_v14 = vpop.f32.mrf.mxu1  ;;  %v4738_v49 = vadd.f32 %v4737_v31, %v4689_v25 }
 0x3db   : > { %v4789_v23 = vadd.f32 %v4788_v10, %v9526_v11  ;;  %v9565_v11 = vld [vmem:[%s11035_s6] ss:$0 sm:$0xff] }
 0x3dc   : > { %v4868_v32 = vmax.f32 %v4738_v49, 0.0 }
 0x3dd   : > { %v4838_v62 = vadd.f32 %v4837_v14, %v4789_v23 }
 0x3df   : > { %v4871_v56 = vmax.f32 %v4838_v62, 0.0  ;;  %v4690_v51 = vpop.f32.mrf.mxu2  ;;  %v4739_v47 = vpop.f32.mrf.mxu3 }
 0x3e0   : > { %v4691_v57 = vadd.f32 %v4690_v51, %v9530_v43  ;;  %v5183_v43 = vand.u32 127, %v5182_v4 }
 0x3e1   : > { %v4887_v60 = vpack.c.bf16 %v4871_v56, %v4869_v5 }
 0x3e2   : > { %v4740_v37 = vadd.f32 %v4739_v47, %v4691_v57  ;;  %v9568_v63 = vsub.s32 127, %v5183_v43 }
 0x3e3   : > { %5112 = vmatmul.bf16.gmra.mxu3 %v4887_v60 }
 0x3e4   : > { %v4870_v44 = vmax.f32 %v4740_v37, 0.0 }
 0x3e6   : > { %v4886_v52 = vpack.c.bf16 %v4870_v44, %v4868_v32 }
 0x3e8   : > { %5063 = vmatmul.bf16.gmra.mxu2 %v4886_v52 }
 0x3e9   : > { %v5078_v58 = vpop.f32.mrf.mxu3 }
 0x3f1   : > { %v5080_v35 = vpop.f32.mrf.mxu3 }
 0x3f4   : > { %v5029_v21 = vpop.f32.mrf.mxu2 }
 0x3f5   : > { %v5030_v48 = vadd.f32 %v9565_v11, %v5029_v21 }
 0x3f7   : > { %v5079_v34 = vadd.f32 %v5078_v58, %v5030_v48 }
 0x3f9   : > { %vm5134_vm7 = vcmp.lt.s32.totalorder %v5079_v34, 0  ;;  %v5150_v16 = vxor.u32 2147483647, %v5079_v34  ;;  %v5083_v50 = vpop.f32.mrf.mxu3 }
 0x3fb   : > { %v5166_v46 = vsel %vm5134_vm7, %v5150_v16, %v5079_v34 }
 0x3fc   : > { %v5184_v8 = vand.u32 4294967168, %v5166_v46  ;;  %v5031_v19 = vpop.f32.mrf.mxu2 }
 0x3fd   : > { %v5032_v1 = vadd.f32 %v9565_v11, %v5031_v19 }
 0x3fe   : > { %v9572_v9 = vor.u32 %v9568_v63, %v5184_v8 }
 0x3ff   : > { %v5081_v45 = vadd.f32 %v5080_v35, %v5032_v1 }
 0x400   : > { %v5218_v13 = vshra.s32 %v9572_v9, 16 }
 0x401   : > { %vm5135_vm8 = vcmp.lt.s32.totalorder %v5081_v45, 0  ;;  %v5151_v18 = vxor.u32 2147483647, %v5081_v45  ;;  %v5085_v36 = vpop.f32.mrf.mxu3 }
 0x402   : > { %v9575_v54 = vcvt.s32.f32 %v5218_v13 }
 0x403   : > { %v5167_v17 = vsel %vm5135_vm8, %v5151_v18, %v5081_v45 }
 0x404   : > { %v5185_v20 = vand.u32 4294967168, %v5167_v17  ;;  %v5034_v2 = vpop.f32.mrf.mxu2  ;;  %5221 = vmax.xlane.f32.xlu0 %v9575_v54 }
 0x405   : > { %v5035_v39 = vadd.f32 %v9565_v11, %v5034_v2 }
 0x406   : > { %v9580_v28 = vor.u32 %v9568_v63, %v5185_v20 }
 0x407   : > { %v5084_v61 = vadd.f32 %v5083_v50, %v5035_v39 }
 0x408   : > { %v5232_v41 = vshra.s32 %v9580_v28, 16 }
 0x409   : > { %vm5136_vm9 = vcmp.lt.s32.totalorder %v5084_v61, 0  ;;  %v5152_v33 = vxor.u32 2147483647, %v5084_v61  ;;  %v5088_v53 = vpop.f32.mrf.mxu3 }
 0x40a   : > { %v9583_v55 = vcvt.s32.f32 %v5232_v41 }
 0x40b   : > { %v5168_v3 = vsel %vm5136_vm9, %v5152_v33, %v5084_v61 }
 0x40c   : > { %v5186_v30 = vand.u32 4294967168, %v5168_v3  ;;  %v5036_v42 = vpop.f32.mrf.mxu2  ;;  %5235 = vmax.xlane.f32.xlu1 %v9583_v55 }
 0x40d   : > { %v5037_v29 = vadd.f32 %v9565_v11, %v5036_v42 }
 0x40e   : > { %v9588_v26 = vor.u32 %v9568_v63, %v5186_v30 }
 0x40f   : > { %v5086_v40 = vadd.f32 %v5085_v36, %v5037_v29 }
 0x410   : > { %v5246_v24 = vshra.s32 %v9588_v26, 16 }
 0x411   : > { %vm5137_vm10 = vcmp.lt.s32.totalorder %v5086_v40, 0  ;;  %v5153_v6 = vxor.u32 2147483647, %v5086_v40  ;;  %v5090_v0 = vpop.f32.mrf.mxu3 }
 0x412   : > { %v9591_v15 = vcvt.s32.f32 %v5246_v24 }
 0x413   : > { %v5169_v59 = vsel %vm5137_vm10, %v5153_v6, %v5086_v40 }
 0x414   : > { %v5187_v27 = vand.u32 4294967168, %v5169_v59  ;;  %v5039_v22 = vpop.f32.mrf.mxu2  ;;  %5249 = vmax.xlane.f32.xlu2 %v9591_v15 }
 0x415   : > { %v5040_v7 = vadd.f32 %v9565_v11, %v5039_v22 }
 0x416   : > { %v9596_v38 = vor.u32 %v9568_v63, %v5187_v27 }
 0x417   : > { %v5089_v31 = vadd.f32 %v5088_v53, %v5040_v7 }
 0x418   : > { %v5260_v10 = vshra.s32 %v9596_v38, 16 }
 0x419   : > { %vm5138_vm11 = vcmp.lt.s32.totalorder %v5089_v31, 0  ;;  %v5154_v12 = vxor.u32 2147483647, %v5089_v31  ;;  %v5093_v23 = vpop.f32.mrf.mxu3 }
 0x41a   : > { %v9599_v25 = vcvt.s32.f32 %v5260_v10 }
 0x41b   : > { %v5170_v14 = vsel %vm5138_vm11, %v5154_v12, %v5089_v31 }
 0x41c   : > { %v5188_v62 = vand.u32 4294967168, %v5170_v14  ;;  %v5041_v5 = vpop.f32.mrf.mxu2  ;;  %5263 = vmax.xlane.f32.xlu0 %v9599_v25 }
 0x41d   : > { %v5042_v56 = vadd.f32 %v9565_v11, %v5041_v5 }
 0x41e   : > { %v9604_v51 = vor.u32 %v9568_v63, %v5188_v62 }
 0x41f   : > { %v5091_v49 = vadd.f32 %v5090_v0, %v5042_v56 }
 0x420   : > { %v5274_v57 = vshra.s32 %v9604_v51, 16 }
 0x421   : > { %vm5139_vm12 = vcmp.lt.s32.totalorder %v5091_v49, 0  ;;  %v5155_v60 = vxor.u32 2147483647, %v5091_v49  ;;  %v5095_v37 = vpop.f32.mrf.mxu3 }
 0x422   : > { %v9607_v47 = vcvt.s32.f32 %v5274_v57 }
 0x423   : > { %v5171_v32 = vsel %vm5139_vm12, %v5155_v60, %v5091_v49 }
 0x424   : > { %v5189_v44 = vand.u32 4294967168, %v5171_v32  ;;  %v5044_v52 = vpop.f32.mrf.mxu2  ;;  %5277 = vmax.xlane.f32.xlu1 %v9607_v47 }
 0x425   : > { %v5045_v58 = vadd.f32 %v9565_v11, %v5044_v52 }
 0x426   : > { %v9612_v35 = vor.u32 %v9568_v63, %v5189_v44 }
 0x427   : > { %v5094_v4 = vadd.f32 %v5093_v23, %v5045_v58 }
 0x428   : > { %v5288_v21 = vshra.s32 %v9612_v35, 16 }
 0x429   : > { %vm5140_vm13 = vcmp.lt.s32.totalorder %v5094_v4, 0  ;;  %v5156_v48 = vxor.u32 2147483647, %v5094_v4  ;;  %v5098_v46 = vpop.f32.mrf.mxu3 }
 0x42a   : > { %v9615_v43 = vcvt.s32.f32 %v5288_v21 }
 0x42b   : > { %v5172_v34 = vsel %vm5140_vm13, %v5156_v48, %v5094_v4 }
 0x42c   : > { %v5190_v16 = vand.u32 4294967168, %v5172_v34  ;;  %v5046_v50 = vpop.f32.mrf.mxu2  ;;  %5291 = vmax.xlane.f32.xlu2 %v9615_v43 }
 0x42d   : > { %v5047_v8 = vadd.f32 %v9565_v11, %v5046_v50 }
 0x42e   : > { %v9620_v19 = vor.u32 %v9568_v63, %v5190_v16 }
 0x42f   : > { %v5096_v1 = vadd.f32 %v5095_v37, %v5047_v8 }
 0x430   : > { %v5302_v45 = vshra.s32 %v9620_v19, 16 }
 0x431   : > { %vm5141_vm14 = vcmp.lt.s32.totalorder %v5096_v1, 0  ;;  %v5157_v13 = vxor.u32 2147483647, %v5096_v1  ;;  %v5100_v61 = vpop.f32.mrf.mxu3 }
 0x432   : > { %v9623_v18 = vcvt.s32.f32 %v5302_v45 }
 0x433   : > { %v5173_v36 = vsel %vm5141_vm14, %v5157_v13, %v5096_v1 }
 0x434   : > { %v5191_v17 = vand.u32 4294967168, %v5173_v36  ;;  %v5049_v20 = vpop.f32.mrf.mxu2  ;;  %5305 = vmax.xlane.f32.xlu0 %v9623_v18 }
 0x435   : > { %v5050_v2 = vadd.f32 %v9565_v11, %v5049_v20 }
 0x436   : > { %v9628_v39 = vor.u32 %v9568_v63, %v5191_v17 }
 0x437   : > { %v5099_v41 = vadd.f32 %v5098_v46, %v5050_v2 }
 0x438   : > { %v5316_v33 = vshra.s32 %v9628_v39, 16 }
 0x439   : > { %vm5142_vm15 = vcmp.lt.s32.totalorder %v5099_v41, 0  ;;  %v5158_v53 = vxor.u32 2147483647, %v5099_v41  ;;  %v5103_v0 = vpop.f32.mrf.mxu3 }
 0x43a   : > { %v9631_v3 = vcvt.s32.f32 %v5316_v33 }
 0x43b   : > { %v5174_v30 = vsel %vm5142_vm15, %v5158_v53, %v5099_v41 }
 0x43c   : > { %v5192_v42 = vand.u32 4294967168, %v5174_v30  ;;  %v5051_v29 = vpop.f32.mrf.mxu2  ;;  %5319 = vmax.xlane.f32.xlu1 %v9631_v3 }
 0x43d   : > { %v5052_v40 = vadd.f32 %v9565_v11, %v5051_v29 }
 0x43e   : > { %v9636_v24 = vor.u32 %v9568_v63, %v5192_v42 }
 0x43f   : > { %v5101_v6 = vadd.f32 %v5100_v61, %v5052_v40 }
 0x440   : > { %v5330_v59 = vshra.s32 %v9636_v24, 16 }
 0x441   : > { %vm5143_vm0 = vcmp.lt.s32.totalorder %v5101_v6, 0  ;;  %v5159_v27 = vxor.u32 2147483647, %v5101_v6  ;;  %v5105_v56 = vpop.f32.mrf.mxu3 }
 0x442   : > { %v9639_v22 = vcvt.s32.f32 %v5330_v59 }
 0x443   : > { %v5175_v7 = vsel %vm5143_vm0, %v5159_v27, %v5101_v6 }
 0x444   : > { %v5193_v31 = vand.u32 4294967168, %v5175_v7  ;;  %v5054_v10 = vpop.f32.mrf.mxu2  ;;  %5333 = vmax.xlane.f32.xlu2 %v9639_v22 }
 0x445   : > { %v5055_v12 = vadd.f32 %v9565_v11, %v5054_v10 }
 0x446   : > { %v9644_v23 = vor.u32 %v9568_v63, %v5193_v31 }
 0x447   : > { %v5104_v14 = vadd.f32 %v5103_v0, %v5055_v12 }
 0x448   : > { %v5344_v62 = vshra.s32 %v9644_v23, 16 }
 0x449   : > { %vm5144_vm1 = vcmp.lt.s32.totalorder %v5104_v14, 0  ;;  %v5160_v5 = vxor.u32 2147483647, %v5104_v14  ;;  %v5108_v16 = vpop.f32.mrf.mxu3 }
 0x44a   : > { %v9647_v49 = vcvt.s32.f32 %v5344_v62 }
 0x44b   : > { %v5176_v57 = vsel %vm5144_vm1, %v5160_v5, %v5104_v14 }
 0x44c   : > { %v5194_v60 = vand.u32 4294967168, %v5176_v57  ;;  %v5056_v37 = vpop.f32.mrf.mxu2  ;;  %5347 = vmax.xlane.f32.xlu0 %v9647_v49  ;;  %v5217_v57 = vand.u32 65535, %v9572_v9 }
 0x44d   : > { %v5057_v32 = vadd.f32 %v9565_v11, %v5056_v37 }
 0x44e   : > { %v9652_v44 = vor.u32 %v9568_v63, %v5194_v60 }
 0x44f   : > { %v5106_v52 = vadd.f32 %v5105_v56, %v5057_v32 }
 0x450   : > { %v5358_v58 = vshra.s32 %v9652_v44, 16 }
 0x451   : > { %vm5145_vm2 = vcmp.lt.s32.totalorder %v5106_v52, 0  ;;  %v5161_v4 = vxor.u32 2147483647, %v5106_v52  ;;  %v5110_v33 = vpop.f32.mrf.mxu3 }
 0x452   : > { %v9655_v21 = vcvt.s32.f32 %v5358_v58 }
 0x453   : > { %v5177_v48 = vsel %vm5145_vm2, %v5161_v4, %v5106_v52 }
 0x454   : > { %v5195_v34 = vand.u32 4294967168, %v5177_v48  ;;  %v5059_v50 = vpop.f32.mrf.mxu2  ;;  %5361 = vmax.xlane.f32.xlu1 %v9655_v21  ;;  %v5219_v48 = vcvt.s32.f32 %v5217_v57 }
 0x455   : > { %v5060_v46 = vadd.f32 %v9565_v11, %v5059_v50 }
 0x456   : > { %v9660_v8 = vor.u32 %v9568_v63, %v5195_v34 }
 0x457   : > { %v5109_v1 = vadd.f32 %v5108_v16, %v5060_v46 }
 0x458   : > { %v5372_v45 = vshra.s32 %v9660_v8, 16 }
 0x459   : > { %vm5146_vm3 = vcmp.lt.s32.totalorder %v5109_v1, 0  ;;  %v5162_v13 = vxor.u32 2147483647, %v5109_v1 }
 0x45a   : > { %v9663_v36 = vcvt.s32.f32 %v5372_v45 }
 0x45b   : > { %v5178_v17 = vsel %vm5146_vm3, %v5162_v13, %v5109_v1  ;;  %v5231_v1 = vand.u32 65535, %v9580_v28 }
 0x45c   : > { %v5196_v20 = vand.u32 4294967168, %v5178_v17  ;;  %v5061_v2 = vpop.f32.mrf.mxu2  ;;  %5375 = vmax.xlane.f32.xlu2 %v9663_v36 }
 0x45d   : > { %v5062_v61 = vadd.f32 %v9565_v11, %v5061_v2  ;;  %v5233_v17 = vcvt.s32.f32 %v5231_v1 }
 0x45e   : > { %v9668_v41 = vor.u32 %v9568_v63, %v5196_v20 }
 0x45f   : > { %v5111_v53 = vadd.f32 %v5110_v33, %v5062_v61  ;;  %v5245_v61 = vand.u32 65535, %v9588_v26 }
 0x460   : > { %v5386_v30 = vshra.s32 %v9668_v41, 16 }
 0x461   : > { %vm5147_vm4 = vcmp.lt.s32.totalorder %v5111_v53, 0  ;;  %v5163_v42 = vxor.u32 2147483647, %v5111_v53 }
 0x462   : > { %v9671_v29 = vcvt.s32.f32 %v5386_v30  ;;  %v5259_v30 = vand.u32 65535, %v9596_v38 }
 0x463   : > { %v5179_v40 = vsel %vm5147_vm4, %v5163_v42, %v5111_v53 }
 0x464   : > { %v5197_v6 = vand.u32 4294967168, %v5179_v40  ;;  %5389 = vmax.xlane.f32.xlu0 %v9671_v29 }
 0x466   : > { %v9675_v0 = vor.u32 %v9568_v63, %v5197_v6  ;;  %v5113_v7 = vpop.f32.mrf.mxu3  ;;  %v5273_v6 = vand.u32 65535, %v9604_v51 }
 0x468   : > { %v5400_v59 = vshra.s32 %v9675_v0, 16 }
 0x46a   : > { %v9678_v27 = vcvt.s32.f32 %v5400_v59 }
 0x46b   : > { %v5064_v31 = vpop.f32.mrf.mxu2 }
 0x46c   : > { %v5065_v10 = vadd.f32 %v9565_v11, %v5064_v31  ;;  %5403 = vmax.xlane.f32.xlu1 %v9678_v27  ;;  %v5287_v31 = vand.u32 65535, %v9612_v35 }
 0x46e   : > { %v5114_v12 = vadd.f32 %v5113_v7, %v5065_v10  ;;  %v5115_v32 = vpop.f32.mrf.mxu3  ;;  %v5275_v7 = vcvt.s32.f32 %v5273_v6 }
 0x470   : > { %vm5148_vm5 = vcmp.lt.s32.totalorder %v5114_v12, 0  ;;  %v5164_v14 = vxor.u32 2147483647, %v5114_v12 }
 0x472   : > { %v5180_v62 = vsel %vm5148_vm5, %v5164_v14, %v5114_v12  ;;  %v5289_v12 = vcvt.s32.f32 %v5287_v31  ;;  %v5301_v14 = vand.u32 65535, %v9620_v19 }
 0x473   : > { %v5198_v5 = vand.u32 4294967168, %v5180_v62  ;;  %v5066_v56 = vpop.f32.mrf.mxu2 }
 0x474   : > { %v5067_v60 = vadd.f32 %v9565_v11, %v5066_v56  ;;  %v5315_v56 = vand.u32 65535, %v9628_v39 }
 0x475   : > { %v9685_v37 = vor.u32 %v9568_v63, %v5198_v5  ;;  %v5303_v5 = vcvt.s32.f32 %v5301_v14 }
 0x476   : > { %v5116_v52 = vadd.f32 %v5115_v32, %v5067_v60  ;;  %v5317_v60 = vcvt.s32.f32 %v5315_v56  ;;  %v5329_v32 = vand.u32 65535, %v9636_v24 }
 0x477   : > { %v5414_v58 = vshra.s32 %v9685_v37, 16  ;;  %v9688_v4 = vpop.xlane.xlu0 %5221 }
 0x478   : > { %vm5149_vm6 = vcmp.lt.s32.totalorder %v5116_v52, 0  ;;  %v5165_v34 = vxor.u32 2147483647, %v5116_v52  ;;  %vm5223_vm7 = vcmp.eq.f32.partialorder %v9575_v54, %v9688_v4  ;;  %v5228_v6 = vcvt.f32.s32 %v9688_v4 }
 0x479   : > { %v9692_v16 = vcvt.s32.f32 %v5414_v58  ;;  %v5224_v50 = vsel %vm5223_vm7, %v5219_v48, -inf  ;;  %v5331_v58 = vcvt.s32.f32 %v5329_v32  ;;  %v5343_v48 = vand.u32 65535, %v9644_v23 }
 0x47a   : > { %v5181_v46 = vsel %vm5149_vm6, %v5165_v34, %v5116_v52  ;;  %5225 = vmax.xlane.f32.xlu0 %v5224_v50  ;;  %v5229_v31 = vshll.u32 %v5228_v6, 16 }
 0x47b   : > { %v5199_v11 = vand.u32 4294967168, %v5181_v46  ;;  %5417 = vmax.xlane.f32.xlu2 %v9692_v16  ;;  %v5345_v50 = vcvt.s32.f32 %v5343_v48  ;;  %v5357_v46 = vand.u32 65535, %v9652_v44 }
 0x47d   : > { %v9697_v45 = vor.u32 %v9568_v63, %v5199_v11  ;;  %v5247_v63 = vcvt.s32.f32 %v5245_v61  ;;  %v5359_v1 = vcvt.s32.f32 %v5357_v46  ;;  %v5385_v61 = vand.u32 65535, %v9668_v41 }
 0x47f   : > { %v9699_v13 = vpop.xlane.xlu1 %5235  ;;  %v5428_v20 = vshra.s32 %v9697_v45, 16  ;;  %v5427_v4 = vand.u32 65535, %v9697_v45 }
 0x480   : > { %vm5237_vm8 = vcmp.eq.f32.partialorder %v9583_v55, %v9699_v13  ;;  %v5261_v55 = vcvt.s32.f32 %v5259_v30  ;;  %v5399_v30 = vand.u32 65535, %v9675_v0 }
 0x481   : > { %v5238_v54 = vsel %vm5237_vm8, %v5233_v17, -inf  ;;  %v9704_v2 = vcvt.s32.f32 %v5428_v20  ;;  %v5371_v17 = vand.u32 65535, %v9660_v8 }
 0x482   : > { %5239 = vmax.xlane.f32.xlu1 %v5238_v54 }
 0x483   : > { %5431 = vmax.xlane.f32.xlu0 %v9704_v2  ;;  %v5373_v54 = vcvt.s32.f32 %v5371_v17 }
 0x487   : > { %v9708_v33 = vpop.xlane.xlu2 %5249 }
 0x488   : > { %vm5251_vm9 = vcmp.eq.f32.partialorder %v9591_v15, %v9708_v33 }
 0x489   : > { %v5252_v53 = vsel %vm5251_vm9, %v5247_v63, -inf }
 0x48a   : > { %5253 = vmax.xlane.f32.xlu2 %v5252_v53  ;;  %v5387_v53 = vcvt.s32.f32 %v5385_v61 }
 0x48f   : > { %v9713_v42 = vpop.xlane.xlu0 %5263 }
 0x490   : > { %vm5265_vm10 = vcmp.eq.f32.partialorder %v9599_v25, %v9713_v42 }
 0x491   : > { %v5266_v40 = vsel %vm5265_vm10, %v5261_v55, -inf }
 0x492   : > { %5267 = vmax.xlane.f32.xlu1 %v5266_v40  ;;  %v5401_v40 = vcvt.s32.f32 %v5399_v30 }
 0x497   : > { %v9718_v59 = vpop.xlane.xlu1 %5277 }
 0x498   : > { %vm5279_vm11 = vcmp.eq.f32.partialorder %v9607_v47, %v9718_v59 }
 0x499   : > { %v5280_v15 = vsel %vm5279_vm11, %v5275_v7, -inf  ;;  %v5413_v7 = vand.u32 65535, %v9685_v37 }
 0x49a   : > { %5281 = vmax.xlane.f32.xlu2 %v5280_v15 }
 0x49f   : > { %v9723_v10 = vpop.xlane.xlu2 %5291 }
 0x4a0   : > { %vm5293_vm12 = vcmp.eq.f32.partialorder %v9615_v43, %v9723_v10 }
 0x4a1   : > { %v5294_v25 = vsel %vm5293_vm12, %v5289_v12, -inf }
 0x4a2   : > { %5295 = vmax.xlane.f32.xlu0 %v5294_v25 }
 0x4a7   : > { %v9728_v62 = vpop.xlane.xlu0 %5305 }
 0x4a8   : > { %vm5307_vm13 = vcmp.eq.f32.partialorder %v9623_v18, %v9728_v62 }
 0x4a9   : > { %v5308_v47 = vsel %vm5307_vm13, %v5303_v5, -inf }
 0x4aa   : > { %5309 = vmax.xlane.f32.xlu1 %v5308_v47 }
 0x4af   : > { %v9733_v57 = vpop.xlane.xlu1 %5319 }
 0x4b0   : > { %vm5321_vm14 = vcmp.eq.f32.partialorder %v9631_v3, %v9733_v57 }
 0x4b1   : > { %v5322_v43 = vsel %vm5321_vm14, %v5317_v60, -inf }
 0x4b2   : > { %5323 = vmax.xlane.f32.xlu2 %v5322_v43 }
 0x4b7   : > { %v9738_v52 = vpop.xlane.xlu2 %5333 }
 0x4b8   : > { %vm5335_vm15 = vcmp.eq.f32.partialorder %v9639_v22, %v9738_v52 }
 0x4b9   : > { %v5336_v18 = vsel %vm5335_vm15, %v5331_v58, -inf }
 0x4ba   : > { %5337 = vmax.xlane.f32.xlu0 %v5336_v18  ;;  %v5429_v18 = vcvt.s32.f32 %v5427_v4 }
 0x4bf   : > { %v9743_v34 = vpop.xlane.xlu0 %5347 }
 0x4c0   : > { %vm5349_vm0 = vcmp.eq.f32.partialorder %v9647_v49, %v9743_v34 }
 0x4c1   : > { %v5350_v3 = vsel %vm5349_vm0, %v5345_v50, -inf }
 0x4c2   : > { %5351 = vmax.xlane.f32.xlu1 %v5350_v3 }
 0x4c7   : > { %v9748_v11 = vpop.xlane.xlu1 %5361 }
 0x4c8   : > { %vm5363_vm1 = vcmp.eq.f32.partialorder %v9655_v21, %v9748_v11 }
 0x4c9   : > { %v5364_v22 = vsel %vm5363_vm1, %v5359_v1, -inf }
 0x4ca   : > { %5365 = vmax.xlane.f32.xlu2 %v5364_v22 }
 0x4cf   : > { %v9753_v20 = vpop.xlane.xlu2 %5375 }
 0x4d0   : > { %vm5377_vm2 = vcmp.eq.f32.partialorder %v9663_v36, %v9753_v20 }
 0x4d1   : > { %v5378_v49 = vsel %vm5377_vm2, %v5373_v54, -inf  ;;  %v5270_v54 = vcvt.f32.s32 %v9713_v42 }
 0x4d2   : > { %5379 = vmax.xlane.f32.xlu0 %v5378_v49 }
 0x4d3   : > { %v5271_v61 = vshll.u32 %v5270_v54, 16 }
 0x4d7   : > { %v9758_v63 = vpop.xlane.xlu0 %5389 }
 0x4d8   : > { %vm5391_vm3 = vcmp.eq.f32.partialorder %v9671_v29, %v9758_v63  ;;  %v5415_v29 = vcvt.s32.f32 %v5413_v7 }
 0x4d9   : > { %v5392_v21 = vsel %vm5391_vm3, %v5387_v53, -inf }
 0x4da   : > { %5393 = vmax.xlane.f32.xlu1 %v5392_v21 }
 0x4df   : > { %v9763_v55 = vpop.xlane.xlu1 %5403 }
 0x4e0   : > { %vm5405_vm4 = vcmp.eq.f32.partialorder %v9678_v27, %v9763_v55  ;;  %v5242_v27 = vcvt.f32.s32 %v9699_v13 }
 0x4e1   : > { %v5406_v36 = vsel %vm5405_vm4, %v5401_v40, -inf  ;;  %v5284_v40 = vcvt.f32.s32 %v9718_v59 }
 0x4e2   : > { %5407 = vmax.xlane.f32.xlu2 %v5406_v36  ;;  %v5243_v43 = vshll.u32 %v5242_v27, 16 }
 0x4e3   : > { %v5285_v6 = vshll.u32 %v5284_v40, 16 }
 0x4ed   : > { %v5226_v15 = vpop.xlane.xlu0 %5225 }
 0x4ee   : > { %v9769_v12 = vpop.xlane.xlu2 %5417  ;;  %v5227_v25 = vcvt.f32.s32 %v5226_v15 }
 0x4ef   : > { %vm5419_vm5 = vcmp.eq.f32.partialorder %v9692_v16, %v9769_v12 }
 0x4f0   : > { %v5420_v14 = vsel %vm5419_vm5, %v5415_v29, -inf  ;;  %v9773_v5 = vadd.s32 %v5229_v31, %v5227_v25  ;;  %v5298_v29 = vcvt.f32.s32 %v9723_v10 }
 0x4f1   : > { %5421 = vmax.xlane.f32.xlu0 %v5420_v14 }
 0x4f2   : > { %vm5473_vm6 = vcmp.eq.s32.totalorder %v9572_v9, %v9773_v5  ;;  %v5299_v14 = vshll.u32 %v5298_v29, 16 }
 0x4f3   : > { %v9780_v47 = vsel %vm5473_vm6, 2147483648, %v9572_v9  ;;  %v5256_v9 = vcvt.f32.s32 %v9708_v33 }
 0x4f4   : > { %v5506_v56 = vshra.s32 %v9780_v47, 16 }
 0x4f5   : > { %v5240_v60 = vpop.xlane.xlu1 %5239  ;;  %v5257_v1 = vshll.u32 %v5256_v9, 16 }
 0x4f6   : > { %v5241_v32 = vcvt.f32.s32 %v5240_v60  ;;  %v9783_v16 = vpop.xlane.xlu0 %5431  ;;  %v9785_v58 = vcvt.s32.f32 %v5506_v56  ;;  %v5312_v60 = vcvt.f32.s32 %v9728_v62 }
 0x4f7   : > { %vm5433_vm7 = vcmp.eq.f32.partialorder %v9704_v2, %v9783_v16 }
 0x4f8   : > { %v9789_v13 = vadd.s32 %v5243_v43, %v5241_v32  ;;  %5509 = vmax.xlane.f32.xlu2 %v9785_v58  ;;  %v5434_v48 = vsel %vm5433_vm7, %v5429_v18, -inf  ;;  %v5313_v32 = vshll.u32 %v5312_v60, 16 }
 0x4f9   : > { %5435 = vmax.xlane.f32.xlu1 %v5434_v48 }
 0x4fa   : > { %vm5474_vm8 = vcmp.eq.s32.totalorder %v9580_v28, %v9789_v13 }
 0x4fb   : > { %v9796_v50 = vsel %vm5474_vm8, 2147483648, %v9580_v28 }
 0x4fc   : > { %v5520_v3 = vshra.s32 %v9796_v50, 16 }
 0x4fd   : > { %v5254_v46 = vpop.xlane.xlu2 %5253 }
 0x4fe   : > { %v5255_v22 = vcvt.f32.s32 %v5254_v46  ;;  %v9799_v2 = vcvt.s32.f32 %v5520_v3  ;;  %v5326_v3 = vcvt.f32.s32 %v9733_v57 }
 0x500   : > { %v9801_v17 = vadd.s32 %v5257_v1, %v5255_v22  ;;  %v5327_v1 = vshll.u32 %v5326_v3, 16  ;;  %v5382_v3 = vcvt.f32.s32 %v9753_v20 }
 0x501   : > { %5523 = vmax.xlane.f32.xlu1 %v9799_v2 }
 0x502   : > { %vm5475_vm9 = vcmp.eq.s32.totalorder %v9588_v26, %v9801_v17 }
 0x503   : > { %v9808_v33 = vsel %vm5475_vm9, 2147483648, %v9588_v26 }
 0x504   : > { %v5534_v28 = vshra.s32 %v9808_v33, 16 }
 0x505   : > { %v5268_v49 = vpop.xlane.xlu1 %5267 }
 0x506   : > { %v5269_v53 = vcvt.f32.s32 %v5268_v49  ;;  %v9811_v21 = vcvt.s32.f32 %v5534_v28  ;;  %v5340_v49 = vcvt.f32.s32 %v9738_v52 }
 0x508   : > { %v9813_v30 = vadd.s32 %v5271_v61, %v5269_v53  ;;  %5537 = vmax.xlane.f32.xlu0 %v9811_v21  ;;  %v5341_v53 = vshll.u32 %v5340_v49, 16 }
 0x50a   : > { %vm5476_vm10 = vcmp.eq.s32.totalorder %v9596_v38, %v9813_v30 }
 0x50b   : > { %v9820_v42 = vsel %vm5476_vm10, 2147483648, %v9596_v38 }
 0x50c   : > { %v5548_v26 = vshra.s32 %v9820_v42, 16 }
 0x50d   : > { %v5282_v36 = vpop.xlane.xlu2 %5281 }
 0x50e   : > { %v5283_v7 = vcvt.f32.s32 %v5282_v36  ;;  %v9823_v15 = vcvt.s32.f32 %v5548_v26 }
 0x510   : > { %v9825_v31 = vadd.s32 %v5285_v6, %v5283_v7  ;;  %5551 = vmax.xlane.f32.xlu2 %v9823_v15  ;;  %v5354_v6 = vcvt.f32.s32 %v9743_v34 }
 0x512   : > { %vm5477_vm11 = vcmp.eq.s32.totalorder %v9604_v51, %v9825_v31  ;;  %v5355_v29 = vshll.u32 %v5354_v6, 16 }
 0x513   : > { %v9832_v59 = vsel %vm5477_vm11, 2147483648, %v9604_v51 }
 0x514   : > { %v5562_v38 = vshra.s32 %v9832_v59, 16 }
 0x515   : > { %v5296_v25 = vpop.xlane.xlu0 %5295 }
 0x516   : > { %v5297_v27 = vcvt.f32.s32 %v5296_v25  ;;  %v9835_v4 = vcvt.s32.f32 %v5562_v38 }
 0x518   : > { %v9837_v56 = vadd.s32 %v5299_v14, %v5297_v27  ;;  %5565 = vmax.xlane.f32.xlu0 %v9835_v4  ;;  %v5368_v27 = vcvt.f32.s32 %v9748_v11 }
 0x51a   : > { %vm5478_vm12 = vcmp.eq.s32.totalorder %v9612_v35, %v9837_v56 }
 0x51b   : > { %v9844_v10 = vsel %vm5478_vm12, 2147483648, %v9612_v35 }
 0x51c   : > { %v5576_v51 = vshra.s32 %v9844_v10, 16 }
 0x51d   : > { %v5310_v43 = vpop.xlane.xlu1 %5309 }
 0x51e   : > { %v5311_v18 = vcvt.f32.s32 %v5310_v43  ;;  %v9847_v48 = vcvt.s32.f32 %v5576_v51  ;;  %v5369_v51 = vshll.u32 %v5368_v27, 16 }
 0x520   : > { %v9849_v9 = vadd.s32 %v5313_v32, %v5311_v18  ;;  %5579 = vmax.xlane.f32.xlu1 %v9847_v48 }
 0x522   : > { %vm5479_vm13 = vcmp.eq.s32.totalorder %v9620_v19, %v9849_v9 }
 0x523   : > { %v9856_v62 = vsel %vm5479_vm13, 2147483648, %v9620_v19 }
 0x524   : > { %v5590_v35 = vshra.s32 %v9856_v62, 16 }
 0x525   : > { %v5324_v46 = vpop.xlane.xlu2 %5323 }
 0x526   : > { %v5325_v22 = vcvt.f32.s32 %v5324_v46  ;;  %v9859_v54 = vcvt.s32.f32 %v5590_v35  ;;  %v5383_v46 = vshll.u32 %v5382_v3, 16 }
 0x528   : > { %v9861_v28 = vadd.s32 %v5327_v1, %v5325_v22  ;;  %5593 = vmax.xlane.f32.xlu2 %v9859_v54 }
 0x52a   : > { %vm5480_vm14 = vcmp.eq.s32.totalorder %v9628_v39, %v9861_v28 }
 0x52b   : > { %v9868_v57 = vsel %vm5480_vm14, 2147483648, %v9628_v39 }
 0x52c   : > { %v5604_v19 = vshra.s32 %v9868_v57, 16 }
 0x52d   : > { %v5338_v61 = vpop.xlane.xlu0 %5337 }
 0x52e   : > { %v5339_v40 = vcvt.f32.s32 %v5338_v61  ;;  %v9871_v26 = vcvt.s32.f32 %v5604_v19  ;;  %v5396_v19 = vcvt.f32.s32 %v9758_v63 }
 0x530   : > { %v9873_v36 = vadd.s32 %v5341_v53, %v5339_v40  ;;  %5607 = vmax.xlane.f32.xlu0 %v9871_v26  ;;  %v5397_v53 = vshll.u32 %v5396_v19, 16  ;;  %v5438_v19 = vcvt.f32.s32 %v9783_v16 }
 0x532   : > { %vm5481_vm15 = vcmp.eq.s32.totalorder %v9636_v24, %v9873_v36 }
 0x533   : > { %v9880_v52 = vsel %vm5481_vm15, 2147483648, %v9636_v24 }
 0x534   : > { %v5618_v39 = vshra.s32 %v9880_v52, 16 }
 0x535   : > { %v5352_v7 = vpop.xlane.xlu1 %5351 }
 0x536   : > { %v5353_v38 = vcvt.f32.s32 %v5352_v7  ;;  %v9883_v25 = vcvt.s32.f32 %v5618_v39  ;;  %v5410_v7 = vcvt.f32.s32 %v9763_v55 }
 0x538   : > { %v9885_v14 = vadd.s32 %v5355_v29, %v5353_v38  ;;  %5621 = vmax.xlane.f32.xlu1 %v9883_v25  ;;  %v5411_v38 = vshll.u32 %v5410_v7, 16 }
 0x53a   : > { %vm5482_vm0 = vcmp.eq.s32.totalorder %v9644_v23, %v9885_v14 }
 0x53b   : > { %v9892_v34 = vsel %vm5482_vm0, 2147483648, %v9644_v23 }
 0x53c   : > { %v5632_v24 = vshra.s32 %v9892_v34, 16 }
 0x53d   : > { %v5366_v60 = vpop.xlane.xlu2 %5365 }
 0x53e   : > { %v5367_v43 = vcvt.f32.s32 %v5366_v60  ;;  %v9895_v32 = vcvt.s32.f32 %v5632_v24 }
 0x540   : > { %v9897_v18 = vadd.s32 %v5369_v51, %v5367_v43  ;;  %5635 = vmax.xlane.f32.xlu2 %v9895_v32  ;;  %v5424_v43 = vcvt.f32.s32 %v9769_v12 }
 0x542   : > { %vm5483_vm1 = vcmp.eq.s32.totalorder %v9652_v44, %v9897_v18 }
 0x543   : > { %v9904_v11 = vsel %vm5483_vm1, 2147483648, %v9652_v44 }
 0x544   : > { %v5646_v23 = vshra.s32 %v9904_v11, 16 }
 0x545   : > { %v5380_v35 = vpop.xlane.xlu0 %5379 }
 0x546   : > { %v5381_v1 = vcvt.f32.s32 %v5380_v35  ;;  %v9907_v22 = vcvt.s32.f32 %v5646_v23  ;;  %v5425_v23 = vshll.u32 %v5424_v43, 16  ;;  %v5519_v43 = vand.u32 65535, %v9796_v50 }
 0x548   : > { %v9909_v49 = vadd.s32 %v5383_v46, %v5381_v1  ;;  %5649 = vmax.xlane.f32.xlu0 %v9907_v22  ;;  %v5505_v1 = vand.u32 65535, %v9780_v47 }
 0x54a   : > { %vm5484_vm2 = vcmp.eq.s32.totalorder %v9660_v8, %v9909_v49  ;;  %v5507_v12 = vcvt.s32.f32 %v5505_v1 }
 0x54b   : > { %v9916_v20 = vsel %vm5484_vm2, 2147483648, %v9660_v8 }
 0x54c   : > { %v5660_v44 = vshra.s32 %v9916_v20, 16 }
 0x54d   : > { %v5394_v61 = vpop.xlane.xlu1 %5393 }
 0x54e   : > { %v5395_v40 = vcvt.f32.s32 %v5394_v61  ;;  %v9919_v6 = vcvt.s32.f32 %v5660_v44 }
 0x550   : > { %v9921_v39 = vadd.s32 %v5397_v53, %v5395_v40  ;;  %5663 = vmax.xlane.f32.xlu1 %v9919_v6  ;;  %v5439_v40 = vshll.u32 %v5438_v19, 16  ;;  %v5547_v19 = vand.u32 65535, %v9820_v42 }
 0x552   : > { %vm5485_vm3 = vcmp.eq.s32.totalorder %v9668_v41, %v9921_v39 }
 0x553   : > { %v9928_v63 = vsel %vm5485_vm3, 2147483648, %v9668_v41 }
 0x554   : > { %v5674_v8 = vshra.s32 %v9928_v63, 16 }
 0x555   : > { %v5408_v29 = vpop.xlane.xlu2 %5407 }
 0x556   : > { %v5409_v27 = vcvt.f32.s32 %v5408_v29  ;;  %v9931_v24 = vcvt.s32.f32 %v5674_v8 }
 0x558   : > { %v9933_v60 = vadd.s32 %v5411_v38, %v5409_v27  ;;  %5677 = vmax.xlane.f32.xlu2 %v9931_v24 }
 0x55a   : > { %vm5486_vm4 = vcmp.eq.s32.totalorder %v9675_v0, %v9933_v60 }
 0x55b   : > { %v9939_v55 = vsel %vm5486_vm4, 2147483648, %v9675_v0 }
 0x55c   : > { %v5688_v41 = vshra.s32 %v9939_v55, 16 }
 0x55e   : > { %v9942_v51 = vcvt.s32.f32 %v5688_v41 }
 0x560   : > { %5691 = vmax.xlane.f32.xlu0 %v9942_v51 }
 0x564   : > { %v5422_v3 = vpop.xlane.xlu0 %5421 }
 0x565   : > { %v5423_v35 = vcvt.f32.s32 %v5422_v3 }
 0x567   : > { %v9946_v46 = vadd.s32 %v5425_v23, %v5423_v35 }
 0x569   : > { %vm5487_vm5 = vcmp.eq.s32.totalorder %v9685_v37, %v9946_v46 }
 0x56a   : > { %v9953_v0 = vsel %vm5487_vm5, 2147483648, %v9685_v37 }
 0x56b   : > { %v5702_v44 = vshra.s32 %v9953_v0, 16  ;;  %v9956_v61 = vpop.xlane.xlu2 %5509 }
 0x56c   : > { %v5436_v53 = vpop.xlane.xlu1 %5435  ;;  %vm5511_vm6 = vcmp.eq.f32.partialorder %v9785_v58, %v9956_v61  ;;  %v5533_v58 = vand.u32 65535, %v9808_v33 }
 0x56d   : > { %v9960_v7 = vcvt.s32.f32 %v5702_v44  ;;  %v5437_v8 = vcvt.f32.s32 %v5436_v53  ;;  %v5512_v16 = vsel %vm5511_vm6, %v5507_v12, -inf  ;;  %v5549_v12 = vcvt.s32.f32 %v5547_v19 }
 0x56e   : > { %5513 = vmax.xlane.f32.xlu0 %v5512_v16  ;;  %v5535_v23 = vcvt.s32.f32 %v5533_v58  ;;  %v5575_v16 = vand.u32 65535, %v9844_v10 }
 0x56f   : > { %5705 = vmax.xlane.f32.xlu1 %v9960_v7  ;;  %v9963_v29 = vadd.s32 %v5439_v40, %v5437_v8 }
 0x570   : > { %v5577_v58 = vcvt.s32.f32 %v5575_v16 }
 0x571   : > { %vm5488_vm7 = vcmp.eq.s32.totalorder %v9697_v45, %v9963_v29 }
 0x572   : > { %v9968_v37 = vsel %vm5488_vm7, 2147483648, %v9697_v45  ;;  %v5521_v45 = vcvt.s32.f32 %v5519_v43  ;;  %v5589_v43 = vand.u32 65535, %v9856_v62  ;;  %vm6625_vm7 = vcmask 7168  }
 0x573   : > { %v5716_v38 = vshra.s32 %v9968_v37, 16 }
 0x574   : > { %v9975_v41 = vpop.xlane.xlu1 %5523 }
 0x575   : > { %v9971_v27 = vcvt.s32.f32 %v5716_v38  ;;  %vm5525_vm8 = vcmp.eq.f32.partialorder %v9799_v2, %v9975_v41  ;;  %v5561_v2 = vand.u32 65535, %v9832_v59 }
 0x576   : > { %v5526_v1 = vsel %vm5525_vm8, %v5521_v45, -inf  ;;  %v5591_v45 = vcvt.s32.f32 %v5589_v43 }
 0x577   : > { %5719 = vmax.xlane.f32.xlu2 %v9971_v27  ;;  %v5563_v8 = vcvt.s32.f32 %v5561_v2 }
 0x57b   : > { %v9978_v3 = vpop.xlane.xlu0 %5537 }
 0x57c   : > { %vm5539_vm9 = vcmp.eq.f32.partialorder %v9811_v21, %v9978_v3 }
 0x57d   : > { %v5540_v35 = vsel %vm5539_vm9, %v5535_v23, -inf }
 0x57e   : > { %5541 = vmax.xlane.f32.xlu1 %v5540_v35  ;;  %v5603_v35 = vand.u32 65535, %v9868_v57 }
 0x57f   : > { %5527 = vmax.xlane.f32.xlu2 %v5526_v1 }
 0x580   : > { %v5605_v19 = vcvt.s32.f32 %v5603_v35 }
 0x583   : > { %v9985_v44 = vpop.xlane.xlu2 %5551 }
 0x584   : > { %vm5553_vm10 = vcmp.eq.f32.partialorder %v9823_v15, %v9985_v44 }
 0x585   : > { %v5554_v53 = vsel %vm5553_vm10, %v5549_v12, -inf  ;;  %v5617_v12 = vand.u32 65535, %v9880_v52 }
 0x586   : > { %5555 = vmax.xlane.f32.xlu0 %v5554_v53 }
 0x587   : > { %v5619_v2 = vcvt.s32.f32 %v5617_v12 }
 0x58b   : > { %v9990_v40 = vpop.xlane.xlu0 %5565 }
 0x58c   : > { %vm5567_vm11 = vcmp.eq.f32.partialorder %v9835_v4, %v9990_v40 }
 0x58d   : > { %v5568_v21 = vsel %vm5567_vm11, %v5563_v8, -inf  ;;  %v5631_v8 = vand.u32 65535, %v9892_v34 }
 0x58e   : > { %5569 = vmax.xlane.f32.xlu1 %v5568_v21 }
 0x58f   : > { %v5633_v16 = vcvt.s32.f32 %v5631_v8 }
 0x593   : > { %v9995_v38 = vpop.xlane.xlu1 %5579 }
 0x594   : > { %vm5581_vm12 = vcmp.eq.f32.partialorder %v9847_v48, %v9995_v38 }
 0x595   : > { %v5582_v15 = vsel %vm5581_vm12, %v5577_v58, -inf  ;;  %v5645_v58 = vand.u32 65535, %v9904_v11 }
 0x596   : > { %5583 = vmax.xlane.f32.xlu2 %v5582_v15 }
 0x597   : > { %v5647_v43 = vcvt.s32.f32 %v5645_v58 }
 0x59b   : > { %v10000_v23 = vpop.xlane.xlu2 %5593 }
 0x59c   : > { %vm5595_vm13 = vcmp.eq.f32.partialorder %v9859_v54, %v10000_v23 }
 0x59d   : > { %v5596_v4 = vsel %vm5595_vm13, %v5591_v45, -inf  ;;  %v5659_v45 = vand.u32 65535, %v9916_v20 }
 0x59e   : > { %5597 = vmax.xlane.f32.xlu0 %v5596_v4 }
 0x59f   : > { %v5661_v35 = vcvt.s32.f32 %v5659_v45 }
 0x5a3   : > { %v10005_v1 = vpop.xlane.xlu0 %5607 }
 0x5a4   : > { %vm5609_vm14 = vcmp.eq.f32.partialorder %v9871_v26, %v10005_v1 }
 0x5a5   : > { %v5610_v48 = vsel %vm5609_vm14, %v5605_v19, -inf  ;;  %v5673_v19 = vand.u32 65535, %v9928_v63 }
 0x5a6   : > { %5611 = vmax.xlane.f32.xlu1 %v5610_v48 }
 0x5a7   : > { %v5675_v12 = vcvt.s32.f32 %v5673_v19 }
 0x5ab   : > { %v10010_v53 = vpop.xlane.xlu1 %5621 }
 0x5ac   : > { %vm5623_vm15 = vcmp.eq.f32.partialorder %v9883_v25, %v10010_v53 }
 0x5ad   : > { %v5624_v54 = vsel %vm5623_vm15, %v5619_v2, -inf  ;;  %v5687_v2 = vand.u32 65535, %v9939_v55 }
 0x5ae   : > { %5625 = vmax.xlane.f32.xlu2 %v5624_v54 }
 0x5af   : > { %v5689_v8 = vcvt.s32.f32 %v5687_v2 }
 0x5b3   : > { %v10015_v21 = vpop.xlane.xlu2 %5635 }
 0x5b4   : > { %vm5637_vm0 = vcmp.eq.f32.partialorder %v9895_v32, %v10015_v21 }
 0x5b5   : > { %v5638_v26 = vsel %vm5637_vm0, %v5633_v16, -inf  ;;  %v5516_v16 = vcvt.f32.s32 %v9956_v61  ;;  %v5715_v61 = vand.u32 65535, %v9968_v37 }
 0x5b6   : > { %5639 = vmax.xlane.f32.xlu0 %v5638_v26  ;;  %v5701_v26 = vand.u32 65535, %v9953_v0 }
 0x5bb   : > { %v10020_v15 = vpop.xlane.xlu0 %5649 }
 0x5bc   : > { %vm5651_vm1 = vcmp.eq.f32.partialorder %v9907_v22, %v10020_v15 }
 0x5bd   : > { %v5652_v25 = vsel %vm5651_vm1, %v5647_v43, -inf  ;;  %v5517_v43 = vshll.u32 %v5516_v16, 16 }
 0x5be   : > { %5653 = vmax.xlane.f32.xlu1 %v5652_v25 }
 0x5c3   : > { %v10025_v4 = vpop.xlane.xlu1 %5663 }
 0x5c4   : > { %vm5665_vm2 = vcmp.eq.f32.partialorder %v9919_v6, %v10025_v4 }
 0x5c5   : > { %v5666_v32 = vsel %vm5665_vm2, %v5661_v35, -inf  ;;  %v5441_v35 = vand.u32 127, %v9773_v5 }
 0x5c6   : > { %5667 = vmax.xlane.f32.xlu2 %v5666_v32 }
 0x5cb   : > { %v10030_v48 = vpop.xlane.xlu2 %5677 }
 0x5cc   : > { %vm5679_vm3 = vcmp.eq.f32.partialorder %v9931_v24, %v10030_v48  ;;  %v5703_v24 = vcvt.s32.f32 %v5701_v26 }
 0x5cd   : > { %v5680_v22 = vsel %vm5679_vm3, %v5675_v12, -inf }
 0x5ce   : > { %5681 = vmax.xlane.f32.xlu0 %v5680_v22  ;;  %v5457_v22 = vsub.s32 127, %v5441_v35 }
 0x5d3   : > { %v10035_v54 = vpop.xlane.xlu0 %5691 }
 0x5d4   : > { %vm5693_vm4 = vcmp.eq.f32.partialorder %v9942_v51, %v10035_v54 }
 0x5d5   : > { %v5694_v6 = vsel %vm5693_vm4, %v5689_v8, -inf }
 0x5d6   : > { %5695 = vmax.xlane.f32.xlu1 %v5694_v6  ;;  %v5717_v6 = vcvt.s32.f32 %v5715_v61 }
 0x5e1   : > { %v5514_v58 = vpop.xlane.xlu0 %5513 }
 0x5e2   : > { %v10041_v25 = vpop.xlane.xlu1 %5705  ;;  %v5515_v45 = vcvt.f32.s32 %v5514_v58  ;;  %v5530_v58 = vcvt.f32.s32 %v9975_v41 }
 0x5e3   : > { %vm5707_vm5 = vcmp.eq.f32.partialorder %v9960_v7, %v10041_v25 }
 0x5e4   : > { %v5708_v32 = vsel %vm5707_vm5, %v5703_v24, -inf  ;;  %v5518_v19 = vadd.s32 %v5517_v43, %v5515_v45 }
 0x5e5   : > { %5709 = vmax.xlane.f32.xlu2 %v5708_v32  ;;  %v5531_v32 = vshll.u32 %v5530_v58, 16 }
 0x5e6   : > { %v5729_v51 = vand.u32 127, %v5518_v19  ;;  %vm5761_vm6 = vcmp.eq.s32.totalorder %v9780_v47, %v5518_v19 }
 0x5e7   : > { %v10049_v12 = vsel %vm5761_vm6, 2147483648, %v9780_v47  ;;  %v5544_v47 = vcvt.f32.s32 %v9978_v3 }
 0x5e8   : > { %v5745_v2 = vsub.s32 127, %v5729_v51  ;;  %v5794_v8 = vshra.s32 %v10049_v12, 16  ;;  %v5443_v51 = vand.u32 127, %v9801_v17 }
 0x5e9   : > { %v5545_v24 = vshll.u32 %v5544_v47, 16 }
 0x5ea   : > { %v10053_v7 = vsel %vm6625_vm7, %v5457_v22, %v5745_v2  ;;  %v10055_v5 = vpop.xlane.xlu2 %5719  ;;  %v10057_v16 = vcvt.s32.f32 %v5794_v8  ;;  %v5442_v22 = vand.u32 127, %v9789_v13  ;;  %v5558_v2 = vcvt.f32.s32 %v9985_v44 }
 0x5eb   : > { %vm5721_vm8 = vcmp.eq.f32.partialorder %v9971_v27, %v10055_v5 }
 0x5ec   : > { %v5722_v26 = vsel %vm5721_vm8, %v5717_v6, -inf  ;;  %5797 = vmax.xlane.f32.xlu1 %v10057_v16  ;;  %v5459_v6 = vsub.s32 127, %v5443_v51  ;;  %v5458_v13 = vsub.s32 127, %v5442_v22 }
 0x5ed   : > { %5723 = vmax.xlane.f32.xlu0 %v5722_v26 }
 0x5f1   : > { %v5542_v43 = vpop.xlane.xlu1 %5541 }
 0x5f2   : > { %v5528_v45 = vpop.xlane.xlu2 %5527  ;;  %v5543_v35 = vcvt.f32.s32 %v5542_v43 }
 0x5f3   : > { %v5529_v19 = vcvt.f32.s32 %v5528_v45 }
 0x5f4   : > { %v5546_v61 = vadd.s32 %v5545_v24, %v5543_v35  ;;  %v5559_v24 = vshll.u32 %v5558_v2, 16 }
 0x5f5   : > { %v5532_v27 = vadd.s32 %v5531_v32, %v5529_v19  ;;  %v5444_v19 = vand.u32 127, %v9813_v30 }
 0x5f6   : > { %v5731_v8 = vand.u32 127, %v5546_v61  ;;  %vm5763_vm9 = vcmp.eq.s32.totalorder %v9808_v33, %v5546_v61  ;;  %v5572_v61 = vcvt.f32.s32 %v9990_v40  ;;  %v5445_v40 = vand.u32 127, %v9825_v31 }
 0x5f7   : > { %v5730_v3 = vand.u32 127, %v5532_v27  ;;  %vm5762_vm10 = vcmp.eq.s32.totalorder %v9796_v50, %v5532_v27  ;;  %v10070_v41 = vsel %vm5763_vm9, 2147483648, %v9808_v33  ;;  %v5460_v2 = vsub.s32 127, %v5444_v19 }
 0x5f8   : > { %v10073_v26 = vsel %vm5762_vm10, 2147483648, %v9796_v50  ;;  %v5747_v17 = vsub.s32 127, %v5731_v8  ;;  %v5822_v47 = vshra.s32 %v10070_v41, 16 }
 0x5f9   : > { %v5746_v58 = vsub.s32 127, %v5730_v3  ;;  %v5556_v43 = vpop.xlane.xlu0 %5555  ;;  %v5808_v44 = vshra.s32 %v10073_v26, 16 }
 0x5fa   : > { %v10078_v45 = vsel %vm6625_vm7, %v5459_v6, %v5747_v17  ;;  %v5557_v35 = vcvt.f32.s32 %v5556_v43  ;;  %v10080_v32 = vcvt.s32.f32 %v5822_v47  ;;  %v5573_v17 = vshll.u32 %v5572_v61, 16 }
 0x5fb   : > { %v10083_v33 = vsel %vm6625_vm7, %v5458_v13, %v5746_v58  ;;  %v10085_v50 = vcvt.s32.f32 %v5808_v44 }
 0x5fc   : > { %v5560_v51 = vadd.s32 %v5559_v24, %v5557_v35  ;;  %5825 = vmax.xlane.f32.xlu2 %v10080_v32  ;;  %v5461_v24 = vsub.s32 127, %v5445_v40 }
 0x5fd   : > { %5811 = vmax.xlane.f32.xlu0 %v10085_v50 }
 0x5fe   : > { %v5732_v22 = vand.u32 127, %v5560_v51  ;;  %vm5764_vm11 = vcmp.eq.s32.totalorder %v9820_v42, %v5560_v51 }
 0x5ff   : > { %v10093_v27 = vsel %vm5764_vm11, 2147483648, %v9820_v42  ;;  %v5586_v42 = vcvt.f32.s32 %v9995_v38  ;;  %v5446_v38 = vand.u32 127, %v9837_v56 }
 0x600   : > { %v5748_v8 = vsub.s32 127, %v5732_v22  ;;  %v5836_v3 = vshra.s32 %v10093_v27, 16 }
 0x601   : > { %v5570_v6 = vpop.xlane.xlu1 %5569  ;;  %v5587_v61 = vshll.u32 %v5586_v42, 16 }
 0x602   : > { %v10097_v30 = vsel %vm6625_vm7, %v5460_v2, %v5748_v8  ;;  %v5571_v47 = vcvt.f32.s32 %v5570_v6  ;;  %v10099_v13 = vcvt.s32.f32 %v5836_v3 }
 0x604   : > { %v5574_v58 = vadd.s32 %v5573_v17, %v5571_v47  ;;  %v5462_v17 = vsub.s32 127, %v5446_v38 }
 0x605   : > { %5839 = vmax.xlane.f32.xlu0 %v10099_v13 }
 0x606   : > { %v5733_v43 = vand.u32 127, %v5574_v58  ;;  %vm5765_vm12 = vcmp.eq.s32.totalorder %v9832_v59, %v5574_v58 }
 0x607   : > { %v10106_v44 = vsel %vm5765_vm12, 2147483648, %v9832_v59  ;;  %v5600_v59 = vcvt.f32.s32 %v10000_v23  ;;  %v5447_v23 = vand.u32 127, %v9849_v9 }
 0x608   : > { %v5749_v35 = vsub.s32 127, %v5733_v43  ;;  %v5850_v19 = vshra.s32 %v10106_v44, 16 }
 0x609   : > { %v5584_v51 = vpop.xlane.xlu2 %5583  ;;  %v5601_v42 = vshll.u32 %v5600_v59, 16 }
 0x60a   : > { %v10110_v22 = vsel %vm6625_vm7, %v5461_v24, %v5749_v35  ;;  %v5585_v31 = vcvt.f32.s32 %v5584_v51  ;;  %v10112_v2 = vcvt.s32.f32 %v5850_v19 }
 0x60c   : > { %v5588_v8 = vadd.s32 %v5587_v61, %v5585_v31  ;;  %5853 = vmax.xlane.f32.xlu1 %v10112_v2  ;;  %v5463_v61 = vsub.s32 127, %v5447_v23 }
 0x60e   : > { %v5734_v3 = vand.u32 127, %v5588_v8  ;;  %vm5766_vm13 = vcmp.eq.s32.totalorder %v9844_v10, %v5588_v8 }
 0x60f   : > { %v10119_v6 = vsel %vm5766_vm13, 2147483648, %v9844_v10  ;;  %v5614_v10 = vcvt.f32.s32 %v10005_v1  ;;  %v5448_v1 = vand.u32 127, %v9861_v28 }
 0x610   : > { %v5750_v47 = vsub.s32 127, %v5734_v3  ;;  %v5864_v40 = vshra.s32 %v10119_v6, 16 }
 0x611   : > { %v5598_v58 = vpop.xlane.xlu0 %5597  ;;  %v5615_v59 = vshll.u32 %v5614_v10, 16 }
 0x612   : > { %v10123_v43 = vsel %vm6625_vm7, %v5462_v17, %v5750_v47  ;;  %v5599_v56 = vcvt.f32.s32 %v5598_v58  ;;  %v10125_v24 = vcvt.s32.f32 %v5864_v40 }
 0x614   : > { %v5602_v35 = vadd.s32 %v5601_v42, %v5599_v56  ;;  %5867 = vmax.xlane.f32.xlu2 %v10125_v24  ;;  %v5464_v42 = vsub.s32 127, %v5448_v1 }
 0x616   : > { %v5735_v19 = vand.u32 127, %v5602_v35  ;;  %vm5767_vm14 = vcmp.eq.s32.totalorder %v9856_v62, %v5602_v35 }
 0x617   : > { %v10132_v51 = vsel %vm5767_vm14, 2147483648, %v9856_v62  ;;  %v5628_v62 = vcvt.f32.s32 %v10010_v53  ;;  %v5449_v53 = vand.u32 127, %v9873_v36 }
 0x618   : > { %v5751_v31 = vsub.s32 127, %v5735_v19  ;;  %v5878_v38 = vshra.s32 %v10132_v51, 16 }
 0x619   : > { %v5612_v8 = vpop.xlane.xlu1 %5611  ;;  %v5629_v10 = vshll.u32 %v5628_v62, 16 }
 0x61a   : > { %v10136_v3 = vsel %vm6625_vm7, %v5463_v61, %v5751_v31  ;;  %v5613_v9 = vcvt.f32.s32 %v5612_v8  ;;  %v10138_v17 = vcvt.s32.f32 %v5878_v38 }
 0x61c   : > { %v5616_v47 = vadd.s32 %v5615_v59, %v5613_v9  ;;  %5881 = vmax.xlane.f32.xlu0 %v10138_v17  ;;  %v5465_v59 = vsub.s32 127, %v5449_v53 }
 0x61e   : > { %v5736_v40 = vand.u32 127, %v5616_v47  ;;  %vm5768_vm15 = vcmp.eq.s32.totalorder %v9868_v57, %v5616_v47 }
 0x61f   : > { %v10145_v58 = vsel %vm5768_vm15, 2147483648, %v9868_v57  ;;  %v5642_v57 = vcvt.f32.s32 %v10015_v21  ;;  %v5450_v21 = vand.u32 127, %v9885_v14 }
 0x620   : > { %v5752_v56 = vsub.s32 127, %v5736_v40  ;;  %v5892_v23 = vshra.s32 %v10145_v58, 16 }
 0x621   : > { %v5626_v35 = vpop.xlane.xlu2 %5625  ;;  %v5643_v62 = vshll.u32 %v5642_v57, 16 }
 0x622   : > { %v10149_v19 = vsel %vm6625_vm7, %v5464_v42, %v5752_v56  ;;  %v5627_v28 = vcvt.f32.s32 %v5626_v35  ;;  %v10151_v61 = vcvt.s32.f32 %v5892_v23 }
 0x624   : > { %v5630_v31 = vadd.s32 %v5629_v10, %v5627_v28  ;;  %5895 = vmax.xlane.f32.xlu1 %v10151_v61  ;;  %v5466_v10 = vsub.s32 127, %v5450_v21 }
 0x626   : > { %v5737_v38 = vand.u32 127, %v5630_v31  ;;  %vm5769_vm0 = vcmp.eq.s32.totalorder %v9880_v52, %v5630_v31 }
 0x627   : > { %v10158_v8 = vsel %vm5769_vm0, 2147483648, %v9880_v52  ;;  %v5656_v52 = vcvt.f32.s32 %v10020_v15  ;;  %v5451_v15 = vand.u32 127, %v9897_v18 }
 0x628   : > { %v5753_v9 = vsub.s32 127, %v5737_v38  ;;  %v5906_v1 = vshra.s32 %v10158_v8, 16 }
 0x629   : > { %v5640_v47 = vpop.xlane.xlu0 %5639  ;;  %v5657_v57 = vshll.u32 %v5656_v52, 16 }
 0x62a   : > { %v10162_v40 = vsel %vm6625_vm7, %v5465_v59, %v5753_v9  ;;  %v5641_v36 = vcvt.f32.s32 %v5640_v47  ;;  %v10164_v42 = vcvt.s32.f32 %v5906_v1 }
 0x62c   : > { %v5644_v56 = vadd.s32 %v5643_v62, %v5641_v36  ;;  %5909 = vmax.xlane.f32.xlu2 %v10164_v42  ;;  %v5467_v62 = vsub.s32 127, %v5451_v15 }
 0x62e   : > { %v5738_v23 = vand.u32 127, %v5644_v56  ;;  %vm5770_vm1 = vcmp.eq.s32.totalorder %v9892_v34, %v5644_v56 }
 0x62f   : > { %v10171_v35 = vsel %vm5770_vm1, 2147483648, %v9892_v34  ;;  %v5670_v34 = vcvt.f32.s32 %v10025_v4  ;;  %v5452_v4 = vand.u32 127, %v9909_v49 }
 0x630   : > { %v5754_v28 = vsub.s32 127, %v5738_v23  ;;  %v5920_v53 = vshra.s32 %v10171_v35, 16 }
 0x631   : > { %v5654_v31 = vpop.xlane.xlu1 %5653  ;;  %v5671_v52 = vshll.u32 %v5670_v34, 16 }
 0x632   : > { %v10175_v38 = vsel %vm6625_vm7, %v5466_v10, %v5754_v28  ;;  %v5655_v14 = vcvt.f32.s32 %v5654_v31  ;;  %v10177_v59 = vcvt.s32.f32 %v5920_v53 }
 0x634   : > { %v5658_v9 = vadd.s32 %v5657_v57, %v5655_v14  ;;  %5923 = vmax.xlane.f32.xlu0 %v10177_v59  ;;  %v5468_v57 = vsub.s32 127, %v5452_v4 }
 0x636   : > { %v5739_v1 = vand.u32 127, %v5658_v9  ;;  %vm5771_vm2 = vcmp.eq.s32.totalorder %v9904_v11, %v5658_v9 }
 0x637   : > { %v10184_v47 = vsel %vm5771_vm2, 2147483648, %v9904_v11  ;;  %v5684_v11 = vcvt.f32.s32 %v10030_v48  ;;  %v5453_v48 = vand.u32 127, %v9921_v39 }
 0x638   : > { %v5755_v36 = vsub.s32 127, %v5739_v1  ;;  %v5934_v21 = vshra.s32 %v10184_v47, 16 }
 0x639   : > { %v5668_v56 = vpop.xlane.xlu2 %5667  ;;  %v5685_v34 = vshll.u32 %v5684_v11, 16 }
 0x63a   : > { %v10188_v23 = vsel %vm6625_vm7, %v5467_v62, %v5755_v36  ;;  %v5669_v18 = vcvt.f32.s32 %v5668_v56  ;;  %v10190_v10 = vcvt.s32.f32 %v5934_v21 }
 0x63c   : > { %v5672_v28 = vadd.s32 %v5671_v52, %v5669_v18  ;;  %5937 = vmax.xlane.f32.xlu1 %v10190_v10  ;;  %v5469_v52 = vsub.s32 127, %v5453_v48 }
 0x63e   : > { %v5740_v53 = vand.u32 127, %v5672_v28  ;;  %vm5772_vm3 = vcmp.eq.s32.totalorder %v9916_v20, %v5672_v28 }
 0x63f   : > { %v10197_v31 = vsel %vm5772_vm3, 2147483648, %v9916_v20  ;;  %v5698_v20 = vcvt.f32.s32 %v10035_v54  ;;  %v5454_v54 = vand.u32 127, %v9933_v60  ;;  %v5712_v60 = vcvt.f32.s32 %v10041_v25 }
 0x640   : > { %v5756_v14 = vsub.s32 127, %v5740_v53  ;;  %v5948_v15 = vshra.s32 %v10197_v31, 16 }
 0x641   : > { %v5682_v9 = vpop.xlane.xlu0 %5681  ;;  %v5699_v11 = vshll.u32 %v5698_v20, 16 }
 0x642   : > { %v10201_v1 = vsel %vm6625_vm7, %v5468_v57, %v5756_v14  ;;  %v5683_v49 = vcvt.f32.s32 %v5682_v9  ;;  %v10203_v62 = vcvt.s32.f32 %v5948_v15  ;;  %v5470_v9 = vsub.s32 127, %v5454_v54 }
 0x644   : > { %v5686_v36 = vadd.s32 %v5685_v34, %v5683_v49  ;;  %5951 = vmax.xlane.f32.xlu2 %v10203_v62 }
 0x646   : > { %v5741_v21 = vand.u32 127, %v5686_v36  ;;  %vm5773_vm4 = vcmp.eq.s32.totalorder %v9928_v63, %v5686_v36 }
 0x647   : > { %v10210_v56 = vsel %vm5773_vm4, 2147483648, %v9928_v63 }
 0x648   : > { %v5757_v18 = vsub.s32 127, %v5741_v21  ;;  %v5962_v4 = vshra.s32 %v10210_v56, 16  ;;  %v5713_v21 = vshll.u32 %v5712_v60, 16 }
 0x649   : > { %v5696_v28 = vpop.xlane.xlu1 %5695 }
 0x64a   : > { %v10214_v53 = vsel %vm6625_vm7, %v5469_v52, %v5757_v18  ;;  %v5697_v39 = vcvt.f32.s32 %v5696_v28  ;;  %v10216_v57 = vcvt.s32.f32 %v5962_v4  ;;  %v5455_v18 = vand.u32 127, %v9946_v46 }
 0x64b   : > { %v5726_v4 = vcvt.f32.s32 %v10055_v5  ;;  %v5456_v5 = vand.u32 127, %v9963_v29 }
 0x64c   : > { %v5700_v14 = vadd.s32 %v5699_v11, %v5697_v39  ;;  %5965 = vmax.xlane.f32.xlu0 %v10216_v57  ;;  %v5471_v39 = vsub.s32 127, %v5455_v18 }
 0x64d   : > { %v5727_v25 = vshll.u32 %v5726_v4, 16 }
 0x64e   : > { %v5742_v15 = vand.u32 127, %v5700_v14  ;;  %vm5774_vm5 = vcmp.eq.s32.totalorder %v9939_v55, %v5700_v14 }
 0x64f   : > { %v10222_v63 = vsel %vm5774_vm5, 2147483648, %v9939_v55 }
 0x650   : > { %v5758_v34 = vsub.s32 127, %v5742_v15  ;;  %v5976_v49 = vshra.s32 %v10222_v63, 16 }
 0x652   : > { %v10226_v48 = vsel %vm6625_vm7, %v5470_v9, %v5758_v34  ;;  %v10228_v36 = vcvt.s32.f32 %v5976_v49 }
 0x654   : > { %5979 = vmax.xlane.f32.xlu1 %v10228_v36 }
 0x658   : > { %v5710_v20 = vpop.xlane.xlu2 %5709 }
 0x659   : > { %v5711_v52 = vcvt.f32.s32 %v5710_v20 }
 0x65b   : > { %v5714_v55 = vadd.s32 %v5713_v21, %v5711_v52  ;;  %v5472_v52 = vsub.s32 127, %v5456_v5 }
 0x65d   : > { %v5743_v28 = vand.u32 127, %v5714_v55  ;;  %vm5775_vm6 = vcmp.eq.s32.totalorder %v9953_v0, %v5714_v55 }
 0x65e   : > { %v10236_v11 = vsel %vm5775_vm6, 2147483648, %v9953_v0  ;;  %v5793_v0 = vand.u32 65535, %v10049_v12 }
 0x65f   : > { %v5759_v54 = vsub.s32 127, %v5743_v28  ;;  %v5990_v14 = vshra.s32 %v10236_v11, 16  ;;  %v10246_v60 = vpop.xlane.xlu1 %5797 }
 0x660   : > { %v5724_v15 = vpop.xlane.xlu0 %5723  ;;  %vm5799_vm9 = vcmp.eq.f32.partialorder %v10057_v16, %v10246_v60  ;;  %v5795_v55 = vcvt.s32.f32 %v5793_v0 }
 0x661   : > { %v10240_v9 = vsel %vm6625_vm7, %v5471_v39, %v5759_v54  ;;  %v10242_v34 = vcvt.s32.f32 %v5990_v14  ;;  %v5725_v46 = vcvt.f32.s32 %v5724_v15 }
 0x662   : > { %v5800_v39 = vsel %vm5799_vm9, %v5795_v55, -inf  ;;  %v5863_v55 = vand.u32 65535, %v10119_v6 }
 0x663   : > { %5993 = vmax.xlane.f32.xlu2 %v10242_v34  ;;  %v5728_v49 = vadd.s32 %v5727_v25, %v5725_v46  ;;  %v5821_v25 = vand.u32 65535, %v10070_v41  ;;  %v5835_v46 = vand.u32 65535, %v10093_v27 }
 0x665   : > { %v5744_v20 = vand.u32 127, %v5728_v49  ;;  %vm5776_vm8 = vcmp.eq.s32.totalorder %v9968_v37, %v5728_v49  ;;  %v5823_v49 = vcvt.s32.f32 %v5821_v25  ;;  %v5837_v0 = vcvt.s32.f32 %v5835_v46 }
 0x666   : > { %v10251_v21 = vsel %vm5776_vm8, 2147483648, %v9968_v37  ;;  %v5807_v37 = vand.u32 65535, %v10073_v26  ;;  %v5891_v46 = vand.u32 65535, %v10145_v58 }
 0x667   : > { %v5760_v18 = vsub.s32 127, %v5744_v20  ;;  %v6004_v29 = vshra.s32 %v10251_v21, 16 }
 0x668   : > { %v5809_v14 = vcvt.s32.f32 %v5807_v37  ;;  %v5865_v37 = vcvt.s32.f32 %v5863_v55 }
 0x669   : > { %v10257_v4 = vsel %vm6625_vm7, %v5472_v52, %v5760_v18  ;;  %v10259_v28 = vcvt.s32.f32 %v6004_v29  ;;  %v5849_v52 = vand.u32 65535, %v10106_v44 }
 0x66b   : > { %5801 = vmax.xlane.f32.xlu2 %v5800_v39  ;;  %6007 = vmax.xlane.f32.xlu0 %v10259_v28  ;;  %v5851_v29 = vcvt.s32.f32 %v5849_v52 }
 0x66f   : > { %v10267_v15 = vpop.xlane.xlu2 %5825 }
 0x670   : > { %v10263_v54 = vpop.xlane.xlu0 %5811  ;;  %vm5827_vm7 = vcmp.eq.f32.partialorder %v10080_v32, %v10267_v15 }
 0x671   : > { %vm5813_vm10 = vcmp.eq.f32.partialorder %v10085_v50, %v10263_v54  ;;  %v5828_v20 = vsel %vm5827_vm7, %v5823_v49, -inf }
 0x672   : > { %v5814_v16 = vsel %vm5813_vm10, %v5809_v14, -inf  ;;  %v5877_v14 = vand.u32 65535, %v10132_v51  ;;  %vm6642_vm10 = vcmask 15360  }
 0x673   : > { %5815 = vmax.xlane.f32.xlu1 %v5814_v16 }
 0x674   : > { %v5879_v25 = vcvt.s32.f32 %v5877_v14 }
 0x678   : > { %v10273_v5 = vpop.xlane.xlu0 %5839 }
 0x679   : > { %vm5841_vm11 = vcmp.eq.f32.partialorder %v10099_v13, %v10273_v5 }
 0x67a   : > { %v5842_v50 = vsel %vm5841_vm11, %v5837_v0, -inf  ;;  %v5893_v0 = vcvt.s32.f32 %v5891_v46 }
 0x67b   : > { %5829 = vmax.xlane.f32.xlu1 %v5828_v20  ;;  %5843 = vmax.xlane.f32.xlu2 %v5842_v50  ;;  %v5905_v20 = vand.u32 65535, %v10158_v8 }
 0x67d   : > { %v5907_v52 = vcvt.s32.f32 %v5905_v20 }
 0x67f   : > { %v10278_v18 = vpop.xlane.xlu1 %5853 }
 0x680   : > { %vm5855_vm12 = vcmp.eq.f32.partialorder %v10112_v2, %v10278_v18 }
 0x681   : > { %v5856_v32 = vsel %vm5855_vm12, %v5851_v29, -inf  ;;  %v5919_v29 = vand.u32 65535, %v10171_v35 }
 0x682   : > { %5857 = vmax.xlane.f32.xlu0 %v5856_v32 }
 0x683   : > { %v5921_v55 = vcvt.s32.f32 %v5919_v29 }
 0x687   : > { %v10283_v39 = vpop.xlane.xlu2 %5867 }
 0x688   : > { %vm5869_vm13 = vcmp.eq.f32.partialorder %v10125_v24, %v10283_v39 }
 0x689   : > { %v5870_v13 = vsel %vm5869_vm13, %v5865_v37, -inf  ;;  %v5933_v37 = vand.u32 65535, %v10184_v47 }
 0x68a   : > { %5871 = vmax.xlane.f32.xlu1 %v5870_v13 }
 0x68b   : > { %v5935_v14 = vcvt.s32.f32 %v5933_v37 }
 0x68f   : > { %v10288_v16 = vpop.xlane.xlu0 %5881 }
 0x690   : > { %vm5883_vm14 = vcmp.eq.f32.partialorder %v10138_v17, %v10288_v16 }
 0x691   : > { %v5884_v2 = vsel %vm5883_vm14, %v5879_v25, -inf  ;;  %v5947_v25 = vand.u32 65535, %v10197_v31 }
 0x692   : > { %5885 = vmax.xlane.f32.xlu2 %v5884_v2 }
 0x693   : > { %v5949_v46 = vcvt.s32.f32 %v5947_v25 }
 0x697   : > { %v10293_v49 = vpop.xlane.xlu1 %5895 }
 0x698   : > { %vm5897_vm15 = vcmp.eq.f32.partialorder %v10151_v61, %v10293_v49 }
 0x699   : > { %v5898_v24 = vsel %vm5897_vm15, %v5893_v0, -inf  ;;  %v5961_v0 = vand.u32 65535, %v10210_v56 }
 0x69a   : > { %5899 = vmax.xlane.f32.xlu0 %v5898_v24 }
 0x69b   : > { %v5963_v20 = vcvt.s32.f32 %v5961_v0 }
 0x69f   : > { %v10298_v50 = vpop.xlane.xlu2 %5909 }
 0x6a0   : > { %vm5911_vm0 = vcmp.eq.f32.partialorder %v10164_v42, %v10298_v50 }
 0x6a1   : > { %v5912_v17 = vsel %vm5911_vm0, %v5907_v52, -inf  ;;  %v5975_v52 = vand.u32 65535, %v10222_v63 }
 0x6a2   : > { %5913 = vmax.xlane.f32.xlu1 %v5912_v17 }
 0x6a3   : > { %v5977_v29 = vcvt.s32.f32 %v5975_v52 }
 0x6a7   : > { %v10303_v32 = vpop.xlane.xlu0 %5923 }
 0x6a8   : > { %vm5925_vm1 = vcmp.eq.f32.partialorder %v10177_v59, %v10303_v32 }
 0x6a9   : > { %v5926_v61 = vsel %vm5925_vm1, %v5921_v55, -inf  ;;  %v5989_v55 = vand.u32 65535, %v10236_v11 }
 0x6aa   : > { %5927 = vmax.xlane.f32.xlu2 %v5926_v61 }
 0x6ab   : > { %v5991_v37 = vcvt.s32.f32 %v5989_v55 }
 0x6af   : > { %v10308_v13 = vpop.xlane.xlu1 %5937 }
 0x6b0   : > { %vm5939_vm2 = vcmp.eq.f32.partialorder %v10190_v10, %v10308_v13 }
 0x6b1   : > { %v5940_v42 = vsel %vm5939_vm2, %v5935_v14, -inf  ;;  %v6003_v14 = vand.u32 65535, %v10251_v21 }
 0x6b2   : > { %5941 = vmax.xlane.f32.xlu0 %v5940_v42  ;;  %v5804_v42 = vcvt.f32.s32 %v10246_v60 }
 0x6b7   : > { %v10313_v2 = vpop.xlane.xlu2 %5951 }
 0x6b8   : > { %vm5953_vm3 = vcmp.eq.f32.partialorder %v10203_v62, %v10313_v2 }
 0x6b9   : > { %v5954_v59 = vsel %vm5953_vm3, %v5949_v46, -inf }
 0x6ba   : > { %5955 = vmax.xlane.f32.xlu1 %v5954_v59  ;;  %v5805_v59 = vshll.u32 %v5804_v42, 16  ;;  %v5832_v42 = vcvt.f32.s32 %v10267_v15 }
 0x6bf   : > { %v10318_v24 = vpop.xlane.xlu0 %5965 }
 0x6c0   : > { %vm5967_vm4 = vcmp.eq.f32.partialorder %v10216_v57, %v10318_v24 }
 0x6c1   : > { %v5968_v10 = vsel %vm5967_vm4, %v5963_v20, -inf }
 0x6c2   : > { %5969 = vmax.xlane.f32.xlu2 %v5968_v10 }
 0x6c7   : > { %v10323_v17 = vpop.xlane.xlu1 %5979 }
 0x6c8   : > { %vm5981_vm5 = vcmp.eq.f32.partialorder %v10228_v36, %v10323_v17  ;;  %v6005_v36 = vcvt.s32.f32 %v6003_v14 }
 0x6c9   : > { %v5982_v62 = vsel %vm5981_vm5, %v5977_v29, -inf }
 0x6ca   : > { %5983 = vmax.xlane.f32.xlu0 %v5982_v62 }
 0x6d6   : > { %v10328_v61 = vpop.xlane.xlu2 %5993 }
 0x6d7   : > { %vm5995_vm6 = vcmp.eq.f32.partialorder %v10242_v34, %v10328_v61  ;;  %v5818_v34 = vcvt.f32.s32 %v10263_v54 }
 0x6d8   : > { %v5996_v57 = vsel %vm5995_vm6, %v5991_v37, -inf }
 0x6d9   : > { %5997 = vmax.xlane.f32.xlu1 %v5996_v57  ;;  %v5819_v37 = vshll.u32 %v5818_v34, 16 }
 0x6de   : > { %v5802_v25 = vpop.xlane.xlu2 %5801  ;;  %v10334_v46 = vpop.xlane.xlu0 %6007 }
 0x6df   : > { %v5803_v0 = vcvt.f32.s32 %v5802_v25  ;;  %vm6009_vm8 = vcmp.eq.f32.partialorder %v10259_v28, %v10334_v46 }
 0x6e0   : > { %v6010_v20 = vsel %vm6009_vm8, %v6005_v36, -inf }
 0x6e1   : > { %v5806_v10 = vadd.s32 %v5805_v59, %v5803_v0  ;;  %6011 = vmax.xlane.f32.xlu2 %v6010_v20  ;;  %v5833_v0 = vshll.u32 %v5832_v42, 16 }
 0x6e3   : > { %v6017_v52 = vand.u32 127, %v5806_v10  ;;  %vm6049_vm9 = vcmp.eq.s32.totalorder %v10049_v12, %v5806_v10 }
 0x6e4   : > { %v10341_v60 = vsel %vm6049_vm9, 2147483648, %v10049_v12  ;;  %v5846_v12 = vcvt.f32.s32 %v10273_v5 }
 0x6e5   : > { %v6033_v29 = vsub.s32 127, %v6017_v52  ;;  %v6082_v62 = vshra.s32 %v10341_v60, 16 }
 0x6e6   : > { %v5816_v55 = vpop.xlane.xlu1 %5815  ;;  %v5847_v20 = vshll.u32 %v5846_v12, 16 }
 0x6e7   : > { %v10346_v28 = vsel %vm6642_vm10, %v10053_v7, %v6033_v29  ;;  %v10348_v57 = vcvt.s32.f32 %v6082_v62  ;;  %v5817_v14 = vcvt.f32.s32 %v5816_v55 }
 0x6e9   : > { %6085 = vmax.xlane.f32.xlu0 %v10348_v57  ;;  %v5820_v54 = vadd.s32 %v5819_v37, %v5817_v14 }
 0x6eb   : > { %v6018_v25 = vand.u32 127, %v5820_v54  ;;  %vm6050_vm7 = vcmp.eq.s32.totalorder %v10073_v26, %v5820_v54 }
 0x6ec   : > { %v10355_v36 = vsel %vm6050_vm7, 2147483648, %v10073_v26  ;;  %v5860_v26 = vcvt.f32.s32 %v10278_v18 }
 0x6ed   : > { %v6034_v59 = vsub.s32 127, %v6018_v25  ;;  %v6096_v7 = vshra.s32 %v10355_v36, 16 }
 0x6ee   : > { %v5830_v10 = vpop.xlane.xlu1 %5829  ;;  %v5844_v34 = vpop.xlane.xlu2 %5843  ;;  %v5861_v18 = vshll.u32 %v5860_v26, 16 }
 0x6ef   : > { %v10360_v52 = vsel %vm6642_vm10, %v10083_v33, %v6034_v59  ;;  %v5831_v15 = vcvt.f32.s32 %v5830_v10  ;;  %v5845_v29 = vcvt.f32.s32 %v5844_v34  ;;  %v10362_v5 = vcvt.s32.f32 %v6096_v7 }
 0x6f1   : > { %v5834_v62 = vadd.s32 %v5833_v0, %v5831_v15  ;;  %v5848_v55 = vadd.s32 %v5847_v20, %v5845_v29  ;;  %6099 = vmax.xlane.f32.xlu2 %v10362_v5  ;;  %v5874_v15 = vcvt.f32.s32 %v10283_v39  ;;  %v5888_v39 = vcvt.f32.s32 %v10288_v16 }
 0x6f2   : > { %v5902_v16 = vcvt.f32.s32 %v10293_v49  ;;  %v5916_v49 = vcvt.f32.s32 %v10298_v50  ;;  %v5930_v50 = vcvt.f32.s32 %v10303_v32  ;;  %v5944_v32 = vcvt.f32.s32 %v10308_v13 }
 0x6f3   : > { %v6019_v37 = vand.u32 127, %v5834_v62  ;;  %vm6051_vm11 = vcmp.eq.s32.totalorder %v10070_v41, %v5834_v62  ;;  %v6020_v14 = vand.u32 127, %v5848_v55  ;;  %vm6052_vm12 = vcmp.eq.s32.totalorder %v10093_v27, %v5848_v55 }
 0x6f4   : > { %v10369_v54 = vsel %vm6051_vm11, 2147483648, %v10070_v41  ;;  %v10372_v33 = vsel %vm6052_vm12, 2147483648, %v10093_v27  ;;  %v5875_v26 = vshll.u32 %v5874_v15, 16  ;;  %v5958_v13 = vcvt.f32.s32 %v10313_v2 }
 0x6f5   : > { %v6035_v42 = vsub.s32 127, %v6019_v37  ;;  %v6036_v12 = vsub.s32 127, %v6020_v14  ;;  %v5858_v25 = vpop.xlane.xlu0 %5857  ;;  %v6110_v59 = vshra.s32 %v10369_v54, 16  ;;  %v6124_v7 = vshra.s32 %v10372_v33, 16 }
 0x6f6   : > { %v5859_v0 = vcvt.f32.s32 %v5858_v25  ;;  %v5972_v2 = vcvt.f32.s32 %v10318_v24  ;;  %v5986_v24 = vcvt.f32.s32 %v10323_v17 }
 0x6f7   : > { %v10378_v20 = vsel %vm6642_vm10, %v10078_v45, %v6035_v42  ;;  %v10382_v41 = vsel %vm6642_vm10, %v10097_v30, %v6036_v12  ;;  %v10384_v10 = vcvt.s32.f32 %v6110_v59  ;;  %v10386_v27 = vcvt.s32.f32 %v6124_v7 }
 0x6f8   : > { %v5862_v34 = vadd.s32 %v5861_v18, %v5859_v0 }
 0x6f9   : > { %6113 = vmax.xlane.f32.xlu0 %v10384_v10  ;;  %6127 = vmax.xlane.f32.xlu1 %v10386_v27 }
 0x6fa   : > { %v6021_v29 = vand.u32 127, %v5862_v34  ;;  %vm6053_vm13 = vcmp.eq.s32.totalorder %v10106_v44, %v5862_v34 }
 0x6fb   : > { %v10393_v45 = vsel %vm6053_vm13, 2147483648, %v10106_v44 }
 0x6fc   : > { %v6037_v62 = vsub.s32 127, %v6021_v29  ;;  %v6138_v30 = vshra.s32 %v10393_v45, 16 }
 0x6fd   : > { %v5872_v55 = vpop.xlane.xlu1 %5871 }
 0x6fe   : > { %v10398_v37 = vsel %vm6642_vm10, %v10110_v22, %v6037_v62  ;;  %v5873_v14 = vcvt.f32.s32 %v5872_v55  ;;  %v10400_v42 = vcvt.s32.f32 %v6138_v30  ;;  %v5889_v22 = vshll.u32 %v5888_v39, 16 }
 0x700   : > { %v5876_v12 = vadd.s32 %v5875_v26, %v5873_v14  ;;  %6141 = vmax.xlane.f32.xlu2 %v10400_v42 }
 0x702   : > { %v6022_v25 = vand.u32 127, %v5876_v12  ;;  %vm6054_vm14 = vcmp.eq.s32.totalorder %v10119_v6, %v5876_v12 }
 0x703   : > { %v10406_v44 = vsel %vm6054_vm14, 2147483648, %v10119_v6 }
 0x704   : > { %v6038_v59 = vsub.s32 127, %v6022_v25  ;;  %v6152_v7 = vshra.s32 %v10406_v44, 16 }
 0x705   : > { %v5886_v18 = vpop.xlane.xlu2 %5885 }
 0x706   : > { %v10411_v0 = vsel %vm6642_vm10, %v10123_v43, %v6038_v59  ;;  %v5887_v34 = vcvt.f32.s32 %v5886_v18  ;;  %v10413_v15 = vcvt.s32.f32 %v6152_v7  ;;  %v5903_v43 = vshll.u32 %v5902_v16, 16 }
 0x708   : > { %v5890_v29 = vadd.s32 %v5889_v22, %v5887_v34  ;;  %6155 = vmax.xlane.f32.xlu0 %v10413_v15 }
 0x70a   : > { %v6023_v62 = vand.u32 127, %v5890_v29  ;;  %vm6055_vm15 = vcmp.eq.s32.totalorder %v10132_v51, %v5890_v29 }
 0x70b   : > { %v10419_v6 = vsel %vm6055_vm15, 2147483648, %v10132_v51 }
 0x70c   : > { %v6039_v30 = vsub.s32 127, %v6023_v62  ;;  %v6166_v55 = vshra.s32 %v10419_v6, 16 }
 0x70d   : > { %v5900_v26 = vpop.xlane.xlu0 %5899 }
 0x70e   : > { %v10424_v14 = vsel %vm6642_vm10, %v10136_v3, %v6039_v30  ;;  %v5901_v12 = vcvt.f32.s32 %v5900_v26  ;;  %v10426_v39 = vcvt.s32.f32 %v6166_v55  ;;  %v5917_v3 = vshll.u32 %v5916_v49, 16 }
 0x710   : > { %v5904_v25 = vadd.s32 %v5903_v43, %v5901_v12  ;;  %6169 = vmax.xlane.f32.xlu1 %v10426_v39 }
 0x712   : > { %v6024_v59 = vand.u32 127, %v5904_v25  ;;  %vm6056_vm0 = vcmp.eq.s32.totalorder %v10145_v58, %v5904_v25 }
 0x713   : > { %v10432_v51 = vsel %vm6056_vm0, 2147483648, %v10145_v58 }
 0x714   : > { %v6040_v7 = vsub.s32 127, %v6024_v59  ;;  %v6180_v18 = vshra.s32 %v10432_v51, 16 }
 0x715   : > { %v5914_v22 = vpop.xlane.xlu1 %5913 }
 0x716   : > { %v10437_v34 = vsel %vm6642_vm10, %v10149_v19, %v6040_v7  ;;  %v5915_v29 = vcvt.f32.s32 %v5914_v22  ;;  %v10439_v16 = vcvt.s32.f32 %v6180_v18  ;;  %v5931_v19 = vshll.u32 %v5930_v50, 16 }
 0x718   : > { %v5918_v62 = vadd.s32 %v5917_v3, %v5915_v29  ;;  %6183 = vmax.xlane.f32.xlu2 %v10439_v16 }
 0x71a   : > { %v6025_v30 = vand.u32 127, %v5918_v62  ;;  %vm6057_vm1 = vcmp.eq.s32.totalorder %v10158_v8, %v5918_v62 }
 0x71b   : > { %v10445_v58 = vsel %vm6057_vm1, 2147483648, %v10158_v8 }
 0x71c   : > { %v6041_v55 = vsub.s32 127, %v6025_v30  ;;  %v6194_v26 = vshra.s32 %v10445_v58, 16 }
 0x71d   : > { %v5928_v43 = vpop.xlane.xlu2 %5927 }
 0x71e   : > { %v10450_v12 = vsel %vm6642_vm10, %v10162_v40, %v6041_v55  ;;  %v5929_v25 = vcvt.f32.s32 %v5928_v43  ;;  %v10452_v49 = vcvt.s32.f32 %v6194_v26  ;;  %v5945_v40 = vshll.u32 %v5944_v32, 16 }
 0x720   : > { %v5932_v59 = vadd.s32 %v5931_v19, %v5929_v25  ;;  %6197 = vmax.xlane.f32.xlu0 %v10452_v49 }
 0x722   : > { %v6026_v7 = vand.u32 127, %v5932_v59  ;;  %vm6058_vm2 = vcmp.eq.s32.totalorder %v10171_v35, %v5932_v59 }
 0x723   : > { %v10458_v8 = vsel %vm6058_vm2, 2147483648, %v10171_v35 }
 0x724   : > { %v6042_v18 = vsub.s32 127, %v6026_v7  ;;  %v6208_v22 = vshra.s32 %v10458_v8, 16 }
 0x725   : > { %v5942_v3 = vpop.xlane.xlu0 %5941 }
 0x726   : > { %v10463_v29 = vsel %vm6642_vm10, %v10175_v38, %v6042_v18  ;;  %v5943_v62 = vcvt.f32.s32 %v5942_v3  ;;  %v10465_v50 = vcvt.s32.f32 %v6208_v22  ;;  %v5959_v38 = vshll.u32 %v5958_v13, 16 }
 0x728   : > { %v5946_v30 = vadd.s32 %v5945_v40, %v5943_v62  ;;  %6211 = vmax.xlane.f32.xlu1 %v10465_v50 }
 0x72a   : > { %v6027_v55 = vand.u32 127, %v5946_v30  ;;  %vm6059_vm3 = vcmp.eq.s32.totalorder %v10184_v47, %v5946_v30 }
 0x72b   : > { %v10471_v35 = vsel %vm6059_vm3, 2147483648, %v10184_v47 }
 0x72c   : > { %v6043_v26 = vsub.s32 127, %v6027_v55  ;;  %v6222_v43 = vshra.s32 %v10471_v35, 16 }
 0x72d   : > { %v5956_v19 = vpop.xlane.xlu1 %5955 }
 0x72e   : > { %v10476_v25 = vsel %vm6642_vm10, %v10188_v23, %v6043_v26  ;;  %v5957_v59 = vcvt.f32.s32 %v5956_v19  ;;  %v10478_v32 = vcvt.s32.f32 %v6222_v43  ;;  %v5973_v23 = vshll.u32 %v5972_v2, 16 }
 0x730   : > { %v5960_v7 = vadd.s32 %v5959_v38, %v5957_v59  ;;  %6225 = vmax.xlane.f32.xlu2 %v10478_v32 }
 0x732   : > { %v6028_v18 = vand.u32 127, %v5960_v7  ;;  %vm6060_vm4 = vcmp.eq.s32.totalorder %v10197_v31, %v5960_v7 }
 0x733   : > { %v10484_v47 = vsel %vm6060_vm4, 2147483648, %v10197_v31 }
 0x734   : > { %v6044_v22 = vsub.s32 127, %v6028_v18  ;;  %v6236_v3 = vshra.s32 %v10484_v47, 16 }
 0x735   : > { %v5970_v40 = vpop.xlane.xlu2 %5969 }
 0x736   : > { %v10489_v62 = vsel %vm6642_vm10, %v10201_v1, %v6044_v22  ;;  %v5971_v30 = vcvt.f32.s32 %v5970_v40  ;;  %v10491_v13 = vcvt.s32.f32 %v6236_v3  ;;  %v5987_v1 = vshll.u32 %v5986_v24, 16 }
 0x738   : > { %v5974_v55 = vadd.s32 %v5973_v23, %v5971_v30  ;;  %6239 = vmax.xlane.f32.xlu0 %v10491_v13  ;;  %v6000_v23 = vcvt.f32.s32 %v10328_v61 }
 0x73a   : > { %v6029_v26 = vand.u32 127, %v5974_v55  ;;  %vm6061_vm5 = vcmp.eq.s32.totalorder %v10210_v56, %v5974_v55  ;;  %v6001_v55 = vshll.u32 %v6000_v23, 16 }
 0x73b   : > { %v10497_v31 = vsel %vm6061_vm5, 2147483648, %v10210_v56 }
 0x73c   : > { %v6045_v43 = vsub.s32 127, %v6029_v26  ;;  %v6250_v19 = vshra.s32 %v10497_v31, 16 }
 0x73d   : > { %v5984_v38 = vpop.xlane.xlu0 %5983 }
 0x73e   : > { %v10502_v59 = vsel %vm6642_vm10, %v10214_v53, %v6045_v43  ;;  %v5985_v7 = vcvt.f32.s32 %v5984_v38  ;;  %v10504_v2 = vcvt.s32.f32 %v6250_v19 }
 0x740   : > { %v5988_v18 = vadd.s32 %v5987_v1, %v5985_v7  ;;  %6253 = vmax.xlane.f32.xlu1 %v10504_v2 }
 0x742   : > { %v6030_v17 = vand.u32 127, %v5988_v18  ;;  %vm6062_vm6 = vcmp.eq.s32.totalorder %v10222_v63, %v5988_v18 }
 0x743   : > { %v10509_v56 = vsel %vm6062_vm6, 2147483648, %v10222_v63  ;;  %v6014_v63 = vcvt.f32.s32 %v10334_v46 }
 0x744   : > { %v6046_v22 = vsub.s32 127, %v6030_v17  ;;  %v6264_v3 = vshra.s32 %v10509_v56, 16 }
 0x745   : > { %v6015_v7 = vshll.u32 %v6014_v63, 16 }
 0x746   : > { %v10514_v40 = vsel %vm6642_vm10, %v10226_v48, %v6046_v22  ;;  %v10516_v53 = vcvt.s32.f32 %v6264_v3  ;;  %v6081_v22 = vand.u32 65535, %v10341_v60 }
 0x748   : > { %6267 = vmax.xlane.f32.xlu2 %v10516_v53 }
 0x74c   : > { %v5998_v30 = vpop.xlane.xlu1 %5997 }
 0x74d   : > { %v5999_v24 = vcvt.f32.s32 %v5998_v30  ;;  %v6083_v30 = vcvt.s32.f32 %v6081_v22 }
 0x74f   : > { %v6002_v26 = vadd.s32 %v6001_v55, %v5999_v24 }
 0x751   : > { %v6031_v43 = vand.u32 127, %v6002_v26  ;;  %vm6063_vm8 = vcmp.eq.s32.totalorder %v10236_v11, %v6002_v26  ;;  %v6095_v26 = vand.u32 65535, %v10355_v36 }
 0x752   : > { %v10523_v19 = vsel %vm6063_vm8, 2147483648, %v10236_v11 }
 0x753   : > { %v6047_v48 = vsub.s32 127, %v6031_v43  ;;  %v6278_v38 = vshra.s32 %v10523_v19, 16 }
 0x754   : > { %v6012_v1 = vpop.xlane.xlu2 %6011 }
 0x755   : > { %v10528_v61 = vsel %vm6642_vm10, %v10240_v9, %v6047_v48  ;;  %v10530_v18 = vcvt.s32.f32 %v6278_v38  ;;  %v6013_v17 = vcvt.f32.s32 %v6012_v1  ;;  %v6097_v48 = vcvt.s32.f32 %v6095_v26 }
 0x756   : > { %v6151_v26 = vand.u32 65535, %v10406_v44 }
 0x757   : > { %6281 = vmax.xlane.f32.xlu0 %v10530_v18  ;;  %v6016_v46 = vadd.s32 %v6015_v7, %v6013_v17 }
 0x759   : > { %v6032_v3 = vand.u32 127, %v6016_v46  ;;  %vm6064_vm9 = vcmp.eq.s32.totalorder %v10251_v21, %v6016_v46 }
 0x75a   : > { %v10544_v9 = vsel %vm6064_vm9, 2147483648, %v10251_v21  ;;  %v6123_v21 = vand.u32 65535, %v10372_v33 }
 0x75b   : > { %v6048_v11 = vsub.s32 127, %v6032_v3  ;;  %v6292_v63 = vshra.s32 %v10544_v9, 16  ;;  %v6137_v3 = vand.u32 65535, %v10393_v45 }
 0x75c   : > { %v10535_v23 = vpop.xlane.xlu0 %6085  ;;  %v6125_v17 = vcvt.s32.f32 %v6123_v21 }
 0x75d   : > { %v10539_v55 = vsel %vm6642_vm10, %v10257_v4, %v6048_v11  ;;  %vm6087_vm7 = vcmp.eq.f32.partialorder %v10348_v57, %v10535_v23  ;;  %v10550_v38 = vcvt.s32.f32 %v6292_v63  ;;  %v6109_v57 = vand.u32 65535, %v10369_v54 }
 0x75e   : > { %v6088_v24 = vsel %vm6087_vm7, %v6083_v30, -inf  ;;  %v6139_v30 = vcvt.s32.f32 %v6137_v3  ;;  %v6153_v63 = vcvt.s32.f32 %v6151_v26  ;;  %vm6659_vm7 = vcmask 23552  }
 0x75f   : > { %6089 = vmax.xlane.f32.xlu1 %v6088_v24  ;;  %v6111_v46 = vcvt.s32.f32 %v6109_v57  ;;  %v6179_v57 = vand.u32 65535, %v10432_v51 }
 0x764   : > { %v10548_v43 = vpop.xlane.xlu2 %6099 }
 0x765   : > { %vm6101_vm10 = vcmp.eq.f32.partialorder %v10362_v5, %v10548_v43 }
 0x766   : > { %v6102_v4 = vsel %vm6101_vm10, %v6097_v48, -inf  ;;  %v6165_v48 = vand.u32 65535, %v10419_v6 }
 0x767   : > { %6295 = vmax.xlane.f32.xlu1 %v10550_v38  ;;  %6103 = vmax.xlane.f32.xlu2 %v6102_v4 }
 0x768   : > { %v6167_v21 = vcvt.s32.f32 %v6165_v48 }
 0x76c   : > { %v10557_v1 = vpop.xlane.xlu1 %6127  ;;  %v10559_v7 = vpop.xlane.xlu0 %6113 }
 0x76d   : > { %vm6129_vm11 = vcmp.eq.f32.partialorder %v10386_v27, %v10557_v1  ;;  %vm6115_vm12 = vcmp.eq.f32.partialorder %v10384_v10, %v10559_v7 }
 0x76e   : > { %v6130_v5 = vsel %vm6129_vm11, %v6125_v17, -inf  ;;  %v6116_v22 = vsel %vm6115_vm12, %v6111_v46, -inf  ;;  %v6181_v46 = vcvt.s32.f32 %v6179_v57 }
 0x76f   : > { %6131 = vmax.xlane.f32.xlu1 %v6130_v5  ;;  %6117 = vmax.xlane.f32.xlu0 %v6116_v22  ;;  %v6193_v5 = vand.u32 65535, %v10445_v58 }
 0x771   : > { %v6195_v3 = vcvt.s32.f32 %v6193_v5 }
 0x773   : > { %v10566_v11 = vpop.xlane.xlu2 %6141 }
 0x774   : > { %vm6143_vm13 = vcmp.eq.f32.partialorder %v10400_v42, %v10566_v11 }
 0x775   : > { %v6144_v24 = vsel %vm6143_vm13, %v6139_v30, -inf  ;;  %v6207_v30 = vand.u32 65535, %v10458_v8 }
 0x776   : > { %6145 = vmax.xlane.f32.xlu2 %v6144_v24 }
 0x777   : > { %v6209_v26 = vcvt.s32.f32 %v6207_v30 }
 0x77b   : > { %v10571_v27 = vpop.xlane.xlu0 %6155 }
 0x77c   : > { %vm6157_vm14 = vcmp.eq.f32.partialorder %v10413_v15, %v10571_v27 }
 0x77d   : > { %v6158_v10 = vsel %vm6157_vm14, %v6153_v63, -inf  ;;  %v6221_v63 = vand.u32 65535, %v10471_v35 }
 0x77e   : > { %6159 = vmax.xlane.f32.xlu0 %v6158_v10 }
 0x77f   : > { %v6223_v48 = vcvt.s32.f32 %v6221_v63 }
 0x783   : > { %v10576_v4 = vpop.xlane.xlu1 %6169 }
 0x784   : > { %vm6171_vm15 = vcmp.eq.f32.partialorder %v10426_v39, %v10576_v4 }
 0x785   : > { %v6172_v42 = vsel %vm6171_vm15, %v6167_v21, -inf  ;;  %v6235_v21 = vand.u32 65535, %v10484_v47 }
 0x786   : > { %6173 = vmax.xlane.f32.xlu1 %v6172_v42 }
 0x787   : > { %v6237_v57 = vcvt.s32.f32 %v6235_v21 }
 0x78b   : > { %v10581_v17 = vpop.xlane.xlu2 %6183 }
 0x78c   : > { %vm6185_vm0 = vcmp.eq.f32.partialorder %v10439_v16, %v10581_v17 }
 0x78d   : > { %v6186_v15 = vsel %vm6185_vm0, %v6181_v46, -inf  ;;  %v6249_v46 = vand.u32 65535, %v10497_v31 }
 0x78e   : > { %6187 = vmax.xlane.f32.xlu2 %v6186_v15 }
 0x78f   : > { %v6251_v5 = vcvt.s32.f32 %v6249_v46 }
 0x793   : > { %v10586_v22 = vpop.xlane.xlu0 %6197 }
 0x794   : > { %vm6199_vm1 = vcmp.eq.f32.partialorder %v10452_v49, %v10586_v22 }
 0x795   : > { %v6200_v39 = vsel %vm6199_vm1, %v6195_v3, -inf  ;;  %v6263_v3 = vand.u32 65535, %v10509_v56 }
 0x796   : > { %6201 = vmax.xlane.f32.xlu0 %v6200_v39 }
 0x797   : > { %v6265_v30 = vcvt.s32.f32 %v6263_v3 }
 0x79b   : > { %v10591_v24 = vpop.xlane.xlu1 %6211 }
 0x79c   : > { %vm6213_vm2 = vcmp.eq.f32.partialorder %v10465_v50, %v10591_v24 }
 0x79d   : > { %v6214_v16 = vsel %vm6213_vm2, %v6209_v26, -inf  ;;  %v6277_v26 = vand.u32 65535, %v10523_v19 }
 0x79e   : > { %6215 = vmax.xlane.f32.xlu1 %v6214_v16 }
 0x79f   : > { %v6279_v63 = vcvt.s32.f32 %v6277_v26 }
 0x7a3   : > { %v10596_v10 = vpop.xlane.xlu2 %6225 }
 0x7a4   : > { %vm6227_vm3 = vcmp.eq.f32.partialorder %v10478_v32, %v10596_v10 }
 0x7a5   : > { %v6228_v49 = vsel %vm6227_vm3, %v6223_v48, -inf  ;;  %v6092_v48 = vcvt.f32.s32 %v10535_v23 }
 0x7a6   : > { %6229 = vmax.xlane.f32.xlu2 %v6228_v49 }
 0x7a7   : > { %v6093_v21 = vshll.u32 %v6092_v48, 16 }
 0x7ab   : > { %v10601_v42 = vpop.xlane.xlu0 %6239 }
 0x7ac   : > { %vm6241_vm4 = vcmp.eq.f32.partialorder %v10491_v13, %v10601_v42 }
 0x7ad   : > { %v6242_v50 = vsel %vm6241_vm4, %v6237_v57, -inf }
 0x7ae   : > { %6243 = vmax.xlane.f32.xlu0 %v6242_v50 }
 0x7b3   : > { %v10606_v15 = vpop.xlane.xlu1 %6253 }
 0x7b4   : > { %vm6255_vm5 = vcmp.eq.f32.partialorder %v10504_v2, %v10606_v15 }
 0x7b5   : > { %v6256_v32 = vsel %vm6255_vm5, %v6251_v5, -inf  ;;  %v6106_v5 = vcvt.f32.s32 %v10548_v43 }
 0x7b6   : > { %6257 = vmax.xlane.f32.xlu1 %v6256_v32 }
 0x7b7   : > { %v6107_v43 = vshll.u32 %v6106_v5, 16 }
 0x7bb   : > { %v10611_v39 = vpop.xlane.xlu2 %6267 }
 0x7bc   : > { %vm6269_vm6 = vcmp.eq.f32.partialorder %v10516_v53, %v10611_v39  ;;  %v6291_v53 = vand.u32 65535, %v10544_v9 }
 0x7bd   : > { %v6270_v13 = vsel %vm6269_vm6, %v6265_v30, -inf }
 0x7be   : > { %6271 = vmax.xlane.f32.xlu2 %v6270_v13  ;;  %v6293_v23 = vcvt.s32.f32 %v6291_v53 }
 0x7ca   : > { %v10616_v16 = vpop.xlane.xlu0 %6281 }
 0x7cb   : > { %vm6283_vm8 = vcmp.eq.f32.partialorder %v10530_v18, %v10616_v16 }
 0x7cc   : > { %v6284_v2 = vsel %vm6283_vm8, %v6279_v63, -inf }
 0x7cd   : > { %6285 = vmax.xlane.f32.xlu0 %v6284_v2 }
 0x7d2   : > { %v6090_v49 = vpop.xlane.xlu1 %6089 }
 0x7d3   : > { %v6091_v57 = vcvt.f32.s32 %v6090_v49  ;;  %v6134_v49 = vcvt.f32.s32 %v10557_v1 }
 0x7d5   : > { %v6094_v50 = vadd.s32 %v6093_v21, %v6091_v57  ;;  %v6120_v21 = vcvt.f32.s32 %v10559_v7  ;;  %v6135_v5 = vshll.u32 %v6134_v49, 16 }
 0x7d7   : > { %v6305_v46 = vand.u32 127, %v6094_v50  ;;  %vm6337_vm9 = vcmp.eq.s32.totalorder %v10341_v60, %v6094_v50 }
 0x7d8   : > { %v10625_v32 = vsel %vm6337_vm9, 2147483648, %v10341_v60 }
 0x7d9   : > { %v6321_v18 = vsub.s32 127, %v6305_v46  ;;  %v6370_v3 = vshra.s32 %v10625_v32, 16 }
 0x7da   : > { %v10628_v30 = vpop.xlane.xlu1 %6295  ;;  %v6104_v13 = vpop.xlane.xlu2 %6103 }
 0x7db   : > { %v10632_v26 = vsel %vm6659_vm7, %v10346_v28, %v6321_v18  ;;  %v10634_v63 = vcvt.s32.f32 %v6370_v3  ;;  %vm6297_vm10 = vcmp.eq.f32.partialorder %v10550_v38, %v10628_v30  ;;  %v6105_v60 = vcvt.f32.s32 %v6104_v13 }
 0x7dc   : > { %v6298_v2 = vsel %vm6297_vm10, %v6293_v23, -inf  ;;  %v6121_v18 = vshll.u32 %v6120_v21, 16 }
 0x7dd   : > { %6373 = vmax.xlane.f32.xlu2 %v10634_v63  ;;  %6299 = vmax.xlane.f32.xlu1 %v6298_v2  ;;  %v6108_v48 = vadd.s32 %v6107_v43, %v6105_v60 }
 0x7df   : > { %v6306_v57 = vand.u32 127, %v6108_v48  ;;  %vm6338_vm11 = vcmp.eq.s32.totalorder %v10355_v36, %v6108_v48 }
 0x7e0   : > { %v10643_v28 = vsel %vm6338_vm11, 2147483648, %v10355_v36  ;;  %v6148_v36 = vcvt.f32.s32 %v10566_v11 }
 0x7e1   : > { %v6322_v50 = vsub.s32 127, %v6306_v57  ;;  %v6384_v46 = vshra.s32 %v10643_v28, 16 }
 0x7e2   : > { %v6132_v53 = vpop.xlane.xlu1 %6131  ;;  %v6118_v38 = vpop.xlane.xlu0 %6117  ;;  %v6149_v11 = vshll.u32 %v6148_v36, 16 }
 0x7e3   : > { %v6133_v3 = vcvt.f32.s32 %v6132_v53  ;;  %v6119_v23 = vcvt.f32.s32 %v6118_v38  ;;  %v10648_v1 = vsel %vm6659_vm7, %v10360_v52, %v6322_v50  ;;  %v10650_v7 = vcvt.s32.f32 %v6384_v46 }
 0x7e5   : > { %v6136_v13 = vadd.s32 %v6135_v5, %v6133_v3  ;;  %v6122_v43 = vadd.s32 %v6121_v18, %v6119_v23  ;;  %6387 = vmax.xlane.f32.xlu1 %v10650_v7  ;;  %v6162_v3 = vcvt.f32.s32 %v10571_v27 }
 0x7e7   : > { %v6308_v2 = vand.u32 127, %v6136_v13  ;;  %v6307_v60 = vand.u32 127, %v6122_v43  ;;  %vm6340_vm12 = vcmp.eq.s32.totalorder %v10372_v33, %v6136_v13  ;;  %vm6339_vm13 = vcmp.eq.s32.totalorder %v10369_v54, %v6122_v43 }
 0x7e8   : > { %v10657_v48 = vsel %vm6340_vm12, 2147483648, %v10372_v33  ;;  %v10660_v52 = vsel %vm6339_vm13, 2147483648, %v10369_v54  ;;  %v6163_v36 = vshll.u32 %v6162_v3, 16 }
 0x7e9   : > { %v6324_v49 = vsub.s32 127, %v6308_v2  ;;  %v6323_v21 = vsub.s32 127, %v6307_v60  ;;  %v6146_v57 = vpop.xlane.xlu2 %6145  ;;  %v6412_v50 = vshra.s32 %v10657_v48, 16  ;;  %v6398_v38 = vshra.s32 %v10660_v52, 16 }
 0x7ea   : > { %v6147_v53 = vcvt.f32.s32 %v6146_v57 }
 0x7eb   : > { %v10666_v46 = vsel %vm6659_vm7, %v10382_v41, %v6324_v49  ;;  %v10670_v33 = vsel %vm6659_vm7, %v10378_v20, %v6323_v21  ;;  %v10672_v5 = vcvt.s32.f32 %v6412_v50  ;;  %v10674_v18 = vcvt.s32.f32 %v6398_v38 }
 0x7ec   : > { %v6150_v54 = vadd.s32 %v6149_v11, %v6147_v53  ;;  %v6176_v21 = vcvt.f32.s32 %v10576_v4  ;;  %v6190_v4 = vcvt.f32.s32 %v10581_v17  ;;  %v6204_v17 = vcvt.f32.s32 %v10586_v22 }
 0x7ed   : > { %6415 = vmax.xlane.f32.xlu0 %v10672_v5  ;;  %6401 = vmax.xlane.f32.xlu2 %v10674_v18  ;;  %v6218_v22 = vcvt.f32.s32 %v10591_v24  ;;  %v6232_v24 = vcvt.f32.s32 %v10596_v10  ;;  %v6246_v10 = vcvt.f32.s32 %v10601_v42  ;;  %v6260_v42 = vcvt.f32.s32 %v10606_v15 }
 0x7ee   : > { %v6309_v23 = vand.u32 127, %v6150_v54  ;;  %vm6341_vm14 = vcmp.eq.s32.totalorder %v10393_v45, %v6150_v54  ;;  %v6274_v15 = vcvt.f32.s32 %v10611_v39 }
 0x7ef   : > { %v10681_v41 = vsel %vm6341_vm14, 2147483648, %v10393_v45 }
 0x7f0   : > { %v6325_v13 = vsub.s32 127, %v6309_v23  ;;  %v6426_v20 = vshra.s32 %v10681_v41, 16 }
 0x7f1   : > { %v6160_v43 = vpop.xlane.xlu0 %6159 }
 0x7f2   : > { %v10686_v2 = vsel %vm6659_vm7, %v10398_v37, %v6325_v13  ;;  %v6161_v60 = vcvt.f32.s32 %v6160_v43  ;;  %v10688_v49 = vcvt.s32.f32 %v6426_v20  ;;  %v6177_v37 = vshll.u32 %v6176_v21, 16 }
 0x7f4   : > { %v6164_v27 = vadd.s32 %v6163_v36, %v6161_v60  ;;  %6429 = vmax.xlane.f32.xlu1 %v10688_v49 }
 0x7f6   : > { %v6310_v57 = vand.u32 127, %v6164_v27  ;;  %vm6342_vm15 = vcmp.eq.s32.totalorder %v10406_v44, %v6164_v27 }
 0x7f7   : > { %v10694_v45 = vsel %vm6342_vm15, 2147483648, %v10406_v44 }
 0x7f8   : > { %v6326_v50 = vsub.s32 127, %v6310_v57  ;;  %v6440_v11 = vshra.s32 %v10694_v45, 16 }
 0x7f9   : > { %v6174_v53 = vpop.xlane.xlu1 %6173 }
 0x7fa   : > { %v10699_v38 = vsel %vm6659_vm7, %v10411_v0, %v6326_v50  ;;  %v6175_v54 = vcvt.f32.s32 %v6174_v53  ;;  %v10701_v3 = vcvt.s32.f32 %v6440_v11  ;;  %v6191_v0 = vshll.u32 %v6190_v4, 16 }
 0x7fc   : > { %v6178_v23 = vadd.s32 %v6177_v37, %v6175_v54  ;;  %6443 = vmax.xlane.f32.xlu2 %v10701_v3 }
 0x7fe   : > { %v6311_v13 = vand.u32 127, %v6178_v23  ;;  %vm6343_vm0 = vcmp.eq.s32.totalorder %v10419_v6, %v6178_v23 }
 0x7ff   : > { %v10707_v44 = vsel %vm6343_vm0, 2147483648, %v10419_v6 }
 0x800   : > { %v6327_v20 = vsub.s32 127, %v6311_v13  ;;  %v6454_v43 = vshra.s32 %v10707_v44, 16 }
 0x801   : > { %v6188_v36 = vpop.xlane.xlu2 %6187 }
 0x802   : > { %v10712_v60 = vsel %vm6659_vm7, %v10424_v14, %v6327_v20  ;;  %v6189_v27 = vcvt.f32.s32 %v6188_v36  ;;  %v10714_v21 = vcvt.s32.f32 %v6454_v43  ;;  %v6205_v14 = vshll.u32 %v6204_v17, 16 }
 0x804   : > { %v6192_v57 = vadd.s32 %v6191_v0, %v6189_v27  ;;  %6457 = vmax.xlane.f32.xlu0 %v10714_v21 }
 0x806   : > { %v6312_v50 = vand.u32 127, %v6192_v57  ;;  %vm6344_vm1 = vcmp.eq.s32.totalorder %v10432_v51, %v6192_v57 }
 0x807   : > { %v10720_v6 = vsel %vm6344_vm1, 2147483648, %v10432_v51 }
 0x808   : > { %v6328_v11 = vsub.s32 127, %v6312_v50  ;;  %v6468_v53 = vshra.s32 %v10720_v6, 16 }
 0x809   : > { %v6202_v37 = vpop.xlane.xlu0 %6201 }
 0x80a   : > { %v10725_v54 = vsel %vm6659_vm7, %v10437_v34, %v6328_v11  ;;  %v6203_v23 = vcvt.f32.s32 %v6202_v37  ;;  %v10727_v4 = vcvt.s32.f32 %v6468_v53  ;;  %v6219_v34 = vshll.u32 %v6218_v22, 16 }
 0x80c   : > { %v6206_v13 = vadd.s32 %v6205_v14, %v6203_v23  ;;  %6471 = vmax.xlane.f32.xlu1 %v10727_v4 }
 0x80e   : > { %v6313_v20 = vand.u32 127, %v6206_v13  ;;  %vm6345_vm2 = vcmp.eq.s32.totalorder %v10445_v58, %v6206_v13 }
 0x80f   : > { %v10733_v51 = vsel %vm6345_vm2, 2147483648, %v10445_v58 }
 0x810   : > { %v6329_v43 = vsub.s32 127, %v6313_v20  ;;  %v6482_v36 = vshra.s32 %v10733_v51, 16 }
 0x811   : > { %v6216_v0 = vpop.xlane.xlu1 %6215 }
 0x812   : > { %v10738_v27 = vsel %vm6659_vm7, %v10450_v12, %v6329_v43  ;;  %v6217_v57 = vcvt.f32.s32 %v6216_v0  ;;  %v10740_v17 = vcvt.s32.f32 %v6482_v36  ;;  %v6233_v12 = vshll.u32 %v6232_v24, 16 }
 0x814   : > { %v6220_v50 = vadd.s32 %v6219_v34, %v6217_v57  ;;  %6485 = vmax.xlane.f32.xlu2 %v10740_v17 }
 0x816   : > { %v6314_v11 = vand.u32 127, %v6220_v50  ;;  %vm6346_vm3 = vcmp.eq.s32.totalorder %v10458_v8, %v6220_v50 }
 0x817   : > { %v10746_v58 = vsel %vm6346_vm3, 2147483648, %v10458_v8 }
 0x818   : > { %v6330_v53 = vsub.s32 127, %v6314_v11  ;;  %v6496_v37 = vshra.s32 %v10746_v58, 16 }
 0x819   : > { %v6230_v14 = vpop.xlane.xlu2 %6229 }
 0x81a   : > { %v10751_v23 = vsel %vm6659_vm7, %v10463_v29, %v6330_v53  ;;  %v6231_v13 = vcvt.f32.s32 %v6230_v14  ;;  %v10753_v22 = vcvt.s32.f32 %v6496_v37  ;;  %v6247_v29 = vshll.u32 %v6246_v10, 16 }
 0x81c   : > { %v6234_v20 = vadd.s32 %v6233_v12, %v6231_v13  ;;  %6499 = vmax.xlane.f32.xlu0 %v10753_v22 }
 0x81e   : > { %v6315_v43 = vand.u32 127, %v6234_v20  ;;  %vm6347_vm4 = vcmp.eq.s32.totalorder %v10471_v35, %v6234_v20 }
 0x81f   : > { %v10759_v8 = vsel %vm6347_vm4, 2147483648, %v10471_v35 }
 0x820   : > { %v6331_v36 = vsub.s32 127, %v6315_v43  ;;  %v6510_v0 = vshra.s32 %v10759_v8, 16 }
 0x821   : > { %v6244_v34 = vpop.xlane.xlu0 %6243 }
 0x822   : > { %v10764_v57 = vsel %vm6659_vm7, %v10476_v25, %v6331_v36  ;;  %v6245_v50 = vcvt.f32.s32 %v6244_v34  ;;  %v10766_v24 = vcvt.s32.f32 %v6510_v0  ;;  %v6261_v25 = vshll.u32 %v6260_v42, 16 }
 0x824   : > { %v6248_v11 = vadd.s32 %v6247_v29, %v6245_v50  ;;  %6513 = vmax.xlane.f32.xlu1 %v10766_v24 }
 0x826   : > { %v6316_v53 = vand.u32 127, %v6248_v11  ;;  %vm6348_vm5 = vcmp.eq.s32.totalorder %v10484_v47, %v6248_v11 }
 0x827   : > { %v10772_v35 = vsel %vm6348_vm5, 2147483648, %v10484_v47 }
 0x828   : > { %v6332_v37 = vsub.s32 127, %v6316_v53  ;;  %v6524_v14 = vshra.s32 %v10772_v35, 16 }
 0x829   : > { %v6258_v12 = vpop.xlane.xlu1 %6257 }
 0x82a   : > { %v10777_v13 = vsel %vm6659_vm7, %v10489_v62, %v6332_v37  ;;  %v6259_v20 = vcvt.f32.s32 %v6258_v12  ;;  %v10779_v10 = vcvt.s32.f32 %v6524_v14  ;;  %v6275_v62 = vshll.u32 %v6274_v15, 16 }
 0x82c   : > { %v6262_v43 = vadd.s32 %v6261_v25, %v6259_v20  ;;  %6527 = vmax.xlane.f32.xlu2 %v10779_v10  ;;  %v6288_v25 = vcvt.f32.s32 %v10616_v16  ;;  %v6369_v16 = vand.u32 65535, %v10625_v32 }
 0x82e   : > { %v6317_v36 = vand.u32 127, %v6262_v43  ;;  %vm6349_vm6 = vcmp.eq.s32.totalorder %v10497_v31, %v6262_v43  ;;  %v6289_v43 = vshll.u32 %v6288_v25, 16 }
 0x82f   : > { %v10785_v47 = vsel %vm6349_vm6, 2147483648, %v10497_v31 }
 0x830   : > { %v6333_v0 = vsub.s32 127, %v6317_v36  ;;  %v6538_v34 = vshra.s32 %v10785_v47, 16 }
 0x831   : > { %v6272_v29 = vpop.xlane.xlu2 %6271 }
 0x832   : > { %v10790_v50 = vsel %vm6659_vm7, %v10502_v59, %v6333_v0  ;;  %v6273_v11 = vcvt.f32.s32 %v6272_v29  ;;  %v10792_v42 = vcvt.s32.f32 %v6538_v34 }
 0x834   : > { %v6276_v53 = vadd.s32 %v6275_v62, %v6273_v11  ;;  %6541 = vmax.xlane.f32.xlu0 %v10792_v42  ;;  %v6302_v11 = vcvt.f32.s32 %v10628_v30 }
 0x836   : > { %v6318_v39 = vand.u32 127, %v6276_v53  ;;  %vm6350_vm8 = vcmp.eq.s32.totalorder %v10509_v56, %v6276_v53 }
 0x837   : > { %v10797_v31 = vsel %vm6350_vm8, 2147483648, %v10509_v56 }
 0x838   : > { %v6334_v37 = vsub.s32 127, %v6318_v39  ;;  %v6552_v14 = vshra.s32 %v10797_v31, 16 }
 0x83a   : > { %v10800_v12 = vcvt.s32.f32 %v6552_v14  ;;  %v10804_v59 = vsel %vm6659_vm7, %v10514_v40, %v6334_v37  ;;  %v6303_v37 = vshll.u32 %v6302_v11, 16 }
 0x83c   : > { %6555 = vmax.xlane.f32.xlu1 %v10800_v12 }
 0x840   : > { %v6286_v20 = vpop.xlane.xlu0 %6285 }
 0x841   : > { %v6287_v15 = vcvt.f32.s32 %v6286_v20 }
 0x843   : > { %v6290_v36 = vadd.s32 %v6289_v43, %v6287_v15  ;;  %v6383_v43 = vand.u32 65535, %v10643_v28 }
 0x845   : > { %v6319_v0 = vand.u32 127, %v6290_v36  ;;  %vm6351_vm9 = vcmp.eq.s32.totalorder %v10523_v19, %v6290_v36 }
 0x846   : > { %v10810_v56 = vsel %vm6351_vm9, 2147483648, %v10523_v19  ;;  %v6371_v19 = vcvt.s32.f32 %v6369_v16 }
 0x847   : > { %v6335_v34 = vsub.s32 127, %v6319_v0  ;;  %v6566_v29 = vshra.s32 %v10810_v56, 16 }
 0x849   : > { %v10813_v62 = vcvt.s32.f32 %v6566_v29  ;;  %v10817_v40 = vsel %vm6659_vm7, %v10528_v61, %v6335_v34  ;;  %v6385_v34 = vcvt.s32.f32 %v6383_v43  ;;  %v6397_v29 = vand.u32 65535, %v10660_v52 }
 0x84b   : > { %6569 = vmax.xlane.f32.xlu2 %v10813_v62 }
 0x850   : > { %v10822_v53 = vpop.xlane.xlu2 %6373  ;;  %v6300_v39 = vpop.xlane.xlu1 %6299 }
 0x851   : > { %v6301_v14 = vcvt.f32.s32 %v6300_v39  ;;  %vm6375_vm10 = vcmp.eq.f32.partialorder %v10634_v63, %v10822_v53 }
 0x852   : > { %v6376_v25 = vsel %vm6375_vm10, %v6371_v19, -inf  ;;  %v6425_v19 = vand.u32 65535, %v10681_v41  ;;  %v6453_v41 = vand.u32 65535, %v10707_v44  ;;  %v6481_v44 = vand.u32 65535, %v10733_v51 }
 0x853   : > { %v6304_v20 = vadd.s32 %v6303_v37, %v6301_v14  ;;  %6377 = vmax.xlane.f32.xlu0 %v6376_v25  ;;  %v6509_v51 = vand.u32 65535, %v10759_v8  ;;  %v6537_v8 = vand.u32 65535, %v10785_v47  ;;  %v6565_v47 = vand.u32 65535, %v10810_v56 }
 0x854   : > { %v6427_v52 = vcvt.s32.f32 %v6425_v19  ;;  %v6455_v43 = vcvt.s32.f32 %v6453_v41  ;;  %vm6676_vm10 = vcmask 31744  }
 0x855   : > { %v6320_v61 = vand.u32 127, %v6304_v20  ;;  %vm6352_vm11 = vcmp.eq.s32.totalorder %v10544_v9, %v6304_v20 }
 0x856   : > { %v10829_v32 = vsel %vm6352_vm11, 2147483648, %v10544_v9  ;;  %v6411_v9 = vand.u32 65535, %v10657_v48  ;;  %vm6693_vm11 = vcmask 39936  }
 0x857   : > { %v6336_v30 = vsub.s32 127, %v6320_v61  ;;  %v6580_v15 = vshra.s32 %v10829_v32, 16  ;;  %v6579_v56 = vand.u32 65535, %v10829_v32 }
 0x858   : > { %v10834_v0 = vpop.xlane.xlu1 %6387  ;;  %v6413_v11 = vcvt.s32.f32 %v6411_v9 }
 0x859   : > { %v10832_v36 = vcvt.s32.f32 %v6580_v15  ;;  %v10838_v63 = vsel %vm6659_vm7, %v10539_v55, %v6336_v30  ;;  %vm6389_vm12 = vcmp.eq.f32.partialorder %v10650_v7, %v10834_v0  ;;  %v6399_v55 = vcvt.s32.f32 %v6397_v29 }
 0x85a   : > { %v6390_v28 = vsel %vm6389_vm12, %v6385_v34, -inf  ;;  %vm6710_vm12 = vcmask 64512  }
 0x85b   : > { %6583 = vmax.xlane.f32.xlu0 %v10832_v36  ;;  %6391 = vmax.xlane.f32.xlu1 %v6390_v28  ;;  %v6483_v28 = vcvt.s32.f32 %v6481_v44 }
 0x860   : > { %v10845_v16 = vpop.xlane.xlu0 %6415  ;;  %v10847_v39 = vpop.xlane.xlu2 %6401 }
 0x861   : > { %vm6417_vm7 = vcmp.eq.f32.partialorder %v10672_v5, %v10845_v16  ;;  %vm6403_vm13 = vcmp.eq.f32.partialorder %v10674_v18, %v10847_v39  ;;  %v6439_v5 = vand.u32 65535, %v10694_v45  ;;  %v6467_v45 = vand.u32 65535, %v10720_v6 }
 0x862   : > { %v6418_v7 = vsel %vm6417_vm7, %v6413_v11, -inf  ;;  %v6404_v37 = vsel %vm6403_vm13, %v6399_v55, -inf  ;;  %v6495_v6 = vand.u32 65535, %v10746_v58  ;;  %v6511_v55 = vcvt.s32.f32 %v6509_v51 }
 0x863   : > { %6419 = vmax.xlane.f32.xlu0 %v6418_v7  ;;  %6405 = vmax.xlane.f32.xlu2 %v6404_v37  ;;  %v6441_v20 = vcvt.s32.f32 %v6439_v5  ;;  %v6469_v15 = vcvt.s32.f32 %v6467_v45  ;;  %v6523_v58 = vand.u32 65535, %v10772_v35  ;;  %v6551_v35 = vand.u32 65535, %v10797_v31 }
 0x864   : > { %v6497_v29 = vcvt.s32.f32 %v6495_v6  ;;  %v6380_v31 = vcvt.f32.s32 %v10822_v53  ;;  %v6408_v51 = vcvt.f32.s32 %v10847_v39 }
 0x865   : > { %v6525_v19 = vcvt.s32.f32 %v6523_v58  ;;  %v6553_v5 = vcvt.s32.f32 %v6551_v35 }
 0x867   : > { %v10854_v48 = vpop.xlane.xlu1 %6429 }
 0x868   : > { %vm6431_vm14 = vcmp.eq.f32.partialorder %v10688_v49, %v10854_v48 }
 0x869   : > { %v6432_v14 = vsel %vm6431_vm14, %v6427_v52, -inf  ;;  %v6539_v52 = vcvt.s32.f32 %v6537_v8 }
 0x86a   : > { %6433 = vmax.xlane.f32.xlu1 %v6432_v14 }
 0x86f   : > { %v10859_v25 = vpop.xlane.xlu2 %6443 }
 0x870   : > { %vm6445_vm15 = vcmp.eq.f32.partialorder %v10701_v3, %v10859_v25 }
 0x871   : > { %v6446_v18 = vsel %vm6445_vm15, %v6441_v20, -inf }
 0x872   : > { %6447 = vmax.xlane.f32.xlu2 %v6446_v18  ;;  %v6567_v18 = vcvt.s32.f32 %v6565_v47 }
 0x877   : > { %v10864_v61 = vpop.xlane.xlu0 %6457 }
 0x878   : > { %vm6459_vm0 = vcmp.eq.f32.partialorder %v10714_v21, %v10864_v61 }
 0x879   : > { %v6460_v49 = vsel %vm6459_vm0, %v6455_v43, -inf  ;;  %v6381_v43 = vshll.u32 %v6380_v31, 16 }
 0x87a   : > { %6461 = vmax.xlane.f32.xlu0 %v6460_v49 }
 0x87f   : > { %v10869_v30 = vpop.xlane.xlu1 %6471 }
 0x880   : > { %vm6473_vm1 = vcmp.eq.f32.partialorder %v10727_v4, %v10869_v30 }
 0x881   : > { %v6474_v3 = vsel %vm6473_vm1, %v6469_v15, -inf  ;;  %v6394_v15 = vcvt.f32.s32 %v10834_v0 }
 0x882   : > { %6475 = vmax.xlane.f32.xlu1 %v6474_v3  ;;  %v6581_v3 = vcvt.s32.f32 %v6579_v56  ;;  %v6450_v56 = vcvt.f32.s32 %v10859_v25 }
 0x883   : > { %v6395_v44 = vshll.u32 %v6394_v15, 16 }
 0x887   : > { %v10874_v34 = vpop.xlane.xlu2 %6485 }
 0x888   : > { %vm6487_vm2 = vcmp.eq.f32.partialorder %v10740_v17, %v10874_v34 }
 0x889   : > { %v6488_v21 = vsel %vm6487_vm2, %v6483_v28, -inf }
 0x88a   : > { %6489 = vmax.xlane.f32.xlu2 %v6488_v21 }
 0x88f   : > { %v10879_v9 = vpop.xlane.xlu0 %6499 }
 0x890   : > { %vm6501_vm3 = vcmp.eq.f32.partialorder %v10753_v22, %v10879_v9 }
 0x891   : > { %v6502_v4 = vsel %vm6501_vm3, %v6497_v29, -inf }
 0x892   : > { %6503 = vmax.xlane.f32.xlu0 %v6502_v4  ;;  %v6422_v4 = vcvt.f32.s32 %v10845_v16 }
 0x894   : > { %v6423_v58 = vshll.u32 %v6422_v4, 16 }
 0x897   : > { %v10884_v11 = vpop.xlane.xlu1 %6513 }
 0x898   : > { %vm6515_vm4 = vcmp.eq.f32.partialorder %v10766_v24, %v10884_v11 }
 0x899   : > { %v6516_v17 = vsel %vm6515_vm4, %v6511_v55, -inf }
 0x89a   : > { %6517 = vmax.xlane.f32.xlu1 %v6516_v17 }
 0x89f   : > { %v10889_v7 = vpop.xlane.xlu2 %6527 }
 0x8a0   : > { %vm6529_vm5 = vcmp.eq.f32.partialorder %v10779_v10, %v10889_v7 }
 0x8a1   : > { %v6530_v22 = vsel %vm6529_vm5, %v6525_v19, -inf }
 0x8a2   : > { %6531 = vmax.xlane.f32.xlu2 %v6530_v22  ;;  %v6409_v22 = vshll.u32 %v6408_v51, 16 }
 0x8a7   : > { %v10894_v37 = vpop.xlane.xlu0 %6541 }
 0x8a8   : > { %vm6543_vm6 = vcmp.eq.f32.partialorder %v10792_v42, %v10894_v37 }
 0x8a9   : > { %v6544_v24 = vsel %vm6543_vm6, %v6539_v52, -inf }
 0x8aa   : > { %6545 = vmax.xlane.f32.xlu0 %v6544_v24 }
 0x8af   : > { %v10899_v14 = vpop.xlane.xlu1 %6555 }
 0x8b0   : > { %vm6557_vm8 = vcmp.eq.f32.partialorder %v10800_v12, %v10899_v14 }
 0x8b1   : > { %v6558_v10 = vsel %vm6557_vm8, %v6553_v5, -inf  ;;  %v6436_v5 = vcvt.f32.s32 %v10854_v48 }
 0x8b2   : > { %6559 = vmax.xlane.f32.xlu1 %v6558_v10 }
 0x8be   : > { %v10904_v20 = vpop.xlane.xlu2 %6569 }
 0x8bf   : > { %vm6571_vm9 = vcmp.eq.f32.partialorder %v10813_v62, %v10904_v20 }
 0x8c0   : > { %v6572_v42 = vsel %vm6571_vm9, %v6567_v18, -inf }
 0x8c1   : > { %6573 = vmax.xlane.f32.xlu2 %v6572_v42  ;;  %v6437_v42 = vshll.u32 %v6436_v5, 16 }
 0x8c6   : > { %v6378_v41 = vpop.xlane.xlu0 %6377 }
 0x8c7   : > { %v6379_v12 = vcvt.f32.s32 %v6378_v41 }
 0x8c9   : > { %v6382_v49 = vadd.s32 %v6381_v43, %v6379_v12 }
 0x8cb   : > { %v6593_v45 = vand.u32 127, %v6382_v49 }
 0x8cd   : > { %v6609_v62 = vsub.s32 127, %v6593_v45 }
 0x8ce   : > { %v10918_v53 = vpop.xlane.xlu0 %6583  ;;  %v6392_v0 = vpop.xlane.xlu1 %6391 }
 0x8cf   : > { %v6677_v32 = vsel %vm6676_vm10, %v10632_v26, %v6609_v62  ;;  %vm6585_vm7 = vcmp.eq.f32.partialorder %v10832_v36, %v10918_v53  ;;  %v6393_v6 = vcvt.f32.s32 %v6392_v0 }
 0x8d0   : > { %v6694_v28 = vsel %vm6693_vm11, %v6677_v32, 0  ;;  %v6586_v21 = vsel %vm6585_vm7, %v6581_v3, -inf  ;;  %v6451_v3 = vshll.u32 %v6450_v56, 16 }
 0x8d1   : > { %6711 = vst.msk [vmem:[%s10916_s16] sm:$0xff] %vm6710_vm12, %v6694_v28  ;;  %6587 = vmax.xlane.f32.xlu0 %v6586_v21  ;;  %v6396_v29 = vadd.s32 %v6395_v44, %v6393_v6  ;;  %v6464_v44 = vcvt.f32.s32 %v10864_v61 }
 0x8d3   : > { %v6594_v55 = vand.u32 127, %v6396_v29  ;;  %v6465_v6 = vshll.u32 %v6464_v44, 16 }
 0x8d5   : > { %v6610_v26 = vsub.s32 127, %v6594_v55  ;;  %v6478_v55 = vcvt.f32.s32 %v10869_v30 }
 0x8d6   : > { %v6420_v17 = vpop.xlane.xlu0 %6419  ;;  %v6406_v36 = vpop.xlane.xlu2 %6405 }
 0x8d7   : > { %v6421_v19 = vcvt.f32.s32 %v6420_v17  ;;  %v6678_v8 = vsel %vm6676_vm10, %v10648_v1, %v6610_v26  ;;  %v6407_v52 = vcvt.f32.s32 %v6406_v36 }
 0x8d8   : > { %v6695_v24 = vsel %vm6693_vm11, %v6678_v8, 0  ;;  %v6492_v8 = vcvt.f32.s32 %v10874_v34 }
 0x8d9   : > { %v6424_v35 = vadd.s32 %v6423_v58, %v6421_v19  ;;  %6712 = vst.msk [vmem:[%s10916_s16 + $0x8] sm:$0xff] %vm6710_vm12, %v6695_v24  ;;  %v6410_v16 = vadd.s32 %v6409_v22, %v6407_v52  ;;  %v6479_v58 = vshll.u32 %v6478_v55, 16 }
 0x8db   : > { %v6596_v39 = vand.u32 127, %v6424_v35  ;;  %v6595_v10 = vand.u32 127, %v6410_v16  ;;  %v6493_v35 = vshll.u32 %v6492_v8, 16  ;;  %v6576_v8 = vcvt.f32.s32 %v10904_v20 }
 0x8dd   : > { %v6612_v47 = vsub.s32 127, %v6596_v39  ;;  %v6434_v18 = vpop.xlane.xlu1 %6433  ;;  %v6611_v31 = vsub.s32 127, %v6595_v10  ;;  %v6506_v10 = vcvt.f32.s32 %v10879_v9 }
 0x8de   : > { %v6435_v41 = vcvt.f32.s32 %v6434_v18 }
 0x8df   : > { %v6680_v1 = vsel %vm6676_vm10, %v10666_v46, %v6612_v47  ;;  %v6679_v43 = vsel %vm6676_vm10, %v10670_v33, %v6611_v31 }
 0x8e0   : > { %v6697_v48 = vsel %vm6693_vm11, %v6680_v1, 0  ;;  %v6438_v12 = vadd.s32 %v6437_v42, %v6435_v41  ;;  %v6696_v49 = vsel %vm6693_vm11, %v6679_v43, 0  ;;  %v6507_v42 = vshll.u32 %v6506_v10, 16 }
 0x8e1   : > { %6714 = vst.msk [vmem:[%s10916_s16 + $0x18] sm:$0xff] %vm6710_vm12, %v6697_v48  ;;  %v6520_v43 = vcvt.f32.s32 %v10884_v11 }
 0x8e2   : > { %6713 = vst.msk [vmem:[%s10916_s16 + $0x10] sm:$0xff] %vm6710_vm12, %v6696_v49  ;;  %v6597_v45 = vand.u32 127, %v6438_v12 }
 0x8e3   : > { %v6521_v49 = vshll.u32 %v6520_v43, 16 }
 0x8e4   : > { %v6613_v15 = vsub.s32 127, %v6597_v45 }
 0x8e5   : > { %v6448_v62 = vpop.xlane.xlu2 %6447 }
 0x8e6   : > { %v6681_v46 = vsel %vm6676_vm10, %v10686_v2, %v6613_v15  ;;  %v6449_v33 = vcvt.f32.s32 %v6448_v62  ;;  %v6534_v62 = vcvt.f32.s32 %v10889_v7 }
 0x8e7   : > { %v6698_v32 = vsel %vm6693_vm11, %v6681_v46, 0 }
 0x8e8   : > { %6715 = vst.msk [vmem:[%s10916_s16 + $0x20] sm:$0xff] %vm6710_vm12, %v6698_v32  ;;  %v6452_v0 = vadd.s32 %v6451_v3, %v6449_v33  ;;  %v6535_v33 = vshll.u32 %v6534_v62, 16 }
 0x8ea   : > { %v6598_v28 = vand.u32 127, %v6452_v0 }
 0x8ec   : > { %v6614_v25 = vsub.s32 127, %v6598_v28  ;;  %v6548_v28 = vcvt.f32.s32 %v10894_v37 }
 0x8ed   : > { %v6462_v21 = vpop.xlane.xlu0 %6461 }
 0x8ee   : > { %v6682_v29 = vsel %vm6676_vm10, %v10699_v38, %v6614_v25  ;;  %v6463_v4 = vcvt.f32.s32 %v6462_v21 }
 0x8ef   : > { %v6699_v51 = vsel %vm6693_vm11, %v6682_v29, 0 }
 0x8f0   : > { %6716 = vst.msk [vmem:[%s10916_s16 + $0x28] sm:$0xff] %vm6710_vm12, %v6699_v51  ;;  %v6466_v2 = vadd.s32 %v6465_v6, %v6463_v4  ;;  %v6549_v6 = vshll.u32 %v6548_v28, 16 }
 0x8f2   : > { %v6599_v26 = vand.u32 127, %v6466_v2  ;;  %v6562_v2 = vcvt.f32.s32 %v10899_v14 }
 0x8f4   : > { %v6615_v17 = vsub.s32 127, %v6599_v26 }
 0x8f5   : > { %v6476_v61 = vpop.xlane.xlu1 %6475 }
 0x8f6   : > { %v6683_v36 = vsel %vm6676_vm10, %v10712_v60, %v6615_v17  ;;  %v6477_v19 = vcvt.f32.s32 %v6476_v61  ;;  %v6563_v17 = vshll.u32 %v6562_v2, 16 }
 0x8f7   : > { %v6700_v22 = vsel %vm6693_vm11, %v6683_v36, 0 }
 0x8f8   : > { %6717 = vst.msk [vmem:[%s10916_s16 + $0x30] sm:$0xff] %vm6710_vm12, %v6700_v22  ;;  %v6480_v38 = vadd.s32 %v6479_v58, %v6477_v19 }
 0x8fa   : > { %v6600_v52 = vand.u32 127, %v6480_v38 }
 0x8fc   : > { %v6616_v24 = vsub.s32 127, %v6600_v52 }
 0x8fd   : > { %v6490_v30 = vpop.xlane.xlu2 %6489 }
 0x8fe   : > { %v6684_v5 = vsel %vm6676_vm10, %v10725_v54, %v6616_v24  ;;  %v6491_v16 = vcvt.f32.s32 %v6490_v30 }
 0x8ff   : > { %v6701_v39 = vsel %vm6693_vm11, %v6684_v5, 0 }
 0x900   : > { %6718 = vst.msk [vmem:[%s10916_s16 + $0x38] sm:$0xff] %vm6710_vm12, %v6701_v39  ;;  %v6494_v60 = vadd.s32 %v6493_v35, %v6491_v16 }
 0x902   : > { %v6601_v47 = vand.u32 127, %v6494_v60 }
 0x904   : > { %v6617_v18 = vsub.s32 127, %v6601_v47 }
 0x905   : > { %v6504_v34 = vpop.xlane.xlu0 %6503 }
 0x906   : > { %v6685_v31 = vsel %vm6676_vm10, %v10738_v27, %v6617_v18  ;;  %v6505_v41 = vcvt.f32.s32 %v6504_v34 }
 0x907   : > { %v6702_v1 = vsel %vm6693_vm11, %v6685_v31, 0 }
 0x908   : > { %6719 = vst.msk [vmem:[%s10916_s16 + $0x40] sm:$0xff] %vm6710_vm12, %v6702_v1  ;;  %v6508_v54 = vadd.s32 %v6507_v42, %v6505_v41 }
 0x90a   : > { %v6602_v48 = vand.u32 127, %v6508_v54 }
 0x90c   : > { %v6618_v12 = vsub.s32 127, %v6602_v48 }
 0x90d   : > { %v6518_v9 = vpop.xlane.xlu1 %6517 }
 0x90e   : > { %v6686_v56 = vsel %vm6676_vm10, %v10751_v23, %v6618_v12  ;;  %v6519_v45 = vcvt.f32.s32 %v6518_v9 }
 0x90f   : > { %v6703_v15 = vsel %vm6693_vm11, %v6686_v56, 0 }
 0x910   : > { %6720 = vst.msk [vmem:[%s10916_s16 + $0x48] sm:$0xff] %vm6710_vm12, %v6703_v15  ;;  %v6522_v27 = vadd.s32 %v6521_v49, %v6519_v45 }
 0x912   : > { %v6603_v3 = vand.u32 127, %v6522_v27 }
 0x914   : > { %v6619_v46 = vsub.s32 127, %v6603_v3 }
 0x915   : > { %v6532_v11 = vpop.xlane.xlu2 %6531 }
 0x916   : > { %v6687_v32 = vsel %vm6676_vm10, %v10764_v57, %v6619_v46  ;;  %v6533_v0 = vcvt.f32.s32 %v6532_v11 }
 0x917   : > { %v6704_v44 = vsel %vm6693_vm11, %v6687_v32, 0 }
 0x918   : > { %6721 = vst.msk [vmem:[%s10916_s16 + $0x50] sm:$0xff] %vm6710_vm12, %v6704_v44  ;;  %v6536_v23 = vadd.s32 %v6535_v33, %v6533_v0 }
 0x91a   : > { %v6604_v25 = vand.u32 127, %v6536_v23 }
 0x91c   : > { %v6620_v21 = vsub.s32 127, %v6604_v25 }
 0x91d   : > { %v6546_v7 = vpop.xlane.xlu0 %6545 }
 0x91e   : > { %v6688_v29 = vsel %vm6676_vm10, %v10777_v13, %v6620_v21  ;;  %v6547_v4 = vcvt.f32.s32 %v6546_v7 }
 0x91f   : > { %v6705_v51 = vsel %vm6693_vm11, %v6688_v29, 0 }
 0x920   : > { %6722 = vst.msk [vmem:[%s10916_s16 + $0x58] sm:$0xff] %vm6710_vm12, %v6705_v51  ;;  %v6550_v57 = vadd.s32 %v6549_v6, %v6547_v4 }
 0x922   : > { %v6605_v55 = vand.u32 127, %v6550_v57 }
 0x924   : > { %v6621_v26 = vsub.s32 127, %v6605_v55 }
 0x925   : > { %v6560_v37 = vpop.xlane.xlu1 %6559 }
 0x926   : > { %v6689_v61 = vsel %vm6676_vm10, %v10790_v50, %v6621_v26  ;;  %v6561_v58 = vcvt.f32.s32 %v6560_v37  ;;  %v6577_v50 = vshll.u32 %v6576_v8, 16 }
 0x927   : > { %v6706_v36 = vsel %vm6693_vm11, %v6689_v61, 0 }
 0x928   : > { %6723 = vst.msk [vmem:[%s10916_s16 + $0x60] sm:$0xff] %vm6710_vm12, %v6706_v36  ;;  %v6564_v13 = vadd.s32 %v6563_v17, %v6561_v58 }
 0x92a   : > { %v6606_v19 = vand.u32 127, %v6564_v13 }
 0x92c   : > { %v6622_v22 = vsub.s32 127, %v6606_v19 }
 0x92e   : > { %v6690_v38 = vsel %vm6676_vm10, %v10804_v59, %v6622_v22  ;;  %v6590_v59 = vcvt.f32.s32 %v10918_v53 }
 0x92f   : > { %v6707_v14 = vsel %vm6693_vm11, %v6690_v38, 0 }
 0x930   : > { %6724 = vst.msk [vmem:[%s10916_s16 + $0x68] sm:$0xff] %vm6710_vm12, %v6707_v14  ;;  %v6591_v10 = vshll.u32 %v6590_v59, 16 }
 0x934   : > { %v6574_v52 = vpop.xlane.xlu2 %6573 }
 0x935   : > { %v6575_v24 = vcvt.f32.s32 %v6574_v52 }
 0x937   : > { %v6578_v30 = vadd.s32 %v6577_v50, %v6575_v24 }
 0x939   : > { %v6607_v35 = vand.u32 127, %v6578_v30 }
 0x93b   : > { %v6623_v5 = vsub.s32 127, %v6607_v35 }
 0x93d   : > { %v6691_v16 = vsel %vm6676_vm10, %v10817_v40, %v6623_v5 }
 0x93e   : > { %v6708_v39 = vsel %vm6693_vm11, %v6691_v16, 0 }
 0x93f   : > { %6725 = vst.msk [vmem:[%s10916_s16 + $0x70] sm:$0xff] %vm6710_vm12, %v6708_v39 }
 0x944   : > { %v6588_v60 = vpop.xlane.xlu0 %6587 }
 0x945   : > { %v6589_v47 = vcvt.f32.s32 %v6588_v60 }
 0x947   : > { %v6592_v20 = vadd.s32 %v6591_v10, %v6589_v47 }
 0x949   : > { %v6608_v18 = vand.u32 127, %v6592_v20 }
 0x94b   : > { %v6624_v34 = vsub.s32 127, %v6608_v18 }
 0x94d   : > { %v6692_v42 = vsel %vm6676_vm10, %v10838_v63, %v6624_v34 }
 0x94e   : > { %v6709_v31 = vsel %vm6693_vm11, %v6692_v42, 0 }
 0x94f   : > { %6726 = vst.msk [vmem:[%s10916_s16 + $0x78] sm:$0xff] %vm6710_vm12, %v6709_v31 }
 0x950 PF: > { %p19_p4 = scmp.ge.s32.totalorder %s7890_s19, 4   ;;  %s11189_s24 = smov %s7762_s25 }
 0x951   : > { %s11190_s25 = smov %s7766_s26  ;;  %s11191_s26 = smov %s7899_s22 }
 0x952   : > { %s11192_s27 = smov %s7890_s19  ;;  %21 = sbr.rel (!%p19_p4) target bundleno = 5 (0x5), region = 104 }
 0x957   :  { %6749 = vsyncpa [#allocation3], 1 }
 0x958   :  { %6751 = vsyncpa [#allocation3 + $0x1], 1 }
 0x959   :  { %6752 = vsyncpa [#allocation5], 1 }
 0x95a   :  { %6753 = vsyncpa [#allocation8], 1 }

</bundles_post_ra>
